<compile_context>
chip_gen: v6e
topology: v6e:2x2x1
jax: 0.10.0
libtpu: 0.0.40
codegen_flags: <defaults>
</compile_context>

<pallas_src>
import functools

import jax
import jax.numpy as jnp
from jax.experimental import pallas as pl
from jax.experimental.pallas import tpu as pltpu

_LANE = 128
_BN_EPS = 1e-5
_LN_EPS = 1e-5
_VMEM_LIMIT = 32 * 1024 * 1024


def _round_up(x, m):
    return ((x + m - 1) // m) * m


def _pad_axes(a, targets):
    pads = [(0, int(t) - int(s)) for s, t in zip(a.shape, targets)]
    return jnp.pad(a, pads)


# ----------------------------------------------------------------------------
# Kernel A: local representation (depthwise 3x3 + folded BN + SiLU, then 1x1).
# ----------------------------------------------------------------------------
def _local_rep_kernel(x_ref, w9_ref, b1_ref, wpw_ref, o_ref):
    # x_ref:   (1, H+2, W+2, Cp) spatially padded, channel-padded input
    # w9_ref:  (9, Cp)           depthwise taps (dy*3+dx), BN scale folded in
    # b1_ref:  (1, Cp)           folded BN bias
    # wpw_ref: (Cp, Dp)          1x1 projection to attn_dim
    # o_ref:   (1, H, W, Dp)
    Hp, Wp, Cp = x_ref.shape[1], x_ref.shape[2], x_ref.shape[3]
    H, W = Hp - 2, Wp - 2
    Dp = wpw_ref.shape[1]

    x = x_ref[0]            # (Hp, Wp, Cp)
    w9 = w9_ref[...]        # (9, Cp)

    # Depthwise 3x3, regrouped per column offset: the dy slices are on a free
    # (non lane/sublane) dim, and only the 2 final column shifts touch sublanes.
    cols = []
    for dx in range(3):
        a = jnp.zeros((H, Wp, Cp), jnp.float32)
        for dy in range(3):
            wt = w9[dy * 3 + dx:dy * 3 + dx + 1, :]          # (1, Cp)
            a = a + x[dy:dy + H] * wt
        cols.append(a)
    y = cols[0][:, 0:W, :] + cols[1][:, 1:W + 1, :] + cols[2][:, 2:W + 2, :]

    y = y + b1_ref[...]                                       # folded BatchNorm (eval)
    y = y * jax.nn.sigmoid(y)                                 # SiLU

    # 1x1 conv as one lane-dense MXU matmul.
    fm = jnp.dot(y.reshape(H * W, Cp), wpw_ref[...],
                 preferred_element_type=jnp.float32)
    o_ref[0] = fm.reshape(H, W, Dp)
    # TODO(synk): halo-tiled spatial blocking (grid over H) for large resolutions / v7x VMEM.


# ----------------------------------------------------------------------------
# Kernel B: one TransformerEncoder (pre-LN MHA + pre-LN FFN), one slab per step.
# ----------------------------------------------------------------------------
def _transformer_kernel(x_ref, wqkv_ref, wo_ref, w1_ref, w2_ref, vec_ref, b1_ref,
                        o_ref, *, heads, hd, d_real, scale, eps):
    # x_ref:   (1, S, Dp)      vec_ref rows: [ln1_g, ln1_b, ln2_g, ln2_b, bq, bk, bv, bo, b2]
    # wqkv_ref:(Dp, 3*Dp)      wo_ref: (Dp, Dp)   w1_ref: (Dp, Fp)   w2_ref: (Fp, Dp)
    # b1_ref:  (1, Fp)         o_ref:  (1, S, Dp)
    S = x_ref.shape[1]
    Dp = x_ref.shape[2]

    x = x_ref[0]                 # (S, Dp)
    vec = vec_ref[...]           # (9, Dp)

    def row(i):
        return vec[i:i + 1, :]   # (1, Dp)

    def layer_norm(v, g, b):
        mean = jnp.sum(v, axis=-1, keepdims=True) / d_real
        var = jnp.sum(v * v, axis=-1, keepdims=True) / d_real - mean * mean
        inv = jax.lax.rsqrt(var + eps)
        return (v - mean) * inv * g + b

    # ---- multi-head self attention ----
    h = layer_norm(x, row(0), row(1))
    wqkv = wqkv_ref[...]
    q = jnp.dot(h, wqkv[:, 0:Dp], preferred_element_type=jnp.float32) + row(4)
    k = jnp.dot(h, wqkv[:, Dp:2 * Dp], preferred_element_type=jnp.float32) + row(5)
    v = jnp.dot(h, wqkv[:, 2 * Dp:3 * Dp], preferred_element_type=jnp.float32) + row(6)
    q = q * scale                # note: scale = dim_head**-0.5 (PyTorch semantics)

    lane = jax.lax.broadcasted_iota(jnp.int32, (1, Dp), 1)
    attn_out = jnp.zeros((S, Dp), jnp.float32)
    for head in range(heads):
        lo = head * hd
        m = ((lane >= lo) & (lane < lo + hd)).astype(jnp.float32)   # (1, Dp) head mask
        # lane-dense per-head score matmul: masked q zeroes other heads' channels.
        s = jax.lax.dot_general(q * m, k, (((1,), (1,)), ((), ())),
                                preferred_element_type=jnp.float32)  # (S, S)
        s = s - jnp.max(s, axis=-1, keepdims=True)
        p = jnp.exp(s)
        p = p / jnp.sum(p, axis=-1, keepdims=True)
        attn_out = attn_out + jnp.dot(p, v * m, preferred_element_type=jnp.float32)

    proj = jnp.dot(attn_out, wo_ref[...], preferred_element_type=jnp.float32) + row(7)
    x = x + proj

    # ---- feed-forward ----
    h2 = layer_norm(x, row(2), row(3))
    f = jnp.dot(h2, w1_ref[...], preferred_element_type=jnp.float32) + b1_ref[...]
    f = f * jax.nn.sigmoid(f)                                        # SiLU
    y = jnp.dot(f, w2_ref[...], preferred_element_type=jnp.float32) + row(8)
    o_ref[0] = x + y


# ----------------------------------------------------------------------------
# Kernel C: final LN + conv_proj(1x1+BN+SiLU) + fusion(1x1+BN+SiLU) + residual.
# ----------------------------------------------------------------------------
def _proj_fusion_kernel(g_ref, fm_ref, res_ref, lnf_ref, wproj_ref, bproj_ref,
                        wffm_ref, wfpr_ref, bfus_ref, o_ref, *, d_real, eps):
    TH, W, Dp = g_ref.shape[1], g_ref.shape[2], g_ref.shape[3]
    Cp = o_ref.shape[3]
    M = TH * W

    g = g_ref[0].reshape(M, Dp)
    fm = fm_ref[0].reshape(M, Dp)
    res = res_ref[0].reshape(M, Cp)

    # final LayerNorm of global_rep (channel dim is unchanged by folding).
    mean = jnp.sum(g, axis=-1, keepdims=True) / d_real
    var = jnp.sum(g * g, axis=-1, keepdims=True) / d_real - mean * mean
    gl = (g - mean) * jax.lax.rsqrt(var + eps) * lnf_ref[0:1, :] + lnf_ref[1:2, :]

    # conv_proj: 1x1 + folded BN + SiLU
    p = jnp.dot(gl, wproj_ref[...], preferred_element_type=jnp.float32) + bproj_ref[...]
    p = p * jax.nn.sigmoid(p)

    # fusion: concat(fm_conv, proj) @ Wfus expressed as two lane-dense matmuls.
    f = (jnp.dot(fm, wffm_ref[...], preferred_element_type=jnp.float32)
         + jnp.dot(p, wfpr_ref[...], preferred_element_type=jnp.float32)
         + bfus_ref[...])
    f = f * jax.nn.sigmoid(f)

    o_ref[0] = (f + res).reshape(TH, W, Cp)


# ----------------------------------------------------------------------------
# Wrapper
# ----------------------------------------------------------------------------
@functools.partial(jax.jit, static_argnames=("heads", "dim_head", "patch_h", "patch_w"))
def mobilevit_block_v3_forward(x_nchw, params, *, heads, dim_head, patch_h, patch_w):
    N, Cin, H, W = x_nchw.shape
    D = params["pw_w"].shape[0]                    # attn_dim
    Cp = _round_up(Cin, _LANE)
    Dp = _round_up(D, _LANE)

    assert H % patch_h == 0 and W % patch_w == 0
    # TODO(synk): bilinear resize when H/W are not multiples of the patch size is not implemented.

    # --- single NCHW -> NHWC transpose; channels zero-padded to lane width ---
    x_nhwc = jnp.transpose(x_nchw, (0, 2, 3, 1)).astype(jnp.float32)
    res_p = _pad_axes(x_nhwc, (N, H, W, Cp))                       # residual (N,H,W,Cp)
    x_spad = jnp.pad(res_p, ((0, 0), (1, 1), (1, 1), (0, 0)))      # halo for 3x3 depthwise

    # --- local_rep params: fold BN scale into depthwise taps ---
    s1 = params["bn1_g"] / jnp.sqrt(params["bn1_v"] + _BN_EPS)
    b1 = params["bn1_b"] - params["bn1_m"] * s1
    w9 = jnp.transpose(params["dw_w"] * s1[:, None, None], (1, 2, 0)).reshape(9, Cin)
    w9 = _pad_axes(w9, (9, Cp))
    b1p = _pad_axes(b1.reshape(1, Cin), (1, Cp))
    wpw = _pad_axes(jnp.transpose(params["pw_w"]), (Cp, Dp))       # (Cin,D) -> (Cp,Dp)

    Hp, Wp = H + 2, W + 2
    fm = pl.pallas_call(
        _local_rep_kernel,
        grid=(N,),
        in_specs=[pl.BlockSpec((1, Hp, Wp, Cp), lambda n: (n, 0, 0, 0)),
                  pl.BlockSpec((9, Cp), lambda n: (0, 0)),
                  pl.BlockSpec((1, Cp), lambda n: (0, 0)),
                  pl.BlockSpec((Cp, Dp), lambda n: (0, 0))],
        out_specs=pl.BlockSpec((1, H, W, Dp), lambda n: (n, 0, 0, 0)),
        out_shape=jax.ShapeDtypeStruct((N, H, W, Dp), jnp.float32),
        compiler_params=pltpu.CompilerParams(
            dimension_semantics=("parallel",),
            vmem_limit_bytes=_VMEM_LIMIT),
    )(x_spad, w9, b1p, wpw)

    # --- unfolding (pure layout; same token ordering as the PyTorch code) ---
    ph, pw = patch_h, patch_w
    nph, npw = H // ph, W // pw
    S = nph * npw
    BP = N * ph * pw
    patches = fm.reshape(N, nph, ph, npw, pw, Dp).transpose(0, 2, 4, 1, 3, 5)
    patches = patches.reshape(BP, S, Dp)

    # --- global_rep: one Pallas call per TransformerEncoder ---
    hd = D // heads
    scale = float(dim_head) ** -0.5
    for blk in params["blocks"]:
        F = blk["w1"].shape[0]
        Fp = _round_up(F, _LANE)

        wqkv_t = jnp.transpose(blk["wqkv"])                        # (D, 3D)
        wq = _pad_axes(wqkv_t[:, 0:D], (Dp, Dp))
        wk = _pad_axes(wqkv_t[:, D:2 * D], (Dp, Dp))
        wv = _pad_axes(wqkv_t[:, 2 * D:3 * D], (Dp, Dp))
        wqkv_p = jnp.concatenate([wq, wk, wv], axis=1)             # (Dp, 3Dp)
        wo_p = _pad_axes(jnp.transpose(blk["wo"]), (Dp, Dp))
        w1_p = _pad_axes(jnp.transpose(blk["w1"]), (Dp, Fp))
        w2_p = _pad_axes(jnp.transpose(blk["w2"]), (Fp, Dp))
        b1_p = _pad_axes(blk["b1"].reshape(1, F), (1, Fp))

        def padv(v):
            return _pad_axes(v, (Dp,))

        vecs = jnp.stack([padv(blk["ln1_g"]), padv(blk["ln1_b"]),
                          padv(blk["ln2_g"]), padv(blk["ln2_b"]),
                          padv(blk["bqkv"][0:D]), padv(blk["bqkv"][D:2 * D]),
                          padv(blk["bqkv"][2 * D:3 * D]),
                          padv(blk["bo"]), padv(blk["b2"])])       # (9, Dp)

        patches = pl.pallas_call(
            functools.partial(_transformer_kernel, heads=heads, hd=hd, d_real=D,
                              scale=scale, eps=_LN_EPS),
            grid=(BP,),
            in_specs=[pl.BlockSpec((1, S, Dp), lambda b: (b, 0, 0)),
                      pl.BlockSpec((Dp, 3 * Dp), lambda b: (0, 0)),
                      pl.BlockSpec((Dp, Dp), lambda b: (0, 0)),
                      pl.BlockSpec((Dp, Fp), lambda b: (0, 0)),
                      pl.BlockSpec((Fp, Dp), lambda b: (0, 0)),
                      pl.BlockSpec((9, Dp), lambda b: (0, 0)),
                      pl.BlockSpec((1, Fp), lambda b: (0, 0))],
            out_specs=pl.BlockSpec((1, S, Dp), lambda b: (b, 0, 0)),
            out_shape=jax.ShapeDtypeStruct((BP, S, Dp), jnp.float32),
            compiler_params=pltpu.CompilerParams(
                dimension_semantics=("parallel",),
                vmem_limit_bytes=_VMEM_LIMIT),
        )(patches, wqkv_p, wo_p, w1_p, w2_p, vecs, b1_p)

    # --- folding (inverse layout) ---
    g = patches.reshape(N, ph, pw, nph, npw, Dp).transpose(0, 3, 1, 4, 2, 5)
    g = g.reshape(N, H, W, Dp)

    # --- conv_proj / fusion params with folded BN ---
    s_pr = params["bn_proj_g"] / jnp.sqrt(params["bn_proj_v"] + _BN_EPS)
    b_pr = params["bn_proj_b"] - params["bn_proj_m"] * s_pr
    wproj = _pad_axes(jnp.transpose(params["proj_w"]) * s_pr[None, :], (Dp, Cp))
    bproj = _pad_axes(b_pr.reshape(1, Cin), (1, Cp))

    s_fu = params["bn_fus_g"] / jnp.sqrt(params["bn_fus_v"] + _BN_EPS)
    b_fu = params["bn_fus_b"] - params["bn_fus_m"] * s_fu
    wfus = jnp.transpose(params["fus_w"]) * s_fu[None, :]          # (D+Cin, Cin)
    wf_fm = _pad_axes(wfus[0:D], (Dp, Cp))                         # rows for fm_conv channels
    wf_pr = _pad_axes(wfus[D:], (Cp, Cp))                          # rows for conv_proj output
    bfus = _pad_axes(b_fu.reshape(1, Cin), (1, Cp))
    lnf = jnp.stack([_pad_axes(params["lnf_g"], (Dp,)),
                     _pad_axes(params["lnf_b"], (Dp,))])           # (2, Dp)

    TH = 8 if H % 8 == 0 else H
    NB = H // TH
    out_p = pl.pallas_call(
        functools.partial(_proj_fusion_kernel, d_real=D, eps=_LN_EPS),
        grid=(N, NB),
        in_specs=[pl.BlockSpec((1, TH, W, Dp), lambda n, h: (n, h, 0, 0)),
                  pl.BlockSpec((1, TH, W, Dp), lambda n, h: (n, h, 0, 0)),
                  pl.BlockSpec((1, TH, W, Cp), lambda n, h: (n, h, 0, 0)),
                  pl.BlockSpec((2, Dp), lambda n, h: (0, 0)),
                  pl.BlockSpec((Dp, Cp), lambda n, h: (0, 0)),
                  pl.BlockSpec((1, Cp), lambda n, h: (0, 0)),
                  pl.BlockSpec((Dp, Cp), lambda n, h: (0, 0)),
                  pl.BlockSpec((Cp, Cp), lambda n, h: (0, 0)),
                  pl.BlockSpec((1, Cp), lambda n, h: (0, 0))],
        out_specs=pl.BlockSpec((1, TH, W, Cp), lambda n, h: (n, h, 0, 0)),
        out_shape=jax.ShapeDtypeStruct((N, H, W, Cp), jnp.float32),
        compiler_params=pltpu.CompilerParams(
            dimension_semantics=("parallel", "parallel"),
            vmem_limit_bytes=_VMEM_LIMIT),
    )(g, fm, res_p, lnf, wproj, bproj, wf_fm, wf_pr, bfus)

    # NHWC -> NCHW once, drop channel padding.
    return jnp.transpose(out_p[..., :Cin], (0, 3, 1, 2))


# ----------------------------------------------------------------------------
# Pure-JAX reference (mirrors the PyTorch module, f32, highest precision).
# ----------------------------------------------------------------------------
def _reference_forward(x, params, *, heads, dim_head, patch_h, patch_w):
    N, Cin, H, W = x.shape
    D = params["pw_w"].shape[0]
    P = jax.lax.Precision.HIGHEST

    def bn(v, g, b, m, var):
        s = g / jnp.sqrt(var + _BN_EPS)
        return v * s[None, :, None, None] + (b - m * s)[None, :, None, None]

    def silu(v):
        return v * jax.nn.sigmoid(v)

    def ln(v, g, b):
        mu = jnp.mean(v, axis=-1, keepdims=True)
        va = jnp.mean((v - mu) ** 2, axis=-1, keepdims=True)
        return (v - mu) / jnp.sqrt(va + _LN_EPS) * g + b

    # local_rep
    y = jax.lax.conv_general_dilated(
        x, params["dw_w"].reshape(Cin, 1, 3, 3), (1, 1), ((1, 1), (1, 1)),
        dimension_numbers=("NCHW", "OIHW", "NCHW"), feature_group_count=Cin, precision=P)
    y = silu(bn(y, params["bn1_g"], params["bn1_b"], params["bn1_m"], params["bn1_v"]))
    fm = jax.lax.conv_general_dilated(
        y, params["pw_w"].reshape(D, Cin, 1, 1), (1, 1), ((0, 0), (0, 0)),
        dimension_numbers=("NCHW", "OIHW", "NCHW"), precision=P)

    # unfolding
    ph, pw = patch_h, patch_w
    nph, npw = H // ph, W // pw
    S = nph * npw
    pt = fm.reshape(N, D, nph, ph, npw, pw).transpose(0, 3, 5, 2, 4, 1)
    pt = pt.reshape(N * ph * pw, S, D)

    # global_rep
    hd = D // heads
    scale = float(dim_head) ** -0.5
    for blk in params["blocks"]:
        h = ln(pt, blk["ln1_g"], blk["ln1_b"])
        qkv = jnp.matmul(h, blk["wqkv"].T, precision=P) + blk["bqkv"]
        qkv = qkv.reshape(pt.shape[0], S, 3, heads, hd).transpose(0, 3, 2, 1, 4)
        q, k, v = qkv[:, :, 0], qkv[:, :, 1], qkv[:, :, 2]
        q = q * scale
        attn = jnp.matmul(q, jnp.swapaxes(k, -1, -2), precision=P)
        attn = jax.nn.softmax(attn, axis=-1)
        o = jnp.matmul(attn, v, precision=P)
        o = o.transpose(0, 2, 1, 3).reshape(pt.shape[0], S, D)
        o = jnp.matmul(o, blk["wo"].T, precision=P) + blk["bo"]
        pt = pt + o
        h2 = ln(pt, blk["ln2_g"], blk["ln2_b"])
        f = silu(jnp.matmul(h2, blk["w1"].T, precision=P) + blk["b1"])
        pt = pt + jnp.matmul(f, blk["w2"].T, precision=P) + blk["b2"]
    pt = ln(pt, params["lnf_g"], params["lnf_b"])

    # folding
    g = pt.reshape(N, ph * pw, S, D).transpose(0, 3, 2, 1)
    g = g.reshape(N * D * nph, npw, ph, pw).transpose(0, 2, 1, 3).reshape(N, D, H, W)

    # conv_proj + fusion + residual
    pj = jax.lax.conv_general_dilated(
        g, params["proj_w"].reshape(Cin, D, 1, 1), (1, 1), ((0, 0), (0, 0)),
        dimension_numbers=("NCHW", "OIHW", "NCHW"), precision=P)
    pj = silu(bn(pj, params["bn_proj_g"], params["bn_proj_b"],
                 params["bn_proj_m"], params["bn_proj_v"]))
    cat = jnp.concatenate([fm, pj], axis=1)
    fu = jax.lax.conv_general_dilated(
        cat, params["fus_w"].reshape(Cin, Cin + D, 1, 1), (1, 1), ((0, 0), (0, 0)),
        dimension_numbers=("NCHW", "OIHW", "NCHW"), precision=P)
    fu = silu(bn(fu, params["bn_fus_g"], params["bn_fus_b"],
                 params["bn_fus_m"], params["bn_fus_v"]))
    return fu + x


# ----------------------------------------------------------------------------
if __name__ == "__main__":
    N, Cin, H, W = 2, 4, 16, 16
    attn_dim, ffn_multiplier = 32, 2
    heads, dim_head, attn_blocks = 4, 8, 2
    patch_h, patch_w = 2, 2
    ffn_dim = int(ffn_multiplier * attn_dim // 16 * 16)   # 64, as in the PyTorch module

    root = jax.random.PRNGKey(0)
    kit = iter(jax.random.split(root, 64))

    def unif(shape, fan_in):
        b = 1.0 / (fan_in ** 0.5)
        return jax.random.uniform(next(kit), shape, jnp.float32, minval=-b, maxval=b)

    def bn_stats(c, phase):
        i = jnp.arange(c, dtype=jnp.float32)
        return (1.0 + 0.1 * jnp.cos(i + phase),
                0.05 * jnp.sin(i + phase),
                0.1 * jnp.sin(0.7 * i + phase),
                1.0 + 0.2 * jnp.abs(jnp.sin(i + phase)))

    def ln_stats(c, phase):
        i = jnp.arange(c, dtype=jnp.float32)
        return 1.0 + 0.1 * jnp.sin(i + phase), 0.05 * jnp.cos(i + phase)

    bn1 = bn_stats(Cin, 0.1)
    bn_pr = bn_stats(Cin, 0.2)
    bn_fu = bn_stats(Cin, 0.3)

    blocks = []
    for bi in range(attn_blocks):
        lg1, lb1 = ln_stats(attn_dim, 0.4 + bi)
        lg2, lb2 = ln_stats(attn_dim, 0.5 + bi)
        blocks.append(dict(
            ln1_g=lg1, ln1_b=lb1, ln2_g=lg2, ln2_b=lb2,
            wqkv=unif((3 * attn_dim, attn_dim), attn_dim),
            bqkv=unif((3 * attn_dim,), attn_dim),
            wo=unif((attn_dim, attn_dim), attn_dim),
            bo=unif((attn_dim,), attn_dim),
            w1=unif((ffn_dim, attn_dim), attn_dim),
            b1=unif((ffn_dim,), attn_dim),
            w2=unif((attn_dim, ffn_dim), ffn_dim),
            b2=unif((attn_dim,), ffn_dim),
        ))
    lnf_g, lnf_b = ln_stats(attn_dim, 0.6)

    params = dict(
        dw_w=unif((Cin, 3, 3), 9),
        bn1_g=bn1[0], bn1_b=bn1[1], bn1_m=bn1[2], bn1_v=bn1[3],
        pw_w=unif((attn_dim, Cin), Cin),
        blocks=blocks,
        lnf_g=lnf_g, lnf_b=lnf_b,
        proj_w=unif((Cin, attn_dim), attn_dim),
        bn_proj_g=bn_pr[0], bn_proj_b=bn_pr[1], bn_proj_m=bn_pr[2], bn_proj_v=bn_pr[3],
        fus_w=unif((Cin, Cin + attn_dim), Cin + attn_dim),
        bn_fus_g=bn_fu[0], bn_fus_b=bn_fu[1], bn_fus_m=bn_fu[2], bn_fus_v=bn_fu[3],
    )

    x = jax.random.normal(next(kit), (N, Cin, H, W), dtype=jnp.float32)

    out = mobilevit_block_v3_forward(x, params, heads=heads, dim_head=dim_head,
                                     patch_h=patch_h, patch_w=patch_w)
    out = jax.block_until_ready(out)

    ref = _reference_forward(x, params, heads=heads, dim_head=dim_head,
                             patch_h=patch_h, patch_w=patch_w)
    ref = jax.block_until_ready(ref)

    assert out.shape == (N, Cin, H, W)
    max_err = float(jnp.max(jnp.abs(out - ref)))
    assert jnp.allclose(out, ref, atol=2e-2, rtol=2e-2), f"max abs err {max_err}"
    print("KERNEL_OK")
</pallas_src>

<mosaic_0001>
module attributes {stable_mosaic.version = 11 : i64} {
  func.func @_local_rep_kernel(%arg0: i32, %arg1: memref<1x18x18x128xf32, #tpu.memory_space<vmem>>, %arg2: memref<9x128xf32, #tpu.memory_space<vmem>>, %arg3: memref<1x128xf32, #tpu.memory_space<vmem>>, %arg4: memref<128x128xf32, #tpu.memory_space<vmem>>, %arg5: memref<1x16x16x128xf32, #tpu.memory_space<vmem>>) attributes {dimension_semantics = [#tpu.dimension_semantics<parallel>], iteration_bounds = array<i64: 2>, scalar_prefetch = 0 : i64, scratch_operands = 0 : i64, tpu.core_type = #tpu.core_type<tc>, window_params = [{transform_indices = @transform_0, window_bounds = array<i64: 1, 18, 18, 128>}, {pipeline_mode = #tpu.pipeline_mode<synchronous>, transform_indices = @transform_1, window_bounds = array<i64: 9, 128>}, {pipeline_mode = #tpu.pipeline_mode<synchronous>, transform_indices = @transform_2, window_bounds = array<i64: 1, 128>}, {pipeline_mode = #tpu.pipeline_mode<synchronous>, transform_indices = @transform_3, window_bounds = array<i64: 128, 128>}, {transform_indices = @transform_4, window_bounds = array<i64: 1, 16, 16, 128>}]} {
    %c0 = arith.constant 0 : index
    %c0_0 = arith.constant 0 : index
    %c0_1 = arith.constant 0 : index
    %c0_2 = arith.constant 0 : index
    %0 = vector.load %arg1[%c0, %c0_0, %c0_1, %c0_2] : memref<1x18x18x128xf32, #tpu.memory_space<vmem>>, vector<1x18x18x128xf32>
    %1 = vector.shape_cast %0 : vector<1x18x18x128xf32> to vector<18x18x128xf32>
    %c0_3 = arith.constant 0 : index
    %c0_4 = arith.constant 0 : index
    %2 = vector.load %arg2[%c0_3, %c0_4] : memref<9x128xf32, #tpu.memory_space<vmem>>, vector<9x128xf32>
    %cst = arith.constant 0.000000e+00 : f32
    %3 = vector.broadcast %cst : f32 to vector<16x18x128xf32>
    %4 = vector.extract_strided_slice %2 {offsets = [0, 0], sizes = [1, 128], strides = [1, 1]} : vector<9x128xf32> to vector<1x128xf32>
    %5 = vector.extract_strided_slice %1 {offsets = [0, 0, 0], sizes = [16, 18, 128], strides = [1, 1, 1]} : vector<18x18x128xf32> to vector<16x18x128xf32>
    %6 = vector.shape_cast %4 : vector<1x128xf32> to vector<1x1x128xf32>
    %7 = vector.broadcast %6 : vector<1x1x128xf32> to vector<16x18x128xf32>
    %8 = arith.mulf %5, %7 : vector<16x18x128xf32>
    %9 = arith.addf %3, %8 : vector<16x18x128xf32>
    %10 = vector.extract_strided_slice %2 {offsets = [3, 0], sizes = [1, 128], strides = [1, 1]} : vector<9x128xf32> to vector<1x128xf32>
    %11 = vector.extract_strided_slice %1 {offsets = [1, 0, 0], sizes = [16, 18, 128], strides = [1, 1, 1]} : vector<18x18x128xf32> to vector<16x18x128xf32>
    %12 = vector.shape_cast %10 : vector<1x128xf32> to vector<1x1x128xf32>
    %13 = vector.broadcast %12 : vector<1x1x128xf32> to vector<16x18x128xf32>
    %14 = arith.mulf %11, %13 : vector<16x18x128xf32>
    %15 = arith.addf %9, %14 : vector<16x18x128xf32>
    %16 = vector.extract_strided_slice %2 {offsets = [6, 0], sizes = [1, 128], strides = [1, 1]} : vector<9x128xf32> to vector<1x128xf32>
    %17 = vector.extract_strided_slice %1 {offsets = [2, 0, 0], sizes = [16, 18, 128], strides = [1, 1, 1]} : vector<18x18x128xf32> to vector<16x18x128xf32>
    %18 = vector.shape_cast %16 : vector<1x128xf32> to vector<1x1x128xf32>
    %19 = vector.broadcast %18 : vector<1x1x128xf32> to vector<16x18x128xf32>
    %20 = arith.mulf %17, %19 : vector<16x18x128xf32>
    %21 = arith.addf %15, %20 : vector<16x18x128xf32>
    %cst_5 = arith.constant 0.000000e+00 : f32
    %22 = vector.broadcast %cst_5 : f32 to vector<16x18x128xf32>
    %23 = vector.extract_strided_slice %2 {offsets = [1, 0], sizes = [1, 128], strides = [1, 1]} : vector<9x128xf32> to vector<1x128xf32>
    %24 = vector.extract_strided_slice %1 {offsets = [0, 0, 0], sizes = [16, 18, 128], strides = [1, 1, 1]} : vector<18x18x128xf32> to vector<16x18x128xf32>
    %25 = vector.shape_cast %23 : vector<1x128xf32> to vector<1x1x128xf32>
    %26 = vector.broadcast %25 : vector<1x1x128xf32> to vector<16x18x128xf32>
    %27 = arith.mulf %24, %26 : vector<16x18x128xf32>
    %28 = arith.addf %22, %27 : vector<16x18x128xf32>
    %29 = vector.extract_strided_slice %2 {offsets = [4, 0], sizes = [1, 128], strides = [1, 1]} : vector<9x128xf32> to vector<1x128xf32>
    %30 = vector.extract_strided_slice %1 {offsets = [1, 0, 0], sizes = [16, 18, 128], strides = [1, 1, 1]} : vector<18x18x128xf32> to vector<16x18x128xf32>
    %31 = vector.shape_cast %29 : vector<1x128xf32> to vector<1x1x128xf32>
    %32 = vector.broadcast %31 : vector<1x1x128xf32> to vector<16x18x128xf32>
    %33 = arith.mulf %30, %32 : vector<16x18x128xf32>
    %34 = arith.addf %28, %33 : vector<16x18x128xf32>
    %35 = vector.extract_strided_slice %2 {offsets = [7, 0], sizes = [1, 128], strides = [1, 1]} : vector<9x128xf32> to vector<1x128xf32>
    %36 = vector.extract_strided_slice %1 {offsets = [2, 0, 0], sizes = [16, 18, 128], strides = [1, 1, 1]} : vector<18x18x128xf32> to vector<16x18x128xf32>
    %37 = vector.shape_cast %35 : vector<1x128xf32> to vector<1x1x128xf32>
    %38 = vector.broadcast %37 : vector<1x1x128xf32> to vector<16x18x128xf32>
    %39 = arith.mulf %36, %38 : vector<16x18x128xf32>
    %40 = arith.addf %34, %39 : vector<16x18x128xf32>
    %cst_6 = arith.constant 0.000000e+00 : f32
    %41 = vector.broadcast %cst_6 : f32 to vector<16x18x128xf32>
    %42 = vector.extract_strided_slice %2 {offsets = [2, 0], sizes = [1, 128], strides = [1, 1]} : vector<9x128xf32> to vector<1x128xf32>
    %43 = vector.extract_strided_slice %1 {offsets = [0, 0, 0], sizes = [16, 18, 128], strides = [1, 1, 1]} : vector<18x18x128xf32> to vector<16x18x128xf32>
    %44 = vector.shape_cast %42 : vector<1x128xf32> to vector<1x1x128xf32>
    %45 = vector.broadcast %44 : vector<1x1x128xf32> to vector<16x18x128xf32>
    %46 = arith.mulf %43, %45 : vector<16x18x128xf32>
    %47 = arith.addf %41, %46 : vector<16x18x128xf32>
    %48 = vector.extract_strided_slice %2 {offsets = [5, 0], sizes = [1, 128], strides = [1, 1]} : vector<9x128xf32> to vector<1x128xf32>
    %49 = vector.extract_strided_slice %1 {offsets = [1, 0, 0], sizes = [16, 18, 128], strides = [1, 1, 1]} : vector<18x18x128xf32> to vector<16x18x128xf32>
    %50 = vector.shape_cast %48 : vector<1x128xf32> to vector<1x1x128xf32>
    %51 = vector.broadcast %50 : vector<1x1x128xf32> to vector<16x18x128xf32>
    %52 = arith.mulf %49, %51 : vector<16x18x128xf32>
    %53 = arith.addf %47, %52 : vector<16x18x128xf32>
    %54 = vector.extract_strided_slice %2 {offsets = [8, 0], sizes = [1, 128], strides = [1, 1]} : vector<9x128xf32> to vector<1x128xf32>
    %55 = vector.extract_strided_slice %1 {offsets = [2, 0, 0], sizes = [16, 18, 128], strides = [1, 1, 1]} : vector<18x18x128xf32> to vector<16x18x128xf32>
    %56 = vector.shape_cast %54 : vector<1x128xf32> to vector<1x1x128xf32>
    %57 = vector.broadcast %56 : vector<1x1x128xf32> to vector<16x18x128xf32>
    %58 = arith.mulf %55, %57 : vector<16x18x128xf32>
    %59 = arith.addf %53, %58 : vector<16x18x128xf32>
    %60 = vector.extract_strided_slice %21 {offsets = [0, 0, 0], sizes = [16, 16, 128], strides = [1, 1, 1]} : vector<16x18x128xf32> to vector<16x16x128xf32>
    %61 = vector.extract_strided_slice %40 {offsets = [0, 1, 0], sizes = [16, 16, 128], strides = [1, 1, 1]} : vector<16x18x128xf32> to vector<16x16x128xf32>
    %62 = arith.addf %60, %61 : vector<16x16x128xf32>
    %63 = vector.extract_strided_slice %59 {offsets = [0, 2, 0], sizes = [16, 16, 128], strides = [1, 1, 1]} : vector<16x18x128xf32> to vector<16x16x128xf32>
    %64 = arith.addf %62, %63 : vector<16x16x128xf32>
    %c0_7 = arith.constant 0 : index
    %c0_8 = arith.constant 0 : index
    %65 = vector.load %arg3[%c0_7, %c0_8] : memref<1x128xf32, #tpu.memory_space<vmem>>, vector<1x128xf32>
    %66 = vector.shape_cast %65 : vector<1x128xf32> to vector<1x1x128xf32>
    %67 = vector.broadcast %66 : vector<1x1x128xf32> to vector<16x16x128xf32>
    %68 = arith.addf %64, %67 : vector<16x16x128xf32>
    %69 = arith.negf %68 : vector<16x16x128xf32>
    %70 = math.exp %69 : vector<16x16x128xf32>
    %cst_9 = arith.constant 1.000000e+00 : f32
    %71 = vector.broadcast %cst_9 : f32 to vector<16x16x128xf32>
    %72 = arith.addf %71, %70 : vector<16x16x128xf32>
    %73 = arith.divf %71, %72 : vector<16x16x128xf32>
    %74 = arith.mulf %68, %73 : vector<16x16x128xf32>
    %75 = vector.shape_cast %74 : vector<16x16x128xf32> to vector<256x128xf32>
    %c0_10 = arith.constant 0 : index
    %c0_11 = arith.constant 0 : index
    %76 = vector.load %arg4[%c0_10, %c0_11] : memref<128x128xf32, #tpu.memory_space<vmem>>, vector<128x128xf32>
    %cst_12 = arith.constant dense<0.000000e+00> : vector<256x128xf32>
    %77 = tpu.matmul %75, %76, %cst_12 {dimension_numbers = #tpu.dot_dimension_numbers<[1], [0], [0], [1], [0, 0, 1, 1], [], []>} : vector<256x128xf32>, vector<128x128xf32>, vector<256x128xf32> -> vector<256x128xf32>
    %78 = vector.shape_cast %77 : vector<256x128xf32> to vector<16x16x128xf32>
    %c0_13 = arith.constant 0 : index
    %c0_14 = arith.constant 0 : index
    %c0_15 = arith.constant 0 : index
    %c0_16 = arith.constant 0 : index
    %79 = vector.load %arg5[%c0_13, %c0_14, %c0_15, %c0_16] : memref<1x16x16x128xf32, #tpu.memory_space<vmem>>, vector<1x16x16x128xf32>
    %80 = vector.shape_cast %79 : vector<1x16x16x128xf32> to vector<16x16x128xf32>
    %81 = vector.shape_cast %78 : vector<16x16x128xf32> to vector<1x16x16x128xf32>
    tpu.vector_store %arg5[%c0_13, %c0_14, %c0_15, %c0_16], %81 {strides = array<i32>} : memref<1x16x16x128xf32, #tpu.memory_space<vmem>>, vector<1x16x16x128xf32>,
    return
  }
  func.func @transform_0(%arg0: i32) -> (i32, i32, i32, i32) {
    %c0_i32 = arith.constant 0 : i32
    %c0_i32_0 = arith.constant 0 : i32
    %c0_i32_1 = arith.constant 0 : i32
    %c0_i32_2 = arith.constant 0 : i32
    return %arg0, %c0_i32, %c0_i32_0, %c0_i32_1 : i32, i32, i32, i32
  }
  func.func @transform_1(%arg0: i32) -> (i32, i32) {
    %c0_i32 = arith.constant 0 : i32
    %c0_i32_0 = arith.constant 0 : i32
    %c0_i32_1 = arith.constant 0 : i32
    return %c0_i32, %c0_i32_0 : i32, i32
  }
  func.func @transform_2(%arg0: i32) -> (i32, i32) {
    %c0_i32 = arith.constant 0 : i32
    %c0_i32_0 = arith.constant 0 : i32
    %c0_i32_1 = arith.constant 0 : i32
    return %c0_i32, %c0_i32_0 : i32, i32
  }
  func.func @transform_3(%arg0: i32) -> (i32, i32) {
    %c0_i32 = arith.constant 0 : i32
    %c0_i32_0 = arith.constant 0 : i32
    %c0_i32_1 = arith.constant 0 : i32
    return %c0_i32, %c0_i32_0 : i32, i32
  }
  func.func @transform_4(%arg0: i32) -> (i32, i32, i32, i32) {
    %c0_i32 = arith.constant 0 : i32
    %c0_i32_0 = arith.constant 0 : i32
    %c0_i32_1 = arith.constant 0 : i32
    %c0_i32_2 = arith.constant 0 : i32
    return %arg0, %c0_i32, %c0_i32_0, %c0_i32_1 : i32, i32, i32, i32
  }
}

module attributes {stable_mosaic.version = 11 : i64} {
  func.func @_transformer_kernel(%arg0: i32, %arg1: memref<1x64x128xf32, #tpu.memory_space<vmem>>, %arg2: memref<128x384xf32, #tpu.memory_space<vmem>>, %arg3: memref<128x128xf32, #tpu.memory_space<vmem>>, %arg4: memref<128x128xf32, #tpu.memory_space<vmem>>, %arg5: memref<128x128xf32, #tpu.memory_space<vmem>>, %arg6: memref<9x128xf32, #tpu.memory_space<vmem>>, %arg7: memref<1x128xf32, #tpu.memory_space<vmem>>, %arg8: memref<1x64x128xf32, #tpu.memory_space<vmem>>) attributes {dimension_semantics = [#tpu.dimension_semantics<parallel>], iteration_bounds = array<i64: 8>, scalar_prefetch = 0 : i64, scratch_operands = 0 : i64, tpu.core_type = #tpu.core_type<tc>, window_params = [{transform_indices = @transform_0, window_bounds = array<i64: 1, 64, 128>}, {pipeline_mode = #tpu.pipeline_mode<synchronous>, transform_indices = @transform_1, window_bounds = array<i64: 128, 384>}, {pipeline_mode = #tpu.pipeline_mode<synchronous>, transform_indices = @transform_2, window_bounds = array<i64: 128, 128>}, {pipeline_mode = #tpu.pipeline_mode<synchronous>, transform_indices = @transform_3, window_bounds = array<i64: 128, 128>}, {pipeline_mode = #tpu.pipeline_mode<synchronous>, transform_indices = @transform_4, window_bounds = array<i64: 128, 128>}, {pipeline_mode = #tpu.pipeline_mode<synchronous>, transform_indices = @transform_5, window_bounds = array<i64: 9, 128>}, {pipeline_mode = #tpu.pipeline_mode<synchronous>, transform_indices = @transform_6, window_bounds = array<i64: 1, 128>}, {transform_indices = @transform_7, window_bounds = array<i64: 1, 64, 128>}]} {
    %c0 = arith.constant 0 : index
    %c0_0 = arith.constant 0 : index
    %c0_1 = arith.constant 0 : index
    %0 = vector.load %arg1[%c0, %c0_0, %c0_1] : memref<1x64x128xf32, #tpu.memory_space<vmem>>, vector<1x64x128xf32>
    %1 = vector.shape_cast %0 : vector<1x64x128xf32> to vector<64x128xf32>
    %c0_2 = arith.constant 0 : index
    %c0_3 = arith.constant 0 : index
    %2 = vector.load %arg6[%c0_2, %c0_3] : memref<9x128xf32, #tpu.memory_space<vmem>>, vector<9x128xf32>
    %3 = vector.extract_strided_slice %2 {offsets = [0, 0], sizes = [1, 128], strides = [1, 1]} : vector<9x128xf32> to vector<1x128xf32>
    %4 = vector.extract_strided_slice %2 {offsets = [1, 0], sizes = [1, 128], strides = [1, 1]} : vector<9x128xf32> to vector<1x128xf32>
    %cst = arith.constant dense<0.000000e+00> : vector<64xf32>
    %5 = vector.multi_reduction <add>, %1, %cst [1] : vector<64x128xf32> to vector<64xf32>
    %6 = vector.shape_cast %5 : vector<64xf32> to vector<64x1xf32>
    %cst_4 = arith.constant 3.200000e+01 : f32
    %7 = vector.broadcast %cst_4 : f32 to vector<64x1xf32>
    %8 = arith.divf %6, %7 : vector<64x1xf32>
    %9 = arith.mulf %1, %1 : vector<64x128xf32>
    %cst_5 = arith.constant dense<0.000000e+00> : vector<64xf32>
    %10 = vector.multi_reduction <add>, %9, %cst_5 [1] : vector<64x128xf32> to vector<64xf32>
    %11 = vector.shape_cast %10 : vector<64xf32> to vector<64x1xf32>
    %cst_6 = arith.constant 3.200000e+01 : f32
    %12 = vector.broadcast %cst_6 : f32 to vector<64x1xf32>
    %13 = arith.divf %11, %12 : vector<64x1xf32>
    %14 = arith.mulf %8, %8 : vector<64x1xf32>
    %15 = arith.subf %13, %14 : vector<64x1xf32>
    %cst_7 = arith.constant 9.99999974E-6 : f32
    %16 = vector.broadcast %cst_7 : f32 to vector<64x1xf32>
    %17 = arith.addf %15, %16 : vector<64x1xf32>
    %18 = math.rsqrt %17 : vector<64x1xf32>
    %19 = vector.broadcast %8 : vector<64x1xf32> to vector<64x128xf32>
    %20 = arith.subf %1, %19 : vector<64x128xf32>
    %21 = vector.broadcast %18 : vector<64x1xf32> to vector<64x128xf32>
    %22 = arith.mulf %20, %21 : vector<64x128xf32>
    %23 = vector.broadcast %3 : vector<1x128xf32> to vector<64x128xf32>
    %24 = arith.mulf %22, %23 : vector<64x128xf32>
    %25 = vector.broadcast %4 : vector<1x128xf32> to vector<64x128xf32>
    %26 = arith.addf %24, %25 : vector<64x128xf32>
    %c0_8 = arith.constant 0 : index
    %c0_9 = arith.constant 0 : index
    %27 = vector.load %arg2[%c0_8, %c0_9] : memref<128x384xf32, #tpu.memory_space<vmem>>, vector<128x384xf32>
    %28 = vector.extract_strided_slice %27 {offsets = [0, 0], sizes = [128, 128], strides = [1, 1]} : vector<128x384xf32> to vector<128x128xf32>
    %cst_10 = arith.constant dense<0.000000e+00> : vector<64x128xf32>
    %29 = tpu.matmul %26, %28, %cst_10 {dimension_numbers = #tpu.dot_dimension_numbers<[1], [0], [0], [1], [0, 0, 1, 1], [], []>} : vector<64x128xf32>, vector<128x128xf32>, vector<64x128xf32> -> vector<64x128xf32>
    %30 = vector.extract_strided_slice %2 {offsets = [4, 0], sizes = [1, 128], strides = [1, 1]} : vector<9x128xf32> to vector<1x128xf32>
    %31 = vector.broadcast %30 : vector<1x128xf32> to vector<64x128xf32>
    %32 = arith.addf %29, %31 : vector<64x128xf32>
    %33 = vector.extract_strided_slice %27 {offsets = [0, 128], sizes = [128, 128], strides = [1, 1]} : vector<128x384xf32> to vector<128x128xf32>
    %cst_11 = arith.constant dense<0.000000e+00> : vector<64x128xf32>
    %34 = tpu.matmul %26, %33, %cst_11 {dimension_numbers = #tpu.dot_dimension_numbers<[1], [0], [0], [1], [0, 0, 1, 1], [], []>} : vector<64x128xf32>, vector<128x128xf32>, vector<64x128xf32> -> vector<64x128xf32>
    %35 = vector.extract_strided_slice %2 {offsets = [5, 0], sizes = [1, 128], strides = [1, 1]} : vector<9x128xf32> to vector<1x128xf32>
    %36 = vector.broadcast %35 : vector<1x128xf32> to vector<64x128xf32>
    %37 = arith.addf %34, %36 : vector<64x128xf32>
    %38 = vector.extract_strided_slice %27 {offsets = [0, 256], sizes = [128, 128], strides = [1, 1]} : vector<128x384xf32> to vector<128x128xf32>
    %cst_12 = arith.constant dense<0.000000e+00> : vector<64x128xf32>
    %39 = tpu.matmul %26, %38, %cst_12 {dimension_numbers = #tpu.dot_dimension_numbers<[1], [0], [0], [1], [0, 0, 1, 1], [], []>} : vector<64x128xf32>, vector<128x128xf32>, vector<64x128xf32> -> vector<64x128xf32>
    %40 = vector.extract_strided_slice %2 {offsets = [6, 0], sizes = [1, 128], strides = [1, 1]} : vector<9x128xf32> to vector<1x128xf32>
    %41 = vector.broadcast %40 : vector<1x128xf32> to vector<64x128xf32>
    %42 = arith.addf %39, %41 : vector<64x128xf32>
    %cst_13 = arith.constant 0.353553385 : f32
    %43 = vector.broadcast %cst_13 : f32 to vector<64x128xf32>
    %44 = arith.mulf %32, %43 : vector<64x128xf32>
    %45 = tpu.iota {dimensions = array<i32: 1>} : vector<1x128xi32>
    %cst_14 = arith.constant 0.000000e+00 : f32
    %46 = vector.broadcast %cst_14 : f32 to vector<64x128xf32>
    %c0_i32 = arith.constant 0 : i32
    %47 = vector.broadcast %c0_i32 : i32 to vector<1x128xi32>
    %48 = arith.cmpi sge, %45, %47 : vector<1x128xi32>
    %c8_i32 = arith.constant 8 : i32
    %49 = vector.broadcast %c8_i32 : i32 to vector<1x128xi32>
    %50 = arith.cmpi slt, %45, %49 : vector<1x128xi32>
    %51 = arith.andi %48, %50 : vector<1x128xi1>
    %52 = arith.extui %51 : vector<1x128xi1> to vector<1x128xi32>
    %53 = arith.sitofp %52 : vector<1x128xi32> to vector<1x128xf32>
    %54 = vector.broadcast %53 : vector<1x128xf32> to vector<64x128xf32>
    %55 = arith.mulf %44, %54 : vector<64x128xf32>
    %cst_15 = arith.constant dense<0.000000e+00> : vector<64x64xf32>
    %56 = tpu.matmul %55, %37, %cst_15 {dimension_numbers = #tpu.dot_dimension_numbers<[1], [1], [0], [0], [0, 0, 1, 0], [], []>} : vector<64x128xf32>, vector<64x128xf32>, vector<64x64xf32> -> vector<64x64xf32>
    %cst_16 = arith.constant dense<0xFF800000> : vector<64xf32>
    %57 = vector.multi_reduction <maximumf>, %56, %cst_16 [1] : vector<64x64xf32> to vector<64xf32>
    %58 = vector.shape_cast %57 : vector<64xf32> to vector<64x1xf32>
    %59 = vector.broadcast %58 : vector<64x1xf32> to vector<64x64xf32>
    %60 = arith.subf %56, %59 : vector<64x64xf32>
    %61 = math.exp %60 : vector<64x64xf32>
    %cst_17 = arith.constant dense<0.000000e+00> : vector<64xf32>
    %62 = vector.multi_reduction <add>, %61, %cst_17 [1] : vector<64x64xf32> to vector<64xf32>
    %63 = vector.shape_cast %62 : vector<64xf32> to vector<64x1xf32>
    %64 = vector.broadcast %63 : vector<64x1xf32> to vector<64x64xf32>
    %65 = arith.divf %61, %64 : vector<64x64xf32>
    %66 = vector.broadcast %53 : vector<1x128xf32> to vector<64x128xf32>
    %67 = arith.mulf %42, %66 : vector<64x128xf32>
    %cst_18 = arith.constant dense<0.000000e+00> : vector<64x128xf32>
    %68 = tpu.matmul %65, %67, %cst_18 {dimension_numbers = #tpu.dot_dimension_numbers<[1], [0], [0], [1], [0, 0, 1, 1], [], []>} : vector<64x64xf32>, vector<64x128xf32>, vector<64x128xf32> -> vector<64x128xf32>
    %69 = arith.addf %46, %68 : vector<64x128xf32>
    %c8_i32_19 = arith.constant 8 : i32
    %70 = vector.broadcast %c8_i32_19 : i32 to vector<1x128xi32>
    %71 = arith.cmpi sge, %45, %70 : vector<1x128xi32>
    %c16_i32 = arith.constant 16 : i32
    %72 = vector.broadcast %c16_i32 : i32 to vector<1x128xi32>
    %73 = arith.cmpi slt, %45, %72 : vector<1x128xi32>
    %74 = arith.andi %71, %73 : vector<1x128xi1>
    %75 = arith.extui %74 : vector<1x128xi1> to vector<1x128xi32>
    %76 = arith.sitofp %75 : vector<1x128xi32> to vector<1x128xf32>
    %77 = vector.broadcast %76 : vector<1x128xf32> to vector<64x128xf32>
    %78 = arith.mulf %44, %77 : vector<64x128xf32>
    %cst_20 = arith.constant dense<0.000000e+00> : vector<64x64xf32>
    %79 = tpu.matmul %78, %37, %cst_20 {dimension_numbers = #tpu.dot_dimension_numbers<[1], [1], [0], [0], [0, 0, 1, 0], [], []>} : vector<64x128xf32>, vector<64x128xf32>, vector<64x64xf32> -> vector<64x64xf32>
    %cst_21 = arith.constant dense<0xFF800000> : vector<64xf32>
    %80 = vector.multi_reduction <maximumf>, %79, %cst_21 [1] : vector<64x64xf32> to vector<64xf32>
    %81 = vector.shape_cast %80 : vector<64xf32> to vector<64x1xf32>
    %82 = vector.broadcast %81 : vector<64x1xf32> to vector<64x64xf32>
    %83 = arith.subf %79, %82 : vector<64x64xf32>
    %84 = math.exp %83 : vector<64x64xf32>
    %cst_22 = arith.constant dense<0.000000e+00> : vector<64xf32>
    %85 = vector.multi_reduction <add>, %84, %cst_22 [1] : vector<64x64xf32> to vector<64xf32>
    %86 = vector.shape_cast %85 : vector<64xf32> to vector<64x1xf32>
    %87 = vector.broadcast %86 : vector<64x1xf32> to vector<64x64xf32>
    %88 = arith.divf %84, %87 : vector<64x64xf32>
    %89 = vector.broadcast %76 : vector<1x128xf32> to vector<64x128xf32>
    %90 = arith.mulf %42, %89 : vector<64x128xf32>
    %cst_23 = arith.constant dense<0.000000e+00> : vector<64x128xf32>
    %91 = tpu.matmul %88, %90, %cst_23 {dimension_numbers = #tpu.dot_dimension_numbers<[1], [0], [0], [1], [0, 0, 1, 1], [], []>} : vector<64x64xf32>, vector<64x128xf32>, vector<64x128xf32> -> vector<64x128xf32>
    %92 = arith.addf %69, %91 : vector<64x128xf32>
    %c16_i32_24 = arith.constant 16 : i32
    %93 = vector.broadcast %c16_i32_24 : i32 to vector<1x128xi32>
    %94 = arith.cmpi sge, %45, %93 : vector<1x128xi32>
    %c24_i32 = arith.constant 24 : i32
    %95 = vector.broadcast %c24_i32 : i32 to vector<1x128xi32>
    %96 = arith.cmpi slt, %45, %95 : vector<1x128xi32>
    %97 = arith.andi %94, %96 : vector<1x128xi1>
    %98 = arith.extui %97 : vector<1x128xi1> to vector<1x128xi32>
    %99 = arith.sitofp %98 : vector<1x128xi32> to vector<1x128xf32>
    %100 = vector.broadcast %99 : vector<1x128xf32> to vector<64x128xf32>
    %101 = arith.mulf %44, %100 : vector<64x128xf32>
    %cst_25 = arith.constant dense<0.000000e+00> : vector<64x64xf32>
    %102 = tpu.matmul %101, %37, %cst_25 {dimension_numbers = #tpu.dot_dimension_numbers<[1], [1], [0], [0], [0, 0, 1, 0], [], []>} : vector<64x128xf32>, vector<64x128xf32>, vector<64x64xf32> -> vector<64x64xf32>
    %cst_26 = arith.constant dense<0xFF800000> : vector<64xf32>
    %103 = vector.multi_reduction <maximumf>, %102, %cst_26 [1] : vector<64x64xf32> to vector<64xf32>
    %104 = vector.shape_cast %103 : vector<64xf32> to vector<64x1xf32>
    %105 = vector.broadcast %104 : vector<64x1xf32> to vector<64x64xf32>
    %106 = arith.subf %102, %105 : vector<64x64xf32>
    %107 = math.exp %106 : vector<64x64xf32>
    %cst_27 = arith.constant dense<0.000000e+00> : vector<64xf32>
    %108 = vector.multi_reduction <add>, %107, %cst_27 [1] : vector<64x64xf32> to vector<64xf32>
    %109 = vector.shape_cast %108 : vector<64xf32> to vector<64x1xf32>
    %110 = vector.broadcast %109 : vector<64x1xf32> to vector<64x64xf32>
    %111 = arith.divf %107, %110 : vector<64x64xf32>
    %112 = vector.broadcast %99 : vector<1x128xf32> to vector<64x128xf32>
    %113 = arith.mulf %42, %112 : vector<64x128xf32>
    %cst_28 = arith.constant dense<0.000000e+00> : vector<64x128xf32>
    %114 = tpu.matmul %111, %113, %cst_28 {dimension_numbers = #tpu.dot_dimension_numbers<[1], [0], [0], [1], [0, 0, 1, 1], [], []>} : vector<64x64xf32>, vector<64x128xf32>, vector<64x128xf32> -> vector<64x128xf32>
    %115 = arith.addf %92, %114 : vector<64x128xf32>
    %c24_i32_29 = arith.constant 24 : i32
    %116 = vector.broadcast %c24_i32_29 : i32 to vector<1x128xi32>
    %117 = arith.cmpi sge, %45, %116 : vector<1x128xi32>
    %c32_i32 = arith.constant 32 : i32
    %118 = vector.broadcast %c32_i32 : i32 to vector<1x128xi32>
    %119 = arith.cmpi slt, %45, %118 : vector<1x128xi32>
    %120 = arith.andi %117, %119 : vector<1x128xi1>
    %121 = arith.extui %120 : vector<1x128xi1> to vector<1x128xi32>
    %122 = arith.sitofp %121 : vector<1x128xi32> to vector<1x128xf32>
    %123 = vector.broadcast %122 : vector<1x128xf32> to vector<64x128xf32>
    %124 = arith.mulf %44, %123 : vector<64x128xf32>
    %cst_30 = arith.constant dense<0.000000e+00> : vector<64x64xf32>
    %125 = tpu.matmul %124, %37, %cst_30 {dimension_numbers = #tpu.dot_dimension_numbers<[1], [1], [0], [0], [0, 0, 1, 0], [], []>} : vector<64x128xf32>, vector<64x128xf32>, vector<64x64xf32> -> vector<64x64xf32>
    %cst_31 = arith.constant dense<0xFF800000> : vector<64xf32>
    %126 = vector.multi_reduction <maximumf>, %125, %cst_31 [1] : vector<64x64xf32> to vector<64xf32>
    %127 = vector.shape_cast %126 : vector<64xf32> to vector<64x1xf32>
    %128 = vector.broadcast %127 : vector<64x1xf32> to vector<64x64xf32>
    %129 = arith.subf %125, %128 : vector<64x64xf32>
    %130 = math.exp %129 : vector<64x64xf32>
    %cst_32 = arith.constant dense<0.000000e+00> : vector<64xf32>
    %131 = vector.multi_reduction <add>, %130, %cst_32 [1] : vector<64x64xf32> to vector<64xf32>
    %132 = vector.shape_cast %131 : vector<64xf32> to vector<64x1xf32>
    %133 = vector.broadcast %132 : vector<64x1xf32> to vector<64x64xf32>
    %134 = arith.divf %130, %133 : vector<64x64xf32>
    %135 = vector.broadcast %122 : vector<1x128xf32> to vector<64x128xf32>
    %136 = arith.mulf %42, %135 : vector<64x128xf32>
    %cst_33 = arith.constant dense<0.000000e+00> : vector<64x128xf32>
    %137 = tpu.matmul %134, %136, %cst_33 {dimension_numbers = #tpu.dot_dimension_numbers<[1], [0], [0], [1], [0, 0, 1, 1], [], []>} : vector<64x64xf32>, vector<64x128xf32>, vector<64x128xf32> -> vector<64x128xf32>
    %138 = arith.addf %115, %137 : vector<64x128xf32>
    %c0_34 = arith.constant 0 : index
    %c0_35 = arith.constant 0 : index
    %139 = vector.load %arg3[%c0_34, %c0_35] : memref<128x128xf32, #tpu.memory_space<vmem>>, vector<128x128xf32>
    %cst_36 = arith.constant dense<0.000000e+00> : vector<64x128xf32>
    %140 = tpu.matmul %138, %139, %cst_36 {dimension_numbers = #tpu.dot_dimension_numbers<[1], [0], [0], [1], [0, 0, 1, 1], [], []>} : vector<64x128xf32>, vector<128x128xf32>, vector<64x128xf32> -> vector<64x128xf32>
    %141 = vector.extract_strided_slice %2 {offsets = [7, 0], sizes = [1, 128], strides = [1, 1]} : vector<9x128xf32> to vector<1x128xf32>
    %142 = vector.broadcast %141 : vector<1x128xf32> to vector<64x128xf32>
    %143 = arith.addf %140, %142 : vector<64x128xf32>
    %144 = arith.addf %1, %143 : vector<64x128xf32>
    %145 = vector.extract_strided_slice %2 {offsets = [2, 0], sizes = [1, 128], strides = [1, 1]} : vector<9x128xf32> to vector<1x128xf32>
    %146 = vector.extract_strided_slice %2 {offsets = [3, 0], sizes = [1, 128], strides = [1, 1]} : vector<9x128xf32> to vector<1x128xf32>
    %cst_37 = arith.constant dense<0.000000e+00> : vector<64xf32>
    %147 = vector.multi_reduction <add>, %144, %cst_37 [1] : vector<64x128xf32> to vector<64xf32>
    %148 = vector.shape_cast %147 : vector<64xf32> to vector<64x1xf32>
    %cst_38 = arith.constant 3.200000e+01 : f32
    %149 = vector.broadcast %cst_38 : f32 to vector<64x1xf32>
    %150 = arith.divf %148, %149 : vector<64x1xf32>
    %151 = arith.mulf %144, %144 : vector<64x128xf32>
    %cst_39 = arith.constant dense<0.000000e+00> : vector<64xf32>
    %152 = vector.multi_reduction <add>, %151, %cst_39 [1] : vector<64x128xf32> to vector<64xf32>
    %153 = vector.shape_cast %152 : vector<64xf32> to vector<64x1xf32>
    %cst_40 = arith.constant 3.200000e+01 : f32
    %154 = vector.broadcast %cst_40 : f32 to vector<64x1xf32>
    %155 = arith.divf %153, %154 : vector<64x1xf32>
    %156 = arith.mulf %150, %150 : vector<64x1xf32>
    %157 = arith.subf %155, %156 : vector<64x1xf32>
    %cst_41 = arith.constant 9.99999974E-6 : f32
    %158 = vector.broadcast %cst_41 : f32 to vector<64x1xf32>
    %159 = arith.addf %157, %158 : vector<64x1xf32>
    %160 = math.rsqrt %159 : vector<64x1xf32>
    %161 = vector.broadcast %150 : vector<64x1xf32> to vector<64x128xf32>
    %162 = arith.subf %144, %161 : vector<64x128xf32>
    %163 = vector.broadcast %160 : vector<64x1xf32> to vector<64x128xf32>
    %164 = arith.mulf %162, %163 : vector<64x128xf32>
    %165 = vector.broadcast %145 : vector<1x128xf32> to vector<64x128xf32>
    %166 = arith.mulf %164, %165 : vector<64x128xf32>
    %167 = vector.broadcast %146 : vector<1x128xf32> to vector<64x128xf32>
    %168 = arith.addf %166, %167 : vector<64x128xf32>
    %c0_42 = arith.constant 0 : index
    %c0_43 = arith.constant 0 : index
    %169 = vector.load %arg4[%c0_42, %c0_43] : memref<128x128xf32, #tpu.memory_space<vmem>>, vector<128x128xf32>
    %cst_44 = arith.constant dense<0.000000e+00> : vector<64x128xf32>
    %170 = tpu.matmul %168, %169, %cst_44 {dimension_numbers = #tpu.dot_dimension_numbers<[1], [0], [0], [1], [0, 0, 1, 1], [], []>} : vector<64x128xf32>, vector<128x128xf32>, vector<64x128xf32> -> vector<64x128xf32>
    %c0_45 = arith.constant 0 : index
    %c0_46 = arith.constant 0 : index
    %171 = vector.load %arg7[%c0_45, %c0_46] : memref<1x128xf32, #tpu.memory_space<vmem>>, vector<1x128xf32>
    %172 = vector.broadcast %171 : vector<1x128xf32> to vector<64x128xf32>
    %173 = arith.addf %170, %172 : vector<64x128xf32>
    %174 = arith.negf %173 : vector<64x128xf32>
    %175 = math.exp %174 : vector<64x128xf32>
    %cst_47 = arith.constant 1.000000e+00 : f32
    %176 = vector.broadcast %cst_47 : f32 to vector<64x128xf32>
    %177 = arith.addf %176, %175 : vector<64x128xf32>
    %178 = arith.divf %176, %177 : vector<64x128xf32>
    %179 = arith.mulf %173, %178 : vector<64x128xf32>
    %c0_48 = arith.constant 0 : index
    %c0_49 = arith.constant 0 : index
    %180 = vector.load %arg5[%c0_48, %c0_49] : memref<128x128xf32, #tpu.memory_space<vmem>>, vector<128x128xf32>
    %cst_50 = arith.constant dense<0.000000e+00> : vector<64x128xf32>
    %181 = tpu.matmul %179, %180, %cst_50 {dimension_numbers = #tpu.dot_dimension_numbers<[1], [0], [0], [1], [0, 0, 1, 1], [], []>} : vector<64x128xf32>, vector<128x128xf32>, vector<64x128xf32> -> vector<64x128xf32>
    %182 = vector.extract_strided_slice %2 {offsets = [8, 0], sizes = [1, 128], strides = [1, 1]} : vector<9x128xf32> to vector<1x128xf32>
    %183 = vector.broadcast %182 : vector<1x128xf32> to vector<64x128xf32>
    %184 = arith.addf %181, %183 : vector<64x128xf32>
    %185 = arith.addf %144, %184 : vector<64x128xf32>
    %c0_51 = arith.constant 0 : index
    %c0_52 = arith.constant 0 : index
    %c0_53 = arith.constant 0 : index
    %186 = vector.load %arg8[%c0_51, %c0_52, %c0_53] : memref<1x64x128xf32, #tpu.memory_space<vmem>>, vector<1x64x128xf32>
    %187 = vector.shape_cast %186 : vector<1x64x128xf32> to vector<64x128xf32>
    %188 = vector.shape_cast %185 : vector<64x128xf32> to vector<1x64x128xf32>
    tpu.vector_store %arg8[%c0_51, %c0_52, %c0_53], %188 {strides = array<i32>} : memref<1x64x128xf32, #tpu.memory_space<vmem>>, vector<1x64x128xf32>,
    return
  }
  func.func @transform_0(%arg0: i32) -> (i32, i32, i32) {
    %c0_i32 = arith.constant 0 : i32
    %c0_i32_0 = arith.constant 0 : i32
    %c0_i32_1 = arith.constant 0 : i32
    return %arg0, %c0_i32, %c0_i32_0 : i32, i32, i32
  }
  func.func @transform_1(%arg0: i32) -> (i32, i32) {
    %c0_i32 = arith.constant 0 : i32
    %c0_i32_0 = arith.constant 0 : i32
    %c0_i32_1 = arith.constant 0 : i32
    return %c0_i32, %c0_i32_0 : i32, i32
  }
  func.func @transform_2(%arg0: i32) -> (i32, i32) {
    %c0_i32 = arith.constant 0 : i32
    %c0_i32_0 = arith.constant 0 : i32
    %c0_i32_1 = arith.constant 0 : i32
    return %c0_i32, %c0_i32_0 : i32, i32
  }
  func.func @transform_3(%arg0: i32) -> (i32, i32) {
    %c0_i32 = arith.constant 0 : i32
    %c0_i32_0 = arith.constant 0 : i32
    %c0_i32_1 = arith.constant 0 : i32
    return %c0_i32, %c0_i32_0 : i32, i32
  }
  func.func @transform_4(%arg0: i32) -> (i32, i32) {
    %c0_i32 = arith.constant 0 : i32
    %c0_i32_0 = arith.constant 0 : i32
    %c0_i32_1 = arith.constant 0 : i32
    return %c0_i32, %c0_i32_0 : i32, i32
  }
  func.func @transform_5(%arg0: i32) -> (i32, i32) {
    %c0_i32 = arith.constant 0 : i32
    %c0_i32_0 = arith.constant 0 : i32
    %c0_i32_1 = arith.constant 0 : i32
    return %c0_i32, %c0_i32_0 : i32, i32
  }
  func.func @transform_6(%arg0: i32) -> (i32, i32) {
    %c0_i32 = arith.constant 0 : i32
    %c0_i32_0 = arith.constant 0 : i32
    %c0_i32_1 = arith.constant 0 : i32
    return %c0_i32, %c0_i32_0 : i32, i32
  }
  func.func @transform_7(%arg0: i32) -> (i32, i32, i32) {
    %c0_i32 = arith.constant 0 : i32
    %c0_i32_0 = arith.constant 0 : i32
    %c0_i32_1 = arith.constant 0 : i32
    return %arg0, %c0_i32, %c0_i32_0 : i32, i32, i32
  }
}

module attributes {stable_mosaic.version = 11 : i64} {
  func.func @_proj_fusion_kernel(%arg0: i32, %arg1: i32, %arg2: memref<1x8x16x128xf32, #tpu.memory_space<vmem>>, %arg3: memref<1x8x16x128xf32, #tpu.memory_space<vmem>>, %arg4: memref<1x8x16x128xf32, #tpu.memory_space<vmem>>, %arg5: memref<2x128xf32, #tpu.memory_space<vmem>>, %arg6: memref<128x128xf32, #tpu.memory_space<vmem>>, %arg7: memref<1x128xf32, #tpu.memory_space<vmem>>, %arg8: memref<128x128xf32, #tpu.memory_space<vmem>>, %arg9: memref<128x128xf32, #tpu.memory_space<vmem>>, %arg10: memref<1x128xf32, #tpu.memory_space<vmem>>, %arg11: memref<1x8x16x128xf32, #tpu.memory_space<vmem>>) attributes {dimension_semantics = [#tpu.dimension_semantics<parallel>, #tpu.dimension_semantics<parallel>], iteration_bounds = array<i64: 2, 2>, scalar_prefetch = 0 : i64, scratch_operands = 0 : i64, tpu.core_type = #tpu.core_type<tc>, window_params = [{transform_indices = @transform_0, window_bounds = array<i64: 1, 8, 16, 128>}, {transform_indices = @transform_1, window_bounds = array<i64: 1, 8, 16, 128>}, {transform_indices = @transform_2, window_bounds = array<i64: 1, 8, 16, 128>}, {pipeline_mode = #tpu.pipeline_mode<synchronous>, transform_indices = @transform_3, window_bounds = array<i64: 2, 128>}, {pipeline_mode = #tpu.pipeline_mode<synchronous>, transform_indices = @transform_4, window_bounds = array<i64: 128, 128>}, {pipeline_mode = #tpu.pipeline_mode<synchronous>, transform_indices = @transform_5, window_bounds = array<i64: 1, 128>}, {pipeline_mode = #tpu.pipeline_mode<synchronous>, transform_indices = @transform_6, window_bounds = array<i64: 128, 128>}, {pipeline_mode = #tpu.pipeline_mode<synchronous>, transform_indices = @transform_7, window_bounds = array<i64: 128, 128>}, {pipeline_mode = #tpu.pipeline_mode<synchronous>, transform_indices = @transform_8, window_bounds = array<i64: 1, 128>}, {transform_indices = @transform_9, window_bounds = array<i64: 1, 8, 16, 128>}]} {
    %c0 = arith.constant 0 : index
    %c0_0 = arith.constant 0 : index
    %c0_1 = arith.constant 0 : index
    %c0_2 = arith.constant 0 : index
    %0 = vector.load %arg2[%c0, %c0_0, %c0_1, %c0_2] : memref<1x8x16x128xf32, #tpu.memory_space<vmem>>, vector<1x8x16x128xf32>
    %1 = vector.shape_cast %0 : vector<1x8x16x128xf32> to vector<8x16x128xf32>
    %2 = vector.shape_cast %1 : vector<8x16x128xf32> to vector<128x128xf32>
    %c0_3 = arith.constant 0 : index
    %c0_4 = arith.constant 0 : index
    %c0_5 = arith.constant 0 : index
    %c0_6 = arith.constant 0 : index
    %3 = vector.load %arg3[%c0_3, %c0_4, %c0_5, %c0_6] : memref<1x8x16x128xf32, #tpu.memory_space<vmem>>, vector<1x8x16x128xf32>
    %4 = vector.shape_cast %3 : vector<1x8x16x128xf32> to vector<8x16x128xf32>
    %5 = vector.shape_cast %4 : vector<8x16x128xf32> to vector<128x128xf32>
    %c0_7 = arith.constant 0 : index
    %c0_8 = arith.constant 0 : index
    %c0_9 = arith.constant 0 : index
    %c0_10 = arith.constant 0 : index
    %6 = vector.load %arg4[%c0_7, %c0_8, %c0_9, %c0_10] : memref<1x8x16x128xf32, #tpu.memory_space<vmem>>, vector<1x8x16x128xf32>
    %7 = vector.shape_cast %6 : vector<1x8x16x128xf32> to vector<8x16x128xf32>
    %8 = vector.shape_cast %7 : vector<8x16x128xf32> to vector<128x128xf32>
    %cst = arith.constant dense<0.000000e+00> : vector<128xf32>
    %9 = vector.multi_reduction <add>, %2, %cst [1] : vector<128x128xf32> to vector<128xf32>
    %10 = vector.shape_cast %9 : vector<128xf32> to vector<128x1xf32>
    %cst_11 = arith.constant 3.200000e+01 : f32
    %11 = vector.broadcast %cst_11 : f32 to vector<128x1xf32>
    %12 = arith.divf %10, %11 : vector<128x1xf32>
    %13 = arith.mulf %2, %2 : vector<128x128xf32>
    %cst_12 = arith.constant dense<0.000000e+00> : vector<128xf32>
    %14 = vector.multi_reduction <add>, %13, %cst_12 [1] : vector<128x128xf32> to vector<128xf32>
    %15 = vector.shape_cast %14 : vector<128xf32> to vector<128x1xf32>
    %cst_13 = arith.constant 3.200000e+01 : f32
    %16 = vector.broadcast %cst_13 : f32 to vector<128x1xf32>
    %17 = arith.divf %15, %16 : vector<128x1xf32>
    %18 = arith.mulf %12, %12 : vector<128x1xf32>
    %19 = arith.subf %17, %18 : vector<128x1xf32>
    %20 = vector.broadcast %12 : vector<128x1xf32> to vector<128x128xf32>
    %21 = arith.subf %2, %20 : vector<128x128xf32>
    %cst_14 = arith.constant 9.99999974E-6 : f32
    %22 = vector.broadcast %cst_14 : f32 to vector<128x1xf32>
    %23 = arith.addf %19, %22 : vector<128x1xf32>
    %24 = math.rsqrt %23 : vector<128x1xf32>
    %25 = vector.broadcast %24 : vector<128x1xf32> to vector<128x128xf32>
    %26 = arith.mulf %21, %25 : vector<128x128xf32>
    %c0_15 = arith.constant 0 : index
    %c0_16 = arith.constant 0 : index
    %27 = vector.load %arg5[%c0_15, %c0_16] : memref<2x128xf32, #tpu.memory_space<vmem>>, vector<1x128xf32>
    %28 = vector.broadcast %27 : vector<1x128xf32> to vector<128x128xf32>
    %29 = arith.mulf %26, %28 : vector<128x128xf32>
    %c1 = arith.constant 1 : index
    %c0_17 = arith.constant 0 : index
    %30 = vector.load %arg5[%c1, %c0_17] : memref<2x128xf32, #tpu.memory_space<vmem>>, vector<1x128xf32>
    %31 = vector.broadcast %30 : vector<1x128xf32> to vector<128x128xf32>
    %32 = arith.addf %29, %31 : vector<128x128xf32>
    %c0_18 = arith.constant 0 : index
    %c0_19 = arith.constant 0 : index
    %33 = vector.load %arg6[%c0_18, %c0_19] : memref<128x128xf32, #tpu.memory_space<vmem>>, vector<128x128xf32>
    %cst_20 = arith.constant dense<0.000000e+00> : vector<128x128xf32>
    %34 = tpu.matmul %32, %33, %cst_20 {dimension_numbers = #tpu.dot_dimension_numbers<[1], [0], [0], [1], [0, 0, 1, 1], [], []>} : vector<128x128xf32>, vector<128x128xf32>, vector<128x128xf32> -> vector<128x128xf32>
    %c0_21 = arith.constant 0 : index
    %c0_22 = arith.constant 0 : index
    %35 = vector.load %arg7[%c0_21, %c0_22] : memref<1x128xf32, #tpu.memory_space<vmem>>, vector<1x128xf32>
    %36 = vector.broadcast %35 : vector<1x128xf32> to vector<128x128xf32>
    %37 = arith.addf %34, %36 : vector<128x128xf32>
    %38 = arith.negf %37 : vector<128x128xf32>
    %39 = math.exp %38 : vector<128x128xf32>
    %cst_23 = arith.constant 1.000000e+00 : f32
    %40 = vector.broadcast %cst_23 : f32 to vector<128x128xf32>
    %41 = arith.addf %40, %39 : vector<128x128xf32>
    %42 = arith.divf %40, %41 : vector<128x128xf32>
    %43 = arith.mulf %37, %42 : vector<128x128xf32>
    %c0_24 = arith.constant 0 : index
    %c0_25 = arith.constant 0 : index
    %44 = vector.load %arg8[%c0_24, %c0_25] : memref<128x128xf32, #tpu.memory_space<vmem>>, vector<128x128xf32>
    %cst_26 = arith.constant dense<0.000000e+00> : vector<128x128xf32>
    %45 = tpu.matmul %5, %44, %cst_26 {dimension_numbers = #tpu.dot_dimension_numbers<[1], [0], [0], [1], [0, 0, 1, 1], [], []>} : vector<128x128xf32>, vector<128x128xf32>, vector<128x128xf32> -> vector<128x128xf32>
    %c0_27 = arith.constant 0 : index
    %c0_28 = arith.constant 0 : index
    %46 = vector.load %arg9[%c0_27, %c0_28] : memref<128x128xf32, #tpu.memory_space<vmem>>, vector<128x128xf32>
    %cst_29 = arith.constant dense<0.000000e+00> : vector<128x128xf32>
    %47 = tpu.matmul %43, %46, %cst_29 {dimension_numbers = #tpu.dot_dimension_numbers<[1], [0], [0], [1], [0, 0, 1, 1], [], []>} : vector<128x128xf32>, vector<128x128xf32>, vector<128x128xf32> -> vector<128x128xf32>
    %48 = arith.addf %45, %47 : vector<128x128xf32>
    %c0_30 = arith.constant 0 : index
    %c0_31 = arith.constant 0 : index
    %49 = vector.load %arg10[%c0_30, %c0_31] : memref<1x128xf32, #tpu.memory_space<vmem>>, vector<1x128xf32>
    %50 = vector.broadcast %49 : vector<1x128xf32> to vector<128x128xf32>
    %51 = arith.addf %48, %50 : vector<128x128xf32>
    %52 = arith.negf %51 : vector<128x128xf32>
    %53 = math.exp %52 : vector<128x128xf32>
    %cst_32 = arith.constant 1.000000e+00 : f32
    %54 = vector.broadcast %cst_32 : f32 to vector<128x128xf32>
    %55 = arith.addf %54, %53 : vector<128x128xf32>
    %56 = arith.divf %54, %55 : vector<128x128xf32>
    %57 = arith.mulf %51, %56 : vector<128x128xf32>
    %58 = arith.addf %57, %8 : vector<128x128xf32>
    %59 = vector.shape_cast %58 : vector<128x128xf32> to vector<8x16x128xf32>
    %c0_33 = arith.constant 0 : index
    %c0_34 = arith.constant 0 : index
    %c0_35 = arith.constant 0 : index
    %c0_36 = arith.constant 0 : index
    %60 = vector.load %arg11[%c0_33, %c0_34, %c0_35, %c0_36] : memref<1x8x16x128xf32, #tpu.memory_space<vmem>>, vector<1x8x16x128xf32>
    %61 = vector.shape_cast %60 : vector<1x8x16x128xf32> to vector<8x16x128xf32>
    %62 = vector.shape_cast %59 : vector<8x16x128xf32> to vector<1x8x16x128xf32>
    tpu.vector_store %arg11[%c0_33, %c0_34, %c0_35, %c0_36], %62 {strides = array<i32>} : memref<1x8x16x128xf32, #tpu.memory_space<vmem>>, vector<1x8x16x128xf32>,
    return
  }
  func.func @transform_0(%arg0: i32, %arg1: i32) -> (i32, i32, i32, i32) {
    %c0_i32 = arith.constant 0 : i32
    %c0_i32_0 = arith.constant 0 : i32
    %c0_i32_1 = arith.constant 0 : i32
    return %arg0, %arg1, %c0_i32, %c0_i32_0 : i32, i32, i32, i32
  }
  func.func @transform_1(%arg0: i32, %arg1: i32) -> (i32, i32, i32, i32) {
    %c0_i32 = arith.constant 0 : i32
    %c0_i32_0 = arith.constant 0 : i32
    %c0_i32_1 = arith.constant 0 : i32
    return %arg0, %arg1, %c0_i32, %c0_i32_0 : i32, i32, i32, i32
  }
  func.func @transform_2(%arg0: i32, %arg1: i32) -> (i32, i32, i32, i32) {
    %c0_i32 = arith.constant 0 : i32
    %c0_i32_0 = arith.constant 0 : i32
    %c0_i32_1 = arith.constant 0 : i32
    return %arg0, %arg1, %c0_i32, %c0_i32_0 : i32, i32, i32, i32
  }
  func.func @transform_3(%arg0: i32, %arg1: i32) -> (i32, i32) {
    %c0_i32 = arith.constant 0 : i32
    %c0_i32_0 = arith.constant 0 : i32
    %c0_i32_1 = arith.constant 0 : i32
    return %c0_i32, %c0_i32_0 : i32, i32
  }
  func.func @transform_4(%arg0: i32, %arg1: i32) -> (i32, i32) {
    %c0_i32 = arith.constant 0 : i32
    %c0_i32_0 = arith.constant 0 : i32
    %c0_i32_1 = arith.constant 0 : i32
    return %c0_i32, %c0_i32_0 : i32, i32
  }
  func.func @transform_5(%arg0: i32, %arg1: i32) -> (i32, i32) {
    %c0_i32 = arith.constant 0 : i32
    %c0_i32_0 = arith.constant 0 : i32
    %c0_i32_1 = arith.constant 0 : i32
    return %c0_i32, %c0_i32_0 : i32, i32
  }
  func.func @transform_6(%arg0: i32, %arg1: i32) -> (i32, i32) {
    %c0_i32 = arith.constant 0 : i32
    %c0_i32_0 = arith.constant 0 : i32
    %c0_i32_1 = arith.constant 0 : i32
    return %c0_i32, %c0_i32_0 : i32, i32
  }
  func.func @transform_7(%arg0: i32, %arg1: i32) -> (i32, i32) {
    %c0_i32 = arith.constant 0 : i32
    %c0_i32_0 = arith.constant 0 : i32
    %c0_i32_1 = arith.constant 0 : i32
    return %c0_i32, %c0_i32_0 : i32, i32
  }
  func.func @transform_8(%arg0: i32, %arg1: i32) -> (i32, i32) {
    %c0_i32 = arith.constant 0 : i32
    %c0_i32_0 = arith.constant 0 : i32
    %c0_i32_1 = arith.constant 0 : i32
    return %c0_i32, %c0_i32_0 : i32, i32
  }
  func.func @transform_9(%arg0: i32, %arg1: i32) -> (i32, i32, i32, i32) {
    %c0_i32 = arith.constant 0 : i32
    %c0_i32_0 = arith.constant 0 : i32
    %c0_i32_1 = arith.constant 0 : i32
    return %arg0, %arg1, %c0_i32, %c0_i32_0 : i32, i32, i32, i32
  }
}

</mosaic_0001>

<bundles_post_ra>
// kernel: mobilevit_block_v3_forward.7
= control target key start
LH: loop header
LB: loop body
LE: loop exit
PB: predicated region body
PF: predicated region fallthrough
CT: control target
= control target key end

     0   :  { %s2309_s30 = smov 0   ;;  %s2311_s10 = smov 0   ;;  %s3044_s0 = inlined_call_operand.vmem [shape: f32[2,16,16,128], index: 0, kind: input, shape index: {}]   ;;  %s3045_s1 = inlined_call_operand.vmem [shape: f32[2,16,16,128], index: 1, kind: input, shape index: {}]   ;;  %s3046_s2 = inlined_call_operand.vmem [shape: f32[2,16,16,128], index: 2, kind: input, shape index: {}]   ;;  %s3047_s3 = inlined_call_operand.vmem [shape: f32[2,128], index: 3, kind: input, shape index: {}]   ;;  %s3048_s4 = inlined_call_operand.vmem [shape: f32[128,128], index: 4, kind: input, shape index: {}]   ;;  %s3049_s5 = inlined_call_operand.vmem [shape: f32[1,128], index: 5, kind: input, shape index: {}]   ;;  %s3050_s6 = inlined_call_operand.vmem [shape: f32[128,128], index: 6, kind: input, shape index: {}]   ;;  %s3051_s7 = inlined_call_operand.vmem [shape: f32[128,128], index: 7, kind: input, shape index: {}]   ;;  %s3052_s8 = inlined_call_operand.vmem [shape: f32[1,128], index: 8, kind: input, shape index: {}]   ;;  %s3053_s9 = inlined_call_operand.vmem [shape: f32[2,16,16,128], index: 9, kind: output, shape index: {}]  }
   0x1   :  { %s2313_s11 = smov 0   ;;  %s2315_s12 = smov 0  }
   0x2   :  { %s2317_s13 = smov 0  }
   0x3 LB: > { %s28_s14 = sadd.s32 1, %s2249_s11  ;;  %s31_s15 = sadd.s32 1, %s2253_s12  ;;  %s2257_s13 = sphi %s2317_s13, %s19_s13   ;;  %s2253_s12 = sphi %s2315_s12, %s3057_s12   ;;  %s2249_s11 = sphi %s2313_s11, %s3056_s11   ;;  %s2245_s10 = sphi %s2311_s10, %s3055_s10   ;;  %s2241_s30 = sphi %s2309_s30, %s3054_s30  }
   0x4   : > { %p29_p0 = scmp.ge.s32.totalorder %s28_s14, 2  ;;  %p1668_p1 = scmp.ge.s32.totalorder %s2257_s13, 1 }
   0x5   : > { %p345_p2 = scmp.lt.s32.totalorder %s2257_s13, 5 }
   0x6   : > { %s3059_s14 = smov (%p29_p0, %s28_s14), 0  ;;  %s3061_s15 = smov (!%p29_p0, %s31_s15), %s2253_s12 }
   0x7   : > { %p346_p3 = pnand %p1668_p1, %p345_p2  ;;  %p33_p4 = scmp.ge.s32.totalorder %s3061_s15, 2 }
   0x8   : > { %s1669_s16 = sshll.u32 (!%p346_p3), %s2241_s30, 3  ;;  %p412_p5 = scmp.lt.s32.totalorder (!%p346_p3), %s2245_s10, 1 }
   0x9   : > { %s3063_s15 = smov (%p33_p4, %s3061_s15), 0  ;;  %349 = sbr.rel (%p346_p3) target bundleno = 729 (0x2d9), region = 56 }
   0xa   : > { %p414_p6 = scmp.lt.s32.totalorder (!%p346_p3), %s1669_s16, 15 }
   0xe   : > { %s3065_s10 = smov (!%p412_p5, %s2245_s10), 1  ;;  %s3067_s16 = smov (!%p414_p6, %s1669_s16), 15  ;;  %v769_v8 = vld [vmem:[%s3048_s4 + $0x78] sm:$0xff]  ;;  %v768_v11 = vld [vmem:[%s3048_s4 + $0x70] sm:$0xff]  ;;  %v767_v12 = vld [vmem:[%s3048_s4 + $0x68] sm:$0xff] }
   0xf   : > { %s1671_s17 = sshll.u32 %s3065_s10, 5  ;;  %s1670_s18 = sshll.u32 %s3067_s16, 1  ;;  %1819 = vmatprep.subr.mxu0 %v769_v8  ;;  %v766_v15 = vld [vmem:[%s3048_s4 + $0x60] sm:$0xff]  ;;  %v765_v16 = vld [vmem:[%s3048_s4 + $0x58] sm:$0xff]  ;;  %v764_v19 = vld [vmem:[%s3048_s4 + $0x50] sm:$0xff] }
  0x10   : > { %s418_s19 = sadd.s32 %s1671_s17, %s1670_s18  ;;  %1820 = vmatpush3.msra.mxu0 %v769_v8  ;;  %v763_v22 = vld [vmem:[%s3048_s4 + $0x48] sm:$0xff]  ;;  %v762_v23 = vld [vmem:[%s3048_s4 + $0x40] sm:$0xff]  ;;  %v761_v26 = vld [vmem:[%s3048_s4 + $0x38] sm:$0xff] }
  0x11   : > { %s2339_s20 = sshll.u32 %s418_s19, 3  ;;  %1821 = vmatprep.subr.mxu0 %v768_v11  ;;  %v760_v29 = vld [vmem:[%s3048_s4 + $0x30] sm:$0xff]  ;;  %v759_v30 = vld [vmem:[%s3048_s4 + $0x28] sm:$0xff]  ;;  %v758_v33 = vld [vmem:[%s3048_s4 + $0x20] sm:$0xff] }
  0x12   : > { %s2345_s23 = scalar_lea.vmem %s3044_s0, %s2339_s20  ;;  %1822 = vmatpush3.msra.mxu0 %v768_v11  ;;  %v757_v36 = vld [vmem:[%s3048_s4 + $0x18] sm:$0xff]  ;;  %v756_v37 = vld [vmem:[%s3048_s4 + $0x10] sm:$0xff]  ;;  %v755_v40 = vld [vmem:[%s3048_s4 + $0x8] sm:$0xff]  ;;  %s2771_s22 = scalar_lea.vmem %s3045_s1, %s2339_s20 }
  0x13   : > { %v2348_v0 = vld [vmem:[%s2345_s23 + $0x18] sm:$0xff]  ;;  %v2351_v1 = vld [vmem:[%s2345_s23] sm:$0xff]  ;;  %v2358_v3 = vld [vmem:[%s2345_s23 + $0x8] sm:$0xff]  ;;  %1823 = vmatprep.subr.mxu0 %v767_v12  ;;  %s2941_s29 = scalar_lea.vmem %s3046_s2, %s2339_s20  ;;  %s2949_s16 = scalar_lea.vmem %s3053_s9, %s2339_s20 }
  0x14   : > { %509 = vadd.xlane.f32.xlu1 %v2348_v0  ;;  %503 = vadd.xlane.f32.xlu0 %v2351_v1  ;;  %v552_v2 = vmul.f32 %v2351_v1, %v2351_v1  ;;  %v553_v4 = vmul.f32 %v2358_v3, %v2358_v3  ;;  %v2364_v5 = vld [vmem:[%s2345_s23 + $0x10] sm:$0xff]  ;;  %v555_v7 = vmul.f32 %v2348_v0, %v2348_v0  ;;  %v2375_v9 = vld [vmem:[%s2345_s23 + $0x20] sm:$0xff]  ;;  %v2378_v10 = vld [vmem:[%s2345_s23 + $0x28] sm:$0xff] }
  0x15   : > { %v554_v6 = vmul.f32 %v2364_v5, %v2364_v5  ;;  %v556_v13 = vmul.f32 %v2375_v9, %v2375_v9  ;;  %v557_v14 = vmul.f32 %v2378_v10, %v2378_v10  ;;  %1824 = vmatpush3.msra.mxu0 %v767_v12  ;;  %v2399_v17 = vld [vmem:[%s2345_s23 + $0x30] sm:$0xff]  ;;  %v2402_v18 = vld [vmem:[%s2345_s23 + $0x38] sm:$0xff]  ;;  %v2420_v24 = vld [vmem:[%s2345_s23 + $0x40] sm:$0xff] }
  0x16   : > { %1825 = vmatprep.subr.mxu0 %v766_v15  ;;  %v558_v20 = vmul.f32 %v2399_v17, %v2399_v17  ;;  %v559_v21 = vmul.f32 %v2402_v18, %v2402_v18  ;;  %v2423_v25 = vld [vmem:[%s2345_s23 + $0x48] sm:$0xff]  ;;  %v560_v27 = vmul.f32 %v2420_v24, %v2420_v24  ;;  %v2441_v31 = vld [vmem:[%s2345_s23 + $0x50] sm:$0xff]  ;;  %v2444_v32 = vld [vmem:[%s2345_s23 + $0x58] sm:$0xff] }
  0x17   : > { %1826 = vmatpush3.msra.mxu0 %v766_v15  ;;  %v561_v28 = vmul.f32 %v2423_v25, %v2423_v25  ;;  %v562_v34 = vmul.f32 %v2441_v31, %v2441_v31  ;;  %v563_v35 = vmul.f32 %v2444_v32, %v2444_v32  ;;  %v2462_v38 = vld [vmem:[%s2345_s23 + $0x60] sm:$0xff]  ;;  %v2465_v39 = vld [vmem:[%s2345_s23 + $0x68] sm:$0xff]  ;;  %v2480_v44 = vld [vmem:[%s2345_s23 + $0x70] sm:$0xff] }
  0x18   : > { %505 = vadd.xlane.f32.xlu0 %v2358_v3  ;;  %568 = vadd.xlane.f32.xlu1 %v552_v2  ;;  %v564_v41 = vmul.f32 %v2462_v38, %v2462_v38  ;;  %v565_v42 = vmul.f32 %v2465_v39, %v2465_v39  ;;  %v754_v43 = vld [vmem:[%s3048_s4] sm:$0xff]  ;;  %v2483_v45 = vld [vmem:[%s2345_s23 + $0x78] sm:$0xff]  ;;  %v566_v46 = vmul.f32 %v2480_v44, %v2480_v44 }
  0x19   : > { %1827 = vmatprep.subr.mxu0 %v765_v16  ;;  %v567_v47 = vmul.f32 %v2483_v45, %v2483_v45 }
  0x1a   : > { %1828 = vmatpush3.msra.mxu0 %v765_v16 }
  0x1b   : > { %1829 = vmatprep.subr.mxu0 %v764_v19 }
  0x1c   : > { %507 = vadd.xlane.f32.xlu0 %v2364_v5  ;;  %570 = vadd.xlane.f32.xlu1 %v553_v4 }
  0x1d   : > { %1830 = vmatpush3.msra.mxu0 %v764_v19 }
  0x1e   : > { %1831 = vmatprep.subr.mxu0 %v763_v22 }
  0x1f   : > { %1832 = vmatpush3.msra.mxu0 %v763_v22 }
  0x20   : > { %572 = vadd.xlane.f32.xlu0 %v554_v6  ;;  %574 = vadd.xlane.f32.xlu1 %v555_v7 }
  0x21   : > { %1833 = vmatprep.subr.mxu0 %v762_v23 }
  0x22   : > { %1834 = vmatpush3.msra.mxu0 %v762_v23 }
  0x23   : > { %1835 = vmatprep.subr.mxu0 %v761_v26 }
  0x24   : > { %511 = vadd.xlane.f32.xlu0 %v2375_v9  ;;  %513 = vadd.xlane.f32.xlu1 %v2378_v10 }
  0x25   : > { %1836 = vmatpush3.msra.mxu0 %v761_v26 }
  0x26   : > { %1837 = vmatprep.subr.mxu0 %v760_v29 }
  0x27   : > { %1838 = vmatpush3.msra.mxu0 %v760_v29 }
  0x28   : > { %576 = vadd.xlane.f32.xlu0 %v556_v13  ;;  %578 = vadd.xlane.f32.xlu1 %v557_v14 }
  0x29   : > { %1839 = vmatprep.subr.mxu0 %v759_v30 }
  0x2a   : > { %1840 = vmatpush3.msra.mxu0 %v759_v30 }
  0x2b   : > { %1841 = vmatprep.subr.mxu0 %v758_v33 }
  0x2c   : > { %515 = vadd.xlane.f32.xlu0 %v2399_v17  ;;  %517 = vadd.xlane.f32.xlu1 %v2402_v18 }
  0x2d   : > { %1842 = vmatpush3.msra.mxu0 %v758_v33 }
  0x2e   : > { %1843 = vmatprep.subr.mxu0 %v757_v36 }
  0x2f   : > { %1844 = vmatpush3.msra.mxu0 %v757_v36 }
  0x30   : > { %580 = vadd.xlane.f32.xlu0 %v558_v20  ;;  %582 = vadd.xlane.f32.xlu1 %v559_v21 }
  0x31   : > { %1845 = vmatprep.subr.mxu0 %v756_v37 }
  0x32   : > { %1846 = vmatpush3.msra.mxu0 %v756_v37 }
  0x33   : > { %1847 = vmatprep.subr.mxu0 %v755_v40 }
  0x34   : > { %519 = vadd.xlane.f32.xlu0 %v2420_v24  ;;  %521 = vadd.xlane.f32.xlu1 %v2423_v25 }
  0x35   : > { %1848 = vmatpush3.msra.mxu0 %v755_v40 }
  0x36   : > { %1849 = vmatprep.subr.mxu0 %v754_v43 }
  0x37   : > { %1850 = vmatpush3.msra.mxu0 %v754_v43 }
  0x38   : > { %584 = vadd.xlane.f32.xlu0 %v560_v27  ;;  %586 = vadd.xlane.f32.xlu1 %v561_v28 }
  0x3c   : > { %523 = vadd.xlane.f32.xlu0 %v2441_v31  ;;  %525 = vadd.xlane.f32.xlu1 %v2444_v32 }
  0x40   : > { %588 = vadd.xlane.f32.xlu0 %v562_v34  ;;  %590 = vadd.xlane.f32.xlu1 %v563_v35 }
  0x44   : > { %527 = vadd.xlane.f32.xlu0 %v2462_v38  ;;  %529 = vadd.xlane.f32.xlu1 %v2465_v39 }
  0x48   : > { %592 = vadd.xlane.f32.xlu0 %v564_v41  ;;  %594 = vadd.xlane.f32.xlu1 %v565_v42  ;;  %v2511_v42 = vld [vmem:[%s3047_s3] ss:$0 sm:$0xff] }
  0x4c   : > { %531 = vadd.xlane.f32.xlu0 %v2480_v44  ;;  %533 = vadd.xlane.f32.xlu1 %v2483_v45 }
  0x50   : > { %596 = vadd.xlane.f32.xlu0 %v566_v46  ;;  %598 = vadd.xlane.f32.xlu1 %v567_v47 }
  0x9d   : > { %v510_v48 = vpop.xlane.xlu1 %509  ;;  %v504_v49 = vpop.xlane.xlu0 %503 }
  0x9e   : > { %v536_v50 = vmul.f32 0.03125, %v504_v49  ;;  %v2491_v57 = vmul.f32 0.03125, %v510_v48 }
  0xa0   : > { %v616_v53 = vmul.f32 %v536_v50, %v536_v50  ;;  %v619_v4 = vmul.f32 %v2491_v57, %v2491_v57  ;;  %v648_v37 = vsub.f32 %v2351_v1, %v536_v50  ;;  %v2523_v50 = vld [vmem:[%s3047_s3 + $0x1] ss:$0 sm:$0xff] }
  0xa1   : > { %v506_v51 = vpop.xlane.xlu0 %505  ;;  %v569_v52 = vpop.xlane.xlu1 %568 }
  0xa2   : > { %v537_v54 = vmul.f32 0.03125, %v506_v51  ;;  %v600_v55 = vmul.f32 0.03125, %v569_v52 }
  0xa4   : > { %v632_v56 = vsub.f32 %v600_v55, %v616_v53  ;;  %v617_v60 = vmul.f32 %v537_v54, %v537_v54  ;;  %v649_v51 = vsub.f32 %v2358_v3, %v537_v54 }
  0xa5   : > { %v508_v58 = vpop.xlane.xlu0 %507  ;;  %v571_v59 = vpop.xlane.xlu1 %570 }
  0xa6   : > { %v664_v61 = vadd.f32 1e-05, %v632_v56  ;;  %v2493_v62 = vmul.f32 0.03125, %v508_v58  ;;  %v601_v63 = vmul.f32 0.03125, %v571_v59 }
  0xa8   : > { %2059 = vrsqrt.f32 %v664_v61  ;;  %v633_v2 = vsub.f32 %v601_v63, %v617_v60  ;;  %v618_v8 = vmul.f32 %v2493_v62, %v2493_v62 }
  0xa9   : > { %v573_v6 = vpop.xlane.xlu0 %572  ;;  %v575_v7 = vpop.xlane.xlu1 %574 }
  0xaa   : > { %v665_v11 = vadd.f32 1e-05, %v633_v2  ;;  %v602_v12 = vmul.f32 0.03125, %v573_v6  ;;  %v603_v13 = vmul.f32 0.03125, %v575_v7  ;;  %v651_v6 = vsub.f32 %v2348_v0, %v2491_v57 }
  0xab   : > { %v650_v7 = vsub.f32 %v2364_v5, %v2493_v62 }
  0xac   : > { %2061 = vrsqrt.f32 %v665_v11  ;;  %v634_v14 = vsub.f32 %v602_v12, %v618_v8  ;;  %v635_v15 = vsub.f32 %v603_v13, %v619_v4 }
  0xad   : > { %v512_v16 = vpop.xlane.xlu0 %511  ;;  %v514_v19 = vpop.xlane.xlu1 %513 }
  0xae   : > { %v666_v20 = vadd.f32 1e-05, %v634_v14  ;;  %v667_v21 = vadd.f32 1e-05, %v635_v15  ;;  %v2499_v22 = vmul.f32 0.03125, %v512_v16  ;;  %v2501_v23 = vmul.f32 0.03125, %v514_v19 }
  0xb0   : > { %2063 = vrsqrt.f32 %v666_v20  ;;  %v621_v26 = vmul.f32 %v2501_v23, %v2501_v23  ;;  %v620_v29 = vmul.f32 %v2499_v22, %v2499_v22 }
  0xb1   : > { %2065 = vrsqrt.f32 %v667_v21  ;;  %v577_v27 = vpop.xlane.xlu0 %576  ;;  %v579_v28 = vpop.xlane.xlu1 %578 }
  0xb2   : > { %v604_v30 = vmul.f32 0.03125, %v577_v27  ;;  %v605_v33 = vmul.f32 0.03125, %v579_v28 }
  0xb4   : > { %v636_v34 = vsub.f32 %v604_v30, %v620_v29  ;;  %v637_v35 = vsub.f32 %v605_v33, %v621_v26 }
  0xb5   : > { %v2060_v36 = vpop.eup %2059  ;;  %v516_v40 = vpop.xlane.xlu0 %515 }
  0xb6   : > { %v518_v41 = vpop.xlane.xlu1 %517  ;;  %v668_v43 = vadd.f32 1e-05, %v636_v34  ;;  %v669_v46 = vadd.f32 1e-05, %v637_v35  ;;  %v2513_v47 = vmul.f32 0.03125, %v516_v40  ;;  %v696_v49 = vmul.f32 %v2060_v36, %v648_v37 }
  0xb7   : > { %v2515_v48 = vmul.f32 0.03125, %v518_v41  ;;  %v652_v37 = vsub.f32 %v2375_v9, %v2499_v22  ;;  %v653_v40 = vsub.f32 %v2378_v10, %v2501_v23 }
  0xb8   : > { %2067 = vrsqrt.f32 %v668_v43  ;;  %v717_v56 = vmul.f32 %v2511_v42, %v696_v49  ;;  %v622_v58 = vmul.f32 %v2513_v47, %v2513_v47 }
  0xb9   : > { %v623_v1 = vmul.f32 %v2515_v48, %v2515_v48  ;;  %v2062_v52 = vpop.eup %2061  ;;  %2069 = vrsqrt.f32 %v669_v46  ;;  %v581_v53 = vpop.xlane.xlu0 %580 }
  0xba   : > { %v583_v55 = vpop.xlane.xlu1 %582  ;;  %v606_v59 = vmul.f32 0.03125, %v581_v53  ;;  %v697_v54 = vmul.f32 %v2062_v52, %v649_v51  ;;  %v738_v60 = vadd.f32 %v2523_v50, %v717_v56 }
  0xbb   : > { %v607_v3 = vmul.f32 0.03125, %v583_v55 }
  0xbc   : > { %v638_v61 = vsub.f32 %v606_v59, %v622_v58  ;;  %v718_v2 = vmul.f32 %v2511_v42, %v697_v54  ;;  %1851 = vmatprep.mubr.f32.mxu0 %v738_v60 }
  0xbd   : > { %v639_v63 = vsub.f32 %v607_v3, %v623_v1  ;;  %v2064_v4 = vpop.eup %2063  ;;  %v520_v8 = vpop.xlane.xlu0 %519 }
  0xbe   : > { %v522_v11 = vpop.xlane.xlu1 %521  ;;  %v2066_v12 = vpop.eup %2065  ;;  %v670_v13 = vadd.f32 1e-05, %v638_v61  ;;  %v2534_v15 = vmul.f32 0.03125, %v520_v8  ;;  %v739_v19 = vadd.f32 %v2523_v50, %v718_v2  ;;  %v698_v20 = vmul.f32 %v2064_v4, %v650_v7 }
  0xbf   : > { %v671_v14 = vadd.f32 1e-05, %v639_v63  ;;  %v2536_v16 = vmul.f32 0.03125, %v522_v11  ;;  %v699_v21 = vmul.f32 %v2066_v12, %v651_v6  ;;  %v654_v4 = vsub.f32 %v2399_v17, %v2513_v47 }
  0xc0   : > { %2071 = vrsqrt.f32 %v670_v13  ;;  %1852 = vmatmul.mubr.f32.vlgmr.msra.gmra.mxu0 %v739_v19  ;;  %v719_v62 = vmul.f32 %v2511_v42, %v698_v20  ;;  %v624_v27 = vmul.f32 %v2534_v15, %v2534_v15  ;;  %v655_v6 = vsub.f32 %v2402_v18, %v2515_v48 }
  0xc1   : > { %v625_v0 = vmul.f32 %v2536_v16, %v2536_v16  ;;  %2073 = vrsqrt.f32 %v671_v14  ;;  %v585_v5 = vpop.xlane.xlu0 %584  ;;  %v720_v26 = vmul.f32 %v2511_v42, %v699_v21 }
  0xc2   : > { %v587_v57 = vpop.xlane.xlu1 %586  ;;  %v608_v28 = vmul.f32 0.03125, %v585_v5  ;;  %v740_v30 = vadd.f32 %v2523_v50, %v719_v62 }
  0xc3   : > { %v609_v29 = vmul.f32 0.03125, %v587_v57  ;;  %v741_v33 = vadd.f32 %v2523_v50, %v720_v26 }
  0xc4   : > { %v640_v34 = vsub.f32 %v608_v28, %v624_v27  ;;  %1854 = vmatprep.mubr.f32.mxu0 %v740_v30 }
  0xc5   : > { %v641_v35 = vsub.f32 %v609_v29, %v625_v0  ;;  %v2068_v36 = vpop.eup %2067  ;;  %v524_v41 = vpop.xlane.xlu0 %523  ;;  %1855 = vmatmul.mubr.f32.gmra.mxu0 %v741_v33  ;;  %v656_v33 = vsub.f32 %v2420_v24, %v2534_v15 }
  0xc6   : > { %v526_v43 = vpop.xlane.xlu1 %525  ;;  %v2070_v46 = vpop.eup %2069  ;;  %v672_v49 = vadd.f32 1e-05, %v640_v34  ;;  %v2551_v1 = vmul.f32 0.03125, %v524_v41  ;;  %v700_v53 = vmul.f32 %v2068_v36, %v652_v37  ;;  %v657_v34 = vsub.f32 %v2423_v25, %v2536_v16 }
  0xc7   : > { %v673_v51 = vadd.f32 1e-05, %v641_v35  ;;  %v2553_v52 = vmul.f32 0.03125, %v526_v43  ;;  %v701_v55 = vmul.f32 %v2070_v46, %v653_v40 }
  0xc8   : > { %2075 = vrsqrt.f32 %v672_v49  ;;  %v721_v23 = vmul.f32 %v2511_v42, %v700_v53  ;;  %v626_v58 = vmul.f32 %v2551_v1, %v2551_v1 }
  0xc9   : > { %v627_v9 = vmul.f32 %v2553_v52, %v2553_v52  ;;  %2077 = vrsqrt.f32 %v673_v51  ;;  %v589_v22 = vpop.xlane.xlu0 %588  ;;  %v722_v56 = vmul.f32 %v2511_v42, %v701_v55 }
  0xca   : > { %v591_v10 = vpop.xlane.xlu1 %590  ;;  %v610_v59 = vmul.f32 0.03125, %v589_v22  ;;  %v742_v54 = vadd.f32 %v2523_v50, %v721_v23 }
  0xcb   : > { %v611_v3 = vmul.f32 0.03125, %v591_v10  ;;  %v743_v60 = vadd.f32 %v2523_v50, %v722_v56  ;;  %v658_v56 = vsub.f32 %v2441_v31, %v2551_v1 }
  0xcc   : > { %v642_v61 = vsub.f32 %v610_v59, %v626_v58  ;;  %1857 = vmatprep.mubr.f32.mxu0 %v742_v54  ;;  %v659_v54 = vsub.f32 %v2444_v32, %v2553_v52 }
  0xcd   : > { %v643_v63 = vsub.f32 %v611_v3, %v627_v9  ;;  %v2072_v2 = vpop.eup %2071  ;;  %v528_v7 = vpop.xlane.xlu0 %527  ;;  %1858 = vmatmul.mubr.f32.gmra.mxu0 %v743_v60 }
  0xce   : > { %v530_v8 = vpop.xlane.xlu1 %529  ;;  %v2074_v11 = vpop.eup %2073  ;;  %v674_v12 = vadd.f32 1e-05, %v642_v61  ;;  %v2567_v14 = vmul.f32 0.03125, %v528_v7  ;;  %v702_v20 = vmul.f32 %v2072_v2, %v654_v4 }
  0xcf   : > { %v675_v13 = vadd.f32 1e-05, %v643_v63  ;;  %v2569_v19 = vmul.f32 0.03125, %v530_v8  ;;  %v703_v21 = vmul.f32 %v2074_v11, %v655_v6 }
  0xd0   : > { %2079 = vrsqrt.f32 %v674_v12  ;;  %v723_v48 = vmul.f32 %v2511_v42, %v702_v20  ;;  %v628_v5 = vmul.f32 %v2567_v14, %v2567_v14  ;;  %v660_v32 = vsub.f32 %v2462_v38, %v2567_v14 }
  0xd1   : > { %v629_v17 = vmul.f32 %v2569_v19, %v2569_v19  ;;  %2081 = vrsqrt.f32 %v675_v13  ;;  %v593_v47 = vpop.xlane.xlu0 %592  ;;  %v724_v0 = vmul.f32 %v2511_v42, %v703_v21  ;;  %v661_v8 = vsub.f32 %v2465_v39, %v2569_v19 }
  0xd2   : > { %v595_v18 = vpop.xlane.xlu1 %594  ;;  %v612_v57 = vmul.f32 0.03125, %v593_v47  ;;  %v744_v26 = vadd.f32 %v2523_v50, %v723_v48 }
  0xd3   : > { %v613_v62 = vmul.f32 0.03125, %v595_v18  ;;  %v745_v27 = vadd.f32 %v2523_v50, %v724_v0 }
  0xd4   : > { %v644_v28 = vsub.f32 %v612_v57, %v628_v5  ;;  %1860 = vmatprep.mubr.f32.mxu0 %v744_v26  ;;  %v1063_v26 = vld [vmem:[%s3051_s7 + $0x68] sm:$0xff] }
  0xd5   : > { %v645_v29 = vsub.f32 %v613_v62, %v629_v17  ;;  %v2076_v30 = vpop.eup %2075  ;;  %v532_v35 = vpop.xlane.xlu0 %531  ;;  %1861 = vmatmul.mubr.f32.gmra.mxu0 %v745_v27  ;;  %v2635_v27 = vld [vmem:[%s3050_s6 + $0x68] sm:$0xff] }
  0xd6   : > { %v534_v36 = vpop.xlane.xlu1 %533  ;;  %v2078_v37 = vpop.eup %2077  ;;  %v676_v40 = vadd.f32 1e-05, %v644_v28  ;;  %v550_v43 = vmul.f32 0.03125, %v532_v35  ;;  %v704_v49 = vmul.f32 %v2076_v30, %v656_v33  ;;  %v1062_v28 = vld [vmem:[%s3051_s7 + $0x60] sm:$0xff]  ;;  %v1061_v30 = vld [vmem:[%s3051_s7 + $0x58] sm:$0xff]  ;;  %v2665_v35 = vld [vmem:[%s3050_s6 + $0x50] sm:$0xff] }
  0xd7   : > { %v677_v41 = vadd.f32 1e-05, %v645_v29  ;;  %v551_v46 = vmul.f32 0.03125, %v534_v36  ;;  %v705_v51 = vmul.f32 %v2078_v37, %v657_v34  ;;  %v2645_v29 = vld [vmem:[%s3050_s6 + $0x60] sm:$0xff]  ;;  %v2655_v33 = vld [vmem:[%s3050_s6 + $0x58] sm:$0xff]  ;;  %v1060_v34 = vld [vmem:[%s3051_s7 + $0x50] sm:$0xff] }
  0xd8   : > { %2083 = vrsqrt.f32 %v676_v40  ;;  %v725_v24 = vmul.f32 %v2511_v42, %v704_v49  ;;  %v630_v15 = vmul.f32 %v550_v43, %v550_v43  ;;  %v662_v18 = vsub.f32 %v2480_v44, %v550_v43  ;;  %v1065_v44 = vld [vmem:[%s3051_s7 + $0x78] sm:$0xff]  ;;  %v1059_v36 = vld [vmem:[%s3051_s7 + $0x48] sm:$0xff]  ;;  %v1058_v40 = vld [vmem:[%s3051_s7 + $0x40] sm:$0xff] }
  0xd9   : > { %v631_v53 = vmul.f32 %v551_v46, %v551_v46  ;;  %2085 = vrsqrt.f32 %v677_v41  ;;  %v597_v55 = vpop.xlane.xlu0 %596  ;;  %v726_v25 = vmul.f32 %v2511_v42, %v705_v51  ;;  %v663_v14 = vsub.f32 %v2483_v45, %v551_v46  ;;  %v2615_v45 = vld [vmem:[%s3050_s6 + $0x78] sm:$0xff]  ;;  %1875 = vmatprep.subr.mxu1 %v1065_v44  ;;  %v2675_v37 = vld [vmem:[%s3050_s6 + $0x48] sm:$0xff]  ;;  %v2685_v41 = vld [vmem:[%s3050_s6 + $0x40] sm:$0xff] }
  0xda   : > { %v599_v9 = vpop.xlane.xlu1 %598  ;;  %v614_v16 = vmul.f32 0.03125, %v597_v55  ;;  %v746_v10 = vadd.f32 %v2523_v50, %v725_v24  ;;  %1931 = vmatprep.subr.mxu0 %v2615_v45  ;;  %1876 = vmatpush3.msra.mxu1 %v1065_v44  ;;  %v1057_v43 = vld [vmem:[%s3051_s7 + $0x38] sm:$0xff]  ;;  %v1056_v49 = vld [vmem:[%s3051_s7 + $0x30] sm:$0xff]  ;;  %v2715_v55 = vld [vmem:[%s3050_s6 + $0x28] sm:$0xff] }
  0xdb   : > { %v615_v22 = vmul.f32 0.03125, %v599_v9  ;;  %v747_v23 = vadd.f32 %v2523_v50, %v726_v25  ;;  %1932 = vmatpush3.msra.mxu0 %v2615_v45  ;;  %v2695_v46 = vld [vmem:[%s3050_s6 + $0x38] sm:$0xff]  ;;  %v2705_v51 = vld [vmem:[%s3050_s6 + $0x30] sm:$0xff]  ;;  %v1054_v9 = vld [vmem:[%s3051_s7 + $0x20] sm:$0xff] }
  0xdc   : > { %v646_v58 = vsub.f32 %v614_v16, %v630_v15  ;;  %1863 = vmatprep.mubr.f32.mxu0 %v746_v10  ;;  %v2725_v24 = vld [vmem:[%s3050_s6 + $0x20] sm:$0xff]  ;;  %v1053_v25 = vld [vmem:[%s3051_s7 + $0x18] sm:$0xff]  ;;  %v1052_v16 = vld [vmem:[%s3051_s7 + $0x10] sm:$0xff] }
  0xdd   : > { %v647_v59 = vsub.f32 %v615_v22, %v631_v53  ;;  %v2080_v3 = vpop.eup %2079  ;;  %1864 = vmatmul.mubr.f32.gmra.mxu0 %v747_v23  ;;  %v1055_v53 = vld [vmem:[%s3051_s7 + $0x28] sm:$0xff]  ;;  %v2735_v15 = vld [vmem:[%s3050_s6 + $0x18] sm:$0xff]  ;;  %v2745_v22 = vld [vmem:[%s3050_s6 + $0x10] sm:$0xff] }
  0xde   : > { %v2082_v60 = vpop.eup %2081  ;;  %v678_v61 = vadd.f32 1e-05, %v646_v58  ;;  %v706_v2 = vmul.f32 %v2080_v3, %v658_v56  ;;  %v1051_v10 = vld [vmem:[%s3051_s7 + $0x8] sm:$0xff]  ;;  %v1050_v56 = vld [vmem:[%s3051_s7] sm:$0xff] }
  0xdf   : > { %v679_v63 = vadd.f32 1e-05, %v647_v59  ;;  %v707_v4 = vmul.f32 %v2082_v60, %v659_v54  ;;  %v2755_v23 = vld [vmem:[%s3050_s6 + $0x8] sm:$0xff]  ;;  %v2765_v58 = vld [vmem:[%s3050_s6] sm:$0xff]  ;;  %v473_v54 = vld [vmem:[%s2771_s22 + $0x10] sm:$0xff] }
  0xe0   : > { %2087 = vrsqrt.f32 %v678_v61  ;;  %v727_v6 = vmul.f32 %v2511_v42, %v706_v2  ;;  %v471_v59 = vld [vmem:[%s2771_s22] sm:$0xff]  ;;  %v472_v3 = vld [vmem:[%s2771_s22 + $0x8] sm:$0xff]  ;;  %v474_v60 = vld [vmem:[%s2771_s22 + $0x18] sm:$0xff] }
  0xe1   : > { %2089 = vrsqrt.f32 %v679_v63  ;;  %v728_v7 = vmul.f32 %v2511_v42, %v707_v4  ;;  %v475_v61 = vld [vmem:[%s2771_s22 + $0x20] sm:$0xff]  ;;  %v476_v63 = vld [vmem:[%s2771_s22 + $0x28] sm:$0xff]  ;;  %v477_v2 = vld [vmem:[%s2771_s22 + $0x30] sm:$0xff] }
  0xe2   : > { %v748_v31 = vadd.f32 %v2523_v50, %v727_v6  ;;  %v478_v4 = vld [vmem:[%s2771_s22 + $0x38] sm:$0xff]  ;;  %v2787_v6 = vld [vmem:[%s3049_s5] ss:$0 sm:$0xff] }
  0xe3   : > { %v749_v1 = vadd.f32 %v2523_v50, %v728_v7 }
  0xe4   : > { %1866 = vmatprep.mubr.f32.mxu0 %v748_v31 }
  0xe5   : > { %v2084_v52 = vpop.eup %2083  ;;  %1867 = vmatmul.mubr.f32.gmra.mxu0 %v749_v1 }
  0xe6   : > { %v2086_v11 = vpop.eup %2085  ;;  %v708_v12 = vmul.f32 %v2084_v52, %v660_v32 }
  0xe7   : > { %v709_v13 = vmul.f32 %v2086_v11, %v661_v8 }
  0xe8   : > { %v729_v20 = vmul.f32 %v2511_v42, %v708_v12 }
  0xe9   : > { %v730_v21 = vmul.f32 %v2511_v42, %v709_v13 }
  0xea   : > { %v750_v17 = vadd.f32 %v2523_v50, %v729_v20 }
  0xeb   : > { %v751_v47 = vadd.f32 %v2523_v50, %v730_v21 }
  0xec   : > { %1869 = vmatprep.mubr.f32.mxu0 %v750_v17 }
  0xed   : > { %v2088_v38 = vpop.eup %2087  ;;  %1870 = vmatmul.mubr.f32.gmra.mxu0 %v751_v47 }
  0xee   : > { %v2090_v39 = vpop.eup %2089  ;;  %v710_v19 = vmul.f32 %v2088_v38, %v662_v18 }
  0xef   : > { %v711_v48 = vmul.f32 %v2090_v39, %v663_v14 }
  0xf0   : > { %v731_v0 = vmul.f32 %v2511_v42, %v710_v19 }
  0xf1   : > { %v732_v5 = vmul.f32 %v2511_v42, %v711_v48  ;;  %v1064_v42 = vld [vmem:[%s3051_s7 + $0x70] sm:$0xff] }
  0xf2   : > { %v752_v57 = vadd.f32 %v2523_v50, %v731_v0  ;;  %1877 = vmatprep.subr.mxu1 %v1064_v42 }
  0xf3   : > { %v753_v62 = vadd.f32 %v2523_v50, %v732_v5  ;;  %v2625_v50 = vld [vmem:[%s3050_s6 + $0x70] sm:$0xff]  ;;  %1878 = vmatpush3.msra.mxu1 %v1064_v42 }
  0xf4   : > { %1872 = vmatprep.mubr.f32.mxu0 %v752_v57  ;;  %1933 = vmatprep.subr.mxu0 %v2625_v50 }
  0xf5   : > { %1873 = vmatmul.mubr.f32.gmra.mxu0 %v753_v62  ;;  %1879 = vmatprep.subr.mxu1 %v1063_v26 }
  0xf6   : > { %1934 = vmatpush3.msra.mxu0 %v2625_v50  ;;  %1880 = vmatpush3.msra.mxu1 %v1063_v26 }
  0xf7   : > { %1935 = vmatprep.subr.mxu0 %v2635_v27  ;;  %1881 = vmatprep.subr.mxu1 %v1062_v28 }
  0xf8   : > { %1936 = vmatpush3.msra.mxu0 %v2635_v27  ;;  %1882 = vmatpush3.msra.mxu1 %v1062_v28 }
  0xf9   : > { %1937 = vmatprep.subr.mxu0 %v2645_v29  ;;  %1883 = vmatprep.subr.mxu1 %v1061_v30 }
  0xfa   : > { %1938 = vmatpush3.msra.mxu0 %v2645_v29  ;;  %1884 = vmatpush3.msra.mxu1 %v1061_v30 }
  0xfb   : > { %1939 = vmatprep.subr.mxu0 %v2655_v33  ;;  %1885 = vmatprep.subr.mxu1 %v1060_v34 }
  0xfc   : > { %1940 = vmatpush3.msra.mxu0 %v2655_v33  ;;  %1886 = vmatpush3.msra.mxu1 %v1060_v34 }
  0xfd   : > { %1941 = vmatprep.subr.mxu0 %v2665_v35  ;;  %1887 = vmatprep.subr.mxu1 %v1059_v36 }
  0xfe   : > { %1942 = vmatpush3.msra.mxu0 %v2665_v35  ;;  %1888 = vmatpush3.msra.mxu1 %v1059_v36 }
  0xff   : > { %1943 = vmatprep.subr.mxu0 %v2675_v37  ;;  %1889 = vmatprep.subr.mxu1 %v1058_v40 }
 0x100   : > { %1944 = vmatpush3.msra.mxu0 %v2675_v37  ;;  %1890 = vmatpush3.msra.mxu1 %v1058_v40 }
 0x101   : > { %1945 = vmatprep.subr.mxu0 %v2685_v41  ;;  %1891 = vmatprep.subr.mxu1 %v1057_v43 }
 0x102   : > { %1946 = vmatpush3.msra.mxu0 %v2685_v41  ;;  %1892 = vmatpush3.msra.mxu1 %v1057_v43 }
 0x103   : > { %1947 = vmatprep.subr.mxu0 %v2695_v46  ;;  %1893 = vmatprep.subr.mxu1 %v1056_v49 }
 0x104   : > { %1948 = vmatpush3.msra.mxu0 %v2695_v46  ;;  %1894 = vmatpush3.msra.mxu1 %v1056_v49 }
 0x105   : > { %1949 = vmatprep.subr.mxu0 %v2705_v51  ;;  %1895 = vmatprep.subr.mxu1 %v1055_v53 }
 0x106   : > { %1950 = vmatpush3.msra.mxu0 %v2705_v51  ;;  %1896 = vmatpush3.msra.mxu1 %v1055_v53 }
 0x107   : > { %1951 = vmatprep.subr.mxu0 %v2715_v55  ;;  %1897 = vmatprep.subr.mxu1 %v1054_v9 }
 0x108   : > { %1952 = vmatpush3.msra.mxu0 %v2715_v55  ;;  %1898 = vmatpush3.msra.mxu1 %v1054_v9 }
 0x109   : > { %1953 = vmatprep.subr.mxu0 %v2725_v24  ;;  %1899 = vmatprep.subr.mxu1 %v1053_v25 }
 0x10a   : > { %1954 = vmatpush3.msra.mxu0 %v2725_v24  ;;  %1900 = vmatpush3.msra.mxu1 %v1053_v25 }
 0x10b   : > { %1955 = vmatprep.subr.mxu0 %v2735_v15  ;;  %1901 = vmatprep.subr.mxu1 %v1052_v16 }
 0x10c   : > { %1956 = vmatpush3.msra.mxu0 %v2735_v15  ;;  %1902 = vmatpush3.msra.mxu1 %v1052_v16 }
 0x10d   : > { %1957 = vmatprep.subr.mxu0 %v2745_v22  ;;  %1903 = vmatprep.subr.mxu1 %v1051_v10 }
 0x10e   : > { %1958 = vmatpush3.msra.mxu0 %v2745_v22  ;;  %1904 = vmatpush3.msra.mxu1 %v1051_v10 }
 0x10f   : > { %1959 = vmatprep.subr.mxu0 %v2755_v23  ;;  %1905 = vmatprep.subr.mxu1 %v1050_v56 }
 0x110   : > { %1960 = vmatpush3.msra.mxu0 %v2755_v23  ;;  %1906 = vmatpush3.msra.mxu1 %v1050_v56 }
 0x111   : > { %1961 = vmatprep.subr.mxu0 %v2765_v58  ;;  %1963 = vmatprep.mubr.f32.mxu0 %v471_v59 }
 0x112   : > { %1962 = vmatpush3.msra.mxu0 %v2765_v58  ;;  %1987 = vmatprep.subr.mxu1 %v2615_v45 }
 0x113   : > { %1964 = vmatmul.mubr.f32.vlgmr.msra.gmra.mxu0 %v472_v3 }
 0x114   : > { %1966 = vmatprep.mubr.f32.mxu0 %v473_v54 }
 0x117   : > { %1967 = vmatmul.mubr.f32.gmra.mxu0 %v474_v60 }
 0x118   : > { %1969 = vmatprep.mubr.f32.mxu0 %v475_v61 }
 0x11b   : > { %1970 = vmatmul.mubr.f32.gmra.mxu0 %v476_v63 }
 0x11c   : > { %1972 = vmatprep.mubr.f32.mxu0 %v477_v2 }
 0x11f   : > { %1973 = vmatmul.mubr.f32.gmra.mxu0 %v478_v4 }
 0x180   : > { %v1853_v7 = vpop.f32.mrf.mxu0 }
 0x181   : > { %v849_v31 = vadd.f32 %v1853_v7, %v2787_v6 }
 0x182   : > { %v843_v1 = vpop.f32.mrf.mxu0 }
 0x183   : > { %v1689_v32 = vmul.f32 -1.442695, %v849_v31  ;;  %v844_v52 = vadd.f32 %v2787_v6, %v843_v1 }
 0x185   : > { %2091 = vpow2.f32 %v1689_v32  ;;  %v1688_v8 = vmul.f32 -1.442695, %v844_v52  ;;  %v1856_v11 = vpop.f32.mrf.mxu0 }
 0x186   : > { %v2792_v12 = vadd.f32 %v1856_v11, %v2787_v6 }
 0x187   : > { %2093 = vpow2.f32 %v1688_v8  ;;  %v853_v13 = vpop.f32.mrf.mxu0 }
 0x188   : > { %v1691_v20 = vmul.f32 -1.442695, %v2792_v12  ;;  %v2796_v21 = vadd.f32 %v2787_v6, %v853_v13 }
 0x18a   : > { %2095 = vpow2.f32 %v1691_v20  ;;  %v1690_v17 = vmul.f32 -1.442695, %v2796_v21 }
 0x18c   : > { %2097 = vpow2.f32 %v1690_v17 }
 0x18d   : > { %v1859_v47 = vpop.f32.mrf.mxu0 }
 0x18e   : > { %v2800_v18 = vadd.f32 %v1859_v47, %v2787_v6 }
 0x18f   : > { %v863_v38 = vpop.f32.mrf.mxu0 }
 0x190   : > { %v1693_v14 = vmul.f32 -1.442695, %v2800_v18  ;;  %v2804_v39 = vadd.f32 %v2787_v6, %v863_v38 }
 0x192   : > { %v2092_v19 = vpop.eup %2091  ;;  %2099 = vpow2.f32 %v1693_v14  ;;  %v1692_v48 = vmul.f32 -1.442695, %v2804_v39 }
 0x193   : > { %v971_v0 = vadd.f32 1.0, %v2092_v19 }
 0x194   : > { %v2094_v5 = vpop.eup %2093  ;;  %2101 = vpow2.f32 %v1692_v48 }
 0x195   : > { %v970_v57 = vadd.f32 1.0, %v2094_v5  ;;  %v1862_v62 = vpop.f32.mrf.mxu0  ;;  %2103 = vrcp.f32 %v971_v0 }
 0x196   : > { %v2808_v44 = vadd.f32 %v1862_v62, %v2787_v6 }
 0x197   : > { %v2096_v42 = vpop.eup %2095  ;;  %2105 = vrcp.f32 %v970_v57  ;;  %v873_v26 = vpop.f32.mrf.mxu0 }
 0x198   : > { %v973_v28 = vadd.f32 1.0, %v2096_v42  ;;  %v1695_v30 = vmul.f32 -1.442695, %v2808_v44  ;;  %v2812_v34 = vadd.f32 %v2787_v6, %v873_v26 }
 0x199   : > { %v2098_v36 = vpop.eup %2097 }
 0x19a   : > { %2107 = vrcp.f32 %v973_v28  ;;  %v972_v40 = vadd.f32 1.0, %v2098_v36  ;;  %v1694_v43 = vmul.f32 -1.442695, %v2812_v34 }
 0x19b   : > { %2109 = vpow2.f32 %v1695_v30 }
 0x19c   : > { %2111 = vrcp.f32 %v972_v40 }
 0x19d   : > { %2113 = vpow2.f32 %v1694_v43  ;;  %v1865_v49 = vpop.f32.mrf.mxu0 }
 0x19e   : > { %v2816_v53 = vadd.f32 %v1865_v49, %v2787_v6 }
 0x19f   : > { %v2100_v9 = vpop.eup %2099  ;;  %v883_v25 = vpop.f32.mrf.mxu0 }
 0x1a0   : > { %v975_v16 = vadd.f32 1.0, %v2100_v9  ;;  %v1697_v10 = vmul.f32 -1.442695, %v2816_v53  ;;  %v2820_v56 = vadd.f32 %v2787_v6, %v883_v25 }
 0x1a1   : > { %v2102_v59 = vpop.eup %2101 }
 0x1a2   : > { %2115 = vrcp.f32 %v975_v16  ;;  %v974_v3 = vadd.f32 1.0, %v2102_v59  ;;  %v1696_v54 = vmul.f32 -1.442695, %v2820_v56  ;;  %v2104_v60 = vpop.eup %2103 }
 0x1a3   : > { %2117 = vpow2.f32 %v1697_v10  ;;  %v1019_v7 = vmul.f32 %v2104_v60, %v849_v31 }
 0x1a4   : > { %v2106_v61 = vpop.eup %2105  ;;  %2119 = vrcp.f32 %v974_v3 }
 0x1a5   : > { %v1868_v63 = vpop.f32.mrf.mxu0  ;;  %2121 = vpow2.f32 %v1696_v54  ;;  %v1018_v4 = vmul.f32 %v2106_v61, %v844_v52 }
 0x1a6   : > { %v2824_v2 = vadd.f32 %v1868_v63, %v2787_v6 }
 0x1a7   : > { %v893_v1 = vpop.f32.mrf.mxu0  ;;  %v2108_v32 = vpop.eup %2107  ;;  %1907 = vmatprep.mubr.f32.mxu1 %v1018_v4 }
 0x1a8   : > { %v1699_v8 = vmul.f32 -1.442695, %v2824_v2  ;;  %v2828_v11 = vadd.f32 %v2787_v6, %v893_v1  ;;  %v2110_v13 = vpop.eup %2109  ;;  %1908 = vmatmul.mubr.f32.vlgmr.msra.gmra.mxu1 %v1019_v7  ;;  %v1021_v52 = vmul.f32 %v2108_v32, %v2792_v12  ;;  %v479_v1 = vld [vmem:[%s2771_s22 + $0x40] sm:$0xff]  ;;  %v480_v32 = vld [vmem:[%s2771_s22 + $0x48] sm:$0xff] }
 0x1a9   : > { %v2112_v20 = vpop.eup %2111  ;;  %v977_v17 = vadd.f32 1.0, %v2110_v13  ;;  %2003 = vmatpush3.msra.mxu1 %v2615_v45  ;;  %v483_v13 = vld [vmem:[%s2771_s22 + $0x60] sm:$0xff] }
 0x1aa   : > { %2123 = vpow2.f32 %v1699_v8  ;;  %v1698_v47 = vmul.f32 -1.442695, %v2828_v11  ;;  %v2114_v38 = vpop.eup %2113  ;;  %v1020_v31 = vmul.f32 %v2112_v20, %v2796_v21  ;;  %1988 = vmatprep.subr.mxu1 %v2625_v50  ;;  %v481_v8 = vld [vmem:[%s2771_s22 + $0x50] sm:$0xff]  ;;  %v484_v20 = vld [vmem:[%s2771_s22 + $0x68] sm:$0xff] }
 0x1ab   : > { %2125 = vrcp.f32 %v977_v17  ;;  %v976_v14 = vadd.f32 1.0, %v2114_v38  ;;  %2004 = vmatpush3.msra.mxu1 %v2625_v50  ;;  %v485_v17 = vld [vmem:[%s2771_s22 + $0x70] sm:$0xff] }
 0x1ac   : > { %2127 = vpow2.f32 %v1698_v47  ;;  %1910 = vmatprep.mubr.f32.mxu1 %v1020_v31  ;;  %1989 = vmatprep.subr.mxu1 %v2635_v27  ;;  %v486_v47 = vld [vmem:[%s2771_s22 + $0x78] sm:$0xff] }
 0x1ad   : > { %v1871_v19 = vpop.f32.mrf.mxu0  ;;  %2129 = vrcp.f32 %v976_v14  ;;  %1911 = vmatmul.mubr.f32.gmra.mxu1 %v1021_v52  ;;  %v2903_v14 = vld [vmem:[%s3052_s8] ss:$0 sm:$0xff] }
 0x1ae   : > { %v2838_v48 = vadd.f32 %v1871_v19, %v2787_v6  ;;  %2005 = vmatpush3.msra.mxu1 %v2635_v27 }
 0x1af   : > { %v903_v45 = vpop.f32.mrf.mxu0  ;;  %v2116_v21 = vpop.eup %2115  ;;  %1990 = vmatprep.subr.mxu1 %v2645_v29 }
 0x1b0   : > { %v1701_v12 = vmul.f32 -1.442695, %v2838_v48  ;;  %v2843_v0 = vadd.f32 %v2787_v6, %v903_v45  ;;  %v2118_v50 = vpop.eup %2117  ;;  %2006 = vmatpush3.msra.mxu1 %v2645_v29  ;;  %v1023_v26 = vmul.f32 %v2116_v21, %v2800_v18 }
 0x1b1   : > { %v2120_v5 = vpop.eup %2119  ;;  %v979_v57 = vadd.f32 1.0, %v2118_v50  ;;  %1991 = vmatprep.subr.mxu1 %v2655_v33 }
 0x1b2   : > { %2131 = vpow2.f32 %v1701_v12  ;;  %v1700_v62 = vmul.f32 -1.442695, %v2843_v0  ;;  %v2122_v42 = vpop.eup %2121  ;;  %v1022_v27 = vmul.f32 %v2120_v5, %v2804_v39  ;;  %2007 = vmatpush3.msra.mxu1 %v2655_v33 }
 0x1b3   : > { %2133 = vrcp.f32 %v979_v57  ;;  %v978_v28 = vadd.f32 1.0, %v2122_v42  ;;  %1992 = vmatprep.subr.mxu1 %v2665_v35 }
 0x1b4   : > { %2135 = vpow2.f32 %v1700_v62  ;;  %1913 = vmatprep.mubr.f32.mxu1 %v1022_v27  ;;  %2008 = vmatpush3.msra.mxu1 %v2665_v35 }
 0x1b5   : > { %v1874_v29 = vpop.f32.mrf.mxu0  ;;  %2137 = vrcp.f32 %v978_v28  ;;  %1914 = vmatmul.mubr.f32.gmra.mxu1 %v1023_v26  ;;  %1993 = vmatprep.subr.mxu1 %v2675_v37 }
 0x1b6   : > { %v2855_v30 = vadd.f32 %v1874_v29, %v2787_v6  ;;  %2009 = vmatpush3.msra.mxu1 %v2675_v37 }
 0x1b7   : > { %v2124_v39 = vpop.eup %2123  ;;  %v913_v33 = vpop.f32.mrf.mxu0  ;;  %1994 = vmatprep.subr.mxu1 %v2685_v41 }
 0x1b8   : > { %v981_v18 = vadd.f32 1.0, %v2124_v39  ;;  %v1703_v36 = vmul.f32 -1.442695, %v2855_v30  ;;  %v2861_v40 = vadd.f32 %v2787_v6, %v913_v33  ;;  %v2126_v35 = vpop.eup %2125  ;;  %2010 = vmatpush3.msra.mxu1 %v2685_v41 }
 0x1b9   : > { %v2128_v43 = vpop.eup %2127  ;;  %1995 = vmatprep.subr.mxu1 %v2695_v46  ;;  %v1025_v6 = vmul.f32 %v2126_v35, %v2808_v44 }
 0x1ba   : > { %2139 = vrcp.f32 %v981_v18  ;;  %v1702_v49 = vmul.f32 -1.442695, %v2861_v40  ;;  %v2130_v9 = vpop.eup %2129  ;;  %v980_v25 = vadd.f32 1.0, %v2128_v43  ;;  %2011 = vmatpush3.msra.mxu1 %v2695_v46 }
 0x1bb   : > { %2141 = vpow2.f32 %v1703_v36  ;;  %v1024_v37 = vmul.f32 %v2130_v9, %v2812_v34  ;;  %1996 = vmatprep.subr.mxu1 %v2705_v51 }
 0x1bc   : > { %2143 = vpow2.f32 %v1702_v49  ;;  %2012 = vmatpush3.msra.mxu1 %v2705_v51 }
 0x1bd   : > { %2145 = vrcp.f32 %v980_v25  ;;  %1916 = vmatprep.mubr.f32.mxu1 %v1024_v37  ;;  %1997 = vmatprep.subr.mxu1 %v2715_v55 }
 0x1be   : > { %1917 = vmatmul.mubr.f32.gmra.mxu1 %v1025_v6 }
 0x1bf   : > { %v2132_v41 = vpop.eup %2131  ;;  %2013 = vmatpush3.msra.mxu1 %v2715_v55 }
 0x1c0   : > { %v983_v16 = vadd.f32 1.0, %v2132_v41  ;;  %v2134_v10 = vpop.eup %2133  ;;  %1998 = vmatprep.subr.mxu1 %v2725_v24 }
 0x1c1   : > { %v2136_v46 = vpop.eup %2135  ;;  %2014 = vmatpush3.msra.mxu1 %v2725_v24  ;;  %v1027_v44 = vmul.f32 %v2134_v10, %v2816_v53 }
 0x1c2   : > { %v2138_v34 = vpop.eup %2137  ;;  %v982_v59 = vadd.f32 1.0, %v2136_v46  ;;  %1999 = vmatprep.subr.mxu1 %v2735_v15  ;;  %2147 = vrcp.f32 %v983_v16 }
 0x1c3   : > { %v1026_v51 = vmul.f32 %v2138_v34, %v2820_v56  ;;  %2015 = vmatpush3.msra.mxu1 %v2735_v15 }
 0x1c4   : > { %2149 = vrcp.f32 %v982_v59  ;;  %2000 = vmatprep.subr.mxu1 %v2745_v22 }
 0x1c5   : > { %1919 = vmatprep.mubr.f32.mxu1 %v1026_v51  ;;  %2016 = vmatpush3.msra.mxu1 %v2745_v22 }
 0x1c6   : > { %1920 = vmatmul.mubr.f32.gmra.mxu1 %v1027_v44  ;;  %2001 = vmatprep.subr.mxu1 %v2755_v23 }
 0x1c7   : > { %v2140_v55 = vpop.eup %2139  ;;  %2017 = vmatpush3.msra.mxu1 %v2755_v23 }
 0x1c8   : > { %v2142_v24 = vpop.eup %2141  ;;  %2002 = vmatprep.subr.mxu1 %v2765_v58  ;;  %v1029_v22 = vmul.f32 %v2140_v55, %v2824_v2 }
 0x1c9   : > { %v2144_v3 = vpop.eup %2143  ;;  %v985_v56 = vadd.f32 1.0, %v2142_v24  ;;  %2018 = vmatpush3.msra.mxu1 %v2765_v58 }
 0x1ca   : > { %v2146_v15 = vpop.eup %2145  ;;  %v984_v54 = vadd.f32 1.0, %v2144_v3 }
 0x1cb   : > { %v1028_v53 = vmul.f32 %v2146_v15, %v2828_v11  ;;  %2151 = vrcp.f32 %v985_v56  ;;  %v482_v11 = vld [vmem:[%s2771_s22 + $0x58] sm:$0xff] }
 0x1cc   : > { %2153 = vrcp.f32 %v984_v54 }
 0x1cd   : > { %1922 = vmatprep.mubr.f32.mxu1 %v1028_v53 }
 0x1ce   : > { %1923 = vmatmul.mubr.f32.gmra.mxu1 %v1029_v22 }
 0x1cf   : > { %v2148_v23 = vpop.eup %2147 }
 0x1d0   : > { %v1031_v63 = vmul.f32 %v2148_v23, %v2838_v48 }
 0x1d1   : > { %v2150_v60 = vpop.eup %2149 }
 0x1d2   : > { %v1030_v61 = vmul.f32 %v2150_v60, %v2843_v0 }
 0x1d3   : > { %v1965_v38 = vpop.f32.mrf.mxu0 }
 0x1d4   : > { %1925 = vmatprep.mubr.f32.mxu1 %v1030_v61 }
 0x1d5   : > { %1926 = vmatmul.mubr.f32.gmra.mxu1 %v1031_v63  ;;  %v1277_v31 = vpop.f32.mrf.mxu0 }
 0x1d7   : > { %v1968_v48 = vpop.f32.mrf.mxu0 }
 0x1d8   : > { %v2152_v58 = vpop.eup %2151 }
 0x1d9   : > { %v2154_v4 = vpop.eup %2153  ;;  %v1033_v7 = vmul.f32 %v2152_v58, %v2855_v30  ;;  %v1287_v57 = vpop.f32.mrf.mxu0 }
 0x1da   : > { %v1032_v2 = vmul.f32 %v2154_v4, %v2861_v40 }
 0x1db   : > { %v1971_v29 = vpop.f32.mrf.mxu0 }
 0x1dc   : > { %1928 = vmatprep.mubr.f32.mxu1 %v1032_v2  ;;  %v488_v2 = vld [vmem:[%s2941_s29 + $0x8] sm:$0xff] }
 0x1dd   : > { %1929 = vmatmul.mubr.f32.gmra.mxu1 %v1033_v7  ;;  %v1297_v36 = vpop.f32.mrf.mxu0 }
 0x1de   : > { %1975 = vmatprep.mubr.f32.mxu1 %v479_v1 }
 0x1df   : > { %v1974_v37 = vpop.f32.mrf.mxu0 }
 0x1e1   : > { %1976 = vmatmul.mubr.f32.vlgmr.msra.gmra.mxu1 %v480_v32  ;;  %v1307_v34 = vpop.f32.mrf.mxu0 }
 0x1e2   : > { %1978 = vmatprep.mubr.f32.mxu1 %v481_v8  ;;  %v487_v8 = vld [vmem:[%s2941_s29] sm:$0xff] }
 0x1e5   : > { %1979 = vmatmul.mubr.f32.gmra.mxu1 %v482_v11 }
 0x1e6   : > { %1981 = vmatprep.mubr.f32.mxu1 %v483_v13 }
 0x1e9   : > { %1982 = vmatmul.mubr.f32.gmra.mxu1 %v484_v20 }
 0x1ea   : > { %1984 = vmatprep.mubr.f32.mxu1 %v485_v17 }
 0x1ed   : > { %1985 = vmatmul.mubr.f32.gmra.mxu1 %v486_v47 }
 0x268   : > { %v1909_v52 = vpop.f32.mrf.mxu1 }
 0x269   : > { %v1283_v19 = vadd.f32 %v1965_v38, %v1909_v52 }
 0x26a   : > { %v1132_v45 = vpop.f32.mrf.mxu1 }
 0x26b   : > { %v2906_v21 = vadd.f32 %v2903_v14, %v1283_v19  ;;  %v1278_v12 = vadd.f32 %v1277_v31, %v1132_v45  ;;  %v490_v31 = vld [vmem:[%s2941_s29 + $0x18] sm:$0xff]  ;;  %v489_v45 = vld [vmem:[%s2941_s29 + $0x10] sm:$0xff] }
 0x26d   : > { %v1706_v0 = vmul.f32 -1.442695, %v2906_v21  ;;  %v2910_v50 = vadd.f32 %v2903_v14, %v1278_v12  ;;  %v1912_v5 = vpop.f32.mrf.mxu1 }
 0x26e   : > { %v1293_v62 = vadd.f32 %v1968_v48, %v1912_v5 }
 0x26f   : > { %2155 = vpow2.f32 %v1706_v0  ;;  %v1705_v42 = vmul.f32 -1.442695, %v2910_v50  ;;  %v1142_v27 = vpop.f32.mrf.mxu1 }
 0x270   : > { %v2914_v26 = vadd.f32 %v2903_v14, %v1293_v62  ;;  %v1288_v28 = vadd.f32 %v1287_v57, %v1142_v27 }
 0x271   : > { %2157 = vpow2.f32 %v1705_v42 }
 0x272   : > { %v1708_v30 = vmul.f32 -1.442695, %v2914_v26  ;;  %v2918_v39 = vadd.f32 %v2903_v14, %v1288_v28 }
 0x274   : > { %2159 = vpow2.f32 %v1708_v30  ;;  %v1707_v33 = vmul.f32 -1.442695, %v2918_v39 }
 0x275   : > { %v1915_v18 = vpop.f32.mrf.mxu1 }
 0x276   : > { %2161 = vpow2.f32 %v1707_v33  ;;  %v1303_v40 = vadd.f32 %v1971_v29, %v1915_v18  ;;  %v491_v33 = vld [vmem:[%s2941_s29 + $0x20] sm:$0xff] }
 0x277   : > { %v1152_v35 = vpop.f32.mrf.mxu1 }
 0x278   : > { %v2922_v43 = vadd.f32 %v2903_v14, %v1303_v40  ;;  %v1298_v49 = vadd.f32 %v1297_v36, %v1152_v35 }
 0x27a   : > { %v1710_v9 = vmul.f32 -1.442695, %v2922_v43  ;;  %v2926_v25 = vadd.f32 %v2903_v14, %v1298_v49 }
 0x27c   : > { %v2156_v6 = vpop.eup %2155  ;;  %2163 = vpow2.f32 %v1710_v9  ;;  %v1709_v41 = vmul.f32 -1.442695, %v2926_v25 }
 0x27d   : > { %v1428_v16 = vadd.f32 1.0, %v2156_v6  ;;  %v494_v6 = vld [vmem:[%s2941_s29 + $0x38] sm:$0xff] }
 0x27e   : > { %v2158_v10 = vpop.eup %2157  ;;  %2165 = vpow2.f32 %v1709_v41  ;;  %v1918_v46 = vpop.f32.mrf.mxu1 }
 0x27f   : > { %2167 = vrcp.f32 %v1428_v16  ;;  %v1427_v59 = vadd.f32 1.0, %v2158_v10  ;;  %v1313_v51 = vadd.f32 %v1974_v37, %v1918_v46 }
 0x280   : > { %v1162_v44 = vpop.f32.mrf.mxu1 }
 0x281   : > { %v2160_v55 = vpop.eup %2159  ;;  %2169 = vrcp.f32 %v1427_v59  ;;  %v2930_v24 = vadd.f32 %v2903_v14, %v1313_v51  ;;  %v1308_v3 = vadd.f32 %v1307_v34, %v1162_v44 }
 0x282   : > { %v1430_v56 = vadd.f32 1.0, %v2160_v55 }
 0x283   : > { %v2162_v15 = vpop.eup %2161  ;;  %v1712_v54 = vmul.f32 -1.442695, %v2930_v24  ;;  %v2934_v53 = vadd.f32 %v2903_v14, %v1308_v3 }
 0x284   : > { %2171 = vrcp.f32 %v1430_v56  ;;  %v1429_v22 = vadd.f32 1.0, %v2162_v15 }
 0x285   : > { %2173 = vpow2.f32 %v1712_v54  ;;  %v1711_v23 = vmul.f32 -1.442695, %v2934_v53 }
 0x286   : > { %2175 = vrcp.f32 %v1429_v22  ;;  %v1921_v63 = vpop.f32.mrf.mxu1 }
 0x287   : > { %2177 = vpow2.f32 %v1711_v23 }
 0x288   : > { %v1172_v11 = vpop.f32.mrf.mxu1 }
 0x289   : > { %v2164_v60 = vpop.eup %2163 }
 0x28a   : > { %v1432_v61 = vadd.f32 1.0, %v2164_v60 }
 0x28b   : > { %v2166_v58 = vpop.eup %2165 }
 0x28c   : > { %v2168_v4 = vpop.eup %2167  ;;  %2179 = vrcp.f32 %v1432_v61  ;;  %v1431_v7 = vadd.f32 1.0, %v2166_v58 }
 0x28d   : > { %v1476_v1 = vmul.f32 %v2168_v4, %v2906_v21 }
 0x28e   : > { %v2170_v32 = vpop.eup %2169  ;;  %2181 = vrcp.f32 %v1431_v7  ;;  %v1924_v17 = vpop.f32.mrf.mxu1 }
 0x28f   : > { %v1492_v13 = vadd.f32 %v1476_v1, %v488_v2  ;;  %v1475_v20 = vmul.f32 %v2170_v32, %v2910_v50 }
 0x290   : > { %v1182_v5 = vpop.f32.mrf.mxu1 }
 0x291   : > { %v2172_v47 = vpop.eup %2171  ;;  %1508 = vst [vmem:[%s2949_s16 + $0x8] sm:$0xff] %v1492_v13  ;;  %v1491_v38 = vadd.f32 %v1475_v20, %v487_v8 }
 0x292   : > { %v2174_v52 = vpop.eup %2173  ;;  %v1478_v19 = vmul.f32 %v2172_v47, %v2914_v26  ;;  %v492_v26 = vld [vmem:[%s2941_s29 + $0x28] sm:$0xff] }
 0x293   : > { %v2176_v48 = vpop.eup %2175  ;;  %1507 = vst [vmem:[%s2949_s16] sm:$0xff] %v1491_v38  ;;  %v1434_v21 = vadd.f32 1.0, %v2174_v52 }
 0x294   : > { %v2178_v12 = vpop.eup %2177  ;;  %v1494_v0 = vadd.f32 %v1478_v19, %v490_v31  ;;  %v1477_v50 = vmul.f32 %v2176_v48, %v2918_v39 }
 0x295   : > { %2183 = vrcp.f32 %v1434_v21  ;;  %v1433_v57 = vadd.f32 1.0, %v2178_v12  ;;  %v1927_v42 = vpop.f32.mrf.mxu1 }
 0x296   : > { %1510 = vst [vmem:[%s2949_s16 + $0x18] sm:$0xff] %v1494_v0  ;;  %v1493_v62 = vadd.f32 %v1477_v50, %v489_v45 }
 0x297   : > { %2185 = vrcp.f32 %v1433_v57  ;;  %v1192_v29 = vpop.f32.mrf.mxu1 }
 0x298   : > { %1509 = vst [vmem:[%s2949_s16 + $0x10] sm:$0xff] %v1493_v62 }
 0x299   : > { %v2180_v27 = vpop.eup %2179 }
 0x29a   : > { %v1480_v28 = vmul.f32 %v2180_v27, %v2922_v43 }
 0x29b   : > { %v2182_v30 = vpop.eup %2181 }
 0x29c   : > { %v1496_v18 = vadd.f32 %v1480_v28, %v492_v26  ;;  %v1479_v39 = vmul.f32 %v2182_v30, %v2926_v25  ;;  %v493_v25 = vld [vmem:[%s2941_s29 + $0x30] sm:$0xff]  ;;  %v496_v30 = vld [vmem:[%s2941_s29 + $0x48] sm:$0xff] }
 0x29d   : > { %v1930_v36 = vpop.f32.mrf.mxu1 }
 0x29e   : > { %1512 = vst [vmem:[%s2949_s16 + $0x28] sm:$0xff] %v1496_v18  ;;  %v1495_v40 = vadd.f32 %v1479_v39, %v491_v33  ;;  %v495_v39 = vld [vmem:[%s2941_s29 + $0x40] sm:$0xff] }
 0x29f   : > { %v1202_v35 = vpop.f32.mrf.mxu1 }
 0x2a0   : > { %1511 = vst [vmem:[%s2949_s16 + $0x20] sm:$0xff] %v1495_v40 }
 0x2a1   : > { %v1977_v49 = vpop.f32.mrf.mxu1 }
 0x2a2   : > { %v1323_v9 = vadd.f32 %v1977_v49, %v1921_v63  ;;  %v2184_v37 = vpop.eup %2183 }
 0x2a3   : > { %v1317_v41 = vpop.f32.mrf.mxu1  ;;  %v1482_v43 = vmul.f32 %v2184_v37, %v2930_v24 }
 0x2a4   : > { %v2970_v16 = vadd.f32 %v2903_v14, %v1323_v9  ;;  %v1318_v10 = vadd.f32 %v1317_v41, %v1172_v11  ;;  %v2186_v46 = vpop.eup %2185  ;;  %v498_v9 = vld [vmem:[%s2941_s29 + $0x58] sm:$0xff]  ;;  %v497_v41 = vld [vmem:[%s2941_s29 + $0x50] sm:$0xff] }
 0x2a5   : > { %v1980_v34 = vpop.f32.mrf.mxu1  ;;  %v1498_v59 = vadd.f32 %v1482_v43, %v494_v6  ;;  %v1481_v51 = vmul.f32 %v2186_v46, %v2934_v53  ;;  %v500_v46 = vld [vmem:[%s2941_s29 + $0x68] sm:$0xff] }
 0x2a6   : > { %v1714_v44 = vmul.f32 -1.442695, %v2970_v16  ;;  %v2976_v55 = vadd.f32 %v2903_v14, %v1318_v10  ;;  %v1333_v3 = vadd.f32 %v1980_v34, %v1924_v17 }
 0x2a7   : > { %v1327_v56 = vpop.f32.mrf.mxu1  ;;  %1514 = vst [vmem:[%s2949_s16 + $0x38] sm:$0xff] %v1498_v59  ;;  %v1497_v24 = vadd.f32 %v1481_v51, %v493_v25  ;;  %v499_v51 = vld [vmem:[%s2941_s29 + $0x60] sm:$0xff] }
 0x2a8   : > { %2187 = vpow2.f32 %v1714_v44  ;;  %v1713_v15 = vmul.f32 -1.442695, %v2976_v55  ;;  %v1328_v54 = vadd.f32 %v1327_v56, %v1182_v5  ;;  %v2981_v22 = vadd.f32 %v2903_v14, %v1333_v3  ;;  %v502_v56 = vld [vmem:[%s2941_s29 + $0x78] sm:$0xff] }
 0x2a9   : > { %v1983_v23 = vpop.f32.mrf.mxu1  ;;  %1513 = vst [vmem:[%s2949_s16 + $0x30] sm:$0xff] %v1497_v24 }
 0x2aa   : > { %2189 = vpow2.f32 %v1713_v15  ;;  %v2985_v53 = vadd.f32 %v2903_v14, %v1328_v54  ;;  %v1343_v60 = vadd.f32 %v1983_v23, %v1927_v42  ;;  %v1716_v61 = vmul.f32 -1.442695, %v2981_v22 }
 0x2ab   : > { %v1337_v63 = vpop.f32.mrf.mxu1 }
 0x2ac   : > { %v1715_v58 = vmul.f32 -1.442695, %v2985_v53  ;;  %v2990_v4 = vadd.f32 %v2903_v14, %v1343_v60  ;;  %v1338_v2 = vadd.f32 %v1337_v63, %v1192_v29  ;;  %2191 = vpow2.f32 %v1716_v61 }
 0x2ad   : > { %v1986_v7 = vpop.f32.mrf.mxu1 }
 0x2ae   : > { %2193 = vpow2.f32 %v1715_v58  ;;  %v1718_v1 = vmul.f32 -1.442695, %v2990_v4  ;;  %v2994_v32 = vadd.f32 %v2903_v14, %v1338_v2  ;;  %v1353_v8 = vadd.f32 %v1986_v7, %v1930_v36 }
 0x2af   : > { %v1347_v11 = vpop.f32.mrf.mxu1 }
 0x2b0   : > { %2195 = vpow2.f32 %v1718_v1  ;;  %v1717_v13 = vmul.f32 -1.442695, %v2994_v32  ;;  %v2998_v20 = vadd.f32 %v2903_v14, %v1353_v8  ;;  %v1348_v17 = vadd.f32 %v1347_v11, %v1202_v35 }
 0x2b2   : > { %2197 = vpow2.f32 %v1717_v13  ;;  %v1720_v47 = vmul.f32 -1.442695, %v2998_v20  ;;  %v3002_v38 = vadd.f32 %v2903_v14, %v1348_v17 }
 0x2b4   : > { %2199 = vpow2.f32 %v1720_v47  ;;  %v1719_v31 = vmul.f32 -1.442695, %v3002_v38 }
 0x2b5   : > { %v2188_v52 = vpop.eup %2187 }
 0x2b6   : > { %v1436_v19 = vadd.f32 1.0, %v2188_v52  ;;  %2201 = vpow2.f32 %v1719_v31 }
 0x2b7   : > { %v2190_v48 = vpop.eup %2189 }
 0x2b8   : > { %2203 = vrcp.f32 %v1436_v19  ;;  %v1435_v45 = vadd.f32 1.0, %v2190_v48 }
 0x2b9   : > { %v2192_v21 = vpop.eup %2191 }
 0x2ba   : > { %2205 = vrcp.f32 %v1435_v45  ;;  %v1438_v0 = vadd.f32 1.0, %v2192_v21 }
 0x2bb   : > { %v2194_v12 = vpop.eup %2193 }
 0x2bc   : > { %v1437_v50 = vadd.f32 1.0, %v2194_v12  ;;  %2207 = vrcp.f32 %v1438_v0 }
 0x2bd   : > { %v2196_v5 = vpop.eup %2195 }
 0x2be   : > { %2209 = vrcp.f32 %v1437_v50  ;;  %v1440_v14 = vadd.f32 1.0, %v2196_v5 }
 0x2bf   : > { %v2198_v57 = vpop.eup %2197 }
 0x2c0   : > { %2211 = vrcp.f32 %v1440_v14  ;;  %v1439_v62 = vadd.f32 1.0, %v2198_v57 }
 0x2c1   : > { %v2200_v42 = vpop.eup %2199 }
 0x2c2   : > { %2213 = vrcp.f32 %v1439_v62  ;;  %v1442_v27 = vadd.f32 1.0, %v2200_v42 }
 0x2c3   : > { %v2202_v26 = vpop.eup %2201 }
 0x2c4   : > { %2215 = vrcp.f32 %v1442_v27  ;;  %v1441_v28 = vadd.f32 1.0, %v2202_v26 }
 0x2c5   : > { %v2204_v29 = vpop.eup %2203 }
 0x2c6   : > { %v1484_v33 = vmul.f32 %v2204_v29, %v2970_v16  ;;  %2217 = vrcp.f32 %v1441_v28 }
 0x2c7   : > { %v2206_v18 = vpop.eup %2205 }
 0x2c8   : > { %v1500_v36 = vadd.f32 %v1484_v33, %v496_v30  ;;  %v1483_v40 = vmul.f32 %v2206_v18, %v2976_v55 }
 0x2c9   : > { %v2208_v35 = vpop.eup %2207 }
 0x2ca   : > { %1516 = vst [vmem:[%s2949_s16 + $0x48] sm:$0xff] %v1500_v36  ;;  %v1499_v49 = vadd.f32 %v1483_v40, %v495_v39  ;;  %v1486_v6 = vmul.f32 %v2208_v35, %v2981_v22  ;;  %v501_v22 = vld [vmem:[%s2941_s29 + $0x70] sm:$0xff] }
 0x2cb   : > { %v2210_v37 = vpop.eup %2209 }
 0x2cc   : > { %1515 = vst [vmem:[%s2949_s16 + $0x40] sm:$0xff] %v1499_v49  ;;  %v1485_v43 = vmul.f32 %v2210_v37, %v2985_v53  ;;  %v1502_v10 = vadd.f32 %v1486_v6, %v498_v9 }
 0x2cd   : > { %v2212_v16 = vpop.eup %2211 }
 0x2ce   : > { %v1501_v25 = vadd.f32 %v1485_v43, %v497_v41  ;;  %v1488_v34 = vmul.f32 %v2212_v16, %v2990_v4  ;;  %1518 = vst [vmem:[%s2949_s16 + $0x58] sm:$0xff] %v1502_v10 }
 0x2cf   : > { %v2214_v59 = vpop.eup %2213 }
 0x2d0   : > { %1517 = vst [vmem:[%s2949_s16 + $0x50] sm:$0xff] %v1501_v25  ;;  %v1504_v44 = vadd.f32 %v1488_v34, %v500_v46  ;;  %v1487_v55 = vmul.f32 %v2214_v59, %v2994_v32 }
 0x2d1   : > { %v2216_v3 = vpop.eup %2215 }
 0x2d2   : > { %1520 = vst [vmem:[%s2949_s16 + $0x68] sm:$0xff] %v1504_v44  ;;  %v1503_v24 = vadd.f32 %v1487_v55, %v499_v51  ;;  %v1490_v15 = vmul.f32 %v2216_v3, %v2998_v20 }
 0x2d3   : > { %v2218_v54 = vpop.eup %2217 }
 0x2d4   : > { %1519 = vst [vmem:[%s2949_s16 + $0x60] sm:$0xff] %v1503_v24  ;;  %v1506_v23 = vadd.f32 %v1490_v15, %v502_v56  ;;  %v1489_v53 = vmul.f32 %v2218_v54, %v3002_v38 }
 0x2d6   : > { %1522 = vst [vmem:[%s2949_s16 + $0x78] sm:$0xff] %v1506_v23  ;;  %v1505_v60 = vadd.f32 %v1489_v53, %v501_v22 }
 0x2d8   : > { %1521 = vst [vmem:[%s2949_s16 + $0x70] sm:$0xff] %v1505_v60 }
 0x2d9 PF: > { %s19_s13 = sadd.s32 1, %s2257_s13   ;;  %s3054_s30 = smov %s2249_s11 }
 0x2da   : > { %p16_p7 = scmp.ge.s32.totalorder %s19_s13, 6   ;;  %s3055_s10 = smov %s2253_s12 }
 0x2db   : > { %s3056_s11 = smov %s3059_s14  ;;  %s3057_s12 = smov %s3063_s15 }
 0x2dc   :  { %18 = sbr.rel (!%p16_p7) target bundleno = 3 (0x3), region = 92 }

// kernel: mobilevit_block_v3_forward.4
= control target key start
LH: loop header
LB: loop body
LE: loop exit
PB: predicated region body
PF: predicated region fallthrough
CT: control target
= control target key end

     0   :  { %s2420_s15 = smov 0   ;;  %s3918_s0 = inlined_call_operand.vmem [shape: f32[2,18,18,128], index: 0, kind: input, shape index: {}]   ;;  %s3919_s1 = inlined_call_operand.vmem [shape: f32[9,128], index: 1, kind: input, shape index: {}]   ;;  %s3920_s2 = inlined_call_operand.vmem [shape: f32[1,128], index: 2, kind: input, shape index: {}]   ;;  %s3921_s3 = inlined_call_operand.vmem [shape: f32[128,128], index: 3, kind: input, shape index: {}]   ;;  %s3922_s4 = inlined_call_operand.vmem [shape: f32[2,16,16,128], index: 4, kind: output, shape index: {}]  }
   0x1 LB: > { %s2035_s16 = sadd.s32 4294967295, %s2393_s15   ;;  %p2039_p0 = scmp.ge.s32.totalorder %s2393_s15, 1  ;;  %s2393_s15 = sphi %s2420_s15, %s14_s15  }
   0x2   : > { %p162_p1 = scmp.lt.s32.totalorder %s2393_s15, 3 }
   0x4   : > { %p163_p2 = pnand %p2039_p0, %p162_p1 }
   0x5   : > { %p188_p3 = scmp.lt.s32.totalorder (!%p163_p2), %s2035_s16, 1 }
   0x6   : > { %166 = sbr.rel (%p163_p2) target bundleno = 521 (0x209), region = 36 }
   0xb   : > { %v1722_v0 = vld [vmem:[%s3921_s3 + $0x78] sm:$0xff]  ;;  %v1721_v1 = vld [vmem:[%s3921_s3 + $0x70] sm:$0xff]  ;;  %v254_v2 = vlaneseq  ;;  %v1720_v3 = vld [vmem:[%s3921_s3 + $0x68] sm:$0xff]  ;;  %s3924_s16 = smov (!%p188_p3, %s2035_s16), 1  ;;  %vm1106_vm0 = vcmask 1046528   ;;  %vm1299_vm1 = vcmask 1045504  }
   0xc   : > { %2128 = vmatprep.subr.mxu0 %v1722_v0  ;;  %2208 = vmatprep.subr.mxu1 %v1722_v0  ;;  %v1719_v5 = vld [vmem:[%s3921_s3 + $0x60] sm:$0xff]  ;;  %s2240_s25 = smul.u32 432, %s3924_s16  ;;  %v1718_v11 = vld [vmem:[%s3921_s3 + $0x58] sm:$0xff]  ;;  %v1717_v23 = vld [vmem:[%s3921_s3 + $0x50] sm:$0xff] }
   0xd   : > { %2129 = vmatpush3.msra.mxu0 %v1722_v0  ;;  %2224 = vmatpush3.msra.mxu1 %v1722_v0  ;;  %v255_v4 = vshrl.u32 %v254_v2, 7  ;;  %v252_v8 = vld [vmem:[%s3919_s1] sm:$0xff]  ;;  %v1716_v32 = vld [vmem:[%s3921_s3 + $0x48] sm:$0xff]  ;;  %v1714_v48 = vld [vmem:[%s3921_s3 + $0x38] sm:$0xff] }
   0xe   : > { %2130 = vmatprep.subr.mxu0 %v1721_v1  ;;  %2209 = vmatprep.subr.mxu1 %v1721_v1  ;;  %s2452_s6 = scalar_lea.vmem %s3918_s0, %s2240_s25  ;;  %v1715_v40 = vld [vmem:[%s3921_s3 + $0x40] sm:$0xff]  ;;  %v2510_v41 = vld [vmem:[%s3919_s1 + $0x8] ss:$0 sm:$0xff]  ;;  %v1713_v55 = vld [vmem:[%s3921_s3 + $0x30] sm:$0xff] }
   0xf   : > { %2131 = vmatpush3.msra.mxu0 %v1721_v1  ;;  %2225 = vmatpush3.msra.mxu1 %v1721_v1  ;;  %v256_v6 = vsub.s32 0, %v255_v4  ;;  %v324_v7 = vsub.s32 3, %v255_v4  ;;  %v392_v9 = vsub.s32 6, %v255_v4  ;;  %v460_v10 = vsub.s32 1, %v255_v4  ;;  %v198_v16 = vld [vmem:[%s2452_s6] sm:$0xff]  ;;  %v2460_v17 = vld [vmem:[%s2452_s6 + $0x8] sm:$0xff] }
  0x10   : > { %2132 = vmatprep.subr.mxu0 %v1720_v3  ;;  %2210 = vmatprep.subr.mxu1 %v1720_v3  ;;  %v560_v14 = vsub.s32 4, %v255_v4  ;;  %v660_v15 = vsub.s32 7, %v255_v4  ;;  %v2463_v18 = vld [vmem:[%s2452_s6 + $0x18] sm:$0xff]  ;;  %v760_v21 = vsub.s32 2, %v255_v4  ;;  %v860_v22 = vsub.s32 5, %v255_v4  ;;  %v2473_v24 = vld [vmem:[%s2452_s6 + $0x20] sm:$0xff] }
  0x11   : > { %2133 = vmatpush3.msra.mxu0 %v1720_v3  ;;  %2226 = vmatpush3.msra.mxu1 %v1720_v3  ;;  %v2454_v12 = vrot.slane %v252_v8, %v256_v6  ;;  %v2456_v13 = vrot.slane %v252_v8, %v324_v7  ;;  %v2465_v19 = vrot.slane %v252_v8, %v392_v9  ;;  %v2476_v25 = vld [vmem:[%s2452_s6 + $0x30] sm:$0xff]  ;;  %v2492_v33 = vld [vmem:[%s2452_s6 + $0x38] sm:$0xff]  ;;  %v222_v59 = vld [vmem:[%s2452_s6 + $0xc0] sm:$0xff] }
  0x12   : > { %2134 = vmatprep.subr.mxu0 %v1719_v5  ;;  %2211 = vmatprep.subr.mxu1 %v1719_v5  ;;  %v2467_v20 = vrot.slane %v252_v8, %v460_v10  ;;  %v2481_v28 = vrot.slane %v252_v8, %v560_v14  ;;  %v2498_v37 = vrot.slane %v252_v8, %v660_v15  ;;  %v2537_v60 = vld [vmem:[%s2452_s6 + $0xd8] sm:$0xff]  ;;  %v2541_v63 = vld [vmem:[%s2452_s6 + $0xc8] sm:$0xff]  ;;  %v2544_v0 = vld [vmem:[%s2452_s6 + $0xf0] sm:$0xff] }
  0x13   : > { %2135 = vmatpush3.msra.mxu0 %v1719_v5  ;;  %2227 = vmatpush3.msra.mxu1 %v1719_v5  ;;  %v258_v26 = vmul.f32 %v2454_v12, %v198_v16  ;;  %v326_v27 = vmul.f32 %v2456_v13, %v2463_v18  ;;  %v394_v29 = vmul.f32 %v2465_v19, %v2476_v25  ;;  %v1712_v3 = vld [vmem:[%s3921_s3 + $0x28] sm:$0xff]  ;;  %v2555_v6 = vld [vmem:[%s2452_s6 + $0xe0] sm:$0xff]  ;;  %v2563_v9 = vld [vmem:[%s2452_s6 + $0xf8] sm:$0xff] }
  0x14   : > { %2136 = vmatprep.subr.mxu0 %v1718_v11  ;;  %2212 = vmatprep.subr.mxu1 %v1718_v11  ;;  %v462_v30 = vmul.f32 %v2467_v20, %v198_v16  ;;  %v463_v31 = vmul.f32 %v2467_v20, %v2460_v17  ;;  %v562_v35 = vmul.f32 %v2481_v28, %v2463_v18  ;;  %v1711_v14 = vld [vmem:[%s3921_s3 + $0x20] sm:$0xff] }
  0x15   : > { %2137 = vmatpush3.msra.mxu0 %v1718_v11  ;;  %2228 = vmatpush3.msra.mxu1 %v1718_v11  ;;  %v358_v34 = vadd.f32 %v326_v27, %v258_v26  ;;  %v563_v36 = vmul.f32 %v2481_v28, %v2473_v24  ;;  %v2500_v38 = vrot.slane %v252_v8, %v760_v21 }
  0x16   : > { %2138 = vmatprep.subr.mxu0 %v1717_v23  ;;  %2213 = vmatprep.subr.mxu1 %v1717_v23  ;;  %v2502_v39 = vrot.slane %v252_v8, %v860_v22  ;;  %v610_v43 = vadd.f32 %v562_v35, %v462_v30  ;;  %v662_v45 = vmul.f32 %v2498_v37, %v2476_v25 }
  0x17   : > { %2139 = vmatpush3.msra.mxu0 %v1717_v23  ;;  %2229 = vmatpush3.msra.mxu1 %v1717_v23  ;;  %v426_v42 = vadd.f32 %v394_v29, %v358_v34  ;;  %v611_v44 = vadd.f32 %v563_v36, %v463_v31  ;;  %v663_v46 = vmul.f32 %v2498_v37, %v2492_v33  ;;  %v1710_v29 = vld [vmem:[%s3921_s3 + $0x18] sm:$0xff]  ;;  %v2585_v31 = vld [vmem:[%s3920_s2] ss:$0 sm:$0xff] }
  0x18   : > { %2140 = vmatprep.subr.mxu0 %v1716_v32  ;;  %2214 = vmatprep.subr.mxu1 %v1716_v32  ;;  %v762_v47 = vmul.f32 %v2500_v38, %v198_v16  ;;  %v763_v49 = vmul.f32 %v2500_v38, %v2460_v17  ;;  %v862_v50 = vmul.f32 %v2502_v39, %v2463_v18 }
  0x19   : > { %2141 = vmatpush3.msra.mxu0 %v1716_v32  ;;  %2230 = vmatpush3.msra.mxu1 %v1716_v32  ;;  %v863_v51 = vmul.f32 %v2502_v39, %v2473_v24  ;;  %v710_v52 = vadd.f32 %v662_v45, %v610_v43  ;;  %v2526_v53 = vadd.f32 %v663_v46, %v611_v44 }
  0x1a   : > { %2142 = vmatprep.subr.mxu0 %v1715_v40  ;;  %2215 = vmatprep.subr.mxu1 %v1715_v40  ;;  %v962_v54 = vmul.f32 %v2510_v41, %v2476_v25  ;;  %v910_v56 = vadd.f32 %v862_v50, %v762_v47  ;;  %v963_v58 = vmul.f32 %v2510_v41, %v2492_v33 }
  0x1b   : > { %2143 = vmatpush3.msra.mxu0 %v1715_v40  ;;  %2231 = vmatpush3.msra.mxu1 %v1715_v40  ;;  %v911_v57 = vadd.f32 %v863_v51, %v763_v49  ;;  %v1107_v61 = vrot.slane %v710_v52, 1  ;;  %v1108_v62 = vrot.slane %v2526_v53, 1  ;;  %v274_v1 = vmul.f32 %v2454_v12, %v222_v59  ;;  %v1708_v49 = vld [vmem:[%s3921_s3 + $0x8] sm:$0xff] }
  0x1c   : > { %2144 = vmatprep.subr.mxu0 %v1714_v48  ;;  %2216 = vmatprep.subr.mxu1 %v1714_v48  ;;  %v342_v2 = vmul.f32 %v2456_v13, %v2537_v60  ;;  %v1010_v4 = vadd.f32 %v962_v54, %v910_v56  ;;  %v410_v7 = vmul.f32 %v2465_v19, %v2544_v0 }
  0x1d   : > { %2145 = vmatpush3.msra.mxu0 %v1714_v48  ;;  %2232 = vmatpush3.msra.mxu1 %v1714_v48  ;;  %v2552_v5 = vadd.f32 %v963_v58, %v911_v57  ;;  %v1109_v8 = vsel %vm1106_vm0, %v1107_v61, %v1108_v62  ;;  %v486_v11 = vmul.f32 %v2467_v20, %v222_v59  ;;  %v200_v58 = vld [vmem:[%s2452_s6 + $0x10] sm:$0x3] }
  0x1e   : > { %2146 = vmatprep.subr.mxu0 %v1713_v55  ;;  %2217 = vmatprep.subr.mxu1 %v1713_v55  ;;  %v374_v10 = vadd.f32 %v342_v2, %v274_v1  ;;  %v1219_v15 = vadd.f32 %v1109_v8, %v426_v42  ;;  %v1300_v16 = vrot.slane %v1010_v4, 2  ;;  %v487_v22 = vmul.f32 %v2467_v20, %v2541_v63  ;;  %v1709_v42 = vld [vmem:[%s3921_s3 + $0x10] sm:$0xff]  ;;  %v2620_v2 = vld [vmem:[%s2452_s6 + $0x28] sm:$0x3] }
  0x1f   : > { %2147 = vmatpush3.msra.mxu0 %v1713_v55  ;;  %2233 = vmatpush3.msra.mxu1 %v1713_v55  ;;  %v1301_v21 = vrot.slane %v2552_v5, 2  ;;  %v586_v26 = vmul.f32 %v2481_v28, %v2537_v60  ;;  %v587_v27 = vmul.f32 %v2481_v28, %v2555_v6  ;;  %v686_v32 = vmul.f32 %v2498_v37, %v2544_v0 }
  0x20   : > { %2148 = vmatprep.subr.mxu0 %v1712_v3  ;;  %2218 = vmatprep.subr.mxu1 %v1712_v3  ;;  %v442_v23 = vadd.f32 %v410_v7, %v374_v10  ;;  %v687_v34 = vmul.f32 %v2498_v37, %v2563_v9  ;;  %v786_v43 = vmul.f32 %v2500_v38, %v222_v59  ;;  %v1707_v59 = vld [vmem:[%s3921_s3] sm:$0xff] }
  0x21   : > { %2149 = vmatpush3.msra.mxu0 %v1712_v3  ;;  %2234 = vmatpush3.msra.mxu1 %v1712_v3  ;;  %v1302_v30 = vsel %vm1299_vm1, %v1300_v16, %v1301_v21  ;;  %v634_v36 = vadd.f32 %v586_v26, %v486_v11  ;;  %v635_v40 = vadd.f32 %v587_v27, %v487_v22  ;;  %v2623_v3 = vld [vmem:[%s2452_s6 + $0x40] sm:$0x3]  ;;  %v224_v27 = vld [vmem:[%s2452_s6 + $0xd0] sm:$0x3] }
  0x22   : > { %2150 = vmatprep.subr.mxu0 %v1711_v14  ;;  %2219 = vmatprep.subr.mxu1 %v1711_v14  ;;  %v1412_v35 = vadd.f32 %v1302_v30, %v1219_v15  ;;  %v787_v44 = vmul.f32 %v2500_v38, %v2541_v63  ;;  %v886_v45 = vmul.f32 %v2502_v39, %v2537_v60 }
  0x23   : > { %2151 = vmatpush3.msra.mxu0 %v1711_v14  ;;  %2235 = vmatpush3.msra.mxu1 %v1711_v14  ;;  %v734_v47 = vadd.f32 %v686_v32, %v634_v36  ;;  %v2602_v48 = vadd.f32 %v687_v34, %v635_v40  ;;  %v887_v50 = vmul.f32 %v2502_v39, %v2555_v6  ;;  %v2649_v34 = vld [vmem:[%s2452_s6 + $0xe8] sm:$0x3]  ;;  %v2652_v40 = vld [vmem:[%s2452_s6 + $0x100] sm:$0x3] }
  0x24   : > { %2152 = vmatprep.subr.mxu0 %v1710_v29  ;;  %2220 = vmatprep.subr.mxu1 %v1710_v29  ;;  %v2600_v46 = vadd.f32 %v2585_v31, %v1412_v35  ;;  %v934_v51 = vadd.f32 %v886_v45, %v786_v43  ;;  %v986_v52 = vmul.f32 %v2510_v41, %v2544_v0 }
  0x25   : > { %2153 = vmatpush3.msra.mxu0 %v1710_v29  ;;  %2236 = vmatpush3.msra.mxu1 %v1710_v29  ;;  %v987_v55 = vmul.f32 %v2510_v41, %v2563_v9  ;;  %v1147_v56 = vrot.slane %v734_v47, 1  ;;  %v1148_v57 = vrot.slane %v2602_v48, 1  ;;  %v935_v61 = vadd.f32 %v887_v50, %v787_v44 }
  0x26   : > { %2154 = vmatprep.subr.mxu0 %v1709_v42  ;;  %2221 = vmatprep.subr.mxu1 %v1709_v42  ;;  %v2045_v54 = vmul.f32 -1.442695, %v2600_v46  ;;  %v1034_v1 = vadd.f32 %v986_v52, %v934_v51  ;;  %v259_v4 = vmul.f32 %v2454_v12, %v2460_v17  ;;  %v327_v8 = vmul.f32 %v2456_v13, %v2473_v24 }
  0x27   : > { %2155 = vmatpush3.msra.mxu0 %v1709_v42  ;;  %2237 = vmatpush3.msra.mxu1 %v1709_v42  ;;  %v1149_v7 = vsel %vm1106_vm0, %v1147_v56, %v1148_v57  ;;  %v395_v10 = vmul.f32 %v2465_v19, %v2492_v33  ;;  %v2634_v11 = vadd.f32 %v987_v55, %v935_v61 }
  0x28   : > { %2156 = vmatprep.subr.mxu0 %v1708_v49  ;;  %2222 = vmatprep.subr.mxu1 %v1708_v49  ;;  %2249 = vpow2.f32 %v2045_v54  ;;  %v1235_v17 = vadd.f32 %v1149_v7, %v442_v23  ;;  %v1340_v14 = vrot.slane %v1034_v1, 2  ;;  %v464_v15 = vmul.f32 %v2467_v20, %v200_v58 }
  0x29   : > { %2157 = vmatpush3.msra.mxu0 %v1708_v49  ;;  %2238 = vmatpush3.msra.mxu1 %v1708_v49  ;;  %v359_v16 = vadd.f32 %v327_v8, %v259_v4  ;;  %v564_v22 = vmul.f32 %v2481_v28, %v2620_v2  ;;  %v664_v26 = vmul.f32 %v2498_v37, %v2623_v3  ;;  %v1341_v29 = vrot.slane %v2634_v11, 2 }
  0x2a   : > { %2158 = vmatprep.subr.mxu0 %v1707_v59  ;;  %2223 = vmatprep.subr.mxu1 %v1707_v59  ;;  %v764_v23 = vmul.f32 %v2500_v38, %v200_v58  ;;  %v864_v30 = vmul.f32 %v2502_v39, %v2620_v2  ;;  %v964_v32 = vmul.f32 %v2510_v41, %v2623_v3 }
  0x2b   : > { %2159 = vmatpush3.msra.mxu0 %v1707_v59  ;;  %2239 = vmatpush3.msra.mxu1 %v1707_v59  ;;  %v427_v35 = vadd.f32 %v395_v10, %v359_v16  ;;  %v612_v36 = vadd.f32 %v564_v22, %v464_v15  ;;  %v275_v42 = vmul.f32 %v2454_v12, %v2541_v63  ;;  %v2681_v16 = vld [vmem:[%s2452_s6 + $0x48] sm:$0xff] }
  0x2c   : > { %v343_v43 = vmul.f32 %v2456_v13, %v2555_v6  ;;  %v1342_v44 = vsel %vm1299_vm1, %v1340_v14, %v1341_v29  ;;  %v912_v45 = vadd.f32 %v864_v30, %v764_v23  ;;  %v411_v47 = vmul.f32 %v2465_v19, %v2563_v9 }
  0x2d   : > { %v488_v49 = vmul.f32 %v2467_v20, %v224_v27  ;;  %v1428_v50 = vadd.f32 %v1342_v44, %v1235_v17  ;;  %v712_v51 = vadd.f32 %v664_v26, %v612_v36  ;;  %v588_v54 = vmul.f32 %v2481_v28, %v2649_v34  ;;  %v2693_v44 = vld [vmem:[%s2452_s6 + $0x50] sm:$0xff] }
  0x2e   : > { %v375_v52 = vadd.f32 %v343_v43, %v275_v42  ;;  %v1012_v55 = vadd.f32 %v964_v32, %v912_v45  ;;  %v688_v63 = vmul.f32 %v2498_v37, %v2652_v40  ;;  %v788_v56 = vmul.f32 %v2500_v38, %v224_v27 }
  0x2f   : > { %v888_v58 = vmul.f32 %v2502_v39, %v2649_v34  ;;  %v2670_v59 = vadd.f32 %v2585_v31, %v1428_v50  ;;  %v1110_v61 = vrot.slane %v712_v51, 1  ;;  %v636_v4 = vadd.f32 %v588_v54, %v488_v49 }
  0x30   : > { %v443_v1 = vadd.f32 %v411_v47, %v375_v52  ;;  %v1303_v7 = vrot.slane %v1012_v55, 2  ;;  %v988_v10 = vmul.f32 %v2510_v41, %v2652_v40  ;;  %v260_v11 = vmul.f32 %v2454_v12, %v2463_v18 }
  0x31   : > { %v936_v8 = vadd.f32 %v888_v58, %v788_v56  ;;  %v2061_v17 = vmul.f32 -1.442695, %v2670_v59  ;;  %v1111_v14 = vsel %vm1106_vm0, %v1108_v62, %v1110_v61  ;;  %v736_v15 = vadd.f32 %v688_v63, %v636_v4 }
  0x32   : > { %v328_v22 = vmul.f32 %v2456_v13, %v2476_v25  ;;  %v1220_v26 = vadd.f32 %v1111_v14, %v427_v35  ;;  %v1304_v27 = vsel %vm1299_vm1, %v1301_v21, %v1303_v7  ;;  %v396_v30 = vmul.f32 %v2465_v19, %v2681_v16 }
  0x33   : > { %v1036_v23 = vadd.f32 %v988_v10, %v936_v8  ;;  %2251 = vpow2.f32 %v2061_v17  ;;  %v1150_v53 = vrot.slane %v736_v15, 1  ;;  %v465_v62 = vmul.f32 %v2467_v20, %v2463_v18 }
  0x34   : > { %v360_v32 = vadd.f32 %v328_v22, %v260_v11  ;;  %v1413_v42 = vadd.f32 %v1304_v27, %v1220_v26  ;;  %v466_v5 = vmul.f32 %v2467_v20, %v2473_v24  ;;  %v565_v21 = vmul.f32 %v2481_v28, %v2476_v25  ;;  %v2732_v22 = vld [vmem:[%s2452_s6 + $0x108] sm:$0xff] }
  0x35   : > { %v2250_v36 = vpop.eup %2249  ;;  %v1343_v43 = vrot.slane %v1036_v23, 2  ;;  %v1151_v45 = vsel %vm1106_vm0, %v1148_v57, %v1150_v53  ;;  %v566_v49 = vmul.f32 %v2481_v28, %v2492_v33  ;;  %v665_v63 = vmul.f32 %v2498_v37, %v2681_v16 }
  0x36   : > { %v1579_v35 = vadd.f32 1.0, %v2250_v36  ;;  %v428_v47 = vadd.f32 %v396_v30, %v360_v32  ;;  %v2705_v50 = vadd.f32 %v2585_v31, %v1413_v42  ;;  %v1236_v51 = vadd.f32 %v1151_v45, %v443_v1  ;;  %v2747_v36 = vld [vmem:[%s2452_s6 + $0x110] sm:$0xff] }
  0x37   : > { %v1344_v52 = vsel %vm1299_vm1, %v1341_v29, %v1343_v43  ;;  %v613_v54 = vadd.f32 %v565_v21, %v465_v62  ;;  %v614_v55 = vadd.f32 %v566_v49, %v466_v5  ;;  %v666_v48 = vmul.f32 %v2498_v37, %v2693_v44 }
  0x38   : > { %2253 = vrcp.f32 %v1579_v35  ;;  %v2046_v57 = vmul.f32 -1.442695, %v2705_v50  ;;  %v1429_v56 = vadd.f32 %v1344_v52, %v1236_v51  ;;  %v765_v58 = vmul.f32 %v2500_v38, %v2463_v18 }
  0x39   : > { %v766_v61 = vmul.f32 %v2500_v38, %v2473_v24  ;;  %v713_v29 = vadd.f32 %v665_v63, %v613_v54  ;;  %v2717_v1 = vadd.f32 %v666_v48, %v614_v55  ;;  %v865_v4 = vmul.f32 %v2502_v39, %v2476_v25 }
  0x3a   : > { %v866_v7 = vmul.f32 %v2502_v39, %v2492_v33  ;;  %2255 = vpow2.f32 %v2046_v57  ;;  %v2724_v8 = vadd.f32 %v2585_v31, %v1429_v56  ;;  %v965_v18 = vmul.f32 %v2510_v41, %v2681_v16 }
  0x3b   : > { %v966_v10 = vmul.f32 %v2510_v41, %v2693_v44  ;;  %v913_v11 = vadd.f32 %v865_v4, %v765_v58  ;;  %v1112_v14 = vrot.slane %v713_v29, 1  ;;  %v1113_v15 = vrot.slane %v2717_v1, 1 }
  0x3c   : > { %v914_v17 = vadd.f32 %v866_v7, %v766_v61  ;;  %v2062_v26 = vmul.f32 -1.442695, %v2724_v8  ;;  %v276_v27 = vmul.f32 %v2454_v12, %v2537_v60  ;;  %v344_v23 = vmul.f32 %v2456_v13, %v2544_v0 }
  0x3d   : > { %v412_v30 = vmul.f32 %v2465_v19, %v2732_v22  ;;  %v1013_v53 = vadd.f32 %v965_v18, %v913_v11  ;;  %v1114_v62 = vsel %vm1106_vm0, %v1112_v14, %v1113_v15  ;;  %v489_v42 = vmul.f32 %v2467_v20, %v2537_v60 }
  0x3e   : > { %v2741_v32 = vadd.f32 %v966_v10, %v914_v17  ;;  %2257 = vpow2.f32 %v2062_v26  ;;  %v1221_v43 = vadd.f32 %v1114_v62, %v428_v47  ;;  %v376_v5 = vadd.f32 %v344_v23, %v276_v27 }
  0x3f   : > { %v490_v21 = vmul.f32 %v2467_v20, %v2555_v6  ;;  %v1305_v35 = vrot.slane %v1013_v53, 2  ;;  %v589_v49 = vmul.f32 %v2481_v28, %v2544_v0  ;;  %v590_v51 = vmul.f32 %v2481_v28, %v2563_v9 }
  0x40   : > { %v1306_v45 = vrot.slane %v2741_v32, 2  ;;  %v2252_v52 = vpop.eup %2251  ;;  %v444_v54 = vadd.f32 %v412_v30, %v376_v5  ;;  %v689_v55 = vmul.f32 %v2498_v37, %v2732_v22  ;;  %v690_v47 = vmul.f32 %v2498_v37, %v2747_v36 }
  0x41   : > { %v789_v63 = vmul.f32 %v2500_v38, %v2537_v60  ;;  %v1595_v48 = vadd.f32 1.0, %v2252_v52  ;;  %v637_v56 = vadd.f32 %v589_v49, %v489_v42  ;;  %v638_v58 = vadd.f32 %v590_v51, %v490_v21  ;;  %v2790_v21 = vld [vmem:[%s2452_s6 + $0x58] sm:$0x3] }
  0x42   : > { %v1307_v57 = vsel %vm1299_vm1, %v1305_v35, %v1306_v45  ;;  %v790_v29 = vmul.f32 %v2500_v38, %v2555_v6  ;;  %v889_v4 = vmul.f32 %v2502_v39, %v2544_v0  ;;  %v890_v7 = vmul.f32 %v2502_v39, %v2563_v9 }
  0x43   : > { %v1414_v61 = vadd.f32 %v1307_v57, %v1221_v43  ;;  %2259 = vrcp.f32 %v1595_v48  ;;  %v737_v60 = vadd.f32 %v689_v55, %v637_v56  ;;  %v2773_v18 = vadd.f32 %v690_v47, %v638_v58 }
  0x44   : > { %v989_v10 = vmul.f32 %v2510_v41, %v2732_v22  ;;  %v937_v14 = vadd.f32 %v889_v4, %v789_v63  ;;  %v938_v26 = vadd.f32 %v890_v7, %v790_v29  ;;  %v990_v27 = vmul.f32 %v2510_v41, %v2747_v36 }
  0x45   : > { %v2254_v11 = vpop.eup %2253  ;;  %v2778_v17 = vadd.f32 %v2585_v31, %v1414_v61  ;;  %v1152_v30 = vrot.slane %v737_v60, 1  ;;  %v1153_v53 = vrot.slane %v2773_v18, 1  ;;  %v261_v62 = vmul.f32 %v2454_v12, %v2473_v24 }
  0x46   : > { %v1675_v23 = vmul.f32 %v2254_v11, %v2600_v46  ;;  %v1037_v43 = vadd.f32 %v989_v10, %v937_v14  ;;  %v2787_v5 = vadd.f32 %v990_v27, %v938_v26  ;;  %v329_v35 = vmul.f32 %v2456_v13, %v2492_v33 }
  0x47   : > { %v2047_v42 = vmul.f32 -1.442695, %v2778_v17  ;;  %v2256_v49 = vpop.eup %2255  ;;  %v1154_v46 = vsel %vm1106_vm0, %v1152_v30, %v1153_v53  ;;  %v397_v51 = vmul.f32 %v2465_v19, %v2693_v44  ;;  %v467_v24 = vmul.f32 %v2467_v20, %v2620_v2 }
  0x48   : > { %2160 = vmatprep.mubr.f32.mxu0 %v1675_v23  ;;  %v567_v52 = vmul.f32 %v2481_v28, %v2623_v3  ;;  %v1580_v55 = vadd.f32 1.0, %v2256_v49  ;;  %v1237_v47 = vadd.f32 %v1154_v46, %v444_v54  ;;  %v1345_v63 = vrot.slane %v1037_v43, 2 }
  0x49   : > { %2261 = vpow2.f32 %v2047_v42  ;;  %v1346_v48 = vrot.slane %v2787_v5, 2  ;;  %v361_v57 = vadd.f32 %v329_v35, %v261_v62  ;;  %v667_v58 = vmul.f32 %v2498_v37, %v2790_v21 }
  0x4a   : > { %v615_v56 = vadd.f32 %v567_v52, %v467_v24  ;;  %2263 = vrcp.f32 %v1580_v55  ;;  %v767_v61 = vmul.f32 %v2500_v38, %v2620_v2  ;;  %v867_v29 = vmul.f32 %v2502_v39, %v2623_v3  ;;  %v2818_v2 = vld [vmem:[%s2452_s6 + $0x118] sm:$0x3] }
  0x4b   : > { %v967_v4 = vmul.f32 %v2510_v41, %v2790_v21  ;;  %v2258_v54 = vpop.eup %2257  ;;  %v1347_v7 = vsel %vm1299_vm1, %v1345_v63, %v1346_v48  ;;  %v429_v60 = vadd.f32 %v397_v51, %v361_v57  ;;  %v277_v11 = vmul.f32 %v2454_v12, %v2555_v6 }
  0x4c   : > { %v715_v10 = vadd.f32 %v667_v58, %v615_v56  ;;  %v1596_v14 = vadd.f32 1.0, %v2258_v54  ;;  %v1430_v26 = vadd.f32 %v1347_v7, %v1237_v47  ;;  %v915_v27 = vadd.f32 %v867_v29, %v767_v61  ;;  %v2848_v29 = vld [vmem:[%s2452_s6 + $0x60] sm:$0xff] }
  0x4d   : > { %v345_v23 = vmul.f32 %v2456_v13, %v2563_v9  ;;  %v413_v62 = vmul.f32 %v2465_v19, %v2747_v36  ;;  %v491_v42 = vmul.f32 %v2467_v20, %v2649_v34  ;;  %v591_v43 = vmul.f32 %v2481_v28, %v2652_v40 }
  0x4e   : > { %v1115_v30 = vrot.slane %v715_v10, 1  ;;  %2265 = vrcp.f32 %v1596_v14  ;;  %v2829_v6 = vadd.f32 %v2585_v31, %v1430_v26  ;;  %v1015_v35 = vadd.f32 %v967_v4, %v915_v27 }
  0x4f   : > { %v377_v49 = vadd.f32 %v345_v23, %v277_v11  ;;  %v639_v51 = vadd.f32 %v591_v43, %v491_v42  ;;  %v691_v24 = vmul.f32 %v2498_v37, %v2818_v2  ;;  %v791_v52 = vmul.f32 %v2500_v38, %v2649_v34 }
  0x50   : > { %v1116_v46 = vsel %vm1106_vm0, %v1113_v15, %v1115_v30  ;;  %v2260_v55 = vpop.eup %2259  ;;  %v2063_v47 = vmul.f32 -1.442695, %v2829_v6  ;;  %v1308_v57 = vrot.slane %v1015_v35, 2  ;;  %v891_v1 = vmul.f32 %v2502_v39, %v2652_v40 }
  0x51   : > { %v1222_v63 = vadd.f32 %v1116_v46, %v429_v60  ;;  %v445_v56 = vadd.f32 %v413_v62, %v377_v49  ;;  %v1691_v58 = vmul.f32 %v2260_v55, %v2670_v59  ;;  %v739_v61 = vadd.f32 %v691_v24, %v639_v51  ;;  %v2869_v62 = vld [vmem:[%s2452_s6 + $0x68] sm:$0xff] }
  0x52   : > { %v991_v15 = vmul.f32 %v2510_v41, %v2818_v2  ;;  %2267 = vpow2.f32 %v2063_v47  ;;  %v1309_v34 = vsel %vm1299_vm1, %v1306_v45, %v1308_v57  ;;  %v262_v4 = vmul.f32 %v2454_v12, %v2476_v25 }
  0x53   : > { %v330_v59 = vmul.f32 %v2456_v13, %v2681_v16  ;;  %2184 = vmatprep.mubr.f32.mxu1 %v1691_v58  ;;  %v1415_v54 = vadd.f32 %v1309_v34, %v1222_v63  ;;  %v939_v7 = vadd.f32 %v891_v1, %v791_v52  ;;  %v1155_v60 = vrot.slane %v739_v61, 1 }
  0x54   : > { %v398_v10 = vmul.f32 %v2465_v19, %v2848_v29  ;;  %v468_v32 = vmul.f32 %v2467_v20, %v2476_v25  ;;  %v469_v45 = vmul.f32 %v2467_v20, %v2492_v33  ;;  %v568_v14 = vmul.f32 %v2481_v28, %v2681_v16 }
  0x55   : > { %v362_v11 = vadd.f32 %v330_v59, %v262_v4  ;;  %v2863_v27 = vadd.f32 %v2585_v31, %v1415_v54  ;;  %v1039_v23 = vadd.f32 %v991_v15, %v939_v7  ;;  %v1156_v30 = vsel %vm1106_vm0, %v1153_v53, %v1155_v60 }
  0x56   : > { %v2262_v26 = vpop.eup %2261  ;;  %v569_v42 = vmul.f32 %v2481_v28, %v2693_v44  ;;  %v1238_v35 = vadd.f32 %v1156_v30, %v445_v56  ;;  %v616_v46 = vadd.f32 %v568_v14, %v468_v32  ;;  %v668_v47 = vmul.f32 %v2498_v37, %v2848_v29 }
  0x57   : > { %v1581_v43 = vadd.f32 1.0, %v2262_v26  ;;  %v430_v49 = vadd.f32 %v398_v10, %v362_v11  ;;  %v2264_v51 = vpop.eup %2263  ;;  %v2048_v24 = vmul.f32 -1.442695, %v2863_v27  ;;  %v1348_v52 = vrot.slane %v1039_v23, 2  ;;  %v2903_v10 = vld [vmem:[%s2452_s6 + $0x120] sm:$0xff] }
  0x58   : > { %v617_v55 = vadd.f32 %v569_v42, %v469_v45  ;;  %v1676_v18 = vmul.f32 %v2264_v51, %v2705_v50  ;;  %v669_v53 = vmul.f32 %v2498_v37, %v2869_v62  ;;  %v768_v63 = vmul.f32 %v2500_v38, %v2476_v25 }
  0x59   : > { %2269 = vrcp.f32 %v1581_v43  ;;  %v1349_v57 = vsel %vm1299_vm1, %v1346_v48, %v1348_v52  ;;  %v716_v56 = vadd.f32 %v668_v47, %v616_v46  ;;  %v769_v58 = vmul.f32 %v2500_v38, %v2492_v33 }
  0x5a   : > { %2271 = vpow2.f32 %v2048_v24  ;;  %2161 = vmatmul.mubr.f32.vlgmr.msra.gmra.mxu0 %v1676_v18  ;;  %v1431_v61 = vadd.f32 %v1349_v57, %v1238_v35  ;;  %v2886_v50 = vadd.f32 %v669_v53, %v617_v55  ;;  %v868_v1 = vmul.f32 %v2502_v39, %v2681_v16  ;;  %v2921_v35 = vld [vmem:[%s2452_s6 + $0x128] sm:$0xff] }
  0x5b   : > { %v869_v25 = vmul.f32 %v2502_v39, %v2693_v44  ;;  %v2266_v15 = vpop.eup %2265  ;;  %v968_v5 = vmul.f32 %v2510_v41, %v2848_v29  ;;  %v969_v48 = vmul.f32 %v2510_v41, %v2869_v62  ;;  %v1117_v34 = vrot.slane %v716_v56, 1 }
  0x5c   : > { %v278_v4 = vmul.f32 %v2454_v12, %v2544_v0  ;;  %v1692_v59 = vmul.f32 %v2266_v15, %v2724_v8  ;;  %v2900_v54 = vadd.f32 %v2585_v31, %v1431_v61  ;;  %v916_v7 = vadd.f32 %v868_v1, %v768_v63 }
  0x5d   : > { %v917_v60 = vadd.f32 %v869_v25, %v769_v58  ;;  %v1118_v11 = vrot.slane %v2886_v50, 1  ;;  %v346_v32 = vmul.f32 %v2456_v13, %v2732_v22  ;;  %v414_v45 = vmul.f32 %v2465_v19, %v2903_v10 }
  0x5e   : > { %v492_v14 = vmul.f32 %v2467_v20, %v2544_v0  ;;  %2185 = vmatmul.mubr.f32.vlgmr.msra.gmra.mxu1 %v1692_v59  ;;  %v2064_v8 = vmul.f32 -1.442695, %v2900_v54  ;;  %v1016_v26 = vadd.f32 %v968_v5, %v916_v7  ;;  %v493_v30 = vmul.f32 %v2467_v20, %v2563_v9 }
  0x5f   : > { %v2913_v23 = vadd.f32 %v969_v48, %v917_v60  ;;  %v2268_v42 = vpop.eup %2267  ;;  %v1119_v43 = vsel %vm1106_vm0, %v1117_v34, %v1118_v11  ;;  %v378_v46 = vadd.f32 %v346_v32, %v278_v4  ;;  %v592_v51 = vmul.f32 %v2481_v28, %v2732_v22 }
  0x60   : > { %v593_v24 = vmul.f32 %v2481_v28, %v2747_v36  ;;  %v1597_v52 = vadd.f32 1.0, %v2268_v42  ;;  %2273 = vpow2.f32 %v2064_v8  ;;  %v1223_v55 = vadd.f32 %v1119_v43, %v430_v49 }
  0x61   : > { %v1310_v47 = vrot.slane %v1016_v26, 2  ;;  %v1311_v18 = vrot.slane %v2913_v23, 2  ;;  %v446_v53 = vadd.f32 %v414_v45, %v378_v46  ;;  %v640_v63 = vadd.f32 %v592_v51, %v492_v14  ;;  %v2959_v51 = vld [vmem:[%s2452_s6 + $0x70] sm:$0x3] }
  0x62   : > { %v641_v57 = vadd.f32 %v593_v24, %v493_v30  ;;  %2275 = vrcp.f32 %v1597_v52  ;;  %v692_v56 = vmul.f32 %v2498_v37, %v2903_v10  ;;  %v693_v58 = vmul.f32 %v2498_v37, %v2921_v35 }
  0x63   : > { %v792_v61 = vmul.f32 %v2500_v38, %v2544_v0  ;;  %v1312_v49 = vsel %vm1299_vm1, %v1310_v47, %v1311_v18  ;;  %v793_v1 = vmul.f32 %v2500_v38, %v2563_v9  ;;  %v892_v25 = vmul.f32 %v2502_v39, %v2732_v22 }
  0x64   : > { %v893_v15 = vmul.f32 %v2502_v39, %v2747_v36  ;;  %v1416_v5 = vadd.f32 %v1312_v49, %v1223_v55  ;;  %v740_v48 = vadd.f32 %v692_v56, %v640_v63  ;;  %v2943_v34 = vadd.f32 %v693_v58, %v641_v57 }
  0x65   : > { %v992_v0 = vmul.f32 %v2510_v41, %v2903_v10  ;;  %v940_v59 = vadd.f32 %v892_v25, %v792_v61  ;;  %v993_v60 = vmul.f32 %v2510_v41, %v2921_v35  ;;  %v263_v32 = vmul.f32 %v2454_v12, %v2492_v33 }
  0x66   : > { %v2270_v4 = vpop.eup %2269  ;;  %v941_v7 = vadd.f32 %v893_v15, %v793_v1  ;;  %v2953_v8 = vadd.f32 %v2585_v31, %v1416_v5  ;;  %v1157_v26 = vrot.slane %v740_v48, 1  ;;  %v1158_v30 = vrot.slane %v2943_v34, 1 }
  0x67   : > { %v2272_v45 = vpop.eup %2271  ;;  %v1677_v14 = vmul.f32 %v2270_v4, %v2778_v17  ;;  %v1040_v43 = vadd.f32 %v992_v0, %v940_v59  ;;  %v331_v24 = vmul.f32 %v2456_v13, %v2693_v44  ;;  %v399_v52 = vmul.f32 %v2465_v19, %v2869_v62  ;;  %v2986_v0 = vld [vmem:[%s2452_s6 + $0x130] sm:$0x3] }
  0x68   : > { %v1582_v42 = vadd.f32 1.0, %v2272_v45  ;;  %v2956_v46 = vadd.f32 %v993_v60, %v941_v7  ;;  %v2049_v33 = vmul.f32 -1.442695, %v2953_v8  ;;  %v1159_v17 = vsel %vm1106_vm0, %v1157_v26, %v1158_v30 }
  0x69   : > { %2163 = vmatprep.mubr.f32.mxu0 %v1677_v14  ;;  %v470_v55 = vmul.f32 %v2467_v20, %v2623_v3  ;;  %v1239_v47 = vadd.f32 %v1159_v17, %v446_v53  ;;  %v1350_v63 = vrot.slane %v1040_v43, 2  ;;  %v363_v56 = vadd.f32 %v331_v24, %v263_v32 }
  0x6a   : > { %2277 = vrcp.f32 %v1582_v42  ;;  %v1351_v57 = vrot.slane %v2956_v46, 2  ;;  %v570_v58 = vmul.f32 %v2481_v28, %v2790_v21  ;;  %v670_v61 = vmul.f32 %v2498_v37, %v2959_v51 }
  0x6b   : > { %2279 = vpow2.f32 %v2049_v33  ;;  %v770_v1 = vmul.f32 %v2500_v38, %v2623_v3  ;;  %v870_v53 = vmul.f32 %v2502_v39, %v2790_v21  ;;  %v970_v25 = vmul.f32 %v2510_v41, %v2959_v51 }
  0x6c   : > { %v1352_v49 = vsel %vm1299_vm1, %v1350_v63, %v1351_v57  ;;  %v431_v5 = vadd.f32 %v399_v52, %v363_v56  ;;  %v618_v48 = vadd.f32 %v570_v58, %v470_v55  ;;  %v279_v4 = vmul.f32 %v2454_v12, %v2563_v9 }
  0x6d   : > { %v1432_v15 = vadd.f32 %v1352_v49, %v1239_v47  ;;  %v2274_v59 = vpop.eup %2273  ;;  %v918_v7 = vadd.f32 %v870_v53, %v770_v1  ;;  %v347_v60 = vmul.f32 %v2456_v13, %v2747_v36  ;;  %v415_v3 = vmul.f32 %v2465_v19, %v2921_v35 }
  0x6e   : > { %v494_v32 = vmul.f32 %v2467_v20, %v2652_v40  ;;  %v1598_v45 = vadd.f32 1.0, %v2274_v59  ;;  %v718_v26 = vadd.f32 %v670_v61, %v618_v48  ;;  %v594_v42 = vmul.f32 %v2481_v28, %v2818_v2  ;;  %v3020_v48 = vld [vmem:[%s2452_s6 + $0x78] sm:$0xff] }
  0x6f   : > { %v2997_v14 = vadd.f32 %v2585_v31, %v1432_v15  ;;  %v2276_v9 = vpop.eup %2275  ;;  %v1018_v43 = vadd.f32 %v970_v25, %v918_v7  ;;  %v379_v24 = vadd.f32 %v347_v60, %v279_v4  ;;  %v694_v33 = vmul.f32 %v2498_v37, %v2986_v0  ;;  %v3023_v4 = vld [vmem:[%s2452_s6 + $0x80] sm:$0xff] }
  0x70   : > { %v794_v17 = vmul.f32 %v2500_v38, %v2652_v40  ;;  %v1693_v52 = vmul.f32 %v2276_v9, %v2829_v6  ;;  %2281 = vrcp.f32 %v1598_v45  ;;  %v1120_v47 = vrot.slane %v718_v26, 1 }
  0x71   : > { %v2065_v55 = vmul.f32 -1.442695, %v2997_v14  ;;  %v1313_v63 = vrot.slane %v1018_v43, 2  ;;  %v447_v56 = vadd.f32 %v415_v3, %v379_v24  ;;  %v642_v58 = vadd.f32 %v594_v42, %v494_v32 }
  0x72   : > { %v894_v61 = vmul.f32 %v2502_v39, %v2818_v2  ;;  %2187 = vmatprep.mubr.f32.mxu1 %v1693_v52  ;;  %v1121_v40 = vsel %vm1106_vm0, %v1118_v11, %v1120_v47  ;;  %v994_v6 = vmul.f32 %v2510_v41, %v2986_v0  ;;  %v264_v49 = vmul.f32 %v2454_v12, %v2681_v16 }
  0x73   : > { %2283 = vpow2.f32 %v2065_v55  ;;  %v1224_v1 = vadd.f32 %v1121_v40, %v431_v5  ;;  %v1314_v53 = vsel %vm1299_vm1, %v1311_v18, %v1313_v63  ;;  %v742_v25 = vadd.f32 %v694_v33, %v642_v58 }
  0x74   : > { %v942_v15 = vadd.f32 %v894_v61, %v794_v17  ;;  %v332_v50 = vmul.f32 %v2456_v13, %v2848_v29  ;;  %v400_v11 = vmul.f32 %v2465_v19, %v3020_v48  ;;  %v471_v59 = vmul.f32 %v2467_v20, %v2681_v16 }
  0x75   : > { %v472_v23 = vmul.f32 %v2467_v20, %v2693_v44  ;;  %v1417_v5 = vadd.f32 %v1314_v53, %v1224_v1  ;;  %v1160_v7 = vrot.slane %v742_v25, 1  ;;  %v571_v60 = vmul.f32 %v2481_v28, %v2848_v29 }
  0x76   : > { %v1042_v18 = vadd.f32 %v994_v6, %v942_v15  ;;  %v364_v32 = vadd.f32 %v332_v50, %v264_v49  ;;  %v572_v45 = vmul.f32 %v2481_v28, %v2869_v62  ;;  %v671_v26 = vmul.f32 %v2498_v37, %v3020_v48 }
  0x77   : > { %v2278_v3 = vpop.eup %2277  ;;  %v672_v42 = vmul.f32 %v2498_v37, %v3023_v4  ;;  %v3043_v24 = vadd.f32 %v2585_v31, %v1417_v5  ;;  %v1161_v33 = vsel %vm1106_vm0, %v1158_v30, %v1160_v7  ;;  %v619_v63 = vadd.f32 %v571_v60, %v471_v59  ;;  %v3071_v59 = vld [vmem:[%s2452_s6 + $0x138] sm:$0xff] }
  0x78   : > { %v2280_v9 = vpop.eup %2279  ;;  %v1678_v43 = vmul.f32 %v2278_v3, %v2863_v27  ;;  %v1353_v17 = vrot.slane %v1042_v18, 2  ;;  %v1240_v55 = vadd.f32 %v1161_v33, %v447_v56  ;;  %v432_v47 = vadd.f32 %v400_v11, %v364_v32 }
  0x79   : > { %v1583_v52 = vadd.f32 1.0, %v2280_v9  ;;  %v2050_v58 = vmul.f32 -1.442695, %v3043_v24  ;;  %v620_v27 = vadd.f32 %v572_v45, %v472_v23  ;;  %v771_v40 = vmul.f32 %v2500_v38, %v2681_v16  ;;  %v3089_v9 = vld [vmem:[%s2452_s6 + $0x140] sm:$0xff] }
  0x7a   : > { %2164 = vmatmul.mubr.f32.gmra.mxu0 %v1678_v43  ;;  %v1354_v61 = vsel %vm1299_vm1, %v1351_v57, %v1353_v17  ;;  %v719_v30 = vadd.f32 %v671_v26, %v619_v63  ;;  %v772_v56 = vmul.f32 %v2500_v38, %v2693_v44  ;;  %v871_v49 = vmul.f32 %v2502_v39, %v2848_v29 }
  0x7b   : > { %2285 = vrcp.f32 %v1583_v52  ;;  %v1433_v34 = vadd.f32 %v1354_v61, %v1240_v55  ;;  %v3056_v6 = vadd.f32 %v672_v42, %v620_v27  ;;  %v872_v46 = vmul.f32 %v2502_v39, %v2869_v62 }
  0x7c   : > { %2287 = vpow2.f32 %v2050_v58  ;;  %v971_v16 = vmul.f32 %v2510_v41, %v3020_v48  ;;  %v972_v1 = vmul.f32 %v2510_v41, %v3023_v4  ;;  %v1122_v53 = vrot.slane %v719_v30, 1 }
  0x7d   : > { %v3063_v57 = vadd.f32 %v2585_v31, %v1433_v34  ;;  %v2282_v25 = vpop.eup %2281  ;;  %v919_v15 = vadd.f32 %v871_v49, %v771_v40  ;;  %v920_v50 = vadd.f32 %v872_v46, %v772_v56  ;;  %v1123_v11 = vrot.slane %v3056_v6, 1 }
  0x7e   : > { %v280_v23 = vmul.f32 %v2454_v12, %v2732_v22  ;;  %v1694_v5 = vmul.f32 %v2282_v25, %v2900_v54  ;;  %v348_v7 = vmul.f32 %v2456_v13, %v2903_v10  ;;  %v416_v41 = vmul.f32 %v2465_v19, %v3071_v59 }
  0x7f   : > { %v2066_v18 = vmul.f32 -1.442695, %v3063_v57  ;;  %v1019_v3 = vadd.f32 %v971_v16, %v919_v15  ;;  %v3081_v32 = vadd.f32 %v972_v1, %v920_v50  ;;  %v1124_v45 = vsel %vm1106_vm0, %v1122_v53, %v1123_v11  ;;  %v3116_v53 = vld [vmem:[%s3919_s1 + $0x8] ss:$0 sm:$0xff] }
  0x80   : > { %v2284_v60 = vpop.eup %2283  ;;  %v495_v26 = vmul.f32 %v2467_v20, %v2732_v22  ;;  %2188 = vmatmul.mubr.f32.gmra.mxu1 %v1694_v5  ;;  %v1225_v42 = vadd.f32 %v1124_v45, %v432_v47  ;;  %v380_v43 = vadd.f32 %v348_v7, %v280_v23  ;;  %v496_v52 = vmul.f32 %v2467_v20, %v2747_v36 }
  0x81   : > { %v1599_v54 = vadd.f32 1.0, %v2284_v60  ;;  %2289 = vpow2.f32 %v2066_v18  ;;  %v1315_v33 = vrot.slane %v1019_v3, 2  ;;  %v1316_v17 = vrot.slane %v3081_v32, 2 }
  0x82   : > { %v595_v55 = vmul.f32 %v2481_v28, %v2903_v10  ;;  %v448_v63 = vadd.f32 %v416_v41, %v380_v43  ;;  %v596_v58 = vmul.f32 %v2481_v28, %v2921_v35  ;;  %v695_v47 = vmul.f32 %v2498_v37, %v3071_v59 }
  0x83   : > { %2291 = vrcp.f32 %v1599_v54  ;;  %v1317_v61 = vsel %vm1299_vm1, %v1315_v33, %v1316_v17  ;;  %v696_v40 = vmul.f32 %v2498_v37, %v3089_v9  ;;  %v795_v34 = vmul.f32 %v2500_v38, %v2732_v22 }
  0x84   : > { %v643_v27 = vadd.f32 %v595_v55, %v495_v26  ;;  %v1418_v30 = vadd.f32 %v1317_v61, %v1225_v42  ;;  %v644_v56 = vadd.f32 %v596_v58, %v496_v52  ;;  %v796_v49 = vmul.f32 %v2500_v38, %v2747_v36 }
  0x85   : > { %v895_v46 = vmul.f32 %v2502_v39, %v2903_v10  ;;  %v896_v1 = vmul.f32 %v2502_v39, %v2921_v35  ;;  %v995_v22 = vmul.f32 %v3116_v53, %v3071_v59  ;;  %v996_v25 = vmul.f32 %v3116_v53, %v3089_v9 }
  0x86   : > { %v743_v16 = vadd.f32 %v695_v47, %v643_v27  ;;  %v3123_v15 = vadd.f32 %v2585_v31, %v1418_v30  ;;  %v3125_v50 = vadd.f32 %v696_v40, %v644_v56  ;;  %v265_v5 = vmul.f32 %v2454_v12, %v2693_v44  ;;  %v3139_v44 = vld [vmem:[%s2452_s6 + $0x88] sm:$0x3] }
  0x87   : > { %v943_v23 = vadd.f32 %v895_v46, %v795_v34  ;;  %v944_v7 = vadd.f32 %v896_v1, %v796_v49  ;;  %v333_v60 = vmul.f32 %v2456_v13, %v2869_v62  ;;  %v401_v3 = vmul.f32 %v2465_v19, %v3023_v4 }
  0x88   : > { %v2286_v18 = vpop.eup %2285  ;;  %v1162_v41 = vrot.slane %v743_v16, 1  ;;  %v2051_v26 = vmul.f32 -1.442695, %v3123_v15  ;;  %v1163_v42 = vrot.slane %v3125_v50, 1  ;;  %v473_v55 = vmul.f32 %v2467_v20, %v2790_v21 }
  0x89   : > { %v2288_v45 = vpop.eup %2287  ;;  %v1679_v31 = vmul.f32 %v2286_v18, %v2953_v8  ;;  %v1043_v54 = vadd.f32 %v995_v22, %v943_v23  ;;  %v3136_v33 = vadd.f32 %v996_v25, %v944_v7  ;;  %v365_v52 = vadd.f32 %v333_v60, %v265_v5  ;;  %v3165_v18 = vld [vmem:[%s2452_s6 + $0x148] sm:$0x3] }
  0x8a   : > { %v1584_v43 = vadd.f32 1.0, %v2288_v45  ;;  %2293 = vpow2.f32 %v2051_v26  ;;  %v1164_v8 = vsel %vm1106_vm0, %v1162_v41, %v1163_v42  ;;  %v573_v47 = vmul.f32 %v2481_v28, %v2959_v51 }
  0x8b   : > { %2166 = vmatprep.mubr.f32.mxu0 %v1679_v31  ;;  %v1355_v58 = vrot.slane %v1043_v54, 2  ;;  %v1241_v61 = vadd.f32 %v1164_v8, %v448_v63  ;;  %v1356_v27 = vrot.slane %v3136_v33, 2  ;;  %v433_v40 = vadd.f32 %v401_v3, %v365_v52  ;;  %v3177_v31 = vld [vmem:[%s3920_s2] ss:$0 sm:$0xff] }
  0x8c   : > { %2295 = vrcp.f32 %v1584_v43  ;;  %v621_v34 = vadd.f32 %v573_v47, %v473_v55  ;;  %v673_v30 = vmul.f32 %v2498_v37, %v3139_v44  ;;  %v773_v56 = vmul.f32 %v2500_v38, %v2790_v21 }
  0x8d   : > { %v873_v49 = vmul.f32 %v2502_v39, %v2959_v51  ;;  %v1357_v16 = vsel %vm1299_vm1, %v1355_v58, %v1356_v27  ;;  %v973_v63 = vmul.f32 %v3116_v53, %v3139_v44  ;;  %v281_v1 = vmul.f32 %v2454_v12, %v2747_v36 }
  0x8e   : > { %v2290_v46 = vpop.eup %2289  ;;  %v349_v22 = vmul.f32 %v2456_v13, %v2921_v35  ;;  %v1434_v23 = vadd.f32 %v1357_v16, %v1241_v61  ;;  %v721_v21 = vadd.f32 %v673_v30, %v621_v34  ;;  %v417_v60 = vmul.f32 %v2465_v19, %v3089_v9 }
  0x8f   : > { %v1600_v25 = vadd.f32 1.0, %v2290_v46  ;;  %v921_v5 = vadd.f32 %v873_v49, %v773_v56  ;;  %v497_v3 = vmul.f32 %v2467_v20, %v2818_v2  ;;  %v597_v36 = vmul.f32 %v2481_v28, %v2986_v0 }
  0x90   : > { %v2292_v7 = vpop.eup %2291  ;;  %v381_v41 = vadd.f32 %v349_v22, %v281_v1  ;;  %v3180_v26 = vadd.f32 %v3177_v31, %v1434_v23  ;;  %v1125_v43 = vrot.slane %v721_v21, 1  ;;  %v697_v8 = vmul.f32 %v2498_v37, %v3165_v18 }
  0x91   : > { %v1695_v45 = vmul.f32 %v2292_v7, %v2997_v14  ;;  %2297 = vrcp.f32 %v1600_v25  ;;  %v1021_v54 = vadd.f32 %v973_v63, %v921_v5  ;;  %v645_v55 = vadd.f32 %v597_v36, %v497_v3  ;;  %v3200_v63 = vld [vmem:[%s2452_s6 + $0x90] sm:$0xff]  ;;  %v3216_v5 = vld [vmem:[%s2452_s6 + $0x98] sm:$0xff] }
  0x92   : > { %v449_v52 = vadd.f32 %v417_v60, %v381_v41  ;;  %v2067_v14 = vmul.f32 -1.442695, %v3180_v26  ;;  %v797_v47 = vmul.f32 %v2500_v38, %v2818_v2  ;;  %v897_v61 = vmul.f32 %v2502_v39, %v2986_v0 }
  0x93   : > { %2190 = vmatprep.mubr.f32.mxu1 %v1695_v45  ;;  %v1318_v58 = vrot.slane %v1021_v54, 2  ;;  %v1126_v34 = vsel %vm1106_vm0, %v1123_v11, %v1125_v43  ;;  %v745_v30 = vadd.f32 %v697_v8, %v645_v55  ;;  %v997_v56 = vmul.f32 %v3116_v53, %v3165_v18 }
  0x94   : > { %v266_v49 = vmul.f32 %v2454_v12, %v2848_v29  ;;  %2299 = vpow2.f32 %v2067_v14  ;;  %v1226_v46 = vadd.f32 %v1126_v34, %v433_v40  ;;  %v945_v16 = vadd.f32 %v897_v61, %v797_v47 }
  0x95   : > { %v1319_v2 = vsel %vm1299_vm1, %v1316_v17, %v1318_v58  ;;  %v1165_v6 = vrot.slane %v745_v30, 1  ;;  %v334_v11 = vmul.f32 %v2456_v13, %v3020_v48  ;;  %v402_v1 = vmul.f32 %v2465_v19, %v3200_v63 }
  0x96   : > { %v474_v22 = vmul.f32 %v2467_v20, %v2848_v29  ;;  %v1419_v25 = vadd.f32 %v1319_v2, %v1226_v46  ;;  %v1045_v23 = vadd.f32 %v997_v56, %v945_v16  ;;  %v475_v32 = vmul.f32 %v2467_v20, %v2869_v62 }
  0x97   : > { %v574_v17 = vmul.f32 %v2481_v28, %v3020_v48  ;;  %v2294_v40 = vpop.eup %2293  ;;  %v1166_v21 = vsel %vm1106_vm0, %v1163_v42, %v1165_v6  ;;  %v366_v7 = vadd.f32 %v334_v11, %v266_v49  ;;  %v575_v41 = vmul.f32 %v2481_v28, %v3023_v4 }
  0x98   : > { %v674_v60 = vmul.f32 %v2498_v37, %v3200_v63  ;;  %v1585_v36 = vadd.f32 1.0, %v2294_v40  ;;  %v3223_v45 = vadd.f32 %v3177_v31, %v1419_v25  ;;  %v1242_v54 = vadd.f32 %v1166_v21, %v449_v52 }
  0x99   : > { %v2296_v3 = vpop.eup %2295  ;;  %v1358_v43 = vrot.slane %v1045_v23, 2  ;;  %v434_v55 = vadd.f32 %v402_v1, %v366_v7  ;;  %v622_v42 = vadd.f32 %v574_v17, %v474_v22  ;;  %v623_v8 = vadd.f32 %v575_v41, %v475_v32  ;;  %v3252_v22 = vld [vmem:[%s2452_s6 + $0x150] sm:$0xff]  ;;  %v3267_v7 = vld [vmem:[%s2452_s6 + $0x158] sm:$0xff] }
  0x9a   : > { %v1680_v50 = vmul.f32 %v2296_v3, %v3043_v24  ;;  %2301 = vrcp.f32 %v1585_v36  ;;  %v2052_v14 = vmul.f32 -1.442695, %v3223_v45  ;;  %v675_v47 = vmul.f32 %v2498_v37, %v3216_v5 }
  0x9b   : > { %v1359_v58 = vsel %vm1299_vm1, %v1356_v27, %v1358_v43  ;;  %v722_v34 = vadd.f32 %v674_v60, %v622_v42  ;;  %v774_v24 = vmul.f32 %v2500_v38, %v2848_v29  ;;  %v775_v52 = vmul.f32 %v2500_v38, %v2869_v62 }
  0x9c   : > { %2167 = vmatmul.mubr.f32.gmra.mxu0 %v1680_v50  ;;  %v1435_v61 = vadd.f32 %v1359_v58, %v1242_v54  ;;  %2303 = vpow2.f32 %v2052_v14  ;;  %v3236_v30 = vadd.f32 %v675_v47, %v623_v8  ;;  %v874_v33 = vmul.f32 %v2502_v39, %v3020_v48 }
  0x9d   : > { %v875_v27 = vmul.f32 %v2502_v39, %v3023_v4  ;;  %v974_v46 = vmul.f32 %v3116_v53, %v3200_v63  ;;  %v975_v29 = vmul.f32 %v3116_v53, %v3216_v5  ;;  %v1127_v2 = vrot.slane %v722_v34, 1 }
  0x9e   : > { %v2298_v56 = vpop.eup %2297  ;;  %v3243_v49 = vadd.f32 %v3177_v31, %v1435_v61  ;;  %v922_v6 = vadd.f32 %v874_v33, %v774_v24  ;;  %v1128_v1 = vrot.slane %v3236_v30, 1  ;;  %v282_v23 = vmul.f32 %v2454_v12, %v2903_v10 }
  0x9f   : > { %v1696_v16 = vmul.f32 %v2298_v56, %v3063_v57  ;;  %v923_v11 = vadd.f32 %v875_v27, %v775_v52  ;;  %v350_v32 = vmul.f32 %v2456_v13, %v3071_v59  ;;  %v418_v17 = vmul.f32 %v2465_v19, %v3252_v22 }
  0xa0   : > { %v2068_v25 = vmul.f32 -1.442695, %v3243_v49  ;;  %v1022_v40 = vadd.f32 %v974_v46, %v922_v6  ;;  %v1129_v21 = vsel %vm1106_vm0, %v1127_v2, %v1128_v1  ;;  %v498_v41 = vmul.f32 %v2467_v20, %v2903_v10 }
  0xa1   : > { %2191 = vmatmul.mubr.f32.gmra.mxu1 %v1696_v16  ;;  %v3261_v57 = vadd.f32 %v975_v29, %v923_v11  ;;  %v2300_v60 = vpop.eup %2299  ;;  %v1227_v3 = vadd.f32 %v1129_v21, %v434_v55  ;;  %v382_v36 = vadd.f32 %v350_v32, %v282_v23  ;;  %v499_v54 = vmul.f32 %v2467_v20, %v2921_v35 }
  0xa2   : > { %2305 = vpow2.f32 %v2068_v25  ;;  %v1601_v43 = vadd.f32 1.0, %v2300_v60  ;;  %v1320_v50 = vrot.slane %v1022_v40, 2  ;;  %v598_v8 = vmul.f32 %v2481_v28, %v3071_v59 }
  0xa3   : > { %v1321_v42 = vrot.slane %v3261_v57, 2  ;;  %v450_v14 = vadd.f32 %v418_v17, %v382_v36  ;;  %v599_v58 = vmul.f32 %v2481_v28, %v3089_v9  ;;  %v698_v47 = vmul.f32 %v2498_v37, %v3252_v22 }
  0xa4   : > { %v699_v55 = vmul.f32 %v2498_v37, %v3267_v7  ;;  %2307 = vrcp.f32 %v1601_v43  ;;  %v646_v34 = vadd.f32 %v598_v8, %v498_v41  ;;  %v798_v24 = vmul.f32 %v2500_v38, %v2903_v10 }
  0xa5   : > { %v1322_v61 = vsel %vm1299_vm1, %v1320_v50, %v1321_v42  ;;  %v647_v33 = vadd.f32 %v599_v58, %v499_v54  ;;  %v799_v27 = vmul.f32 %v2500_v38, %v2921_v35  ;;  %v898_v56 = vmul.f32 %v2502_v39, %v3071_v59 }
  0xa6   : > { %v1420_v52 = vadd.f32 %v1322_v61, %v1227_v3  ;;  %v746_v46 = vadd.f32 %v698_v47, %v646_v34  ;;  %v899_v29 = vmul.f32 %v2502_v39, %v3089_v9  ;;  %v998_v2 = vmul.f32 %v3116_v53, %v3252_v22 }
  0xa7   : > { %v999_v16 = vmul.f32 %v3116_v53, %v3267_v7  ;;  %v2302_v6 = vpop.eup %2301  ;;  %v3300_v11 = vadd.f32 %v699_v55, %v647_v33  ;;  %v946_v25 = vadd.f32 %v898_v56, %v798_v24  ;;  %v267_v23 = vmul.f32 %v2454_v12, %v2869_v62  ;;  %v3314_v62 = vld [vmem:[%s2452_s6 + $0xa0] sm:$0x3] }
  0xa8   : > { %v3298_v10 = vadd.f32 %v3177_v31, %v1420_v52  ;;  %v1681_v32 = vmul.f32 %v2302_v6, %v3123_v15  ;;  %v947_v17 = vadd.f32 %v899_v29, %v799_v27  ;;  %v1167_v40 = vrot.slane %v746_v46, 1 }
  0xa9   : > { %v335_v21 = vmul.f32 %v2456_v13, %v3023_v4  ;;  %v2304_v41 = vpop.eup %2303  ;;  %v1046_v3 = vadd.f32 %v998_v2, %v946_v25  ;;  %v1168_v36 = vrot.slane %v3300_v11, 1  ;;  %v403_v54 = vmul.f32 %v2465_v19, %v3216_v5 }
  0xaa   : > { %v2053_v60 = vmul.f32 -1.442695, %v3298_v10  ;;  %2169 = vmatprep.mubr.f32.mxu0 %v1681_v32  ;;  %v1586_v43 = vadd.f32 1.0, %v2304_v41  ;;  %v3311_v50 = vadd.f32 %v999_v16, %v947_v17  ;;  %v476_v8 = vmul.f32 %v2467_v20, %v2959_v51  ;;  %v3340_v32 = vld [vmem:[%s2452_s6 + $0x160] sm:$0x3] }
  0xab   : > { %v367_v15 = vadd.f32 %v335_v21, %v267_v23  ;;  %v1169_v58 = vsel %vm1106_vm0, %v1167_v40, %v1168_v36  ;;  %v1360_v47 = vrot.slane %v1046_v3, 2  ;;  %v576_v55 = vmul.f32 %v2481_v28, %v3139_v44 }
  0xac   : > { %2309 = vpow2.f32 %v2053_v60  ;;  %v1243_v61 = vadd.f32 %v1169_v58, %v450_v14  ;;  %v1361_v34 = vrot.slane %v3311_v50, 2  ;;  %v676_v33 = vmul.f32 %v2498_v37, %v3314_v62 }
  0xad   : > { %2311 = vrcp.f32 %v1586_v43  ;;  %v435_v24 = vadd.f32 %v403_v54, %v367_v15  ;;  %v624_v52 = vadd.f32 %v576_v55, %v476_v8  ;;  %v776_v27 = vmul.f32 %v2500_v38, %v2959_v51 }
  0xae   : > { %v876_v56 = vmul.f32 %v2502_v39, %v3139_v44  ;;  %v1362_v29 = vsel %vm1299_vm1, %v1360_v47, %v1361_v34  ;;  %v976_v14 = vmul.f32 %v3116_v53, %v3314_v62  ;;  %v283_v2 = vmul.f32 %v2454_v12, %v2921_v35 }
  0xaf   : > { %v2306_v46 = vpop.eup %2305  ;;  %v351_v16 = vmul.f32 %v2456_v13, %v3089_v9  ;;  %v1436_v25 = vadd.f32 %v1362_v29, %v1243_v61  ;;  %v724_v51 = vadd.f32 %v676_v33, %v624_v52  ;;  %v419_v40 = vmul.f32 %v2465_v19, %v3267_v7 }
  0xb0   : > { %v1602_v6 = vadd.f32 1.0, %v2306_v46  ;;  %v924_v23 = vadd.f32 %v876_v56, %v776_v27  ;;  %v500_v21 = vmul.f32 %v2467_v20, %v2986_v0  ;;  %v600_v41 = vmul.f32 %v2481_v28, %v3165_v18 }
  0xb1   : > { %v383_v17 = vadd.f32 %v351_v16, %v283_v2  ;;  %v2308_v35 = vpop.eup %2307  ;;  %v3349_v60 = vadd.f32 %v3177_v31, %v1436_v25  ;;  %v1130_v54 = vrot.slane %v724_v51, 1  ;;  %v700_v58 = vmul.f32 %v2498_v37, %v3340_v32 }
  0xb2   : > { %2313 = vrcp.f32 %v1602_v6  ;;  %v1024_v3 = vadd.f32 %v976_v14, %v924_v23  ;;  %v1697_v43 = vmul.f32 %v2308_v35, %v3180_v26  ;;  %v648_v8 = vadd.f32 %v600_v41, %v500_v21 }
  0xb3   : > { %v451_v15 = vadd.f32 %v419_v40, %v383_v17  ;;  %v2069_v47 = vmul.f32 -1.442695, %v3349_v60  ;;  %v1131_v55 = vsel %vm1106_vm0, %v1128_v1, %v1130_v54  ;;  %v800_v52 = vmul.f32 %v2500_v38, %v2986_v0  ;;  %v3368_v1 = vld [vmem:[%s2452_s6 + $0xa8] sm:$0xff]  ;;  %v3389_v40 = vld [vmem:[%s2452_s6 + $0xb0] sm:$0xff] }
  0xb4   : > { %v1323_v61 = vrot.slane %v1024_v3, 2  ;;  %2193 = vmatprep.mubr.f32.mxu1 %v1697_v43  ;;  %v1228_v33 = vadd.f32 %v1131_v55, %v435_v24  ;;  %v748_v27 = vadd.f32 %v700_v58, %v648_v8  ;;  %v900_v26 = vmul.f32 %v2502_v39, %v3165_v18 }
  0xb5   : > { %v1000_v56 = vmul.f32 %v3116_v53, %v3340_v32  ;;  %2315 = vpow2.f32 %v2069_v47  ;;  %v268_v0 = vmul.f32 %v2454_v12, %v3020_v48  ;;  %v336_v24 = vmul.f32 %v2456_v13, %v3200_v63 }
  0xb6   : > { %v1324_v30 = vsel %vm1299_vm1, %v1321_v42, %v1323_v61  ;;  %v948_v29 = vadd.f32 %v900_v26, %v800_v52  ;;  %v1170_v14 = vrot.slane %v748_v27, 1  ;;  %v404_v2 = vmul.f32 %v2465_v19, %v3368_v1 }
  0xb7   : > { %v1421_v46 = vadd.f32 %v1324_v30, %v1228_v33  ;;  %v368_v16 = vadd.f32 %v336_v24, %v268_v0  ;;  %v477_v57 = vmul.f32 %v2467_v20, %v3020_v48  ;;  %v478_v42 = vmul.f32 %v2467_v20, %v3023_v4 }
  0xb8   : > { %v577_v6 = vmul.f32 %v2481_v28, %v3200_v63  ;;  %v1048_v23 = vadd.f32 %v1000_v56, %v948_v29  ;;  %v1171_v17 = vsel %vm1106_vm0, %v1168_v36, %v1170_v14  ;;  %v578_v21 = vmul.f32 %v2481_v28, %v3216_v5 }
  0xb9   : > { %v2310_v25 = vpop.eup %2309  ;;  %v3383_v51 = vadd.f32 %v3177_v31, %v1421_v46  ;;  %v1244_v3 = vadd.f32 %v1171_v17, %v451_v15  ;;  %v436_v54 = vadd.f32 %v404_v2, %v368_v16  ;;  %v677_v11 = vmul.f32 %v2498_v37, %v3368_v1  ;;  %v3423_v2 = vld [vmem:[%s2452_s6 + $0x168] sm:$0xff] }
  0xba   : > { %v2312_v41 = vpop.eup %2311  ;;  %v1587_v35 = vadd.f32 1.0, %v2310_v25  ;;  %v625_v43 = vadd.f32 %v577_v6, %v477_v57  ;;  %v1363_v47 = vrot.slane %v1048_v23, 2  ;;  %v626_v55 = vadd.f32 %v578_v21, %v478_v42 }
  0xbb   : > { %v1682_v8 = vmul.f32 %v2312_v41, %v3223_v45  ;;  %v2054_v58 = vmul.f32 -1.442695, %v3383_v51  ;;  %v678_v36 = vmul.f32 %v2498_v37, %v3389_v40  ;;  %v777_v61 = vmul.f32 %v2500_v38, %v3020_v48 }
  0xbc   : > { %2317 = vrcp.f32 %v1587_v35  ;;  %v1364_v45 = vsel %vm1299_vm1, %v1361_v34, %v1363_v47  ;;  %v778_v15 = vmul.f32 %v2500_v38, %v3023_v4  ;;  %v877_v52 = vmul.f32 %v2502_v39, %v3200_v63 }
  0xbd   : > { %2170 = vmatmul.mubr.f32.gmra.mxu0 %v1682_v8  ;;  %2319 = vpow2.f32 %v2054_v58  ;;  %v1437_v33 = vadd.f32 %v1364_v45, %v1244_v3  ;;  %v725_v27 = vadd.f32 %v677_v11, %v625_v43  ;;  %v3408_v26 = vadd.f32 %v678_v36, %v626_v55  ;;  %v3441_v3 = vld [vmem:[%s2452_s6 + $0x170] sm:$0xff] }
  0xbe   : > { %v878_v48 = vmul.f32 %v2502_v39, %v3216_v5  ;;  %v925_v30 = vadd.f32 %v877_v52, %v777_v61  ;;  %v977_v50 = vmul.f32 %v3116_v53, %v3368_v1  ;;  %v978_v34 = vmul.f32 %v3116_v53, %v3389_v40 }
  0xbf   : > { %v2314_v56 = vpop.eup %2313  ;;  %v284_v0 = vmul.f32 %v2454_v12, %v3071_v59  ;;  %v3420_v46 = vadd.f32 %v3177_v31, %v1437_v33  ;;  %v1132_v14 = vrot.slane %v725_v27, 1  ;;  %v1133_v57 = vrot.slane %v3408_v26, 1 }
  0xc0   : > { %v1698_v24 = vmul.f32 %v2314_v56, %v3243_v49  ;;  %v926_v29 = vadd.f32 %v878_v48, %v778_v15  ;;  %v1025_v16 = vadd.f32 %v977_v50, %v925_v30  ;;  %v352_v42 = vmul.f32 %v2456_v13, %v3252_v22 }
  0xc1   : > { %v420_v6 = vmul.f32 %v2465_v19, %v3423_v2  ;;  %v2070_v49 = vmul.f32 -1.442695, %v3420_v46  ;;  %v501_v23 = vmul.f32 %v2467_v20, %v3071_v59  ;;  %v502_v17 = vmul.f32 %v2467_v20, %v3089_v9 }
  0xc2   : > { %2194 = vmatmul.mubr.f32.gmra.mxu1 %v1698_v24  ;;  %v3431_v25 = vadd.f32 %v978_v34, %v926_v29  ;;  %v2316_v21 = vpop.eup %2315  ;;  %v1134_v41 = vsel %vm1106_vm0, %v1132_v14, %v1133_v57  ;;  %v1325_v35 = vrot.slane %v1025_v16, 2  ;;  %v384_v43 = vadd.f32 %v352_v42, %v284_v0 }
  0xc3   : > { %v601_v8 = vmul.f32 %v2481_v28, %v3252_v22  ;;  %v1603_v58 = vadd.f32 1.0, %v2316_v21  ;;  %2321 = vpow2.f32 %v2070_v49  ;;  %v1229_v47 = vadd.f32 %v1134_v41, %v436_v54 }
  0xc4   : > { %v1326_v55 = vrot.slane %v3431_v25, 2  ;;  %v452_v11 = vadd.f32 %v420_v6, %v384_v43  ;;  %v602_v36 = vmul.f32 %v2481_v28, %v3267_v7  ;;  %v701_v45 = vmul.f32 %v2498_v37, %v3423_v2 }
  0xc5   : > { %v649_v61 = vadd.f32 %v601_v8, %v501_v23  ;;  %2323 = vrcp.f32 %v1603_v58  ;;  %v702_v52 = vmul.f32 %v2498_v37, %v3441_v3  ;;  %v801_v54 = vmul.f32 %v2500_v38, %v3071_v59 }
  0xc6   : > { %v1327_v15 = vsel %vm1299_vm1, %v1325_v35, %v1326_v55  ;;  %v650_v27 = vadd.f32 %v602_v36, %v502_v17  ;;  %v802_v56 = vmul.f32 %v2500_v38, %v3089_v9  ;;  %v901_v30 = vmul.f32 %v2502_v39, %v3252_v22  ;;  %v3476_v17 = vld [vmem:[%s2452_s6 + $0xb8] sm:$0x3] }
  0xc7   : > { %v1422_v33 = vadd.f32 %v1327_v15, %v1229_v47  ;;  %v749_v48 = vadd.f32 %v701_v45, %v649_v61  ;;  %v902_v50 = vmul.f32 %v2502_v39, %v3267_v7  ;;  %v1001_v34 = vmul.f32 %v3116_v53, %v3423_v2 }
  0xc8   : > { %v1002_v0 = vmul.f32 %v3116_v53, %v3441_v3  ;;  %v3470_v29 = vadd.f32 %v702_v52, %v650_v27  ;;  %v269_v16 = vmul.f32 %v2454_v12, %v3023_v4  ;;  %v949_v49 = vadd.f32 %v901_v30, %v801_v54 }
  0xc9   : > { %v2318_v59 = vpop.eup %2317  ;;  %v3468_v24 = vadd.f32 %v3177_v31, %v1422_v33  ;;  %v1172_v14 = vrot.slane %v749_v48, 1  ;;  %v950_v23 = vadd.f32 %v902_v50, %v802_v56  ;;  %v337_v21 = vmul.f32 %v2456_v13, %v3216_v5 }
  0xca   : > { %v2320_v42 = vpop.eup %2319  ;;  %v1683_v6 = vmul.f32 %v2318_v59, %v3298_v10  ;;  %v1173_v43 = vrot.slane %v3470_v29, 1  ;;  %v405_v8 = vmul.f32 %v2465_v19, %v3389_v40  ;;  %v1049_v4 = vadd.f32 %v1001_v34, %v949_v49  ;;  %v3506_v34 = vld [vmem:[%s2452_s6 + $0x178] sm:$0x3] }
  0xcb   : > { %v1588_v41 = vadd.f32 1.0, %v2320_v42  ;;  %v2055_v35 = vmul.f32 -1.442695, %v3468_v24  ;;  %v3484_v58 = vadd.f32 %v1002_v0, %v950_v23  ;;  %v369_v10 = vadd.f32 %v337_v21, %v269_v16 }
  0xcc   : > { %2172 = vmatprep.mubr.f32.mxu0 %v1683_v6  ;;  %v479_v47 = vmul.f32 %v2467_v20, %v3139_v44  ;;  %v1174_v36 = vsel %vm1106_vm0, %v1172_v14, %v1173_v43  ;;  %v579_v61 = vmul.f32 %v2481_v28, %v3314_v62  ;;  %v679_v45 = vmul.f32 %v2498_v37, %v3476_v17 }
  0xcd   : > { %2325 = vrcp.f32 %v1588_v41  ;;  %v1245_v15 = vadd.f32 %v1174_v36, %v452_v11  ;;  %v1365_v52 = vrot.slane %v1049_v4, 2  ;;  %v1366_v54 = vrot.slane %v3484_v58, 2 }
  0xce   : > { %2327 = vpow2.f32 %v2055_v35  ;;  %v437_v33 = vadd.f32 %v405_v8, %v369_v10  ;;  %v627_v27 = vadd.f32 %v579_v61, %v479_v47  ;;  %v779_v48 = vmul.f32 %v2500_v38, %v3139_v44 }
  0xcf   : > { %v879_v56 = vmul.f32 %v2502_v39, %v3314_v62  ;;  %v1367_v30 = vsel %vm1299_vm1, %v1365_v52, %v1366_v54  ;;  %v979_v50 = vmul.f32 %v3116_v53, %v3476_v17  ;;  %v285_v11 = vmul.f32 %v2454_v12, %v3089_v9 }
  0xd0   : > { %v353_v0 = vmul.f32 %v2456_v13, %v3267_v7  ;;  %v2322_v59 = vpop.eup %2321  ;;  %v1438_v44 = vadd.f32 %v1367_v30, %v1245_v15  ;;  %v727_v14 = vadd.f32 %v679_v45, %v627_v27  ;;  %v421_v42 = vmul.f32 %v2465_v19, %v3441_v3 }
  0xd1   : > { %v927_v16 = vadd.f32 %v879_v56, %v779_v48  ;;  %v1604_v6 = vadd.f32 1.0, %v2322_v59  ;;  %v503_v23 = vmul.f32 %v2467_v20, %v3165_v18  ;;  %v603_v21 = vmul.f32 %v2481_v28, %v3340_v32 }
  0xd2   : > { %v385_v49 = vadd.f32 %v353_v0, %v285_v11  ;;  %v2324_v41 = vpop.eup %2323  ;;  %v3519_v9 = vadd.f32 %v3177_v31, %v1438_v44  ;;  %v1135_v8 = vrot.slane %v727_v14, 1  ;;  %v703_v4 = vmul.f32 %v2498_v37, %v3506_v34  ;;  %v3542_v11 = vld [vmem:[%s2452_s6 + $0xc0] sm:$0xff] }
  0xd3   : > { %v1027_v35 = vadd.f32 %v979_v50, %v927_v16  ;;  %v1699_v10 = vmul.f32 %v2324_v41, %v3349_v60  ;;  %2329 = vrcp.f32 %v1604_v6  ;;  %v651_v36 = vadd.f32 %v603_v21, %v503_v23 }
  0xd4   : > { %v453_v47 = vadd.f32 %v421_v42, %v385_v49  ;;  %v2071_v61 = vmul.f32 -1.442695, %v3519_v9  ;;  %v1136_v45 = vsel %vm1106_vm0, %v1133_v57, %v1135_v8  ;;  %v803_v52 = vmul.f32 %v2500_v38, %v3165_v18 }
  0xd5   : > { %v1328_v15 = vrot.slane %v1027_v35, 2  ;;  %2196 = vmatprep.mubr.f32.mxu1 %v1699_v10  ;;  %v1230_v27 = vadd.f32 %v1136_v45, %v437_v33  ;;  %v751_v48 = vadd.f32 %v703_v4, %v651_v36  ;;  %v903_v60 = vmul.f32 %v2502_v39, %v3340_v32  ;;  %v3565_v45 = vld [vmem:[%s2452_s6 + $0xc8] sm:$0xff] }
  0xd6   : > { %v1003_v56 = vmul.f32 %v3116_v53, %v3506_v34  ;;  %2331 = vpow2.f32 %v2071_v61  ;;  %v270_v57 = vmul.f32 %v2454_v12, %v3200_v63  ;;  %v338_v18 = vmul.f32 %v2456_v13, %v3368_v1 }
  0xd7   : > { %v1329_v26 = vsel %vm1299_vm1, %v1326_v55, %v1328_v15  ;;  %v951_v33 = vadd.f32 %v903_v60, %v803_v52  ;;  %v1175_v50 = vrot.slane %v751_v48, 1  ;;  %v406_v0 = vmul.f32 %v3542_v11, %v2465_v19 }
  0xd8   : > { %v1423_v30 = vadd.f32 %v1329_v26, %v1230_v27  ;;  %v370_v59 = vadd.f32 %v338_v18, %v270_v57  ;;  %v480_v25 = vmul.f32 %v2467_v20, %v3200_v63  ;;  %v481_v55 = vmul.f32 %v2467_v20, %v3216_v5 }
  0xd9   : > { %v580_v44 = vmul.f32 %v2481_v28, %v3368_v1  ;;  %v1051_v42 = vadd.f32 %v1003_v56, %v951_v33  ;;  %v1176_v6 = vsel %vm1106_vm0, %v1173_v43, %v1175_v50  ;;  %v581_v49 = vmul.f32 %v2481_v28, %v3389_v40 }
  0xda   : > { %v2326_v14 = vpop.eup %2325  ;;  %v3553_v16 = vadd.f32 %v3177_v31, %v1423_v30  ;;  %v1246_v41 = vadd.f32 %v1176_v6, %v453_v47  ;;  %v438_v35 = vadd.f32 %v406_v0, %v370_v59  ;;  %v680_v29 = vmul.f32 %v3542_v11, %v2498_v37 }
  0xdb   : > { %v2328_v23 = vpop.eup %2327  ;;  %v1684_v21 = vmul.f32 %v2326_v14, %v3383_v51  ;;  %v628_v8 = vadd.f32 %v580_v44, %v480_v25  ;;  %v1368_v36 = vrot.slane %v1051_v42, 2  ;;  %v629_v61 = vadd.f32 %v581_v49, %v481_v55  ;;  %v3596_v55 = vld [vmem:[%s2452_s6 + $0x180] sm:$0xff] }
  0xdc   : > { %v1589_v4 = vadd.f32 1.0, %v2328_v23  ;;  %v2056_v10 = vmul.f32 -1.442695, %v3553_v16  ;;  %v681_v43 = vmul.f32 %v3565_v45, %v2498_v37  ;;  %v780_v51 = vmul.f32 %v2500_v38, %v3200_v63 }
  0xdd   : > { %2173 = vmatmul.mubr.f32.gmra.mxu0 %v1684_v21  ;;  %v781_v47 = vmul.f32 %v2500_v38, %v3216_v5  ;;  %v1369_v15 = vsel %vm1299_vm1, %v1366_v54, %v1368_v36  ;;  %v880_v52 = vmul.f32 %v2502_v39, %v3368_v1  ;;  %v881_v27 = vmul.f32 %v2502_v39, %v3389_v40 }
  0xde   : > { %2333 = vrcp.f32 %v1589_v4  ;;  %v1439_v48 = vadd.f32 %v1369_v15, %v1246_v41  ;;  %v728_v60 = vadd.f32 %v680_v29, %v628_v8  ;;  %v3580_v56 = vadd.f32 %v681_v43, %v629_v61  ;;  %v3610_v8 = vld [vmem:[%s2452_s6 + $0x188] sm:$0xff] }
  0xdf   : > { %2335 = vpow2.f32 %v2056_v10  ;;  %v928_v63 = vadd.f32 %v880_v52, %v780_v51  ;;  %v929_v26 = vadd.f32 %v881_v27, %v781_v47  ;;  %v980_v57 = vmul.f32 %v3542_v11, %v3116_v53 }
  0xe0   : > { %v981_v58 = vmul.f32 %v3565_v45, %v3116_v53  ;;  %v2330_v54 = vpop.eup %2329  ;;  %v3587_v18 = vadd.f32 %v3177_v31, %v1439_v48  ;;  %v1137_v30 = vrot.slane %v728_v60, 1  ;;  %v1138_v33 = vrot.slane %v3580_v56, 1 }
  0xe1   : > { %v286_v50 = vmul.f32 %v2454_v12, %v3252_v22  ;;  %v1700_v0 = vmul.f32 %v2330_v54, %v3420_v46  ;;  %v1028_v59 = vadd.f32 %v980_v57, %v928_v63  ;;  %v354_v44 = vmul.f32 %v2456_v13, %v3423_v2 }
  0xe2   : > { %v3593_v25 = vadd.f32 %v981_v58, %v929_v26  ;;  %v2072_v14 = vmul.f32 -1.442695, %v3587_v18  ;;  %v1139_v42 = vsel %vm1106_vm0, %v1137_v30, %v1138_v33  ;;  %v422_v6 = vmul.f32 %v2465_v19, %v3596_v55 }
  0xe3   : > { %v504_v46 = vmul.f32 %v2467_v20, %v3252_v22  ;;  %v2332_v49 = vpop.eup %2331  ;;  %2197 = vmatmul.mubr.f32.gmra.mxu1 %v1700_v0  ;;  %v1231_v23 = vadd.f32 %v1139_v42, %v438_v35  ;;  %v1330_v21 = vrot.slane %v1028_v59, 2  ;;  %v386_v4 = vadd.f32 %v354_v44, %v286_v50 }
  0xe4   : > { %v1331_v41 = vrot.slane %v3593_v25, 2  ;;  %v1605_v10 = vadd.f32 1.0, %v2332_v49  ;;  %2337 = vpow2.f32 %v2072_v14  ;;  %v505_v36 = vmul.f32 %v2467_v20, %v3267_v7 }
  0xe5   : > { %v604_v61 = vmul.f32 %v2481_v28, %v3423_v2  ;;  %v454_v43 = vadd.f32 %v422_v6, %v386_v4  ;;  %v605_v35 = vmul.f32 %v2481_v28, %v3441_v3  ;;  %v704_v51 = vmul.f32 %v2498_v37, %v3596_v55 }
  0xe6   : > { %v1332_v29 = vsel %vm1299_vm1, %v1330_v21, %v1331_v41  ;;  %2339 = vrcp.f32 %v1605_v10  ;;  %v705_v52 = vmul.f32 %v2498_v37, %v3610_v8  ;;  %v804_v48 = vmul.f32 %v2500_v38, %v3252_v22 }
  0xe7   : > { %v1424_v47 = vadd.f32 %v1332_v29, %v1231_v23  ;;  %v652_v15 = vadd.f32 %v604_v61, %v504_v46  ;;  %v653_v27 = vadd.f32 %v605_v35, %v505_v36  ;;  %v805_v60 = vmul.f32 %v2500_v38, %v3267_v7 }
  0xe8   : > { %v904_v63 = vmul.f32 %v2502_v39, %v3423_v2  ;;  %v905_v58 = vmul.f32 %v2502_v39, %v3441_v3  ;;  %v1004_v54 = vmul.f32 %v3116_v53, %v3596_v55  ;;  %v1005_v22 = vmul.f32 %v3116_v53, %v3610_v8 }
  0xe9   : > { %v3632_v26 = vadd.f32 %v3177_v31, %v1424_v47  ;;  %v752_v57 = vadd.f32 %v704_v51, %v652_v15  ;;  %v3638_v30 = vadd.f32 %v705_v52, %v653_v27  ;;  %v271_v0 = vmul.f32 %v2454_v12, %v3216_v5  ;;  %v3662_v27 = vld [vmem:[%s2452_s6 + $0xd0] sm:$0x3] }
  0xea   : > { %v952_v50 = vadd.f32 %v904_v63, %v804_v48  ;;  %v953_v14 = vadd.f32 %v905_v58, %v805_v60  ;;  %v339_v6 = vmul.f32 %v2456_v13, %v3389_v40  ;;  %v407_v4 = vmul.f32 %v3565_v45, %v2465_v19  ;;  %v3676_v58 = vld [vmem:[%s2452_s6 + $0x190] sm:$0x3] }
  0xeb   : > { %v2334_v59 = vpop.eup %2333  ;;  %v2057_v44 = vmul.f32 -1.442695, %v3632_v26  ;;  %v1177_v42 = vrot.slane %v752_v57, 1  ;;  %v1178_v21 = vrot.slane %v3638_v30, 1  ;;  %v582_v35 = vmul.f32 %v2481_v28, %v3476_v17 }
  0xec   : > { %v2336_v46 = vpop.eup %2335  ;;  %v1685_v49 = vmul.f32 %v2334_v59, %v3468_v24  ;;  %v1052_v23 = vadd.f32 %v1004_v54, %v952_v50  ;;  %v3651_v5 = vadd.f32 %v1005_v22, %v953_v14  ;;  %v371_v36 = vadd.f32 %v339_v6, %v271_v0 }
  0xed   : > { %v1590_v10 = vadd.f32 1.0, %v2336_v46  ;;  %2341 = vpow2.f32 %v2057_v44  ;;  %v1179_v61 = vsel %vm1106_vm0, %v1177_v42, %v1178_v21  ;;  %v482_v24 = vmul.f32 %v2467_v20, %v3314_v62 }
  0xee   : > { %2175 = vmatprep.mubr.f32.mxu0 %v1685_v49  ;;  %v1370_v29 = vrot.slane %v1052_v23, 2  ;;  %v1247_v51 = vadd.f32 %v1179_v61, %v454_v43  ;;  %v1371_v47 = vrot.slane %v3651_v5, 2  ;;  %v439_v15 = vadd.f32 %v407_v4, %v371_v36 }
  0xef   : > { %2343 = vrcp.f32 %v1590_v10  ;;  %v630_v52 = vadd.f32 %v582_v35, %v482_v24  ;;  %v682_v48 = vmul.f32 %v3662_v27, %v2498_v37  ;;  %v782_v60 = vmul.f32 %v2500_v38, %v3314_v62 }
  0xf0   : > { %v882_v63 = vmul.f32 %v2502_v39, %v3476_v17  ;;  %v1372_v57 = vsel %vm1299_vm1, %v1370_v29, %v1371_v47  ;;  %v982_v43 = vmul.f32 %v3662_v27, %v3116_v53  ;;  %v287_v54 = vmul.f32 %v2454_v12, %v3267_v7 }
  0xf1   : > { %v355_v50 = vmul.f32 %v2456_v13, %v3441_v3  ;;  %v2338_v22 = vpop.eup %2337  ;;  %v1440_v62 = vadd.f32 %v1372_v57, %v1247_v51  ;;  %v730_v0 = vadd.f32 %v682_v48, %v630_v52  ;;  %v423_v44 = vmul.f32 %v2465_v19, %v3610_v8 }
  0xf2   : > { %v930_v59 = vadd.f32 %v882_v63, %v782_v60  ;;  %v1606_v14 = vadd.f32 1.0, %v2338_v22  ;;  %v506_v53 = vmul.f32 %v2467_v20, %v3340_v32  ;;  %v606_v6 = vmul.f32 %v2481_v28, %v3506_v34  ;;  %v3705_v60 = vld [vmem:[%s3919_s1 + $0x8] ss:$0 sm:$0xff] }
  0xf3   : > { %v387_v42 = vadd.f32 %v355_v50, %v287_v54  ;;  %v2340_v46 = vpop.eup %2339  ;;  %v3689_v7 = vadd.f32 %v3177_v31, %v1440_v62  ;;  %v1140_v23 = vrot.slane %v730_v0, 1  ;;  %v706_v4 = vmul.f32 %v2498_v37, %v3676_v58  ;;  %v2383_v54 = vld [vmem:[%s2452_s6 + $0xd8] sm:$0xff] }
  0xf4   : > { %v1030_v49 = vadd.f32 %v982_v43, %v930_v59  ;;  %v1701_v10 = vmul.f32 %v2340_v46, %v3519_v9  ;;  %2345 = vrcp.f32 %v1606_v14  ;;  %v654_v61 = vadd.f32 %v606_v6, %v506_v53 }
  0xf5   : > { %v455_v36 = vadd.f32 %v423_v44, %v387_v42  ;;  %v2073_v29 = vmul.f32 -1.442695, %v3689_v7  ;;  %v1141_v24 = vsel %vm1106_vm0, %v1138_v33, %v1140_v23  ;;  %v806_v51 = vmul.f32 %v2500_v38, %v3340_v32 }
  0xf6   : > { %v1333_v35 = vrot.slane %v1030_v49, 2  ;;  %2199 = vmatprep.mubr.f32.mxu1 %v1701_v10  ;;  %v1232_v52 = vadd.f32 %v1141_v24, %v439_v15  ;;  %v754_v48 = vadd.f32 %v706_v4, %v654_v61  ;;  %v906_v9 = vmul.f32 %v2502_v39, %v3506_v34 }
  0xf7   : > { %v1006_v56 = vmul.f32 %v3705_v60, %v3676_v58  ;;  %2347 = vpow2.f32 %v2073_v29  ;;  %v272_v32 = vmul.f32 %v2454_v12, %v3368_v1  ;;  %v340_v15 = vmul.f32 %v3542_v11, %v2456_v13 }
  0xf8   : > { %v1334_v33 = vsel %vm1299_vm1, %v1331_v41, %v1333_v35  ;;  %v954_v57 = vadd.f32 %v906_v9, %v806_v51  ;;  %v1180_v43 = vrot.slane %v754_v48, 1  ;;  %v408_v50 = vmul.f32 %v2383_v54, %v2465_v19  ;;  %v3736_v35 = vld [vmem:[%s2452_s6 + $0xe0] sm:$0xff] }
  0xf9   : > { %v1425_v63 = vadd.f32 %v1334_v33, %v1232_v52  ;;  %v372_v62 = vadd.f32 %v340_v15, %v272_v32  ;;  %v483_v0 = vmul.f32 %v2467_v20, %v3368_v1  ;;  %v484_v25 = vmul.f32 %v2467_v20, %v3389_v40 }
  0xfa   : > { %v2342_v22 = vpop.eup %2341  ;;  %v583_v41 = vmul.f32 %v3542_v11, %v2481_v28  ;;  %v1054_v14 = vadd.f32 %v1006_v56, %v954_v57  ;;  %v1181_v42 = vsel %vm1106_vm0, %v1178_v21, %v1180_v43  ;;  %v584_v49 = vmul.f32 %v3565_v45, %v2481_v28  ;;  %v249_v43 = vld [vmem:[%s2452_s6 + $0x198] sm:$0xff] }
  0xfb   : > { %v1591_v59 = vadd.f32 1.0, %v2342_v22  ;;  %v3725_v44 = vadd.f32 %v3177_v31, %v1425_v63  ;;  %v1248_v6 = vadd.f32 %v1181_v42, %v455_v36  ;;  %v440_v46 = vadd.f32 %v408_v50, %v372_v62 }
  0xfc   : > { %v2344_v53 = vpop.eup %2343  ;;  %v631_v23 = vadd.f32 %v583_v41, %v483_v0  ;;  %v1373_v61 = vrot.slane %v1054_v14, 2  ;;  %v632_v29 = vadd.f32 %v584_v49, %v484_v25  ;;  %v683_v24 = vmul.f32 %v2383_v54, %v2498_v37  ;;  %v3774_v41 = vld [vmem:[%s2452_s6 + $0x1a0] sm:$0xff] }
  0xfd   : > { %v1686_v4 = vmul.f32 %v2344_v53, %v3553_v16  ;;  %2349 = vrcp.f32 %v1591_v59  ;;  %v2058_v10 = vmul.f32 -1.442695, %v3725_v44  ;;  %v684_v30 = vmul.f32 %v3736_v35, %v2498_v37 }
  0xfe   : > { %v783_v21 = vmul.f32 %v2500_v38, %v3368_v1  ;;  %v1374_v16 = vsel %vm1299_vm1, %v1371_v47, %v1373_v61  ;;  %v784_v36 = vmul.f32 %v2500_v38, %v3389_v40  ;;  %v883_v51 = vmul.f32 %v3542_v11, %v2502_v39 }
  0xff   : > { %2176 = vmatmul.mubr.f32.gmra.mxu0 %v1686_v4  ;;  %2351 = vpow2.f32 %v2058_v10  ;;  %v1441_v52 = vadd.f32 %v1374_v16, %v1248_v6  ;;  %v731_v48 = vadd.f32 %v683_v24, %v631_v23  ;;  %v3749_v9 = vadd.f32 %v684_v30, %v632_v29 }
 0x100   : > { %v884_v1 = vmul.f32 %v3565_v45, %v2502_v39  ;;  %v931_v56 = vadd.f32 %v883_v51, %v783_v21  ;;  %v983_v33 = vmul.f32 %v2383_v54, %v3705_v60  ;;  %v984_v5 = vmul.f32 %v3736_v35, %v3705_v60 }
 0x101   : > { %v288_v47 = vmul.f32 %v2454_v12, %v3423_v2  ;;  %v2346_v32 = vpop.eup %2345  ;;  %v3759_v11 = vadd.f32 %v3177_v31, %v1441_v52  ;;  %v1142_v63 = vrot.slane %v731_v48, 1  ;;  %v1143_v57 = vrot.slane %v3749_v9, 1 }
 0x102   : > { %v932_v15 = vadd.f32 %v884_v1, %v784_v36  ;;  %v1702_v50 = vmul.f32 %v2346_v32, %v3587_v18  ;;  %v1031_v22 = vadd.f32 %v983_v33, %v931_v56  ;;  %v356_v54 = vmul.f32 %v2456_v13, %v3596_v55 }
 0x103   : > { %v424_v62 = vmul.f32 %v2465_v19, %v249_v43  ;;  %v2074_v0 = vmul.f32 -1.442695, %v3759_v11  ;;  %v1144_v31 = vsel %vm1106_vm0, %v1142_v63, %v1143_v57  ;;  %v507_v59 = vmul.f32 %v2467_v20, %v3423_v2 }
 0x104   : > { %v3768_v25 = vadd.f32 %v984_v5, %v932_v15  ;;  %v2348_v18 = vpop.eup %2347  ;;  %2200 = vmatmul.mubr.f32.gmra.mxu1 %v1702_v50  ;;  %v1233_v14 = vadd.f32 %v1144_v31, %v440_v46  ;;  %v1335_v42 = vrot.slane %v1031_v22, 2  ;;  %v388_v53 = vadd.f32 %v356_v54, %v288_v47  ;;  %v3806_v47 = vld [vmem:[%s3920_s2] ss:$0 sm:$0xff] }
 0x105   : > { %v508_v6 = vmul.f32 %v2467_v20, %v3441_v3  ;;  %v1607_v49 = vadd.f32 1.0, %v2348_v18  ;;  %2353 = vpow2.f32 %v2074_v0  ;;  %v607_v4 = vmul.f32 %v2481_v28, %v3596_v55 }
 0x106   : > { %v1336_v23 = vrot.slane %v3768_v25, 2  ;;  %v456_v10 = vadd.f32 %v424_v62, %v388_v53  ;;  %v608_v61 = vmul.f32 %v2481_v28, %v3610_v8  ;;  %v707_v29 = vmul.f32 %v2498_v37, %v249_v43 }
 0x107   : > { %v708_v46 = vmul.f32 %v2498_v37, %v3774_v41  ;;  %2355 = vrcp.f32 %v1607_v49  ;;  %v655_v30 = vadd.f32 %v607_v4, %v507_v59  ;;  %v807_v21 = vmul.f32 %v2500_v38, %v3423_v2 }
 0x108   : > { %v1337_v24 = vsel %vm1299_vm1, %v1335_v42, %v1336_v23  ;;  %v656_v36 = vadd.f32 %v608_v61, %v508_v6  ;;  %v808_v51 = vmul.f32 %v2500_v38, %v3441_v3  ;;  %v907_v52 = vmul.f32 %v2502_v39, %v3596_v55 }
 0x109   : > { %v1426_v16 = vadd.f32 %v1337_v24, %v1233_v14  ;;  %v755_v1 = vadd.f32 %v707_v29, %v655_v30  ;;  %v908_v56 = vmul.f32 %v2502_v39, %v3610_v8  ;;  %v1007_v33 = vmul.f32 %v3705_v60, %v249_v43  ;;  %v2386_v29 = vld [vmem:[%s2452_s6 + $0xe8] sm:$0x3] }
 0x10a   : > { %v2350_v48 = vpop.eup %2349  ;;  %v1008_v5 = vmul.f32 %v3705_v60, %v3774_v41  ;;  %v3811_v55 = vadd.f32 %v708_v46, %v656_v36  ;;  %v955_v15 = vadd.f32 %v907_v52, %v807_v21  ;;  %v273_v43 = vmul.f32 %v2454_v12, %v3389_v40 }
 0x10b   : > { %v1687_v2 = vmul.f32 %v2350_v48, %v3632_v26  ;;  %v3809_v32 = vadd.f32 %v3806_v47, %v1426_v16  ;;  %v956_v50 = vadd.f32 %v908_v56, %v808_v51  ;;  %v1182_v22 = vrot.slane %v755_v1, 1 }
 0x10c   : > { %v2352_v63 = vpop.eup %2351  ;;  %v341_v26 = vmul.f32 %v3565_v45, %v2456_v13  ;;  %v1055_v0 = vadd.f32 %v1007_v33, %v955_v15  ;;  %v1183_v31 = vrot.slane %v3811_v55, 1  ;;  %v409_v14 = vmul.f32 %v3736_v35, %v2465_v19 }
 0x10d   : > { %2178 = vmatprep.mubr.f32.mxu0 %v1687_v2  ;;  %v1592_v54 = vadd.f32 1.0, %v2352_v63  ;;  %v2059_v62 = vmul.f32 -1.442695, %v3809_v32  ;;  %v3819_v59 = vadd.f32 %v1008_v5, %v956_v50  ;;  %v485_v40 = vmul.f32 %v2467_v20, %v3476_v17 }
 0x10e   : > { %v373_v18 = vadd.f32 %v341_v26, %v273_v43  ;;  %v1184_v45 = vsel %vm1106_vm0, %v1182_v22, %v1183_v31  ;;  %v1375_v42 = vrot.slane %v1055_v0, 2  ;;  %v585_v53 = vmul.f32 %v3662_v27, %v2481_v28 }
 0x10f   : > { %2357 = vrcp.f32 %v1592_v54  ;;  %v1249_v6 = vadd.f32 %v1184_v45, %v456_v10  ;;  %v1376_v49 = vrot.slane %v3819_v59, 2  ;;  %v685_v35 = vmul.f32 %v2386_v29, %v2498_v37  ;;  %v251_v10 = vld [vmem:[%s2452_s6 + $0x1a8] sm:$0x3]  ;;  %s2079_s6 = sshll.u32 %s3924_s16, 8 }
 0x110   : > { %2359 = vpow2.f32 %v2059_v62  ;;  %v441_v4 = vadd.f32 %v409_v14, %v373_v18  ;;  %v633_v61 = vadd.f32 %v585_v53, %v485_v40  ;;  %v785_v46 = vmul.f32 %v2500_v38, %v3476_v17  ;;  %s3871_s21 = scalar_lea.vmem %s3922_s4, %s2079_s6 }
 0x111   : > { %v885_v24 = vmul.f32 %v3662_v27, %v2502_v39  ;;  %v1377_v30 = vsel %vm1299_vm1, %v1375_v42, %v1376_v49  ;;  %v985_v21 = vmul.f32 %v2386_v29, %v3705_v60  ;;  %v289_v16 = vmul.f32 %v2454_v12, %v3441_v3 }
 0x112   : > { %v357_v36 = vmul.f32 %v2456_v13, %v3610_v8  ;;  %v2354_v51 = vpop.eup %2353  ;;  %v1442_v52 = vadd.f32 %v1377_v30, %v1249_v6  ;;  %v733_v17 = vadd.f32 %v685_v35, %v633_v61  ;;  %v425_v27 = vmul.f32 %v2465_v19, %v3774_v41 }
 0x113   : > { %v933_v48 = vadd.f32 %v885_v24, %v785_v46  ;;  %v1608_v1 = vadd.f32 1.0, %v2354_v51  ;;  %v509_v33 = vmul.f32 %v2467_v20, %v3506_v34  ;;  %v609_v5 = vmul.f32 %v2481_v28, %v3676_v58 }
 0x114   : > { %v389_v56 = vadd.f32 %v357_v36, %v289_v16  ;;  %v2356_v12 = vpop.eup %2355  ;;  %v3851_v3 = vadd.f32 %v3806_v47, %v1442_v52  ;;  %v1145_v8 = vrot.slane %v733_v17, 1  ;;  %v709_v2 = vmul.f32 %v2498_v37, %v251_v10 }
 0x115   : > { %v1033_v13 = vadd.f32 %v985_v21, %v933_v48  ;;  %v1703_v55 = vmul.f32 %v2356_v12, %v3689_v7  ;;  %2361 = vrcp.f32 %v1608_v1  ;;  %v657_v19 = vadd.f32 %v609_v5, %v509_v33 }
 0x116   : > { %v2075_v41 = vmul.f32 -1.442695, %v3851_v3  ;;  %v1146_v20 = vsel %vm1106_vm0, %v1143_v57, %v1145_v8  ;;  %v809_v15 = vmul.f32 %v2500_v38, %v3506_v34  ;;  %v909_v37 = vmul.f32 %v2502_v39, %v3676_v58 }
 0x117   : > { %v1338_v28 = vrot.slane %v1033_v13, 2  ;;  %2202 = vmatprep.mubr.f32.mxu1 %v1703_v55  ;;  %v1234_v63 = vadd.f32 %v1146_v20, %v441_v4  ;;  %v757_v50 = vadd.f32 %v709_v2, %v657_v19  ;;  %v1009_v7 = vmul.f32 %v3705_v60, %v251_v10 }
 0x118   : > { %2363 = vpow2.f32 %v2075_v41  ;;  %v457_v9 = vadd.f32 %v425_v27, %v389_v56  ;;  %v957_v34 = vadd.f32 %v909_v37, %v809_v15 }
 0x119   : > { %v1339_v22 = vsel %vm1299_vm1, %v1336_v23, %v1338_v28  ;;  %v1185_v57 = vrot.slane %v757_v50, 1 }
 0x11a   : > { %v1427_v38 = vadd.f32 %v1339_v22, %v1234_v63  ;;  %v2162_v43 = vpop.f32.mrf.mxu0  ;;  %v1057_v60 = vadd.f32 %v1009_v7, %v957_v34 }
 0x11b   : > { %v1186_v25 = vsel %vm1106_vm0, %v1183_v31, %v1185_v57  ;;  %1949 = vst [vmem:[%s3871_s21 + $0x8] sm:$0xff] %v2162_v43 }
 0x11c   : > { %v2358_v39 = vpop.eup %2357  ;;  %v1466_v58 = vadd.f32 %v3806_v47, %v1427_v38  ;;  %v1250_v54 = vadd.f32 %v1186_v25, %v457_v9  ;;  %v1789_v62 = vpop.f32.mrf.mxu0  ;;  %v1378_v14 = vrot.slane %v1057_v60, 2 }
 0x11d   : > { %v2360_v23 = vpop.eup %2359  ;;  %v1688_v26 = vmul.f32 %v2358_v39, %v3725_v44  ;;  %1948 = vst [vmem:[%s3871_s21] sm:$0xff] %v1789_v62 }
 0x11e   : > { %v1593_v0 = vadd.f32 1.0, %v2360_v23  ;;  %v2060_v18 = vmul.f32 -1.442695, %v1466_v58  ;;  %v2186_v40 = vpop.f32.mrf.mxu1  ;;  %v1379_v45 = vsel %vm1299_vm1, %v1376_v49, %v1378_v14 }
 0x11f   : > { %2179 = vmatmul.mubr.f32.gmra.mxu0 %v1688_v26  ;;  %1965 = vst [vmem:[%s3871_s21 + $0x88] sm:$0xff] %v2186_v40  ;;  %v1443_v31 = vadd.f32 %v1379_v45, %v1250_v54 }
 0x120   : > { %2365 = vrcp.f32 %v1593_v0  ;;  %v1869_v42 = vpop.f32.mrf.mxu1 }
 0x121   : > { %2367 = vpow2.f32 %v2060_v18  ;;  %1964 = vst [vmem:[%s3871_s21 + $0x80] sm:$0xff] %v1869_v42  ;;  %v1482_v44 = vadd.f32 %v3806_v47, %v1443_v31 }
 0x122   : > { %v2362_v53 = vpop.eup %2361 }
 0x123   : > { %v1704_v6 = vmul.f32 %v2362_v53, %v3759_v11  ;;  %v2076_v4 = vmul.f32 -1.442695, %v1482_v44 }
 0x125   : > { %v2364_v61 = vpop.eup %2363  ;;  %2203 = vmatmul.mubr.f32.gmra.mxu1 %v1704_v6  ;;  %2369 = vpow2.f32 %v2076_v4 }
 0x126   : > { %v1609_v29 = vadd.f32 1.0, %v2364_v61 }
 0x128   : > { %2371 = vrcp.f32 %v1609_v29 }
 0x12d   : > { %v2366_v59 = vpop.eup %2365 }
 0x12e   : > { %v2368_v49 = vpop.eup %2367  ;;  %v1689_v35 = vmul.f32 %v2366_v59, %v3809_v32 }
 0x12f   : > { %v1594_v46 = vadd.f32 1.0, %v2368_v49 }
 0x130   : > { %2181 = vmatprep.mubr.f32.mxu0 %v1689_v35 }
 0x131   : > { %2373 = vrcp.f32 %v1594_v46 }
 0x132   : > { %v2370_v24 = vpop.eup %2369 }
 0x133   : > { %v1610_v47 = vadd.f32 1.0, %v2370_v24 }
 0x135   : > { %v2372_v11 = vpop.eup %2371  ;;  %2375 = vrcp.f32 %v1610_v47 }
 0x136   : > { %v1705_v30 = vmul.f32 %v2372_v11, %v3851_v3 }
 0x138   : > { %2205 = vmatprep.mubr.f32.mxu1 %v1705_v30 }
 0x13a   : > { %v2165_v21 = vpop.f32.mrf.mxu0 }
 0x13b   : > { %1951 = vst [vmem:[%s3871_s21 + $0x18] sm:$0xff] %v2165_v21 }
 0x13c   : > { %v1799_v10 = vpop.f32.mrf.mxu0 }
 0x13d   : > { %1950 = vst [vmem:[%s3871_s21 + $0x10] sm:$0xff] %v1799_v10 }
 0x13e   : > { %v2374_v32 = vpop.eup %2373 }
 0x13f   : > { %v1690_v16 = vmul.f32 %v2374_v32, %v1466_v58 }
 0x140   : > { %v2189_v36 = vpop.f32.mrf.mxu1 }
 0x141   : > { %2182 = vmatmul.mubr.f32.gmra.mxu0 %v1690_v16  ;;  %1967 = vst [vmem:[%s3871_s21 + $0x98] sm:$0xff] %v2189_v36 }
 0x142   : > { %v1879_v51 = vpop.f32.mrf.mxu1  ;;  %v2376_v52 = vpop.eup %2375 }
 0x143   : > { %1966 = vst [vmem:[%s3871_s21 + $0x90] sm:$0xff] %v1879_v51  ;;  %v1706_v17 = vmul.f32 %v2376_v52, %v1482_v44 }
 0x145   : > { %2206 = vmatmul.mubr.f32.gmra.mxu1 %v1706_v17 }
 0x15c   : > { %v2168_v48 = vpop.f32.mrf.mxu0 }
 0x15d   : > { %1953 = vst [vmem:[%s3871_s21 + $0x28] sm:$0xff] %v2168_v48 }
 0x15e   : > { %v1809_v27 = vpop.f32.mrf.mxu0 }
 0x15f   : > { %1952 = vst [vmem:[%s3871_s21 + $0x20] sm:$0xff] %v1809_v27 }
 0x161   : > { %v2192_v1 = vpop.f32.mrf.mxu1 }
 0x162   : > { %1969 = vst [vmem:[%s3871_s21 + $0xa8] sm:$0xff] %v2192_v1 }
 0x163   : > { %v1889_v56 = vpop.f32.mrf.mxu1 }
 0x164   : > { %1968 = vst [vmem:[%s3871_s21 + $0xa0] sm:$0xff] %v1889_v56 }
 0x17d   : > { %v2171_v33 = vpop.f32.mrf.mxu0 }
 0x17e   : > { %1955 = vst [vmem:[%s3871_s21 + $0x38] sm:$0xff] %v2171_v33 }
 0x17f   : > { %v1819_v5 = vpop.f32.mrf.mxu0 }
 0x180   : > { %1954 = vst [vmem:[%s3871_s21 + $0x30] sm:$0xff] %v1819_v5 }
 0x182   : > { %v2195_v12 = vpop.f32.mrf.mxu1 }
 0x183   : > { %1971 = vst [vmem:[%s3871_s21 + $0xb8] sm:$0xff] %v2195_v12 }
 0x184   : > { %v1899_v3 = vpop.f32.mrf.mxu1 }
 0x185   : > { %1970 = vst [vmem:[%s3871_s21 + $0xb0] sm:$0xff] %v1899_v3 }
 0x19d   : > { %v2174_v13 = vpop.f32.mrf.mxu0 }
 0x19e   : > { %1957 = vst [vmem:[%s3871_s21 + $0x48] sm:$0xff] %v2174_v13 }
 0x19f   : > { %v1829_v8 = vpop.f32.mrf.mxu0 }
 0x1a0   : > { %1956 = vst [vmem:[%s3871_s21 + $0x40] sm:$0xff] %v1829_v8 }
 0x1a3   : > { %v2198_v2 = vpop.f32.mrf.mxu1 }
 0x1a4   : > { %1973 = vst [vmem:[%s3871_s21 + $0xc8] sm:$0xff] %v2198_v2 }
 0x1a5   : > { %v1909_v55 = vpop.f32.mrf.mxu1 }
 0x1a6   : > { %1972 = vst [vmem:[%s3871_s21 + $0xc0] sm:$0xff] %v1909_v55 }
 0x1bf   : > { %v2177_v19 = vpop.f32.mrf.mxu0 }
 0x1c0   : > { %1959 = vst [vmem:[%s3871_s21 + $0x58] sm:$0xff] %v2177_v19 }
 0x1c1   : > { %v1839_v41 = vpop.f32.mrf.mxu0 }
 0x1c2   : > { %1958 = vst [vmem:[%s3871_s21 + $0x50] sm:$0xff] %v1839_v41 }
 0x1c4   : > { %v2201_v20 = vpop.f32.mrf.mxu1 }
 0x1c5   : > { %1975 = vst [vmem:[%s3871_s21 + $0xd8] sm:$0xff] %v2201_v20 }
 0x1c6   : > { %v1919_v28 = vpop.f32.mrf.mxu1 }
 0x1c7   : > { %1974 = vst [vmem:[%s3871_s21 + $0xd0] sm:$0xff] %v1919_v28 }
 0x1df   : > { %v2180_v15 = vpop.f32.mrf.mxu0 }
 0x1e0   : > { %1961 = vst [vmem:[%s3871_s21 + $0x68] sm:$0xff] %v2180_v15 }
 0x1e1   : > { %v1849_v63 = vpop.f32.mrf.mxu0 }
 0x1e2   : > { %1960 = vst [vmem:[%s3871_s21 + $0x60] sm:$0xff] %v1849_v63 }
 0x1e5   : > { %v2204_v50 = vpop.f32.mrf.mxu1 }
 0x1e6   : > { %1977 = vst [vmem:[%s3871_s21 + $0xe8] sm:$0xff] %v2204_v50 }
 0x1e7   : > { %v1929_v37 = vpop.f32.mrf.mxu1 }
 0x1e8   : > { %1976 = vst [vmem:[%s3871_s21 + $0xe0] sm:$0xff] %v1929_v37 }
 0x201   : > { %v2183_v7 = vpop.f32.mrf.mxu0 }
 0x202   : > { %1963 = vst [vmem:[%s3871_s21 + $0x78] sm:$0xff] %v2183_v7 }
 0x203   : > { %v1859_v22 = vpop.f32.mrf.mxu0 }
 0x204   : > { %1962 = vst [vmem:[%s3871_s21 + $0x70] sm:$0xff] %v1859_v22 }
 0x205   : > { %v2207_v9 = vpop.f32.mrf.mxu1 }
 0x206   : > { %1979 = vst [vmem:[%s3871_s21 + $0xf8] sm:$0xff] %v2207_v9 }
 0x207   : > { %v1939_v38 = vpop.f32.mrf.mxu1 }
 0x208   : > { %1978 = vst [vmem:[%s3871_s21 + $0xf0] sm:$0xff] %v1939_v38 }
 0x209 PF: > { %s14_s15 = sadd.s32 1, %s2393_s15  }
 0x20a   : > { %p11_p4 = scmp.ge.s32.totalorder %s14_s15, 4  }
 0x20c   :  { %13 = sbr.rel (!%p11_p4) target bundleno = 1 (0x1), region = 66 }

// kernel: mobilevit_block_v3_forward.5
= control target key start
LH: loop header
LB: loop body
LE: loop exit
PB: predicated region body
PF: predicated region fallthrough
CT: control target
= control target key end

     0   :  { %s3911_s24 = smov 0   ;;  %s5200_s0 = inlined_call_operand.vmem [shape: f32[8,64,128], index: 0, kind: input, shape index: {}]   ;;  %s5201_s1 = inlined_call_operand.vmem [shape: f32[128,384], index: 1, kind: input, shape index: {}]   ;;  %s5202_s2 = inlined_call_operand.vmem [shape: f32[128,128], index: 2, kind: input, shape index: {}]   ;;  %s5203_s3 = inlined_call_operand.vmem [shape: f32[128,128], index: 3, kind: input, shape index: {}]   ;;  %s5204_s4 = inlined_call_operand.vmem [shape: f32[128,128], index: 4, kind: input, shape index: {}]   ;;  %s5205_s5 = inlined_call_operand.vmem [shape: f32[9,128], index: 5, kind: input, shape index: {}]   ;;  %s5206_s6 = inlined_call_operand.vmem [shape: f32[1,128], index: 6, kind: input, shape index: {}]   ;;  %s5207_s7 = inlined_call_operand.vmem [shape: f32[8,64,128], index: 7, kind: output, shape index: {}]  }
   0x1 LB: > { %s2833_s25 = sadd.s32 4294967295, %s3868_s24   ;;  %p2837_p0 = scmp.ge.s32.totalorder %s3868_s24, 1  ;;  %s3868_s24 = sphi %s3911_s24, %s17_s24  }
   0x2   : > { %p237_p1 = scmp.lt.s32.totalorder %s3868_s24, 9 }
   0x4   : > { %p238_p2 = pnand %p2837_p0, %p237_p1 }
   0x6   : > { %241 = sbr.rel (%p238_p2) target bundleno = 2544 (0x9f0), region = 48 }
   0xb   : > { %p269_p3 = scmp.lt.s32.totalorder %s2833_s25, 7  ;;  %v463_v8 = vld [vmem:[%s5201_s1 + $0x168] sm:$0xff]  ;;  %v464_v9 = vld [vmem:[%s5201_s1 + $0x170] sm:$0xff]  ;;  %v461_v13 = vld [vmem:[%s5201_s1 + $0x158] sm:$0xff]  ;;  %vm921_vm10 = vcmask 523264  }
   0xc   : > { %3164 = vmatprep.subr.mxu0 %v463_v8  ;;  %v460_v10 = vld [vmem:[%s5201_s1 + $0x150] sm:$0xff]  ;;  %3208 = vmatprep.subr.mxu1 %v464_v9  ;;  %v457_v14 = vld [vmem:[%s5201_s1 + $0x138] sm:$0xff]  ;;  %v458_v15 = vld [vmem:[%s5201_s1 + $0x140] sm:$0xff] }
   0xd   : > { %s5248_s25 = smov (!%p269_p3, %s2833_s25), 7  ;;  %3165 = vmatpush3.msra.mxu0 %v463_v8  ;;  %3209 = vmatpush3.msra.mxu1 %v464_v9  ;;  %v454_v18 = vld [vmem:[%s5201_s1 + $0x120] sm:$0xff]  ;;  %v455_v19 = vld [vmem:[%s5201_s1 + $0x128] sm:$0xff]  ;;  %v452_v21 = vld [vmem:[%s5201_s1 + $0x110] sm:$0xff]  ;;  %v394_v9 = vlaneseq }
   0xe   : > { %s2890_s26 = sshll.u32 %s5248_s25, 6  ;;  %3166 = vmatprep.subr.mxu0 %v460_v10  ;;  %3210 = vmatprep.subr.mxu1 %v461_v13  ;;  %v451_v20 = vld [vmem:[%s5201_s1 + $0x108] sm:$0xff]  ;;  %v448_v24 = vld [vmem:[%s5201_s1 + $0xf0] sm:$0xff]  ;;  %v449_v25 = vld [vmem:[%s5201_s1 + $0xf8] sm:$0xff] }
   0xf   : > { %s3927_s29 = scalar_lea.vmem %s5200_s0, %s2890_s26  ;;  %3167 = vmatpush3.msra.mxu0 %v460_v10  ;;  %3211 = vmatpush3.msra.mxu1 %v461_v13  ;;  %v445_v28 = vld [vmem:[%s5201_s1 + $0xd8] sm:$0xff]  ;;  %v446_v29 = vld [vmem:[%s5201_s1 + $0xe0] sm:$0xff]  ;;  %v443_v31 = vld [vmem:[%s5201_s1 + $0xc8] sm:$0xff]  ;;  %s278_s16 = scalar_lea.vmem %s5207_s7, %s2890_s26 }
  0x10   : > { %v3930_v0 = vld [vmem:[%s3927_s29 + $0x18] sm:$0xff]  ;;  %v3933_v1 = vld [vmem:[%s3927_s29] sm:$0xff]  ;;  %v3940_v3 = vld [vmem:[%s3927_s29 + $0x8] sm:$0xff]  ;;  %3168 = vmatprep.subr.mxu0 %v457_v14  ;;  %3212 = vmatprep.subr.mxu1 %v458_v15 }
  0x11   : > { %295 = vadd.xlane.f32.xlu1 %v3930_v0  ;;  %289 = vadd.xlane.f32.xlu0 %v3933_v1  ;;  %v314_v2 = vmul.f32 %v3933_v1, %v3933_v1  ;;  %v315_v4 = vmul.f32 %v3940_v3, %v3940_v3  ;;  %v3946_v5 = vld [vmem:[%s3927_s29 + $0x10] sm:$0xff]  ;;  %v317_v7 = vmul.f32 %v3930_v0, %v3930_v0  ;;  %v3963_v11 = vld [vmem:[%s3927_s29 + $0x20] sm:$0xff]  ;;  %v3966_v12 = vld [vmem:[%s3927_s29 + $0x28] sm:$0xff] }
  0x12   : > { %v316_v6 = vmul.f32 %v3946_v5, %v3946_v5  ;;  %v318_v16 = vmul.f32 %v3963_v11, %v3963_v11  ;;  %v319_v17 = vmul.f32 %v3966_v12, %v3966_v12  ;;  %3169 = vmatpush3.msra.mxu0 %v457_v14  ;;  %3213 = vmatpush3.msra.mxu1 %v458_v15  ;;  %v3996_v22 = vld [vmem:[%s3927_s29 + $0x30] sm:$0xff]  ;;  %v3999_v23 = vld [vmem:[%s3927_s29 + $0x38] sm:$0xff]  ;;  %v442_v30 = vld [vmem:[%s5201_s1 + $0xc0] sm:$0xff] }
  0x13   : > { %3170 = vmatprep.subr.mxu0 %v454_v18  ;;  %3214 = vmatprep.subr.mxu1 %v455_v19  ;;  %v320_v26 = vmul.f32 %v3996_v22, %v3996_v22  ;;  %v321_v27 = vmul.f32 %v3999_v23, %v3999_v23  ;;  %v439_v32 = vld [vmem:[%s5201_s1 + $0xa8] sm:$0xff]  ;;  %v440_v33 = vld [vmem:[%s5201_s1 + $0xb0] sm:$0xff]  ;;  %v437_v35 = vld [vmem:[%s5201_s1 + $0x98] sm:$0xff] }
  0x14   : > { %3171 = vmatpush3.msra.mxu0 %v454_v18  ;;  %3215 = vmatpush3.msra.mxu1 %v455_v19  ;;  %v436_v34 = vld [vmem:[%s5201_s1 + $0x90] sm:$0xff]  ;;  %v433_v36 = vld [vmem:[%s5201_s1 + $0x78] sm:$0xff]  ;;  %v434_v37 = vld [vmem:[%s5201_s1 + $0x80] sm:$0xff] }
  0x15   : > { %291 = vadd.xlane.f32.xlu0 %v3940_v3  ;;  %322 = vadd.xlane.f32.xlu1 %v314_v2  ;;  %v430_v38 = vld [vmem:[%s5201_s1 + $0x60] sm:$0xff]  ;;  %v431_v39 = vld [vmem:[%s5201_s1 + $0x68] sm:$0xff]  ;;  %v428_v41 = vld [vmem:[%s5201_s1 + $0x50] sm:$0xff] }
  0x16   : > { %3172 = vmatprep.subr.mxu0 %v451_v20  ;;  %3216 = vmatprep.subr.mxu1 %v452_v21  ;;  %v427_v40 = vld [vmem:[%s5201_s1 + $0x48] sm:$0xff]  ;;  %v424_v42 = vld [vmem:[%s5201_s1 + $0x30] sm:$0xff]  ;;  %v425_v43 = vld [vmem:[%s5201_s1 + $0x38] sm:$0xff] }
  0x17   : > { %3173 = vmatpush3.msra.mxu0 %v451_v20  ;;  %3217 = vmatpush3.msra.mxu1 %v452_v21  ;;  %v421_v44 = vld [vmem:[%s5201_s1 + $0x18] sm:$0xff]  ;;  %v422_v45 = vld [vmem:[%s5201_s1 + $0x20] sm:$0xff]  ;;  %v419_v47 = vld [vmem:[%s5201_s1 + $0x8] sm:$0xff]  ;;  %v4092_v20 = vshrl.u32 %v394_v9, 7 }
  0x18   : > { %3174 = vmatprep.subr.mxu0 %v448_v24  ;;  %3218 = vmatprep.subr.mxu1 %v449_v25  ;;  %v418_v46 = vld [vmem:[%s5201_s1] sm:$0xff]  ;;  %v4076_v48 = vld [vmem:[%s5201_s1 + $0x178] sm:$0xff] }
  0x19   : > { %293 = vadd.xlane.f32.xlu0 %v3946_v5  ;;  %324 = vadd.xlane.f32.xlu1 %v315_v4  ;;  %5217 = vst [vmem:[#allocation2_spill] sm:$0xff] %v4092_v20 }
  0x1a   : > { %3175 = vmatpush3.msra.mxu0 %v448_v24  ;;  %3219 = vmatpush3.msra.mxu1 %v449_v25 }
  0x1b   : > { %3176 = vmatprep.subr.mxu0 %v445_v28  ;;  %3220 = vmatprep.subr.mxu1 %v446_v29 }
  0x1c   : > { %3177 = vmatpush3.msra.mxu0 %v445_v28  ;;  %3221 = vmatpush3.msra.mxu1 %v446_v29 }
  0x1d   : > { %326 = vadd.xlane.f32.xlu0 %v316_v6  ;;  %328 = vadd.xlane.f32.xlu1 %v317_v7 }
  0x1e   : > { %3178 = vmatprep.subr.mxu0 %v442_v30  ;;  %3222 = vmatprep.subr.mxu1 %v443_v31 }
  0x1f   : > { %3179 = vmatpush3.msra.mxu0 %v442_v30  ;;  %3223 = vmatpush3.msra.mxu1 %v443_v31  ;;  %v396_v30 = vsub.s32 0, %v4092_v20 }
  0x20   : > { %3180 = vmatprep.subr.mxu0 %v439_v32  ;;  %3224 = vmatprep.subr.mxu1 %v440_v33 }
  0x21   : > { %297 = vadd.xlane.f32.xlu0 %v3963_v11  ;;  %299 = vadd.xlane.f32.xlu1 %v3966_v12 }
  0x22   : > { %3181 = vmatpush3.msra.mxu0 %v439_v32  ;;  %3225 = vmatpush3.msra.mxu1 %v440_v33 }
  0x23   : > { %3182 = vmatprep.subr.mxu0 %v436_v34  ;;  %3226 = vmatprep.subr.mxu1 %v437_v35 }
  0x24   : > { %3183 = vmatpush3.msra.mxu0 %v436_v34  ;;  %3227 = vmatpush3.msra.mxu1 %v437_v35  ;;  %v4106_v34 = vld [vmem:[%s5205_s5] sm:$0xff]  ;;  %v408_v35 = vsub.s32 1, %v4092_v20 }
  0x25   : > { %330 = vadd.xlane.f32.xlu0 %v318_v16  ;;  %332 = vadd.xlane.f32.xlu1 %v319_v17 }
  0x26   : > { %3184 = vmatprep.subr.mxu0 %v433_v36  ;;  %3228 = vmatprep.subr.mxu1 %v434_v37 }
  0x27   : > { %3185 = vmatpush3.msra.mxu0 %v433_v36  ;;  %3229 = vmatpush3.msra.mxu1 %v434_v37 }
  0x28   : > { %3186 = vmatprep.subr.mxu0 %v430_v38  ;;  %3230 = vmatprep.subr.mxu1 %v431_v39 }
  0x29   : > { %301 = vadd.xlane.f32.xlu0 %v3996_v22  ;;  %303 = vadd.xlane.f32.xlu1 %v3999_v23 }
  0x2a   : > { %3187 = vmatpush3.msra.mxu0 %v430_v38  ;;  %3231 = vmatpush3.msra.mxu1 %v431_v39 }
  0x2b   : > { %3188 = vmatprep.subr.mxu0 %v427_v40  ;;  %3232 = vmatprep.subr.mxu1 %v428_v41 }
  0x2c   : > { %3189 = vmatpush3.msra.mxu0 %v427_v40  ;;  %3233 = vmatpush3.msra.mxu1 %v428_v41 }
  0x2d   : > { %334 = vadd.xlane.f32.xlu0 %v320_v26  ;;  %336 = vadd.xlane.f32.xlu1 %v321_v27 }
  0x2e   : > { %3190 = vmatprep.subr.mxu0 %v424_v42  ;;  %3234 = vmatprep.subr.mxu1 %v425_v43 }
  0x2f   : > { %3191 = vmatpush3.msra.mxu0 %v424_v42  ;;  %3235 = vmatpush3.msra.mxu1 %v425_v43  ;;  %v4111_v42 = vrot.slane %v4106_v34, %v396_v30 }
  0x30   : > { %3192 = vmatprep.subr.mxu0 %v421_v44  ;;  %3236 = vmatprep.subr.mxu1 %v422_v45 }
  0x31   : > { %3193 = vmatpush3.msra.mxu0 %v421_v44  ;;  %3237 = vmatpush3.msra.mxu1 %v422_v45 }
  0x32   : > { %3194 = vmatprep.subr.mxu0 %v418_v46  ;;  %3238 = vmatprep.subr.mxu1 %v419_v47 }
  0x33   : > { %3195 = vmatpush3.msra.mxu0 %v418_v46  ;;  %3239 = vmatpush3.msra.mxu1 %v419_v47 }
  0x34   : > { %3252 = vmatprep.subr.mxu0 %v4076_v48 }
  0x9a   : > { %v296_v49 = vpop.xlane.xlu1 %295  ;;  %v290_v50 = vpop.xlane.xlu0 %289 }
  0x9b   : > { %v306_v51 = vmul.f32 0.03125, %v290_v50  ;;  %v4081_v58 = vmul.f32 0.03125, %v296_v49  ;;  %v4118_v49 = vrot.slane %v4106_v34, %v408_v35 }
  0x9d   : > { %v346_v54 = vmul.f32 %v306_v51, %v306_v51  ;;  %v349_v6 = vmul.f32 %v4081_v58, %v4081_v58  ;;  %v378_v39 = vsub.f32 %v3933_v1, %v306_v51 }
  0x9e   : > { %v292_v52 = vpop.xlane.xlu0 %291  ;;  %v323_v53 = vpop.xlane.xlu1 %322 }
  0x9f   : > { %v4079_v55 = vmul.f32 0.03125, %v292_v52  ;;  %v338_v56 = vmul.f32 0.03125, %v323_v53 }
  0xa1   : > { %v354_v57 = vsub.f32 %v338_v56, %v346_v54  ;;  %v347_v61 = vmul.f32 %v4079_v55, %v4079_v55  ;;  %v379_v50 = vsub.f32 %v3940_v3, %v4079_v55 }
  0xa2   : > { %v294_v59 = vpop.xlane.xlu0 %293  ;;  %v325_v60 = vpop.xlane.xlu1 %324 }
  0xa3   : > { %v362_v62 = vadd.f32 1e-05, %v354_v57  ;;  %v4085_v63 = vmul.f32 0.03125, %v294_v59  ;;  %v339_v2 = vmul.f32 0.03125, %v325_v60 }
  0xa5   : > { %3661 = vrsqrt.f32 %v362_v62  ;;  %v355_v4 = vsub.f32 %v339_v2, %v347_v61  ;;  %v348_v10 = vmul.f32 %v4085_v63, %v4085_v63  ;;  %v380_v3 = vsub.f32 %v3946_v5, %v4085_v63  ;;  %v462_v5 = vld [vmem:[%s5201_s1 + $0x160] sm:$0xff] }
  0xa6   : > { %v327_v7 = vpop.xlane.xlu0 %326  ;;  %v329_v8 = vpop.xlane.xlu1 %328 }
  0xa7   : > { %v363_v13 = vadd.f32 1e-05, %v355_v4  ;;  %v340_v14 = vmul.f32 0.03125, %v327_v7  ;;  %v341_v15 = vmul.f32 0.03125, %v329_v8 }
  0xa9   : > { %3663 = vrsqrt.f32 %v363_v13  ;;  %v356_v16 = vsub.f32 %v340_v14, %v348_v10  ;;  %v357_v17 = vsub.f32 %v341_v15, %v349_v6  ;;  %v381_v6 = vsub.f32 %v3930_v0, %v4081_v58  ;;  %v459_v58 = vld [vmem:[%s5201_s1 + $0x148] sm:$0xff] }
  0xaa   : > { %v298_v18 = vpop.xlane.xlu0 %297  ;;  %v300_v19 = vpop.xlane.xlu1 %299 }
  0xab   : > { %v364_v21 = vadd.f32 1e-05, %v356_v16  ;;  %v365_v24 = vadd.f32 1e-05, %v357_v17  ;;  %v4094_v25 = vmul.f32 0.03125, %v298_v18  ;;  %v4096_v26 = vmul.f32 0.03125, %v300_v19 }
  0xad   : > { %3665 = vrsqrt.f32 %v364_v21  ;;  %v351_v27 = vmul.f32 %v4096_v26, %v4096_v26  ;;  %v350_v31 = vmul.f32 %v4094_v25, %v4094_v25  ;;  %v382_v18 = vsub.f32 %v3963_v11, %v4094_v25  ;;  %v453_v11 = vld [vmem:[%s5201_s1 + $0x118] sm:$0xff] }
  0xae   : > { %3667 = vrsqrt.f32 %v365_v24  ;;  %v331_v28 = vpop.xlane.xlu0 %330  ;;  %v333_v29 = vpop.xlane.xlu1 %332  ;;  %v383_v21 = vsub.f32 %v3966_v12, %v4096_v26  ;;  %v450_v12 = vld [vmem:[%s5201_s1 + $0x100] sm:$0xff] }
  0xaf   : > { %v342_v32 = vmul.f32 0.03125, %v331_v28  ;;  %v343_v33 = vmul.f32 0.03125, %v333_v29  ;;  %v447_v29 = vld [vmem:[%s5201_s1 + $0xe8] sm:$0xff] }
  0xb1   : > { %v358_v36 = vsub.f32 %v342_v32, %v350_v31  ;;  %v359_v37 = vsub.f32 %v343_v33, %v351_v27  ;;  %v444_v33 = vld [vmem:[%s5201_s1 + $0xd0] sm:$0xff] }
  0xb2   : > { %v3662_v38 = vpop.eup %3661  ;;  %v302_v40 = vpop.xlane.xlu0 %301 }
  0xb3   : > { %v304_v41 = vpop.xlane.xlu1 %303  ;;  %v366_v43 = vadd.f32 1e-05, %v358_v36  ;;  %v367_v44 = vadd.f32 1e-05, %v359_v37  ;;  %v4113_v45 = vmul.f32 0.03125, %v302_v40  ;;  %v386_v47 = vmul.f32 %v3662_v38, %v378_v39  ;;  %v441_v38 = vld [vmem:[%s5201_s1 + $0xb8] sm:$0xff] }
  0xb4   : > { %v4115_v46 = vmul.f32 0.03125, %v304_v41  ;;  %v438_v40 = vld [vmem:[%s5201_s1 + $0xa0] sm:$0xff] }
  0xb5   : > { %3669 = vrsqrt.f32 %v366_v43  ;;  %v398_v54 = vmul.f32 %v4111_v42, %v386_v47  ;;  %v352_v56 = vmul.f32 %v4113_v45, %v4113_v45  ;;  %v384_v32 = vsub.f32 %v3996_v22, %v4113_v45  ;;  %v435_v43 = vld [vmem:[%s5201_s1 + $0x88] sm:$0xff]  ;;  %v426_v47 = vld [vmem:[%s5201_s1 + $0x40] sm:$0xff] }
  0xb6   : > { %v353_v1 = vmul.f32 %v4115_v46, %v4115_v46  ;;  %v3664_v51 = vpop.eup %3663  ;;  %3671 = vrsqrt.f32 %v367_v44  ;;  %v335_v52 = vpop.xlane.xlu0 %334  ;;  %v385_v36 = vsub.f32 %v3999_v23, %v4115_v46  ;;  %v432_v46 = vld [vmem:[%s5201_s1 + $0x70] sm:$0xff] }
  0xb7   : > { %v337_v53 = vpop.xlane.xlu1 %336  ;;  %v344_v57 = vmul.f32 0.03125, %v335_v52  ;;  %v387_v60 = vmul.f32 %v3664_v51, %v379_v50  ;;  %v4128_v61 = vadd.f32 %v4118_v49, %v398_v54  ;;  %v420_v50 = vld [vmem:[%s5201_s1 + $0x10] sm:$0xff]  ;;  %v3870_v51 = vmov 0.0  }
  0xb8   : > { %v345_v59 = vmul.f32 0.03125, %v337_v53  ;;  %v468_v54 = vsub.s32 4, %v4092_v20 }
  0xb9   : > { %v360_v55 = vsub.f32 %v344_v57, %v352_v56  ;;  %v399_v2 = vmul.f32 %v4111_v42, %v387_v60  ;;  %3196 = vmatprep.mubr.f32.mxu0 %v4128_v61  ;;  %3240 = vmatprep.mubr.f32.mxu1 %v4128_v61 }
  0xba   : > { %v361_v62 = vsub.f32 %v345_v59, %v353_v1  ;;  %v3666_v4 = vpop.eup %3665  ;;  %v802_v1 = vand.u32 127, %v394_v9  ;;  %v469_v56 = vrot.slane %v4106_v34, %v468_v54 }
  0xbb   : > { %v3668_v7 = vpop.eup %3667  ;;  %v368_v8 = vadd.f32 1e-05, %v360_v55  ;;  %v4138_v13 = vadd.f32 %v4118_v49, %v399_v2  ;;  %v388_v14 = vmul.f32 %v3666_v4, %v380_v3 }
  0xbc   : > { %v369_v10 = vadd.f32 1e-05, %v361_v62  ;;  %v389_v63 = vmul.f32 %v3668_v7, %v381_v6  ;;  %vm1490_vm0 = vcmp.ge.s32.totalorder %v802_v1, 16  ;;  %vm1491_vm1 = vcmp.lt.s32.totalorder %v802_v1, 24 }
  0xbd   : > { %3673 = vrsqrt.f32 %v368_v8  ;;  %3197 = vmatmul.mubr.f32.vlgmr.msra.gmra.mxu0 %v4138_v13  ;;  %3241 = vmatmul.mubr.f32.vlgmr.msra.gmra.mxu1 %v4138_v13  ;;  %v400_v0 = vmul.f32 %v4111_v42, %v388_v14  ;;  %vm1841_vm2 = vcmp.ge.s32.totalorder %v802_v1, 24  ;;  %vm1842_vm3 = vcmp.lt.s32.totalorder %v802_v1, 32  ;;  %vm1492_vm4 = vmand %vm1490_vm0, %vm1491_vm1 }
  0xbe   : > { %3675 = vrsqrt.f32 %v369_v10  ;;  %3253 = vmatpush3.msra.mxu0 %v4076_v48  ;;  %v401_v15 = vmul.f32 %v4111_v42, %v389_v63  ;;  %v456_v48 = vld [vmem:[%s5201_s1 + $0x130] sm:$0xff]  ;;  %v4221_v52 = vsel %vm1492_vm4, 1.0, %v3870_v51  ;;  %vm1843_vm5 = vmand %vm1841_vm2, %vm1842_vm3  ;;  %vm1018_vm6 = vcmp.ge.s32.totalorder %v802_v1, 8 }
  0xbf   : > { %3254 = vmatprep.subr.mxu0 %v462_v5  ;;  %v4152_v16 = vadd.f32 %v4118_v49, %v400_v0  ;;  %v4223_v53 = vsel %vm1843_vm5, 1.0, %v3870_v51  ;;  %vm1019_vm7 = vcmp.lt.s32.totalorder %v802_v1, 16  ;;  %vm804_vm8 = vcmp.lt.s32.totalorder %v802_v1, 8 }
  0xc0   : > { %3255 = vmatpush3.msra.mxu0 %v462_v5  ;;  %v4155_v17 = vadd.f32 %v4118_v49, %v401_v15  ;;  %vm1020_vm9 = vmand %vm1018_vm6, %vm1019_vm7  ;;  %v4237_v6 = vsel %vm804_vm8, 1.0, %v3870_v51 }
  0xc1   : > { %3256 = vmatprep.subr.mxu0 %v459_v58  ;;  %3199 = vmatprep.mubr.f32.mxu0 %v4152_v16  ;;  %v4239_v7 = vsel %vm1020_vm9, 1.0, %v3870_v51 }
  0xc2   : > { %v3670_v19 = vpop.eup %3669  ;;  %3243 = vmatprep.mubr.f32.mxu1 %v4152_v16  ;;  %3257 = vmatpush3.msra.mxu0 %v459_v58 }
  0xc3   : > { %v3672_v24 = vpop.eup %3671  ;;  %3200 = vmatmul.mubr.f32.gmra.mxu0 %v4155_v17  ;;  %3244 = vmatmul.mubr.f32.gmra.mxu1 %v4155_v17  ;;  %v390_v25 = vmul.f32 %v3670_v19, %v382_v18 }
  0xc4   : > { %3258 = vmatprep.subr.mxu0 %v456_v48  ;;  %v391_v27 = vmul.f32 %v3672_v24, %v383_v21 }
  0xc5   : > { %3259 = vmatpush3.msra.mxu0 %v456_v48  ;;  %v402_v26 = vmul.f32 %v4111_v42, %v390_v25 }
  0xc6   : > { %3260 = vmatprep.subr.mxu0 %v453_v11  ;;  %v403_v28 = vmul.f32 %v4111_v42, %v391_v27 }
  0xc7   : > { %3261 = vmatpush3.msra.mxu0 %v453_v11  ;;  %v414_v30 = vadd.f32 %v4118_v49, %v402_v26  ;;  %v577_v11 = vsub.s32 5, %v4092_v20 }
  0xc8   : > { %3262 = vmatprep.subr.mxu0 %v450_v12  ;;  %v415_v31 = vadd.f32 %v4118_v49, %v403_v28 }
  0xc9   : > { %3263 = vmatpush3.msra.mxu0 %v450_v12  ;;  %3202 = vmatprep.mubr.f32.mxu0 %v414_v30 }
  0xca   : > { %v3674_v35 = vpop.eup %3673  ;;  %3264 = vmatprep.subr.mxu0 %v447_v29  ;;  %3246 = vmatprep.mubr.f32.mxu1 %v414_v30 }
  0xcb   : > { %v3676_v37 = vpop.eup %3675  ;;  %3265 = vmatpush3.msra.mxu0 %v447_v29  ;;  %3247 = vmatmul.mubr.f32.gmra.mxu1 %v415_v31  ;;  %v392_v22 = vmul.f32 %v3674_v35, %v384_v32  ;;  %v4269_v29 = vrot.slane %v4106_v34, %v577_v11 }
  0xcc   : > { %3203 = vmatmul.mubr.f32.gmra.mxu0 %v415_v31  ;;  %3266 = vmatprep.subr.mxu0 %v444_v33  ;;  %v393_v39 = vmul.f32 %v3676_v37, %v385_v36 }
  0xcd   : > { %3267 = vmatpush3.msra.mxu0 %v444_v33  ;;  %v404_v23 = vmul.f32 %v4111_v42, %v392_v22 }
  0xce   : > { %3268 = vmatprep.subr.mxu0 %v441_v38  ;;  %v405_v41 = vmul.f32 %v4111_v42, %v393_v39  ;;  %v429_v42 = vld [vmem:[%s5201_s1 + $0x58] sm:$0xff] }
  0xcf   : > { %3269 = vmatpush3.msra.mxu0 %v441_v38  ;;  %v416_v44 = vadd.f32 %v4118_v49, %v404_v23  ;;  %v686_v23 = vsub.s32 6, %v4092_v20 }
  0xd0   : > { %3270 = vmatprep.subr.mxu0 %v438_v40  ;;  %v417_v45 = vadd.f32 %v4118_v49, %v405_v41  ;;  %v423_v49 = vld [vmem:[%s5201_s1 + $0x28] sm:$0xff] }
  0xd1   : > { %3271 = vmatpush3.msra.mxu0 %v438_v40  ;;  %3205 = vmatprep.mubr.f32.mxu0 %v416_v44 }
  0xd2   : > { %3272 = vmatprep.subr.mxu0 %v435_v43  ;;  %3249 = vmatprep.mubr.f32.mxu1 %v416_v44 }
  0xd3   : > { %3273 = vmatpush3.msra.mxu0 %v435_v43  ;;  %3250 = vmatmul.mubr.f32.gmra.mxu1 %v417_v45 }
  0xd4   : > { %3206 = vmatmul.mubr.f32.gmra.mxu0 %v417_v45  ;;  %3274 = vmatprep.subr.mxu0 %v432_v46 }
  0xd5   : > { %3275 = vmatpush3.msra.mxu0 %v432_v46  ;;  %3284 = vmatprep.mubr.f32.mxu0 %v4128_v61 }
  0xd6   : > { %3276 = vmatprep.subr.mxu0 %v429_v42 }
  0xd7   : > { %3277 = vmatpush3.msra.mxu0 %v429_v42 }
  0xd8   : > { %3278 = vmatprep.subr.mxu0 %v426_v47 }
  0xd9   : > { %3279 = vmatpush3.msra.mxu0 %v426_v47 }
  0xda   : > { %3280 = vmatprep.subr.mxu0 %v423_v49 }
  0xdb   : > { %3281 = vmatpush3.msra.mxu0 %v423_v49 }
  0xdc   : > { %3282 = vmatprep.subr.mxu0 %v420_v50 }
  0xdd   : > { %3283 = vmatpush3.msra.mxu0 %v420_v50 }
  0xde   : > { %3285 = vmatmul.mubr.f32.vlgmr.msra.gmra.mxu0 %v4138_v13 }
  0xdf   : > { %3287 = vmatprep.mubr.f32.mxu0 %v4152_v16 }
  0xe2   : > { %3288 = vmatmul.mubr.f32.gmra.mxu0 %v4155_v17 }
  0xe3   : > { %3290 = vmatprep.mubr.f32.mxu0 %v414_v30 }
  0xe6   : > { %3291 = vmatmul.mubr.f32.gmra.mxu0 %v415_v31 }
  0xe7   : > { %3293 = vmatprep.mubr.f32.mxu0 %v416_v44 }
  0xea   : > { %3294 = vmatmul.mubr.f32.gmra.mxu0 %v417_v45  ;;  %v687_v45 = vrot.slane %v4106_v34, %v686_v23 }
 0x17d   : > { %v3198_v57 = vpop.f32.mrf.mxu0  ;;  %v4227_v9 = vpop.f32.mrf.mxu1 }
 0x17e   : > { %v542_v59 = vadd.f32 %v3198_v57, %v469_v56 }
 0x17f   : > { %v536_v60 = vpop.f32.mrf.mxu0  ;;  %v4235_v2 = vpop.f32.mrf.mxu1 }
 0x180   : > { %v4229_v61 = vmul.f32 0.35355338, %v542_v59  ;;  %v537_v3 = vadd.f32 %v536_v60, %v469_v56 }
 0x182   : > { %v4233_v55 = vmul.f32 %v4223_v53, %v4229_v61  ;;  %v793_v62 = vmul.f32 0.35355338, %v537_v3 }
 0x183   : > { %v3201_v4 = vpop.f32.mrf.mxu0  ;;  %v3245_v15 = vpop.f32.mrf.mxu1 }
 0x184   : > { %5218 = vst [vmem:[#allocation3_spill] sm:$0xff] %v4233_v55  ;;  %v552_v8 = vadd.f32 %v3201_v4, %v469_v56  ;;  %v808_v13 = vmul.f32 %v4237_v6, %v793_v62  ;;  %v1023_v14 = vmul.f32 %v4239_v7, %v793_v62  ;;  %v4244_v5 = vmul.f32 %v4221_v52, %v793_v62 }
 0x185   : > { %v546_v10 = vpop.f32.mrf.mxu0  ;;  %v4247_v63 = vmul.f32 %v4223_v53, %v793_v62  ;;  %v4261_v48 = vpop.f32.mrf.mxu1  ;;  %v4332_v54 = vadd.f32 %v3245_v15, %v4269_v29 }
 0x186   : > { %v4249_v0 = vmul.f32 0.35355338, %v552_v8  ;;  %v547_v58 = vadd.f32 %v546_v10, %v469_v56  ;;  %3312 = vmatprep.mubr.f32.mxu1 %v808_v13  ;;  %3340 = vmatprep.mubr.f32.mxu0 %v1023_v14  ;;  %v4368_v14 = vadd.f32 %v4261_v48, %v4269_v29 }
 0x188   : > { %v4251_v16 = vmul.f32 0.35355338, %v547_v58  ;;  %v4255_v17 = vmul.f32 %v4223_v53, %v4249_v0 }
 0x18a   : > { %5219 = vst [vmem:[#allocation4_spill] sm:$0xff] %v4255_v17  ;;  %v4259_v18 = vmul.f32 %v4223_v53, %v4251_v16 }
 0x18b   : > { %v3248_v24 = vpop.f32.mrf.mxu1 }
 0x18c   : > { %5220 = vst [vmem:[#allocation5_spill] sm:$0xff] %v4259_v18  ;;  %v3204_v19 = vpop.f32.mrf.mxu0  ;;  %v4297_v43 = vadd.f32 %v3248_v24, %v4269_v29 }
 0x18d   : > { %v562_v21 = vadd.f32 %v3204_v19, %v469_v56  ;;  %v665_v28 = vpop.f32.mrf.mxu1 }
 0x18e   : > { %v556_v25 = vpop.f32.mrf.mxu0  ;;  %v4313_v42 = vadd.f32 %v665_v28, %v4269_v29 }
 0x18f   : > { %v4264_v27 = vmul.f32 0.35355338, %v562_v21  ;;  %v557_v12 = vadd.f32 %v556_v25, %v469_v56 }
 0x191   : > { %v4266_v26 = vmul.f32 0.35355338, %v557_v12  ;;  %v4273_v30 = vmul.f32 %v4223_v53, %v4264_v27 }
 0x193   : > { %5221 = vst [vmem:[#allocation6_spill] sm:$0xff] %v4273_v30  ;;  %v3251_v31 = vpop.f32.mrf.mxu1  ;;  %v4277_v32 = vmul.f32 %v4223_v53, %v4266_v26 }
 0x194   : > { %v3207_v33 = vpop.f32.mrf.mxu0  ;;  %v4280_v35 = vadd.f32 %v3251_v31, %v4269_v29  ;;  %v4398_v31 = vadd.f32 %v4227_v9, %v4269_v29 }
 0x195   : > { %5222 = vst [vmem:[#allocation7_spill] sm:$0xff] %v4277_v32  ;;  %v572_v36 = vadd.f32 %v3207_v33, %v469_v56  ;;  %v675_v37 = vpop.f32.mrf.mxu1 }
 0x196   : > { %v566_v38 = vpop.f32.mrf.mxu0  ;;  %v4283_v22 = vadd.f32 %v675_v37, %v4269_v29  ;;  %3296 = vmatprep.subr.mxu1 %v4280_v35  ;;  %3324 = vmatprep.subr.mxu0 %v4280_v35 }
 0x197   : > { %v4287_v39 = vmul.f32 0.35355338, %v572_v36  ;;  %v567_v40 = vadd.f32 %v566_v38, %v469_v56  ;;  %3297 = vmatpush3.xpose.msra.mxu1 %v4280_v35  ;;  %3325 = vmatpush3.xpose.msra.mxu0 %v4280_v35 }
 0x198   : > { %3298 = vmatprep.subr.mxu1 %v4283_v22  ;;  %3326 = vmatprep.subr.mxu0 %v4283_v22 }
 0x199   : > { %v4294_v41 = vmul.f32 0.35355338, %v567_v40  ;;  %v4301_v44 = vmul.f32 %v4223_v53, %v4287_v39 }
 0x19b   : > { %5223 = vst [vmem:[#allocation8_spill] sm:$0xff] %v4301_v44  ;;  %3299 = vmatpush3.xpose.msra.mxu1 %v4283_v22  ;;  %3327 = vmatpush3.xpose.msra.mxu0 %v4283_v22  ;;  %v4310_v46 = vmul.f32 %v4223_v53, %v4294_v41 }
 0x19c   : > { %3300 = vmatprep.subr.mxu1 %v4297_v43  ;;  %3328 = vmatprep.subr.mxu0 %v4297_v43 }
 0x19d   : > { %5224 = vst [vmem:[#allocation9_spill] sm:$0xff] %v4310_v46 }
 0x19e   : > { %v3286_v47 = vpop.f32.mrf.mxu0 }
 0x19f   : > { %v4315_v49 = vadd.f32 %v3286_v47, %v687_v45  ;;  %3301 = vmatpush3.xpose.msra.mxu1 %v4297_v43  ;;  %3329 = vmatpush3.xpose.msra.mxu0 %v4297_v43 }
 0x1a0   : > { %v754_v50 = vpop.f32.mrf.mxu0  ;;  %3302 = vmatprep.subr.mxu1 %v4313_v42  ;;  %3330 = vmatprep.subr.mxu0 %v4313_v42 }
 0x1a1   : > { %v4321_v34 = vadd.f32 %v754_v50, %v687_v45  ;;  %v4325_v1 = vmul.f32 %v4237_v6, %v4315_v49  ;;  %v4329_v51 = vmul.f32 %v4221_v52, %v4315_v49  ;;  %v4336_v57 = vmul.f32 %v4223_v53, %v4315_v49 }
 0x1a2   : > { %v3289_v56 = vpop.f32.mrf.mxu0 }
 0x1a3   : > { %5225 = vst [vmem:[#allocation10_spill] sm:$0xff] %v4336_v57  ;;  %v4338_v59 = vadd.f32 %v3289_v56, %v687_v45  ;;  %3303 = vmatpush3.xpose.msra.mxu1 %v4313_v42  ;;  %3331 = vmatpush3.xpose.msra.mxu0 %v4313_v42  ;;  %v4344_v60 = vmul.f32 %v4237_v6, %v4321_v34 }
 0x1a4   : > { %v764_v3 = vpop.f32.mrf.mxu0  ;;  %3304 = vmatprep.subr.mxu1 %v4332_v54  ;;  %3332 = vmatprep.subr.mxu0 %v4332_v54  ;;  %v4350_v62 = vmul.f32 %v4221_v52, %v4321_v34  ;;  %v4354_v4 = vmul.f32 %v4223_v53, %v4321_v34  ;;  %v4424_v56 = vadd.f32 %v4235_v2, %v4269_v29 }
 0x1a5   : > { %v4356_v8 = vadd.f32 %v764_v3, %v687_v45  ;;  %v4360_v10 = vmul.f32 %v4237_v6, %v4338_v59  ;;  %v4364_v13 = vmul.f32 %v4221_v52, %v4338_v59  ;;  %v4372_v15 = vmul.f32 %v4223_v53, %v4338_v59 }
 0x1a6   : > { %5226 = vst [vmem:[#allocation11_spill] sm:$0xff] %v4354_v4  ;;  %v3292_v58 = vpop.f32.mrf.mxu0  ;;  %v1026_v4 = vmul.f32 %v4239_v7, %v4249_v0  ;;  %v811_v57 = vmul.f32 %v4237_v6, %v4249_v0 }
 0x1a7   : > { %5227 = vst [vmem:[#allocation12_spill] sm:$0xff] %v4372_v15  ;;  %v780_v19 = vadd.f32 %v3292_v58, %v687_v45  ;;  %3305 = vmatpush3.xpose.msra.mxu1 %v4332_v54  ;;  %3333 = vmatpush3.xpose.msra.mxu0 %v4332_v54  ;;  %v4378_v21 = vmul.f32 %v4237_v6, %v4356_v8 }
 0x1a8   : > { %v774_v24 = vpop.f32.mrf.mxu0  ;;  %3306 = vmatprep.subr.mxu1 %v4368_v14  ;;  %3334 = vmatprep.subr.mxu0 %v4368_v14  ;;  %v4384_v48 = vmul.f32 %v4221_v52, %v4356_v8  ;;  %v4388_v11 = vmul.f32 %v4223_v53, %v4356_v8 }
 0x1a9   : > { %v775_v25 = vadd.f32 %v774_v24, %v687_v45  ;;  %v4391_v12 = vmul.f32 %v4237_v6, %v780_v19  ;;  %v4394_v28 = vmul.f32 %v4221_v52, %v780_v19  ;;  %v4401_v36 = vmul.f32 %v4223_v53, %v780_v19 }
 0x1aa   : > { %5228 = vst [vmem:[#allocation13_spill] sm:$0xff] %v4388_v11  ;;  %v3295_v33 = vpop.f32.mrf.mxu0  ;;  %v809_v24 = vmul.f32 %v4237_v6, %v4229_v61  ;;  %v1229_v44 = vmul.f32 %v4239_v7, %v780_v19  ;;  %v1028_v19 = vmul.f32 %v4239_v7, %v4264_v27 }
 0x1ab   : > { %5229 = vst [vmem:[#allocation14_spill] sm:$0xff] %v4401_v36  ;;  %v4403_v37 = vadd.f32 %v3295_v33, %v687_v45  ;;  %3307 = vmatpush3.xpose.msra.mxu1 %v4368_v14  ;;  %3335 = vmatpush3.xpose.msra.mxu0 %v4368_v14  ;;  %v4408_v38 = vmul.f32 %v4237_v6, %v775_v25 }
 0x1ac   : > { %v784_v40 = vpop.f32.mrf.mxu0  ;;  %3308 = vmatprep.subr.mxu1 %v4398_v31  ;;  %3336 = vmatprep.subr.mxu0 %v4398_v31  ;;  %v4413_v9 = vmul.f32 %v4221_v52, %v775_v25  ;;  %v4416_v23 = vmul.f32 %v4223_v53, %v775_v25  ;;  %v1024_v33 = vmul.f32 %v4239_v7, %v4229_v61 }
 0x1ad   : > { %v785_v47 = vadd.f32 %v784_v40, %v687_v45  ;;  %v4420_v50 = vmul.f32 %v4221_v52, %v4403_v37  ;;  %v4428_v3 = vmul.f32 %v4223_v53, %v4403_v37  ;;  %v1231_v29 = vmul.f32 %v4239_v7, %v4403_v37 }
 0x1ae   : > { %5230 = vst [vmem:[#allocation15_spill] sm:$0xff] %v4416_v23  ;;  %v1025_v40 = vmul.f32 %v4239_v7, %v4251_v16 }
 0x1af   : > { %3309 = vmatpush3.xpose.msra.mxu1 %v4398_v31  ;;  %3337 = vmatpush3.xpose.msra.mxu0 %v4398_v31  ;;  %v4433_v58 = vmul.f32 %v4237_v6, %v785_v47  ;;  %v4436_v45 = vmul.f32 %v4221_v52, %v785_v47  ;;  %v4441_v2 = vmul.f32 %v4223_v53, %v785_v47 }
 0x1b0   : > { %3310 = vmatprep.subr.mxu1 %v4424_v56  ;;  %3338 = vmatprep.subr.mxu0 %v4424_v56  ;;  %v810_v53 = vmul.f32 %v4237_v6, %v4251_v16  ;;  %v1230_v20 = vmul.f32 %v4239_v7, %v785_v47  ;;  %v1027_v47 = vmul.f32 %v4239_v7, %v4266_v26 }
 0x1b1   : > { %5231 = vst [vmem:[#allocation16_spill] sm:$0xff] %v4441_v2 }
 0x1b3   : > { %3311 = vmatpush3.xpose.msra.mxu1 %v4424_v56  ;;  %3339 = vmatpush3.xpose.msra.mxu0 %v4424_v56 }
 0x1b4   : > { %3352 = vmatprep.subr.mxu1 %v1231_v29  ;;  %3408 = vmatprep.subr.mxu0 %v4280_v35 }
 0x1b6   : > { %3313 = vmatmul.mubr.f32.vlgmr.msra.gmra.mxu1 %v809_v24  ;;  %3341 = vmatmul.mubr.f32.vlgmr.msra.gmra.mxu0 %v1024_v33  ;;  %v812_v24 = vmul.f32 %v4237_v6, %v4266_v26  ;;  %v815_v33 = vmul.f32 %v4237_v6, %v4287_v39 }
 0x1b7   : > { %3315 = vmatprep.mubr.f32.mxu1 %v810_v53  ;;  %3343 = vmatprep.mubr.f32.mxu0 %v1025_v40  ;;  %v1225_v53 = vmul.f32 %v4239_v7, %v4315_v49  ;;  %v4497_v40 = vmul.f32 %v4237_v6, %v4403_v37  ;;  %v1499_v49 = vmul.f32 %v4221_v52, %v4266_v26 }
 0x1b8   : > { %3353 = vmatpush3.msra.mxu1 %v1231_v29  ;;  %3409 = vmatpush3.xpose.msra.mxu0 %v4280_v35  ;;  %v1228_v29 = vmul.f32 %v4239_v7, %v775_v25  ;;  %v1226_v25 = vmul.f32 %v4239_v7, %v4356_v8  ;;  %v1224_v8 = vmul.f32 %v4239_v7, %v4321_v34 }
 0x1b9   : > { %3354 = vmatprep.subr.mxu1 %v1230_v20  ;;  %3410 = vmatprep.subr.mxu0 %v4283_v22  ;;  %v1500_v34 = vmul.f32 %v4221_v52, %v4264_v27  ;;  %v1501_v37 = vmul.f32 %v4221_v52, %v4294_v41 }
 0x1ba   : > { %3355 = vmatpush3.msra.mxu1 %v1230_v20  ;;  %3344 = vmatmul.mubr.f32.gmra.mxu0 %v1026_v4  ;;  %v813_v20 = vmul.f32 %v4237_v6, %v4264_v27  ;;  %v814_v4 = vmul.f32 %v4237_v6, %v4294_v41  ;;  %v1496_v6 = vmul.f32 %v4221_v52, %v4229_v61 }
 0x1bb   : > { %3316 = vmatmul.mubr.f32.gmra.mxu1 %v811_v57  ;;  %3356 = vmatprep.subr.mxu1 %v1229_v44  ;;  %v1227_v57 = vmul.f32 %v4239_v7, %v4338_v59  ;;  %v1030_v59 = vmul.f32 %v4239_v7, %v4287_v39  ;;  %v1502_v61 = vmul.f32 %v4221_v52, %v4287_v39 }
 0x1bc   : > { %3318 = vmatprep.mubr.f32.mxu1 %v812_v24  ;;  %3346 = vmatprep.mubr.f32.mxu0 %v1027_v47 }
 0x1bd   : > { %3357 = vmatpush3.msra.mxu1 %v1229_v44  ;;  %3411 = vmatpush3.xpose.msra.mxu0 %v4283_v22  ;;  %v1029_v44 = vmul.f32 %v4239_v7, %v4294_v41  ;;  %v1497_v7 = vmul.f32 %v4221_v52, %v4251_v16 }
 0x1be   : > { %3358 = vmatprep.subr.mxu1 %v1228_v29  ;;  %3412 = vmatprep.subr.mxu0 %v4297_v43 }
 0x1bf   : > { %3359 = vmatpush3.msra.mxu1 %v1228_v29  ;;  %3347 = vmatmul.mubr.f32.gmra.mxu0 %v1028_v19 }
 0x1c0   : > { %3319 = vmatmul.mubr.f32.gmra.mxu1 %v813_v20  ;;  %3360 = vmatprep.subr.mxu1 %v1227_v57 }
 0x1c1   : > { %3321 = vmatprep.mubr.f32.mxu1 %v814_v4  ;;  %3349 = vmatprep.mubr.f32.mxu0 %v1029_v44 }
 0x1c2   : > { %3361 = vmatpush3.msra.mxu1 %v1227_v57  ;;  %3413 = vmatpush3.xpose.msra.mxu0 %v4297_v43 }
 0x1c3   : > { %3362 = vmatprep.subr.mxu1 %v1226_v25  ;;  %3414 = vmatprep.subr.mxu0 %v4313_v42 }
 0x1c4   : > { %3363 = vmatpush3.msra.mxu1 %v1226_v25  ;;  %3350 = vmatmul.mubr.f32.gmra.mxu0 %v1030_v59 }
 0x1c5   : > { %3322 = vmatmul.mubr.f32.gmra.mxu1 %v815_v33  ;;  %3364 = vmatprep.subr.mxu1 %v1225_v53 }
 0x1c6   : > { %3365 = vmatpush3.msra.mxu1 %v1225_v53  ;;  %3415 = vmatpush3.xpose.msra.mxu0 %v4313_v42 }
 0x1c7   : > { %3424 = vmatprep.mubr.f32.mxu0 %v4244_v5  ;;  %3366 = vmatprep.subr.mxu1 %v1224_v8  ;;  %v1498_v5 = vmul.f32 %v4221_v52, %v4249_v0 }
 0x1c8   : > { %3416 = vmatprep.subr.mxu0 %v4332_v54  ;;  %3367 = vmatpush3.msra.mxu1 %v1224_v8 }
 0x1c9   : > { %3380 = vmatprep.subr.mxu1 %v4497_v40 }
 0x1ca   : > { %3417 = vmatpush3.xpose.msra.mxu0 %v4332_v54 }
 0x1cb   : > { %3418 = vmatprep.subr.mxu0 %v4368_v14 }
 0x1ce   : > { %3419 = vmatpush3.xpose.msra.mxu0 %v4368_v14 }
 0x1cf   : > { %3420 = vmatprep.subr.mxu0 %v4398_v31 }
 0x1d2   : > { %3421 = vmatpush3.xpose.msra.mxu0 %v4398_v31 }
 0x1d3   : > { %3422 = vmatprep.subr.mxu0 %v4424_v56 }
 0x1d6   : > { %3423 = vmatpush3.xpose.msra.mxu0 %v4424_v56 }
 0x1d9   : > { %3425 = vmatmul.mubr.f32.vlgmr.msra.gmra.mxu0 %v1496_v6 }
 0x1da   : > { %3427 = vmatprep.mubr.f32.mxu0 %v1497_v7 }
 0x1dd   : > { %3428 = vmatmul.mubr.f32.gmra.mxu0 %v1498_v5 }
 0x1de   : > { %3430 = vmatprep.mubr.f32.mxu0 %v1499_v49 }
 0x1e1   : > { %3431 = vmatmul.mubr.f32.gmra.mxu0 %v1500_v34 }
 0x1e2   : > { %3433 = vmatprep.mubr.f32.mxu0 %v1501_v37 }
 0x1e5   : > { %3434 = vmatmul.mubr.f32.gmra.mxu0 %v1502_v61 }
 0x276   : > { %v4522_v16 = vpop.f32.mrf.mxu0  ;;  %v4526_v26 = vpop.f32.mrf.mxu1 }
 0x277   : > { %v1139_v0 = vsel %vm921_vm10, %v4522_v16, -inf  ;;  %v925_v7 = vsel %vm921_vm10, %v4526_v26, -inf }
 0x278   : > { %1140 = vmax.xlane.f32.xlu1 %v1139_v0  ;;  %v4528_v24 = vpop.f32.mrf.mxu0  ;;  %v4536_v39 = vpop.f32.mrf.mxu1 }
 0x279   : > { %v1136_v27 = vsel %vm921_vm10, %v4528_v24, -inf  ;;  %v922_v5 = vsel %vm921_vm10, %v4536_v39, -inf }
 0x27a   : > { %1137 = vmax.xlane.f32.xlu0 %v1136_v27  ;;  %v4532_v41 = vpop.f32.mrf.mxu0 }
 0x27b   : > { %v1145_v52 = vsel %vm921_vm10, %v4532_v41, -inf  ;;  %v4544_v20 = vpop.f32.mrf.mxu1 }
 0x27c   : > { %1146 = vmax.xlane.f32.xlu1 %v1145_v52  ;;  %v4538_v47 = vpop.f32.mrf.mxu0  ;;  %v931_v34 = vsel %vm921_vm10, %v4544_v20, -inf }
 0x27d   : > { %v1142_v29 = vsel %vm921_vm10, %v4538_v47, -inf  ;;  %v4552_v25 = vpop.f32.mrf.mxu1 }
 0x27e   : > { %1143 = vmax.xlane.f32.xlu0 %v1142_v29  ;;  %v928_v37 = vsel %vm921_vm10, %v4552_v25, -inf }
 0x27f   : > { %v4542_v19 = vpop.f32.mrf.mxu0 }
 0x280   : > { %v1151_v57 = vsel %vm921_vm10, %v4542_v19, -inf  ;;  %v4562_v6 = vpop.f32.mrf.mxu1 }
 0x281   : > { %1152 = vmax.xlane.f32.xlu1 %v1151_v57  ;;  %v4548_v4 = vpop.f32.mrf.mxu0  ;;  %v937_v0 = vsel %vm921_vm10, %v4562_v6, -inf }
 0x282   : > { %v1148_v44 = vsel %vm921_vm10, %v4548_v4, -inf  ;;  %v4568_v49 = vpop.f32.mrf.mxu1 }
 0x283   : > { %1149 = vmax.xlane.f32.xlu0 %v1148_v44  ;;  %v934_v27 = vsel %vm921_vm10, %v4568_v49, -inf }
 0x284   : > { %v4554_v59 = vpop.f32.mrf.mxu0 }
 0x285   : > { %v1157_v33 = vsel %vm921_vm10, %v4554_v59, -inf  ;;  %v4574_v61 = vpop.f32.mrf.mxu1 }
 0x286   : > { %1158 = vmax.xlane.f32.xlu1 %v1157_v33  ;;  %v4558_v53 = vpop.f32.mrf.mxu0  ;;  %v943_v29 = vsel %vm921_vm10, %v4574_v61, -inf }
 0x287   : > { %v1154_v8 = vsel %vm921_vm10, %v4558_v53, -inf  ;;  %v4580_v52 = vpop.f32.mrf.mxu1 }
 0x288   : > { %1155 = vmax.xlane.f32.xlu0 %v1154_v8  ;;  %v940_v57 = vsel %vm921_vm10, %v4580_v52, -inf }
 0x28a   : > { %926 = vmax.xlane.f32.xlu1 %v925_v7 }
 0x28c   : > { %923 = vmax.xlane.f32.xlu0 %v922_v5 }
 0x28e   : > { %932 = vmax.xlane.f32.xlu1 %v931_v34 }
 0x290   : > { %929 = vmax.xlane.f32.xlu0 %v928_v37 }
 0x292   : > { %938 = vmax.xlane.f32.xlu1 %v937_v0 }
 0x294   : > { %935 = vmax.xlane.f32.xlu0 %v934_v27 }
 0x296   : > { %944 = vmax.xlane.f32.xlu1 %v943_v29 }
 0x298   : > { %941 = vmax.xlane.f32.xlu0 %v940_v57 }
 0x299   : > { %v4586_v44 = vpop.f32.mrf.mxu0 }
 0x29a   : > { %v1611_v33 = vsel %vm921_vm10, %v4586_v44, -inf }
 0x29b   : > { %v4590_v8 = vpop.f32.mrf.mxu0  ;;  %1612 = vmax.xlane.f32.xlu1 %v1611_v33 }
 0x29c   : > { %v1608_v7 = vsel %vm921_vm10, %v4590_v8, -inf }
 0x29d   : > { %v4594_v5 = vpop.f32.mrf.mxu0  ;;  %1609 = vmax.xlane.f32.xlu0 %v1608_v7 }
 0x29e   : > { %v1617_v34 = vsel %vm921_vm10, %v4594_v5, -inf }
 0x29f   : > { %v4598_v37 = vpop.f32.mrf.mxu0  ;;  %1618 = vmax.xlane.f32.xlu1 %v1617_v34 }
 0x2a0   : > { %v1614_v0 = vsel %vm921_vm10, %v4598_v37, -inf }
 0x2a1   : > { %v4602_v27 = vpop.f32.mrf.mxu0  ;;  %1615 = vmax.xlane.f32.xlu0 %v1614_v0 }
 0x2a2   : > { %v1623_v29 = vsel %vm921_vm10, %v4602_v27, -inf }
 0x2a3   : > { %v4606_v57 = vpop.f32.mrf.mxu0  ;;  %1624 = vmax.xlane.f32.xlu1 %v1623_v29 }
 0x2a4   : > { %v1620_v33 = vsel %vm921_vm10, %v4606_v57, -inf }
 0x2a5   : > { %v4610_v7 = vpop.f32.mrf.mxu0  ;;  %1621 = vmax.xlane.f32.xlu0 %v1620_v33 }
 0x2a6   : > { %v1629_v34 = vsel %vm921_vm10, %v4610_v7, -inf }
 0x2a7   : > { %v4614_v11 = vpop.f32.mrf.mxu0  ;;  %1630 = vmax.xlane.f32.xlu1 %v1629_v34 }
 0x2a8   : > { %v1626_v0 = vsel %vm921_vm10, %v4614_v11, -inf }
 0x2a9   : > { %1627 = vmax.xlane.f32.xlu0 %v1626_v0 }
 0x301   : > { %v1141_v46 = vpop.xlane.xlu1 %1140 }
 0x302   : > { %v1161_v15 = vsub.f32 %v4522_v16, %v1141_v46 }
 0x303   : > { %v1138_v29 = vpop.xlane.xlu0 %1137 }
 0x304   : > { %v1170_v30 = vmul.f32 1.442695, %v1161_v15  ;;  %v1160_v23 = vsub.f32 %v4528_v24, %v1138_v29 }
 0x305   : > { %v1147_v32 = vpop.xlane.xlu1 %1146 }
 0x306   : > { %3677 = vpow2.f32 %v1170_v30  ;;  %v1168_v33 = vmul.f32 1.442695, %v1160_v23  ;;  %v1163_v36 = vsub.f32 %v4532_v41, %v1147_v32 }
 0x307   : > { %v1144_v17 = vpop.xlane.xlu0 %1143 }
 0x308   : > { %3679 = vpow2.f32 %v1168_v33  ;;  %v1174_v2 = vmul.f32 1.442695, %v1163_v36  ;;  %v1162_v34 = vsub.f32 %v4538_v47, %v1144_v17 }
 0x30a   : > { %3681 = vpow2.f32 %v1174_v2  ;;  %v1172_v18 = vmul.f32 1.442695, %v1162_v34  ;;  %v1153_v0 = vpop.xlane.xlu1 %1152 }
 0x30b   : > { %v1165_v55 = vsub.f32 %v4542_v19, %v1153_v0 }
 0x30c   : > { %3683 = vpow2.f32 %v1172_v18  ;;  %v1150_v46 = vpop.xlane.xlu0 %1149 }
 0x30d   : > { %v1178_v15 = vmul.f32 1.442695, %v1165_v55  ;;  %v1164_v16 = vsub.f32 %v4548_v4, %v1150_v46 }
 0x30f   : > { %3685 = vpow2.f32 %v1178_v15  ;;  %v1176_v30 = vmul.f32 1.442695, %v1164_v16  ;;  %v1159_v23 = vpop.xlane.xlu1 %1158 }
 0x310   : > { %v1167_v32 = vsub.f32 %v4554_v59, %v1159_v23 }
 0x311   : > { %3687 = vpow2.f32 %v1176_v30  ;;  %v1156_v24 = vpop.xlane.xlu0 %1155 }
 0x312   : > { %v1182_v36 = vmul.f32 1.442695, %v1167_v32  ;;  %v1166_v17 = vsub.f32 %v4558_v53, %v1156_v24 }
 0x313   : > { %v4626_v2 = vpop.eup %3677  ;;  %v927_v41 = vpop.xlane.xlu1 %926 }
 0x314   : > { %3689 = vpow2.f32 %v1182_v36  ;;  %v1180_v47 = vmul.f32 1.442695, %v1166_v17  ;;  %v947_v18 = vsub.f32 %v4526_v26, %v927_v41  ;;  %v1187_v55 = vsel %vm921_vm10, %v4626_v2, 0.0 }
 0x315   : > { %v4631_v19 = vpop.eup %3679  ;;  %v924_v4 = vpop.xlane.xlu0 %923  ;;  %1188 = vadd.xlane.f32.xlu1 %v1187_v55 }
 0x316   : > { %3691 = vpow2.f32 %v1180_v47  ;;  %v956_v59 = vmul.f32 1.442695, %v947_v18  ;;  %v946_v29 = vsub.f32 %v4536_v39, %v924_v4  ;;  %v1184_v53 = vsel %vm921_vm10, %v4631_v19, 0.0 }
 0x317   : > { %v4636_v33 = vpop.eup %3681  ;;  %v933_v34 = vpop.xlane.xlu1 %932  ;;  %1185 = vadd.xlane.f32.xlu0 %v1184_v53 }
 0x318   : > { %3693 = vpow2.f32 %v956_v59  ;;  %v954_v26 = vmul.f32 1.442695, %v946_v29  ;;  %v949_v0 = vsub.f32 %v4544_v20, %v933_v34  ;;  %v1193_v46 = vsel %vm921_vm10, %v4636_v33, 0.0 }
 0x319   : > { %v4641_v15 = vpop.eup %3683  ;;  %v930_v16 = vpop.xlane.xlu0 %929  ;;  %1194 = vadd.xlane.f32.xlu1 %v1193_v46 }
 0x31a   : > { %3695 = vpow2.f32 %v954_v26  ;;  %v960_v39 = vmul.f32 1.442695, %v949_v0  ;;  %v948_v30 = vsub.f32 %v4552_v25, %v930_v16  ;;  %v1190_v23 = vsel %vm921_vm10, %v4641_v15, 0.0 }
 0x31b   : > { %v939_v32 = vpop.xlane.xlu1 %938  ;;  %1191 = vadd.xlane.f32.xlu0 %v1190_v23 }
 0x31c   : > { %v4646_v24 = vpop.eup %3685  ;;  %3697 = vpow2.f32 %v960_v39  ;;  %v958_v20 = vmul.f32 1.442695, %v948_v30  ;;  %v951_v36 = vsub.f32 %v4562_v6, %v939_v32 }
 0x31d   : > { %v936_v17 = vpop.xlane.xlu0 %935  ;;  %v1199_v41 = vsel %vm921_vm10, %v4646_v24, 0.0 }
 0x31e   : > { %v4651_v47 = vpop.eup %3687  ;;  %3699 = vpow2.f32 %v958_v20  ;;  %v964_v18 = vmul.f32 1.442695, %v951_v36  ;;  %v950_v25 = vsub.f32 %v4568_v49, %v936_v17  ;;  %1200 = vadd.xlane.f32.xlu1 %v1199_v41 }
 0x31f   : > { %v945_v55 = vpop.xlane.xlu1 %944  ;;  %v1196_v4 = vsel %vm921_vm10, %v4651_v47, 0.0 }
 0x320   : > { %3701 = vpow2.f32 %v964_v18  ;;  %v962_v59 = vmul.f32 1.442695, %v950_v25  ;;  %v953_v29 = vsub.f32 %v4574_v61, %v945_v55  ;;  %1197 = vadd.xlane.f32.xlu0 %v1196_v4 }
 0x321   : > { %v4657_v6 = vpop.eup %3689  ;;  %v942_v53 = vpop.xlane.xlu0 %941 }
 0x322   : > { %3703 = vpow2.f32 %v962_v59  ;;  %v968_v34 = vmul.f32 1.442695, %v953_v29  ;;  %v952_v26 = vsub.f32 %v4580_v52, %v942_v53  ;;  %v1205_v49 = vsel %vm921_vm10, %v4657_v6, 0.0 }
 0x323   : > { %v4662_v0 = vpop.eup %3691  ;;  %1206 = vadd.xlane.f32.xlu1 %v1205_v49 }
 0x324   : > { %3705 = vpow2.f32 %v968_v34  ;;  %v966_v46 = vmul.f32 1.442695, %v952_v26  ;;  %v1613_v16 = vpop.xlane.xlu1 %1612  ;;  %v1202_v61 = vsel %vm921_vm10, %v4662_v0, 0.0 }
 0x325   : > { %v4666_v39 = vpop.eup %3693  ;;  %v1633_v30 = vsub.f32 %v4586_v44, %v1613_v16  ;;  %1203 = vadd.xlane.f32.xlu0 %v1202_v61 }
 0x326   : > { %3707 = vpow2.f32 %v966_v46  ;;  %v1610_v23 = vpop.xlane.xlu0 %1609  ;;  %v973_v52 = vsel %vm921_vm10, %v4666_v39, 0.0 }
 0x327   : > { %v4671_v32 = vpop.eup %3695  ;;  %v1642_v20 = vmul.f32 1.442695, %v1633_v30  ;;  %v1632_v36 = vsub.f32 %v4590_v8, %v1610_v23  ;;  %974 = vadd.xlane.f32.xlu1 %v973_v52 }
 0x328   : > { %v1619_v17 = vpop.xlane.xlu1 %1618  ;;  %v970_v41 = vsel %vm921_vm10, %v4671_v32, 0.0 }
 0x329   : > { %v4676_v18 = vpop.eup %3697  ;;  %3709 = vpow2.f32 %v1642_v20  ;;  %v1640_v44 = vmul.f32 1.442695, %v1632_v36  ;;  %v1635_v25 = vsub.f32 %v4594_v5, %v1619_v17  ;;  %971 = vadd.xlane.f32.xlu0 %v970_v41 }
 0x32a   : > { %v1616_v55 = vpop.xlane.xlu0 %1615  ;;  %v979_v4 = vsel %vm921_vm10, %v4676_v18, 0.0 }
 0x32b   : > { %v4681_v59 = vpop.eup %3699  ;;  %3711 = vpow2.f32 %v1640_v44  ;;  %v1646_v8 = vmul.f32 1.442695, %v1635_v25  ;;  %v1634_v29 = vsub.f32 %v4598_v37, %v1616_v55  ;;  %980 = vadd.xlane.f32.xlu1 %v979_v4 }
 0x32c   : > { %v1625_v53 = vpop.xlane.xlu1 %1624  ;;  %v976_v34 = vsel %vm921_vm10, %v4681_v59, 0.0 }
 0x32d   : > { %v4686_v26 = vpop.eup %3701  ;;  %3713 = vpow2.f32 %v1646_v8  ;;  %v1644_v5 = vmul.f32 1.442695, %v1634_v29  ;;  %v1637_v49 = vsub.f32 %v4602_v27, %v1625_v53  ;;  %977 = vadd.xlane.f32.xlu0 %v976_v34 }
 0x32e   : > { %v1622_v46 = vpop.xlane.xlu0 %1621  ;;  %v985_v16 = vsel %vm921_vm10, %v4686_v26, 0.0 }
 0x32f   : > { %v4691_v61 = vpop.eup %3703  ;;  %3715 = vpow2.f32 %v1644_v5  ;;  %v1650_v37 = vmul.f32 1.442695, %v1637_v49  ;;  %v1636_v30 = vsub.f32 %v4606_v57, %v1622_v46  ;;  %986 = vadd.xlane.f32.xlu1 %v985_v16 }
 0x330   : > { %v1631_v23 = vpop.xlane.xlu1 %1630  ;;  %v982_v52 = vsel %vm921_vm10, %v4691_v61, 0.0 }
 0x331   : > { %v4696_v20 = vpop.eup %3705  ;;  %3717 = vpow2.f32 %v1650_v37  ;;  %v1648_v27 = vmul.f32 1.442695, %v1636_v30  ;;  %v1639_v36 = vsub.f32 %v4610_v7, %v1631_v23  ;;  %983 = vadd.xlane.f32.xlu0 %v982_v52 }
 0x332   : > { %v1628_v17 = vpop.xlane.xlu0 %1627  ;;  %v991_v41 = vsel %vm921_vm10, %v4696_v20, 0.0 }
 0x333   : > { %v4701_v44 = vpop.eup %3707  ;;  %3719 = vpow2.f32 %v1648_v27  ;;  %v1654_v57 = vmul.f32 1.442695, %v1639_v36  ;;  %v1638_v25 = vsub.f32 %v4614_v11, %v1628_v17  ;;  %992 = vadd.xlane.f32.xlu1 %v991_v41 }
 0x334   : > { %v988_v55 = vsel %vm921_vm10, %v4701_v44, 0.0 }
 0x335   : > { %3721 = vpow2.f32 %v1654_v57  ;;  %v1652_v4 = vmul.f32 1.442695, %v1638_v25  ;;  %989 = vadd.xlane.f32.xlu0 %v988_v55 }
 0x336   : > { %v4706_v8 = vpop.eup %3709 }
 0x337   : > { %3723 = vpow2.f32 %v1652_v4  ;;  %v1659_v7 = vsel %vm921_vm10, %v4706_v8, 0.0 }
 0x338   : > { %v4710_v29 = vpop.eup %3711  ;;  %1660 = vadd.xlane.f32.xlu1 %v1659_v7 }
 0x339   : > { %v1656_v53 = vsel %vm921_vm10, %v4710_v29, 0.0 }
 0x33a   : > { %v4714_v11 = vpop.eup %3713  ;;  %1657 = vadd.xlane.f32.xlu0 %v1656_v53 }
 0x33b   : > { %v1665_v34 = vsel %vm921_vm10, %v4714_v11, 0.0 }
 0x33c   : > { %v4718_v5 = vpop.eup %3715  ;;  %1666 = vadd.xlane.f32.xlu1 %v1665_v34 }
 0x33d   : > { %v1662_v49 = vsel %vm921_vm10, %v4718_v5, 0.0 }
 0x33e   : > { %v4722_v46 = vpop.eup %3717  ;;  %1663 = vadd.xlane.f32.xlu0 %v1662_v49 }
 0x33f   : > { %v1671_v16 = vsel %vm921_vm10, %v4722_v46, 0.0 }
 0x340   : > { %v4726_v37 = vpop.eup %3719  ;;  %1672 = vadd.xlane.f32.xlu1 %v1671_v16 }
 0x341   : > { %v1668_v30 = vsel %vm921_vm10, %v4726_v37, 0.0 }
 0x342   : > { %v4730_v23 = vpop.eup %3721  ;;  %1669 = vadd.xlane.f32.xlu0 %v1668_v30 }
 0x343   : > { %v1677_v52 = vsel %vm921_vm10, %v4730_v23, 0.0 }
 0x344   : > { %v4734_v27 = vpop.eup %3723  ;;  %1678 = vadd.xlane.f32.xlu1 %v1677_v52 }
 0x345   : > { %v1674_v36 = vsel %vm921_vm10, %v4734_v27, 0.0 }
 0x346   : > { %1675 = vadd.xlane.f32.xlu0 %v1674_v36 }
 0x39e   : > { %v1189_v17 = vpop.xlane.xlu1 %1188 }
 0x39f   : > { %3725 = vrcp.f32 %v1189_v17 }
 0x3a0   : > { %v1186_v41 = vpop.xlane.xlu0 %1185 }
 0x3a1   : > { %3727 = vrcp.f32 %v1186_v41 }
 0x3a2   : > { %v1195_v57 = vpop.xlane.xlu1 %1194 }
 0x3a3   : > { %3729 = vrcp.f32 %v1195_v57 }
 0x3a4   : > { %v1192_v25 = vpop.xlane.xlu0 %1191 }
 0x3a5   : > { %3731 = vrcp.f32 %v1192_v25 }
 0x3a7   : > { %v1201_v55 = vpop.xlane.xlu1 %1200 }
 0x3a8   : > { %3733 = vrcp.f32 %v1201_v55 }
 0x3a9   : > { %v1198_v4 = vpop.xlane.xlu0 %1197 }
 0x3aa   : > { %3735 = vrcp.f32 %v1198_v4 }
 0x3ac   : > { %v1207_v7 = vpop.xlane.xlu1 %1206  ;;  %v3726_v53 = vpop.eup %3725 }
 0x3ad   : > { %3737 = vrcp.f32 %v1207_v7  ;;  %v1211_v30 = vmul.f32 %v3726_v53, %v4626_v2 }
 0x3ae   : > { %v3728_v34 = vpop.eup %3727  ;;  %v1204_v49 = vpop.xlane.xlu0 %1203 }
 0x3af   : > { %3739 = vrcp.f32 %v1204_v49  ;;  %v1209_v16 = vmul.f32 %v3728_v34, %v4631_v19 }
 0x3b0   : > { %v975_v52 = vpop.xlane.xlu1 %974  ;;  %v3730_v36 = vpop.eup %3729 }
 0x3b1   : > { %3368 = vmatprep.mubr.msk.f32.mxu1 %vm921_vm10, %v1209_v16  ;;  %3741 = vrcp.f32 %v975_v52  ;;  %v1215_v19 = vmul.f32 %v3730_v36, %v4636_v33 }
 0x3b2   : > { %v3732_v17 = vpop.eup %3731  ;;  %v972_v41 = vpop.xlane.xlu0 %971  ;;  %3369 = vmatmul.mubr.msk.f32.vlgmr.msra.gmra.mxu1 %vm921_vm10, %v1211_v30 }
 0x3b3   : > { %3743 = vrcp.f32 %v972_v41  ;;  %3381 = vmatpush3.msra.mxu1 %v4497_v40  ;;  %v1213_v57 = vmul.f32 %v3732_v17, %v4641_v15 }
 0x3b4   : > { %v981_v25 = vpop.xlane.xlu1 %980  ;;  %3382 = vmatprep.subr.mxu1 %v4433_v58 }
 0x3b5   : > { %3383 = vmatpush3.msra.mxu1 %v4433_v58  ;;  %3371 = vmatprep.mubr.msk.f32.mxu1 %vm921_vm10, %v1213_v57  ;;  %v3734_v2 = vpop.eup %3733  ;;  %3745 = vrcp.f32 %v981_v25 }
 0x3b6   : > { %v978_v55 = vpop.xlane.xlu0 %977  ;;  %3384 = vmatprep.subr.mxu1 %v4391_v12  ;;  %3372 = vmatmul.mubr.msk.f32.gmra.mxu1 %vm921_vm10, %v1215_v19  ;;  %v1219_v58 = vmul.f32 %v3734_v2, %v4646_v24 }
 0x3b7   : > { %v3736_v4 = vpop.eup %3735  ;;  %3747 = vrcp.f32 %v978_v55  ;;  %3385 = vmatpush3.msra.mxu1 %v4391_v12  ;;  %v5244_v55 = vld [vmem:[#allocation10_spill] sm:$0xff] }
 0x3b8   : > { %v987_v40 = vpop.xlane.xlu1 %986  ;;  %3386 = vmatprep.subr.mxu1 %v4408_v38  ;;  %v1217_v33 = vmul.f32 %v3736_v4, %v4651_v47  ;;  %v5245_v4 = vld [vmem:[#allocation11_spill] sm:$0xff] }
 0x3b9   : > { %3387 = vmatpush3.msra.mxu1 %v4408_v38  ;;  %3749 = vrcp.f32 %v987_v40 }
 0x3ba   : > { %v984_v15 = vpop.xlane.xlu0 %983  ;;  %3374 = vmatprep.mubr.msk.f32.mxu1 %vm921_vm10, %v1217_v33  ;;  %3388 = vmatprep.subr.mxu1 %v4360_v10  ;;  %v3738_v7 = vpop.eup %3737 }
 0x3bb   : > { %3751 = vrcp.f32 %v984_v15  ;;  %3375 = vmatmul.mubr.msk.f32.gmra.mxu1 %vm921_vm10, %v1219_v58  ;;  %v1223_v47 = vmul.f32 %v3738_v7, %v4657_v6 }
 0x3bc   : > { %v3740_v12 = vpop.eup %3739  ;;  %v993_v53 = vpop.xlane.xlu1 %992  ;;  %3389 = vmatpush3.msra.mxu1 %v4360_v10 }
 0x3bd   : > { %3390 = vmatprep.subr.mxu1 %v4378_v21  ;;  %v1221_v38 = vmul.f32 %v3740_v12, %v4662_v0  ;;  %3753 = vrcp.f32 %v993_v53 }
 0x3be   : > { %3391 = vmatpush3.msra.mxu1 %v4378_v21  ;;  %v990_v24 = vpop.xlane.xlu0 %989  ;;  %v3742_v34 = vpop.eup %3741 }
 0x3bf   : > { %3755 = vrcp.f32 %v990_v24  ;;  %3377 = vmatprep.mubr.msk.f32.mxu1 %vm921_vm10, %v1221_v38  ;;  %3392 = vmatprep.subr.mxu1 %v4325_v1  ;;  %v997_v16 = vmul.f32 %v3742_v34, %v4666_v39 }
 0x3c0   : > { %v3744_v49 = vpop.eup %3743  ;;  %3378 = vmatmul.mubr.msk.f32.gmra.mxu1 %vm921_vm10, %v1223_v47 }
 0x3c1   : > { %v1661_v10 = vpop.xlane.xlu1 %1660  ;;  %3393 = vmatpush3.msra.mxu1 %v4325_v1  ;;  %v995_v0 = vmul.f32 %v3744_v49, %v4671_v32 }
 0x3c2   : > { %3394 = vmatprep.subr.mxu1 %v4344_v60  ;;  %v3746_v21 = vpop.eup %3745  ;;  %3757 = vrcp.f32 %v1661_v10 }
 0x3c3   : > { %3395 = vmatpush3.msra.mxu1 %v4344_v60  ;;  %v1658_v6 = vpop.xlane.xlu0 %1657  ;;  %3396 = vmatprep.mubr.msk.f32.mxu1 %vm921_vm10, %v995_v0  ;;  %v1001_v32 = vmul.f32 %v3746_v21, %v4676_v18 }
 0x3c4   : > { %v3748_v30 = vpop.eup %3747  ;;  %3759 = vrcp.f32 %v1658_v6  ;;  %3436 = vmatprep.subr.mxu1 %v4420_v50  ;;  %3397 = vmatmul.mubr.msk.f32.vlgmr.msra.gmra.mxu1 %vm921_vm10, %v997_v16 }
 0x3c5   : > { %v1667_v1 = vpop.xlane.xlu1 %1666  ;;  %3437 = vmatpush3.msra.mxu1 %v4420_v50  ;;  %v999_v39 = vmul.f32 %v3748_v30, %v4681_v59 }
 0x3c6   : > { %3438 = vmatprep.subr.mxu1 %v4436_v45  ;;  %v3750_v52 = vpop.eup %3749  ;;  %3761 = vrcp.f32 %v1667_v1 }
 0x3c7   : > { %3439 = vmatpush3.msra.mxu1 %v4436_v45  ;;  %v1664_v60 = vpop.xlane.xlu0 %1663  ;;  %3399 = vmatprep.mubr.msk.f32.mxu1 %vm921_vm10, %v999_v39  ;;  %v1005_v18 = vmul.f32 %v3750_v52, %v4686_v26 }
 0x3c8   : > { %v3752_v36 = vpop.eup %3751  ;;  %3763 = vrcp.f32 %v1664_v60  ;;  %3440 = vmatprep.subr.mxu1 %v4394_v28  ;;  %3400 = vmatmul.mubr.msk.f32.gmra.mxu1 %vm921_vm10, %v1001_v32 }
 0x3c9   : > { %v1673_v50 = vpop.xlane.xlu1 %1672  ;;  %3441 = vmatpush3.msra.mxu1 %v4394_v28  ;;  %v1003_v59 = vmul.f32 %v3752_v36, %v4691_v61 }
 0x3ca   : > { %3442 = vmatprep.subr.mxu1 %v4413_v9  ;;  %v3754_v17 = vpop.eup %3753  ;;  %3765 = vrcp.f32 %v1673_v50 }
 0x3cb   : > { %3443 = vmatpush3.msra.mxu1 %v4413_v9  ;;  %v1670_v45 = vpop.xlane.xlu0 %1669  ;;  %3402 = vmatprep.mubr.msk.f32.mxu1 %vm921_vm10, %v1003_v59  ;;  %v1009_v26 = vmul.f32 %v3754_v17, %v4696_v20 }
 0x3cc   : > { %v3756_v41 = vpop.eup %3755  ;;  %3767 = vrcp.f32 %v1670_v45  ;;  %3444 = vmatprep.subr.mxu1 %v4364_v13  ;;  %3403 = vmatmul.mubr.msk.f32.gmra.mxu1 %vm921_vm10, %v1005_v18 }
 0x3cd   : > { %v1679_v28 = vpop.xlane.xlu1 %1678  ;;  %3445 = vmatpush3.msra.mxu1 %v4364_v13  ;;  %v1007_v61 = vmul.f32 %v3756_v41, %v4701_v44 }
 0x3ce   : > { %3446 = vmatprep.subr.mxu1 %v4384_v48  ;;  %3769 = vrcp.f32 %v1679_v28 }
 0x3cf   : > { %3447 = vmatpush3.msra.mxu1 %v4384_v48  ;;  %v1676_v9 = vpop.xlane.xlu0 %1675  ;;  %3405 = vmatprep.mubr.msk.f32.mxu1 %vm921_vm10, %v1007_v61  ;;  %v3758_v57 = vpop.eup %3757 }
 0x3d0   : > { %3771 = vrcp.f32 %v1676_v9  ;;  %3448 = vmatprep.subr.mxu1 %v4329_v51  ;;  %3406 = vmatmul.mubr.msk.f32.gmra.mxu1 %vm921_vm10, %v1009_v26  ;;  %v1683_v20 = vmul.f32 %v3758_v57, %v4706_v8 }
 0x3d1   : > { %v3760_v25 = vpop.eup %3759  ;;  %3449 = vmatpush3.msra.mxu1 %v4329_v51 }
 0x3d2   : > { %3450 = vmatprep.subr.mxu1 %v4350_v62  ;;  %v1681_v13 = vmul.f32 %v3760_v25, %v4710_v29 }
 0x3d3   : > { %3451 = vmatpush3.msra.mxu1 %v4350_v62  ;;  %v3762_v48 = vpop.eup %3761 }
 0x3d4   : > { %3452 = vmatprep.mubr.msk.f32.mxu1 %vm921_vm10, %v1681_v13  ;;  %3464 = vmatprep.subr.mxu1 %v4280_v35  ;;  %v1687_v29 = vmul.f32 %v3762_v48, %v4714_v11 }
 0x3d5   : > { %v3764_v44 = vpop.eup %3763  ;;  %3453 = vmatmul.mubr.msk.f32.vlgmr.msra.gmra.mxu1 %vm921_vm10, %v1683_v20 }
 0x3d6   : > { %3465 = vmatpush3.xpose.msra.mxu1 %v4280_v35  ;;  %v1685_v51 = vmul.f32 %v3764_v44, %v4718_v5 }
 0x3d7   : > { %3466 = vmatprep.subr.mxu1 %v4283_v22  ;;  %v3766_v19 = vpop.eup %3765 }
 0x3d8   : > { %3455 = vmatprep.mubr.msk.f32.mxu1 %vm921_vm10, %v1685_v51  ;;  %v1691_v35 = vmul.f32 %v3766_v19, %v4722_v46  ;;  %v5239_v46 = vld [vmem:[#allocation6_spill] sm:$0xff] }
 0x3d9   : > { %v3768_v62 = vpop.eup %3767  ;;  %3456 = vmatmul.mubr.msk.f32.gmra.mxu1 %vm921_vm10, %v1687_v29 }
 0x3da   : > { %3467 = vmatpush3.xpose.msra.mxu1 %v4283_v22  ;;  %v1689_v8 = vmul.f32 %v3768_v62, %v4726_v37  ;;  %v5240_v37 = vld [vmem:[#allocation12_spill] sm:$0xff] }
 0x3db   : > { %3468 = vmatprep.subr.mxu1 %v4297_v43  ;;  %v3770_v2 = vpop.eup %3769 }
 0x3dc   : > { %3458 = vmatprep.mubr.msk.f32.mxu1 %vm921_vm10, %v1689_v8  ;;  %v1695_v22 = vmul.f32 %v3770_v2, %v4730_v23  ;;  %v5242_v23 = vld [vmem:[#allocation13_spill] sm:$0xff] }
 0x3dd   : > { %v3772_v5 = vpop.eup %3771  ;;  %3459 = vmatmul.mubr.msk.f32.gmra.mxu1 %vm921_vm10, %v1691_v35 }
 0x3de   : > { %3469 = vmatpush3.xpose.msra.mxu1 %v4297_v43  ;;  %v1693_v11 = vmul.f32 %v3772_v5, %v4734_v27  ;;  %v5232_v43 = vld [vmem:[#allocation3_spill] sm:$0xff]  ;;  %v5243_v27 = vld [vmem:[#allocation8_spill] sm:$0xff] }
 0x3df   : > { %3470 = vmatprep.subr.mxu1 %v4313_v42 }
 0x3e0   : > { %3461 = vmatprep.mubr.msk.f32.mxu1 %vm921_vm10, %v1693_v11 }
 0x3e1   : > { %3462 = vmatmul.mubr.msk.f32.gmra.mxu1 %vm921_vm10, %v1695_v22 }
 0x3e2   : > { %3471 = vmatpush3.xpose.msra.mxu1 %v4313_v42  ;;  %3480 = vmatprep.mubr.f32.mxu1 %v4247_v63  ;;  %v5233_v63 = vld [vmem:[#allocation5_spill] sm:$0xff]  ;;  %v5234_v42 = vld [vmem:[#allocation16_spill] sm:$0xff] }
 0x3e3   : > { %3472 = vmatprep.subr.mxu1 %v4332_v54 }
 0x3e6   : > { %3473 = vmatpush3.xpose.msra.mxu1 %v4332_v54  ;;  %v5235_v54 = vld [vmem:[#allocation4_spill] sm:$0xff] }
 0x3e7   : > { %3474 = vmatprep.subr.mxu1 %v4368_v14 }
 0x3ea   : > { %3475 = vmatpush3.xpose.msra.mxu1 %v4368_v14  ;;  %v5236_v14 = vld [vmem:[#allocation14_spill] sm:$0xff] }
 0x3eb   : > { %3476 = vmatprep.subr.mxu1 %v4398_v31 }
 0x3ee   : > { %3477 = vmatpush3.xpose.msra.mxu1 %v4398_v31  ;;  %v5237_v31 = vld [vmem:[#allocation7_spill] sm:$0xff] }
 0x3ef   : > { %3478 = vmatprep.subr.mxu1 %v4424_v56 }
 0x3f2   : > { %3479 = vmatpush3.xpose.msra.mxu1 %v4424_v56  ;;  %v5238_v56 = vld [vmem:[#allocation15_spill] sm:$0xff] }
 0x3f3   : > { %3492 = vmatprep.subr.mxu1 %v4428_v3 }
 0x3f5   : > { %3481 = vmatmul.mubr.f32.vlgmr.msra.gmra.mxu1 %v5232_v43 }
 0x3f6   : > { %3483 = vmatprep.mubr.f32.mxu1 %v5233_v63  ;;  %3493 = vmatpush3.msra.mxu1 %v4428_v3  ;;  %v5241_v3 = vld [vmem:[#allocation9_spill] sm:$0xff] }
 0x3f7   : > { %3494 = vmatprep.subr.mxu1 %v5234_v42 }
 0x3f8   : > { %3495 = vmatpush3.msra.mxu1 %v5234_v42 }
 0x3f9   : > { %3484 = vmatmul.mubr.f32.gmra.mxu1 %v5235_v54  ;;  %3496 = vmatprep.subr.mxu1 %v5236_v14 }
 0x3fa   : > { %3486 = vmatprep.mubr.f32.mxu1 %v5237_v31  ;;  %3497 = vmatpush3.msra.mxu1 %v5236_v14 }
 0x3fb   : > { %3498 = vmatprep.subr.mxu1 %v5238_v56 }
 0x3fc   : > { %3499 = vmatpush3.msra.mxu1 %v5238_v56 }
 0x3fd   : > { %3487 = vmatmul.mubr.f32.gmra.mxu1 %v5239_v46  ;;  %3500 = vmatprep.subr.mxu1 %v5240_v37 }
 0x3fe   : > { %3489 = vmatprep.mubr.f32.mxu1 %v5241_v3  ;;  %3501 = vmatpush3.msra.mxu1 %v5240_v37 }
 0x3ff   : > { %3502 = vmatprep.subr.mxu1 %v5242_v23 }
 0x400   : > { %3503 = vmatpush3.msra.mxu1 %v5242_v23 }
 0x401   : > { %3490 = vmatmul.mubr.f32.gmra.mxu1 %v5243_v27  ;;  %3504 = vmatprep.subr.mxu1 %v5244_v55 }
 0x402   : > { %3505 = vmatpush3.msra.mxu1 %v5244_v55 }
 0x403   : > { %3506 = vmatprep.subr.mxu1 %v5245_v4 }
 0x404   : > { %3507 = vmatpush3.msra.mxu1 %v5245_v4 }
 0x472   : > { %v3370_v40 = vpop.f32.mrf.mxu1 }
 0x474   : > { %v1322_v33 = vpop.f32.mrf.mxu1 }
 0x476   : > { %v3373_v58 = vpop.f32.mrf.mxu1 }
 0x478   : > { %v1332_v15 = vpop.f32.mrf.mxu1 }
 0x47b   : > { %v3376_v7 = vpop.f32.mrf.mxu1 }
 0x47d   : > { %v1342_v12 = vpop.f32.mrf.mxu1 }
 0x480   : > { %v3379_v53 = vpop.f32.mrf.mxu1 }
 0x482   : > { %v1352_v38 = vpop.f32.mrf.mxu1 }
 0x484   : > { %v3398_v24 = vpop.f32.mrf.mxu1 }
 0x485   : > { %v1457_v47 = vadd.f32 %v3398_v24, %v3370_v40 }
 0x486   : > { %v1451_v34 = vpop.f32.mrf.mxu1 }
 0x487   : > { %v1452_v49 = vadd.f32 %v1451_v34, %v1322_v33 }
 0x488   : > { %v3401_v10 = vpop.f32.mrf.mxu1 }
 0x489   : > { %v1467_v0 = vadd.f32 %v3401_v10, %v3373_v58 }
 0x48a   : > { %v1461_v16 = vpop.f32.mrf.mxu1 }
 0x48b   : > { %v1462_v21 = vadd.f32 %v1461_v16, %v1332_v15 }
 0x48c   : > { %v3404_v6 = vpop.f32.mrf.mxu1 }
 0x48d   : > { %v1477_v30 = vadd.f32 %v3404_v6, %v3376_v7 }
 0x48e   : > { %v1471_v1 = vpop.f32.mrf.mxu1 }
 0x48f   : > { %v1472_v39 = vadd.f32 %v1471_v1, %v1342_v12 }
 0x490   : > { %v3407_v32 = vpop.f32.mrf.mxu1 }
 0x491   : > { %v1487_v52 = vadd.f32 %v3407_v32, %v3379_v53 }
 0x492   : > { %v1481_v60 = vpop.f32.mrf.mxu1 }
 0x493   : > { %v1482_v36 = vadd.f32 %v1481_v60, %v1352_v38 }
 0x495   : > { %v3454_v50 = vpop.f32.mrf.mxu1 }
 0x496   : > { %v4857_v59 = vadd.f32 %v3454_v50, %v1457_v47 }
 0x497   : > { %v1794_v18 = vpop.f32.mrf.mxu1 }
 0x498   : > { %v4859_v17 = vadd.f32 %v1794_v18, %v1452_v49 }
 0x499   : > { %v3457_v45 = vpop.f32.mrf.mxu1 }
 0x49a   : > { %v4861_v41 = vadd.f32 %v3457_v45, %v1467_v0 }
 0x49b   : > { %v1804_v28 = vpop.f32.mrf.mxu1 }
 0x49c   : > { %v4863_v61 = vadd.f32 %v1804_v28, %v1462_v21 }
 0x49d   : > { %v3460_v26 = vpop.f32.mrf.mxu1 }
 0x49e   : > { %v4865_v9 = vadd.f32 %v3460_v26, %v1477_v30 }
 0x49f   : > { %v1814_v57 = vpop.f32.mrf.mxu1 }
 0x4a0   : > { %v4867_v25 = vadd.f32 %v1814_v57, %v1472_v39 }
 0x4a1   : > { %v3463_v13 = vpop.f32.mrf.mxu1 }
 0x4a2   : > { %v4869_v20 = vadd.f32 %v3463_v13, %v1487_v52 }
 0x4a3   : > { %v1824_v48 = vpop.f32.mrf.mxu1 }
 0x4a4   : > { %v4871_v44 = vadd.f32 %v1824_v48, %v1482_v36 }
 0x4b5   : > { %v3482_v51 = vpop.f32.mrf.mxu1 }
 0x4b6   : > { %v1962_v29 = vsel %vm921_vm10, %v3482_v51, -inf }
 0x4b7   : > { %1963 = vmax.xlane.f32.xlu1 %v1962_v29  ;;  %v1920_v19 = vpop.f32.mrf.mxu1  ;;  %v2206_v29 = vld [vmem:[%s5202_s2 + $0x70] sm:$0xff] }
 0x4b8   : > { %v1959_v62 = vsel %vm921_vm10, %v1920_v19, -inf }
 0x4b9   : > { %1960 = vmax.xlane.f32.xlu0 %v1959_v62  ;;  %v3485_v8 = vpop.f32.mrf.mxu1  ;;  %v2204_v62 = vld [vmem:[%s5202_s2 + $0x60] sm:$0xff] }
 0x4ba   : > { %v1968_v35 = vsel %vm921_vm10, %v3485_v8, -inf }
 0x4bb   : > { %1969 = vmax.xlane.f32.xlu1 %v1968_v35  ;;  %v1930_v2 = vpop.f32.mrf.mxu1  ;;  %v2202_v35 = vld [vmem:[%s5202_s2 + $0x50] sm:$0xff] }
 0x4bc   : > { %v1965_v5 = vsel %vm921_vm10, %v1930_v2, -inf }
 0x4bd   : > { %1966 = vmax.xlane.f32.xlu0 %v1965_v5  ;;  %v3488_v11 = vpop.f32.mrf.mxu1  ;;  %v2200_v5 = vld [vmem:[%s5202_s2 + $0x40] sm:$0xff] }
 0x4be   : > { %v1974_v22 = vsel %vm921_vm10, %v3488_v11, -inf }
 0x4bf   : > { %1975 = vmax.xlane.f32.xlu1 %v1974_v22  ;;  %v1940_v43 = vpop.f32.mrf.mxu1  ;;  %v2198_v22 = vld [vmem:[%s5202_s2 + $0x30] sm:$0xff] }
 0x4c0   : > { %v1971_v63 = vsel %vm921_vm10, %v1940_v43, -inf }
 0x4c1   : > { %1972 = vmax.xlane.f32.xlu0 %v1971_v63  ;;  %v3491_v42 = vpop.f32.mrf.mxu1  ;;  %v2196_v63 = vld [vmem:[%s5202_s2 + $0x20] sm:$0xff] }
 0x4c2   : > { %v1980_v54 = vsel %vm921_vm10, %v3491_v42, -inf }
 0x4c3   : > { %1981 = vmax.xlane.f32.xlu1 %v1980_v54  ;;  %v1950_v14 = vpop.f32.mrf.mxu1 }
 0x4c4   : > { %v1977_v31 = vsel %vm921_vm10, %v1950_v14, -inf }
 0x4c5   : > { %1978 = vmax.xlane.f32.xlu0 %v1977_v31 }
 0x540   : > { %v1964_v56 = vpop.xlane.xlu1 %1963 }
 0x541   : > { %v1984_v46 = vsub.f32 %v3482_v51, %v1964_v56  ;;  %v2207_v51 = vld [vmem:[%s5202_s2 + $0x78] sm:$0xff] }
 0x542   : > { %v1961_v37 = vpop.xlane.xlu0 %1960  ;;  %3520 = vmatprep.subr.mxu0 %v2207_v51 }
 0x543   : > { %v1993_v3 = vmul.f32 1.442695, %v1984_v46  ;;  %v1983_v23 = vsub.f32 %v1920_v19, %v1961_v37  ;;  %3521 = vmatpush3.msra.mxu0 %v2207_v51  ;;  %v2205_v19 = vld [vmem:[%s5202_s2 + $0x68] sm:$0xff] }
 0x544   : > { %v1970_v27 = vpop.xlane.xlu1 %1969  ;;  %3522 = vmatprep.subr.mxu0 %v2206_v29 }
 0x545   : > { %3773 = vpow2.f32 %v1993_v3  ;;  %v1991_v55 = vmul.f32 1.442695, %v1983_v23  ;;  %v1986_v4 = vsub.f32 %v3485_v8, %v1970_v27  ;;  %3523 = vmatpush3.msra.mxu0 %v2206_v29  ;;  %v2203_v8 = vld [vmem:[%s5202_s2 + $0x58] sm:$0xff]  ;;  %v3854_v29 = vld [vmem:[%s3927_s29 + $0x8] sm:$0xff] }
 0x546   : > { %v1967_v40 = vpop.xlane.xlu0 %1966  ;;  %3524 = vmatprep.subr.mxu0 %v2205_v19 }
 0x547   : > { %3775 = vpow2.f32 %v1991_v55  ;;  %v1997_v33 = vmul.f32 1.442695, %v1986_v4  ;;  %v1985_v58 = vsub.f32 %v1930_v2, %v1967_v40  ;;  %3525 = vmatpush3.msra.mxu0 %v2205_v19  ;;  %v2201_v2 = vld [vmem:[%s5202_s2 + $0x48] sm:$0xff] }
 0x548   : > { %v1976_v15 = vpop.xlane.xlu1 %1975  ;;  %3526 = vmatprep.subr.mxu0 %v2204_v62 }
 0x549   : > { %3777 = vpow2.f32 %v1997_v33  ;;  %v1995_v7 = vmul.f32 1.442695, %v1985_v58  ;;  %v1988_v12 = vsub.f32 %v3488_v11, %v1976_v15  ;;  %3527 = vmatpush3.msra.mxu0 %v2204_v62  ;;  %v2199_v11 = vld [vmem:[%s5202_s2 + $0x38] sm:$0xff]  ;;  %v3855_v62 = vld [vmem:[%s3927_s29] sm:$0xff] }
 0x54a   : > { %v1973_v53 = vpop.xlane.xlu0 %1972  ;;  %3528 = vmatprep.subr.mxu0 %v2203_v8 }
 0x54b   : > { %3779 = vpow2.f32 %v1995_v7  ;;  %v2001_v38 = vmul.f32 1.442695, %v1988_v12  ;;  %v1987_v24 = vsub.f32 %v1940_v43, %v1973_v53  ;;  %3529 = vmatpush3.msra.mxu0 %v2203_v8  ;;  %v2197_v43 = vld [vmem:[%s5202_s2 + $0x28] sm:$0xff] }
 0x54c   : > { %v1982_v47 = vpop.xlane.xlu1 %1981  ;;  %3530 = vmatprep.subr.mxu0 %v2202_v35 }
 0x54d   : > { %3781 = vpow2.f32 %v2001_v38  ;;  %v1999_v34 = vmul.f32 1.442695, %v1987_v24  ;;  %v1990_v49 = vsub.f32 %v3491_v42, %v1982_v47  ;;  %3531 = vmatpush3.msra.mxu0 %v2202_v35  ;;  %v2195_v42 = vld [vmem:[%s5202_s2 + $0x18] sm:$0xff] }
 0x54e   : > { %v1979_v10 = vpop.xlane.xlu0 %1978  ;;  %3532 = vmatprep.subr.mxu0 %v2201_v2 }
 0x54f   : > { %3783 = vpow2.f32 %v1999_v34  ;;  %v2005_v0 = vmul.f32 1.442695, %v1990_v49  ;;  %v1989_v16 = vsub.f32 %v1950_v14, %v1979_v10  ;;  %3533 = vmatpush3.msra.mxu0 %v2201_v2 }
 0x550   : > { %3534 = vmatprep.subr.mxu0 %v2200_v5 }
 0x551   : > { %3785 = vpow2.f32 %v2005_v0  ;;  %v2003_v21 = vmul.f32 1.442695, %v1989_v16  ;;  %3535 = vmatpush3.msra.mxu0 %v2200_v5  ;;  %v2194_v0 = vld [vmem:[%s5202_s2 + $0x10] sm:$0xff]  ;;  %v2193_v16 = vld [vmem:[%s5202_s2 + $0x8] sm:$0xff] }
 0x552   : > { %v4881_v6 = vpop.eup %3773  ;;  %3536 = vmatprep.subr.mxu0 %v2199_v11 }
 0x553   : > { %3787 = vpow2.f32 %v2003_v21  ;;  %v2010_v30 = vsel %vm921_vm10, %v4881_v6, 0.0  ;;  %3537 = vmatpush3.msra.mxu0 %v2199_v11  ;;  %v2192_v21 = vld [vmem:[%s5202_s2] sm:$0xff] }
 0x554   : > { %v4885_v1 = vpop.eup %3775  ;;  %2011 = vadd.xlane.f32.xlu1 %v2010_v30  ;;  %3538 = vmatprep.subr.mxu0 %v2198_v22 }
 0x555   : > { %v2007_v39 = vsel %vm921_vm10, %v4885_v1, 0.0  ;;  %3539 = vmatpush3.msra.mxu0 %v2198_v22 }
 0x556   : > { %v4889_v32 = vpop.eup %3777  ;;  %2008 = vadd.xlane.f32.xlu0 %v2007_v39  ;;  %3540 = vmatprep.subr.mxu0 %v2197_v43 }
 0x557   : > { %v2016_v52 = vsel %vm921_vm10, %v4889_v32, 0.0  ;;  %3541 = vmatpush3.msra.mxu0 %v2197_v43 }
 0x558   : > { %v4893_v60 = vpop.eup %3779  ;;  %2017 = vadd.xlane.f32.xlu1 %v2016_v52  ;;  %3542 = vmatprep.subr.mxu0 %v2196_v63 }
 0x559   : > { %v2013_v36 = vsel %vm921_vm10, %v4893_v60, 0.0  ;;  %3543 = vmatpush3.msra.mxu0 %v2196_v63  ;;  %v3856_v63 = vld [vmem:[%s3927_s29 + $0x18] sm:$0xff] }
 0x55a   : > { %v4897_v50 = vpop.eup %3781  ;;  %2014 = vadd.xlane.f32.xlu0 %v2013_v36  ;;  %3544 = vmatprep.subr.mxu0 %v2195_v42 }
 0x55b   : > { %v2022_v18 = vsel %vm921_vm10, %v4897_v50, 0.0  ;;  %3545 = vmatpush3.msra.mxu0 %v2195_v42 }
 0x55c   : > { %v4901_v45 = vpop.eup %3783  ;;  %2023 = vadd.xlane.f32.xlu1 %v2022_v18  ;;  %3546 = vmatprep.subr.mxu0 %v2194_v0 }
 0x55d   : > { %v2019_v28 = vsel %vm921_vm10, %v4901_v45, 0.0  ;;  %3547 = vmatpush3.msra.mxu0 %v2194_v0 }
 0x55e   : > { %v4905_v26 = vpop.eup %3785  ;;  %2020 = vadd.xlane.f32.xlu0 %v2019_v28  ;;  %3548 = vmatprep.subr.mxu0 %v2193_v16 }
 0x55f   : > { %v2028_v57 = vsel %vm921_vm10, %v4905_v26, 0.0  ;;  %3549 = vmatpush3.msra.mxu0 %v2193_v16  ;;  %v2462_v16 = vld [vmem:[%s5203_s3 + $0x48] sm:$0xff] }
 0x560   : > { %v4909_v13 = vpop.eup %3787  ;;  %2029 = vadd.xlane.f32.xlu1 %v2028_v57  ;;  %3550 = vmatprep.subr.mxu0 %v2192_v21 }
 0x561   : > { %v2025_v48 = vsel %vm921_vm10, %v4909_v13, 0.0  ;;  %3551 = vmatpush3.msra.mxu0 %v2192_v21  ;;  %v3861_v21 = vld [vmem:[%s3927_s29 + $0x30] sm:$0xff] }
 0x562   : > { %2026 = vadd.xlane.f32.xlu0 %v2025_v48 }
 0x5dd   : > { %v2012_v54 = vpop.xlane.xlu1 %2011 }
 0x5de   : > { %3789 = vrcp.f32 %v2012_v54  ;;  %v3857_v54 = vld [vmem:[%s3927_s29 + $0x10] sm:$0xff] }
 0x5df   : > { %v2009_v14 = vpop.xlane.xlu0 %2008 }
 0x5e0   : > { %3791 = vrcp.f32 %v2009_v14 }
 0x5e1   : > { %v2018_v31 = vpop.xlane.xlu1 %2017 }
 0x5e2   : > { %3793 = vrcp.f32 %v2018_v31 }
 0x5e3   : > { %v2015_v56 = vpop.xlane.xlu0 %2014 }
 0x5e4   : > { %3795 = vrcp.f32 %v2015_v56 }
 0x5e5   : > { %v2024_v46 = vpop.xlane.xlu1 %2023 }
 0x5e6   : > { %3797 = vrcp.f32 %v2024_v46 }
 0x5e7   : > { %v2021_v37 = vpop.xlane.xlu0 %2020 }
 0x5e8   : > { %3799 = vrcp.f32 %v2021_v37  ;;  %v2468_v37 = vld [vmem:[%s5203_s3 + $0x78] sm:$0xff] }
 0x5e9   : > { %v2030_v3 = vpop.xlane.xlu1 %2029  ;;  %3564 = vmatprep.subr.mxu1 %v2468_v37 }
 0x5ea   : > { %3801 = vrcp.f32 %v2030_v3 }
 0x5eb   : > { %v2027_v23 = vpop.xlane.xlu0 %2026  ;;  %v3790_v27 = vpop.eup %3789 }
 0x5ec   : > { %3803 = vrcp.f32 %v2027_v23  ;;  %v2034_v40 = vmul.f32 %v3790_v27, %v4881_v6  ;;  %v2467_v27 = vld [vmem:[%s5203_s3 + $0x70] sm:$0xff] }
 0x5ed   : > { %v3792_v55 = vpop.eup %3791 }
 0x5ee   : > { %v2032_v4 = vmul.f32 %v3792_v55, %v4885_v1 }
 0x5ef   : > { %v3794_v33 = vpop.eup %3793 }
 0x5f0   : > { %3508 = vmatprep.mubr.msk.f32.mxu1 %vm921_vm10, %v2032_v4  ;;  %v2038_v7 = vmul.f32 %v3794_v33, %v4889_v32  ;;  %v3858_v4 = vld [vmem:[%s3927_s29 + $0x28] sm:$0xff] }
 0x5f1   : > { %v3796_v58 = vpop.eup %3795  ;;  %3509 = vmatmul.mubr.msk.f32.vlgmr.msra.gmra.mxu1 %vm921_vm10, %v2034_v40  ;;  %v2466_v33 = vld [vmem:[%s5203_s3 + $0x68] sm:$0xff] }
 0x5f2   : > { %v2036_v15 = vmul.f32 %v3796_v58, %v4893_v60  ;;  %3565 = vmatpush3.msra.mxu1 %v2468_v37  ;;  %v3859_v58 = vld [vmem:[%s3927_s29 + $0x20] sm:$0xff] }
 0x5f3   : > { %v3798_v12 = vpop.eup %3797  ;;  %3566 = vmatprep.subr.mxu1 %v2467_v27 }
 0x5f4   : > { %3511 = vmatprep.mubr.msk.f32.mxu1 %vm921_vm10, %v2036_v15  ;;  %v2042_v24 = vmul.f32 %v3798_v12, %v4897_v50  ;;  %3567 = vmatpush3.msra.mxu1 %v2467_v27 }
 0x5f5   : > { %v3800_v53 = vpop.eup %3799  ;;  %3512 = vmatmul.mubr.msk.f32.gmra.mxu1 %vm921_vm10, %v2038_v7  ;;  %3568 = vmatprep.subr.mxu1 %v2466_v33  ;;  %v2465_v7 = vld [vmem:[%s5203_s3 + $0x60] sm:$0xff] }
 0x5f6   : > { %v2040_v38 = vmul.f32 %v3800_v53, %v4901_v45  ;;  %3569 = vmatpush3.msra.mxu1 %v2466_v33 }
 0x5f7   : > { %v3802_v47 = vpop.eup %3801  ;;  %3570 = vmatprep.subr.mxu1 %v2465_v7 }
 0x5f8   : > { %3514 = vmatprep.mubr.msk.f32.mxu1 %vm921_vm10, %v2040_v38  ;;  %v2046_v10 = vmul.f32 %v3802_v47, %v4905_v26  ;;  %3571 = vmatpush3.msra.mxu1 %v2465_v7 }
 0x5f9   : > { %v3804_v34 = vpop.eup %3803  ;;  %3515 = vmatmul.mubr.msk.f32.gmra.mxu1 %vm921_vm10, %v2042_v24  ;;  %v2464_v24 = vld [vmem:[%s5203_s3 + $0x58] sm:$0xff] }
 0x5fa   : > { %v2044_v49 = vmul.f32 %v3804_v34, %v4909_v13  ;;  %3572 = vmatprep.subr.mxu1 %v2464_v24 }
 0x5fb   : > { %3573 = vmatpush3.msra.mxu1 %v2464_v24 }
 0x5fc   : > { %3517 = vmatprep.mubr.msk.f32.mxu1 %vm921_vm10, %v2044_v49  ;;  %v2463_v49 = vld [vmem:[%s5203_s3 + $0x50] sm:$0xff] }
 0x5fd   : > { %3518 = vmatmul.mubr.msk.f32.gmra.mxu1 %vm921_vm10, %v2046_v10  ;;  %v3860_v10 = vld [vmem:[%s3927_s29 + $0x38] sm:$0xff]  ;;  %3574 = vmatprep.subr.mxu1 %v2463_v49 }
 0x5fe   : > { %3575 = vmatpush3.msra.mxu1 %v2463_v49 }
 0x5ff   : > { %3576 = vmatprep.subr.mxu1 %v2462_v16 }
 0x600   : > { %3577 = vmatpush3.msra.mxu1 %v2462_v16 }
 0x6b1   : > { %v3510_v6 = vpop.f32.mrf.mxu1 }
 0x6b2   : > { %v2185_v39 = vadd.f32 %v3510_v6, %v4857_v59 }
 0x6b3   : > { %v2145_v30 = vpop.f32.mrf.mxu1 }
 0x6b4   : > { %v2184_v1 = vadd.f32 %v2145_v30, %v4859_v17  ;;  %v2461_v30 = vld [vmem:[%s5203_s3 + $0x40] sm:$0xff] }
 0x6b5   : > { %v3513_v32 = vpop.f32.mrf.mxu1  ;;  %3578 = vmatprep.subr.mxu1 %v2461_v30 }
 0x6b6   : > { %3552 = vmatprep.mubr.f32.mxu0 %v2184_v1  ;;  %v2187_v36 = vadd.f32 %v3513_v32, %v4861_v41  ;;  %v5246_v41 = vld [vmem:[#allocation2_spill] sm:$0xff]  ;;  %3579 = vmatpush3.msra.mxu1 %v2461_v30 }
 0x6b7   : > { %v2155_v52 = vpop.f32.mrf.mxu1  ;;  %3553 = vmatmul.mubr.f32.vlgmr.msra.gmra.mxu0 %v2185_v39  ;;  %v2210_v57 = vsub.s32 7, %v5246_v41  ;;  %v2460_v39 = vld [vmem:[%s5203_s3 + $0x38] sm:$0xff] }
 0x6b8   : > { %v2186_v60 = vadd.f32 %v2155_v52, %v4863_v61  ;;  %3580 = vmatprep.subr.mxu1 %v2460_v39  ;;  %v2459_v52 = vld [vmem:[%s5203_s3 + $0x30] sm:$0xff] }
 0x6b9   : > { %v3516_v50 = vpop.f32.mrf.mxu1  ;;  %3581 = vmatpush3.msra.mxu1 %v2460_v39 }
 0x6ba   : > { %3555 = vmatprep.mubr.f32.mxu0 %v2186_v60  ;;  %v2189_v28 = vadd.f32 %v3516_v50, %v4865_v9  ;;  %3582 = vmatprep.subr.mxu1 %v2459_v52  ;;  %v2458_v60 = vld [vmem:[%s5203_s3 + $0x28] sm:$0xff]  ;;  %v2456_v50 = vld [vmem:[%s5203_s3 + $0x18] sm:$0xff] }
 0x6bb   : > { %v2165_v18 = vpop.f32.mrf.mxu1  ;;  %3556 = vmatmul.mubr.f32.gmra.mxu0 %v2187_v36  ;;  %3583 = vmatpush3.msra.mxu1 %v2459_v52  ;;  %v2457_v36 = vld [vmem:[%s5203_s3 + $0x20] sm:$0xff] }
 0x6bc   : > { %v2188_v45 = vadd.f32 %v2165_v18, %v4867_v25  ;;  %v4989_v25 = vld [vmem:[%s5205_s5] sm:$0xff]  ;;  %3584 = vmatprep.subr.mxu1 %v2458_v60  ;;  %v2455_v18 = vld [vmem:[%s5203_s3 + $0x10] sm:$0xff] }
 0x6bd   : > { %v3519_v17 = vpop.f32.mrf.mxu1  ;;  %v2211_v9 = vrot.slane %v4989_v25, %v2210_v57  ;;  %3585 = vmatpush3.msra.mxu1 %v2458_v60 }
 0x6be   : > { %3558 = vmatprep.mubr.f32.mxu0 %v2188_v45  ;;  %v2191_v61 = vadd.f32 %v3519_v17, %v4869_v20  ;;  %3586 = vmatprep.subr.mxu1 %v2457_v36  ;;  %v2454_v45 = vld [vmem:[%s5203_s3 + $0x8] sm:$0xff] }
 0x6bf   : > { %v2175_v59 = vpop.f32.mrf.mxu1  ;;  %3559 = vmatmul.mubr.f32.gmra.mxu0 %v2189_v28  ;;  %3587 = vmatpush3.msra.mxu1 %v2457_v36  ;;  %v2453_v28 = vld [vmem:[%s5203_s3] sm:$0xff] }
 0x6c0   : > { %v2190_v26 = vadd.f32 %v2175_v59, %v4871_v44  ;;  %3588 = vmatprep.subr.mxu1 %v2456_v50 }
 0x6c1   : > { %3589 = vmatpush3.msra.mxu1 %v2456_v50 }
 0x6c2   : > { %3561 = vmatprep.mubr.f32.mxu0 %v2190_v26  ;;  %3590 = vmatprep.subr.mxu1 %v2455_v18 }
 0x6c3   : > { %3562 = vmatmul.mubr.f32.gmra.mxu0 %v2191_v61  ;;  %3591 = vmatpush3.msra.mxu1 %v2455_v18 }
 0x6c4   : > { %3592 = vmatprep.subr.mxu1 %v2454_v45 }
 0x6c5   : > { %3593 = vmatpush3.msra.mxu1 %v2454_v45 }
 0x6c6   : > { %3594 = vmatprep.subr.mxu1 %v2453_v28 }
 0x6c7   : > { %3595 = vmatpush3.msra.mxu1 %v2453_v28 }
 0x777   : > { %v3554_v13 = vpop.f32.mrf.mxu0 }
 0x778   : > { %v2284_v48 = vadd.f32 %v3554_v13, %v2211_v9 }
 0x779   : > { %v2278_v51 = vpop.f32.mrf.mxu0 }
 0x77a   : > { %v4993_v19 = vadd.f32 %v3854_v29, %v2284_v48  ;;  %v2279_v44 = vadd.f32 %v2278_v51, %v2211_v9 }
 0x77b   : > { %v3557_v20 = vpop.f32.mrf.mxu0 }
 0x77c   : > { %v4996_v8 = vadd.f32 %v3855_v62, %v2279_v44  ;;  %2327 = vadd.xlane.f32.xlu1 %v4993_v19  ;;  %v2294_v2 = vadd.f32 %v3557_v20, %v2211_v9  ;;  %v2350_v5 = vmul.f32 %v4993_v19, %v4993_v19 }
 0x77d   : > { %v2288_v35 = vpop.f32.mrf.mxu0 }
 0x77e   : > { %2325 = vadd.xlane.f32.xlu0 %v4996_v8  ;;  %v2289_v11 = vadd.f32 %v2288_v35, %v2211_v9  ;;  %v2349_v22 = vmul.f32 %v4996_v8, %v4996_v8  ;;  %v5005_v42 = vadd.f32 %v3856_v63, %v2294_v2 }
 0x77f   : > { %v3560_v43 = vpop.f32.mrf.mxu0 }
 0x780   : > { %2359 = vadd.xlane.f32.xlu1 %v2350_v5  ;;  %v5008_v14 = vadd.f32 %v3857_v54, %v2289_v11  ;;  %v2304_v56 = vadd.f32 %v3560_v43, %v2211_v9  ;;  %v2352_v46 = vmul.f32 %v5005_v42, %v5005_v42 }
 0x781   : > { %v2298_v31 = vpop.f32.mrf.mxu0 }
 0x782   : > { %2357 = vadd.xlane.f32.xlu0 %v2349_v22  ;;  %v2299_v3 = vadd.f32 %v2298_v31, %v2211_v9  ;;  %v2351_v23 = vmul.f32 %v5008_v14, %v5008_v14  ;;  %v5023_v40 = vadd.f32 %v3858_v4, %v2304_v56 }
 0x783   : > { %v3563_v55 = vpop.f32.mrf.mxu0 }
 0x784   : > { %2331 = vadd.xlane.f32.xlu1 %v5005_v42  ;;  %v5029_v15 = vadd.f32 %v3859_v58, %v2299_v3  ;;  %v2314_v53 = vadd.f32 %v3563_v55, %v2211_v9  ;;  %v2354_v38 = vmul.f32 %v5023_v40, %v5023_v40 }
 0x785   : > { %v2308_v12 = vpop.f32.mrf.mxu0 }
 0x786   : > { %2329 = vadd.xlane.f32.xlu0 %v5008_v14  ;;  %v2309_v47 = vadd.f32 %v2308_v12, %v2211_v9  ;;  %v2353_v34 = vmul.f32 %v5029_v15, %v5029_v15  ;;  %v5047_v0 = vadd.f32 %v3860_v10, %v2314_v53  ;;  %v2431_v12 = vsub.s32 2, %v5246_v41 }
 0x788   : > { %2363 = vadd.xlane.f32.xlu1 %v2352_v46  ;;  %v5053_v6 = vadd.f32 %v3861_v21, %v2309_v47  ;;  %v2356_v1 = vmul.f32 %v5047_v0, %v5047_v0  ;;  %v5107_v30 = vrot.slane %v4989_v25, %v2431_v12 }
 0x78a   : > { %2361 = vadd.xlane.f32.xlu0 %v2351_v23  ;;  %v2355_v32 = vmul.f32 %v5053_v6, %v5053_v6 }
 0x78c   : > { %2335 = vadd.xlane.f32.xlu1 %v5023_v40 }
 0x78e   : > { %2333 = vadd.xlane.f32.xlu0 %v5029_v15 }
 0x790   : > { %2367 = vadd.xlane.f32.xlu1 %v2354_v38 }
 0x792   : > { %2365 = vadd.xlane.f32.xlu0 %v2353_v34 }
 0x794   : > { %2339 = vadd.xlane.f32.xlu1 %v5047_v0 }
 0x796   : > { %2337 = vadd.xlane.f32.xlu0 %v5053_v6 }
 0x798   : > { %2371 = vadd.xlane.f32.xlu1 %v2356_v1  ;;  %v2443_v1 = vsub.s32 3, %v5246_v41 }
 0x79a   : > { %2369 = vadd.xlane.f32.xlu0 %v2355_v32 }
 0x805   : > { %v2328_v17 = vpop.xlane.xlu1 %2327 }
 0x806   : > { %v2342_v59 = vmul.f32 0.03125, %v2328_v17 }
 0x807   : > { %v2326_v26 = vpop.xlane.xlu0 %2325 }
 0x808   : > { %v2341_v61 = vmul.f32 0.03125, %v2326_v26  ;;  %v2382_v9 = vmul.f32 %v2342_v59, %v2342_v59  ;;  %v2414_v47 = vsub.f32 %v4993_v19, %v2342_v59  ;;  %v2444_v26 = vrot.slane %v4989_v25, %v2443_v1 }
 0x809   : > { %v2360_v57 = vpop.xlane.xlu1 %2359 }
 0x80a   : > { %v2374_v13 = vmul.f32 0.03125, %v2360_v57  ;;  %v2381_v51 = vmul.f32 %v2341_v61, %v2341_v61  ;;  %v2413_v50 = vsub.f32 %v4996_v8, %v2341_v61 }
 0x80b   : > { %v2358_v48 = vpop.xlane.xlu0 %2357 }
 0x80c   : > { %v2390_v29 = vsub.f32 %v2374_v13, %v2382_v9  ;;  %v2373_v44 = vmul.f32 0.03125, %v2358_v48 }
 0x80d   : > { %v2332_v20 = vpop.xlane.xlu1 %2331 }
 0x80e   : > { %v2398_v62 = vadd.f32 1e-05, %v2390_v29  ;;  %v2389_v35 = vsub.f32 %v2373_v44, %v2381_v51  ;;  %v5088_v2 = vmul.f32 0.03125, %v2332_v20 }
 0x80f   : > { %v2330_v5 = vpop.xlane.xlu0 %2329 }
 0x810   : > { %3805 = vrsqrt.f32 %v2398_v62  ;;  %v2397_v11 = vadd.f32 1e-05, %v2389_v35  ;;  %v5090_v22 = vmul.f32 0.03125, %v2330_v5  ;;  %v2384_v63 = vmul.f32 %v5088_v2, %v5088_v2 }
 0x811   : > { %v2364_v43 = vpop.xlane.xlu1 %2363  ;;  %v2416_v51 = vsub.f32 %v5005_v42, %v5088_v2 }
 0x812   : > { %3807 = vrsqrt.f32 %v2397_v11  ;;  %v2376_v54 = vmul.f32 0.03125, %v2364_v43  ;;  %v2383_v56 = vmul.f32 %v5090_v22, %v5090_v22  ;;  %v2415_v62 = vsub.f32 %v5008_v14, %v5090_v22 }
 0x813   : > { %v2362_v31 = vpop.xlane.xlu0 %2361 }
 0x814   : > { %v2392_v46 = vsub.f32 %v2376_v54, %v2384_v63  ;;  %v2375_v37 = vmul.f32 0.03125, %v2362_v31 }
 0x815   : > { %v2336_v3 = vpop.xlane.xlu1 %2335 }
 0x816   : > { %v2400_v23 = vadd.f32 1e-05, %v2392_v46  ;;  %v2391_v27 = vsub.f32 %v2375_v37, %v2383_v56  ;;  %v5096_v55 = vmul.f32 0.03125, %v2336_v3 }
 0x817   : > { %v2334_v4 = vpop.xlane.xlu0 %2333 }
 0x818   : > { %3809 = vrsqrt.f32 %v2400_v23  ;;  %v2399_v33 = vadd.f32 1e-05, %v2391_v27  ;;  %v5098_v58 = vmul.f32 0.03125, %v2334_v4  ;;  %v2386_v53 = vmul.f32 %v5096_v55, %v5096_v55 }
 0x819   : > { %v2368_v7 = vpop.xlane.xlu1 %2367  ;;  %v2418_v46 = vsub.f32 %v5023_v40, %v5096_v55 }
 0x81a   : > { %3811 = vrsqrt.f32 %v2399_v33  ;;  %v2378_v38 = vmul.f32 0.03125, %v2368_v7  ;;  %v2385_v34 = vmul.f32 %v5098_v58, %v5098_v58  ;;  %v2417_v23 = vsub.f32 %v5029_v15, %v5098_v58 }
 0x81b   : > { %v2366_v24 = vpop.xlane.xlu0 %2365 }
 0x81c   : > { %v2394_v49 = vsub.f32 %v2378_v38, %v2386_v53  ;;  %v2377_v10 = vmul.f32 0.03125, %v2366_v24 }
 0x81d   : > { %v3806_v16 = vpop.eup %3805  ;;  %v2340_v21 = vpop.xlane.xlu1 %2339 }
 0x81e   : > { %v2402_v39 = vadd.f32 1e-05, %v2394_v49  ;;  %v2393_v32 = vsub.f32 %v2377_v10, %v2385_v34  ;;  %v2348_v52 = vmul.f32 0.03125, %v2340_v21  ;;  %v2422_v60 = vmul.f32 %v3806_v16, %v2414_v47 }
 0x81f   : > { %v3808_v36 = vpop.eup %3807  ;;  %v2338_v18 = vpop.xlane.xlu0 %2337 }
 0x820   : > { %3813 = vrsqrt.f32 %v2402_v39  ;;  %v2401_v45 = vadd.f32 1e-05, %v2393_v32  ;;  %v2347_v28 = vmul.f32 0.03125, %v2338_v18  ;;  %v2421_v59 = vmul.f32 %v3808_v36, %v2413_v50  ;;  %v2652_v39 = vld [vmem:[%s5204_s4 + $0x78] sm:$0xff]  ;;  %v2651_v32 = vld [vmem:[%s5204_s4 + $0x70] sm:$0xff]  ;;  %v2646_v50 = vld [vmem:[%s5204_s4 + $0x48] sm:$0xff] }
 0x821   : > { %v2372_v17 = vpop.xlane.xlu1 %2371  ;;  %v2388_v57 = vmul.f32 %v2348_v52, %v2348_v52  ;;  %v2434_v41 = vmul.f32 %v5107_v30, %v2422_v60  ;;  %v2420_v53 = vsub.f32 %v5047_v0, %v2348_v52  ;;  %3608 = vmatprep.subr.mxu0 %v2652_v39  ;;  %v2649_v52 = vld [vmem:[%s5204_s4 + $0x60] sm:$0xff]  ;;  %v2648_v60 = vld [vmem:[%s5204_s4 + $0x58] sm:$0xff]  ;;  %v2647_v36 = vld [vmem:[%s5204_s4 + $0x50] sm:$0xff] }
 0x822   : > { %3815 = vrsqrt.f32 %v2401_v45  ;;  %v2380_v9 = vmul.f32 0.03125, %v2372_v17  ;;  %v2433_v48 = vmul.f32 %v5107_v30, %v2421_v59  ;;  %v2387_v61 = vmul.f32 %v2347_v28, %v2347_v28  ;;  %3609 = vmatpush3.msra.mxu0 %v2652_v39  ;;  %v2645_v18 = vld [vmem:[%s5204_s4 + $0x40] sm:$0xff]  ;;  %v2644_v45 = vld [vmem:[%s5204_s4 + $0x38] sm:$0xff]  ;;  %v2642_v17 = vld [vmem:[%s5204_s4 + $0x28] sm:$0xff] }
 0x823   : > { %v2370_v13 = vpop.xlane.xlu0 %2369  ;;  %v2446_v11 = vadd.f32 %v2444_v26, %v2434_v41  ;;  %v2419_v47 = vsub.f32 %v5053_v6, %v2347_v28  ;;  %3610 = vmatprep.subr.mxu0 %v2651_v32  ;;  %v2643_v28 = vld [vmem:[%s5204_s4 + $0x30] sm:$0xff]  ;;  %v2641_v59 = vld [vmem:[%s5204_s4 + $0x20] sm:$0xff] }
 0x824   : > { %v2396_v29 = vsub.f32 %v2380_v9, %v2388_v57  ;;  %v2379_v44 = vmul.f32 0.03125, %v2370_v13  ;;  %v2445_v35 = vadd.f32 %v2444_v26, %v2433_v48  ;;  %3611 = vmatpush3.msra.mxu0 %v2651_v32  ;;  %v2639_v57 = vld [vmem:[%s5204_s4 + $0x10] sm:$0xff]  ;;  %v2638_v9 = vld [vmem:[%s5204_s4 + $0x8] sm:$0xff]  ;;  %v2637_v41 = vld [vmem:[%s5204_s4] sm:$0xff] }
 0x825   : > { %v3810_v20 = vpop.eup %3809  ;;  %v2878_v13 = vld [vmem:[%s5206_s6] ss:$0 sm:$0xff] }
 0x826   : > { %v2404_v25 = vadd.f32 1e-05, %v2396_v29  ;;  %v2395_v5 = vsub.f32 %v2379_v44, %v2387_v61  ;;  %v2424_v43 = vmul.f32 %v3810_v20, %v2416_v51  ;;  %3596 = vmatprep.mubr.f32.mxu1 %v2445_v35 }
 0x827   : > { %v3812_v63 = vpop.eup %3811  ;;  %3597 = vmatmul.mubr.f32.vlgmr.msra.gmra.mxu1 %v2446_v11 }
 0x828   : > { %3817 = vrsqrt.f32 %v2404_v25  ;;  %v2403_v54 = vadd.f32 1e-05, %v2395_v5  ;;  %v2423_v31 = vmul.f32 %v3812_v63, %v2415_v62  ;;  %v2436_v2 = vmul.f32 %v5107_v30, %v2424_v43 }
 0x82a   : > { %3819 = vrsqrt.f32 %v2403_v54  ;;  %v2435_v56 = vmul.f32 %v5107_v30, %v2423_v31  ;;  %v2448_v3 = vadd.f32 %v2444_v26, %v2436_v2 }
 0x82c   : > { %v2447_v22 = vadd.f32 %v2444_v26, %v2435_v56 }
 0x82d   : > { %v3814_v37 = vpop.eup %3813 }
 0x82e   : > { %3599 = vmatprep.mubr.f32.mxu1 %v2447_v22  ;;  %v2426_v27 = vmul.f32 %v3814_v37, %v2418_v46 }
 0x82f   : > { %v3816_v4 = vpop.eup %3815  ;;  %3600 = vmatmul.mubr.f32.gmra.mxu1 %v2448_v3 }
 0x830   : > { %v2425_v33 = vmul.f32 %v3816_v4, %v2417_v23  ;;  %v2438_v7 = vmul.f32 %v5107_v30, %v2426_v27 }
 0x832   : > { %v2437_v12 = vmul.f32 %v5107_v30, %v2425_v33  ;;  %v2450_v55 = vadd.f32 %v2444_v26, %v2438_v7 }
 0x834   : > { %v2449_v38 = vadd.f32 %v2444_v26, %v2437_v12 }
 0x835   : > { %v3818_v24 = vpop.eup %3817 }
 0x836   : > { %3602 = vmatprep.mubr.f32.mxu1 %v2449_v38  ;;  %v2428_v34 = vmul.f32 %v3818_v24, %v2420_v53 }
 0x837   : > { %v3820_v49 = vpop.eup %3819  ;;  %3603 = vmatmul.mubr.f32.gmra.mxu1 %v2450_v55 }
 0x838   : > { %v2427_v58 = vmul.f32 %v3820_v49, %v2419_v47  ;;  %v2440_v10 = vmul.f32 %v5107_v30, %v2428_v34 }
 0x83a   : > { %v2439_v16 = vmul.f32 %v5107_v30, %v2427_v58  ;;  %v2452_v1 = vadd.f32 %v2444_v26, %v2440_v10  ;;  %v2650_v30 = vld [vmem:[%s5204_s4 + $0x68] sm:$0xff] }
 0x83b   : > { %3612 = vmatprep.subr.mxu0 %v2650_v30 }
 0x83c   : > { %v2451_v21 = vadd.f32 %v2444_v26, %v2439_v16  ;;  %3613 = vmatpush3.msra.mxu0 %v2650_v30  ;;  %v2640_v26 = vld [vmem:[%s5204_s4 + $0x18] sm:$0xff] }
 0x83d   : > { %3614 = vmatprep.subr.mxu0 %v2649_v52 }
 0x83e   : > { %3605 = vmatprep.mubr.f32.mxu1 %v2451_v21  ;;  %3615 = vmatpush3.msra.mxu0 %v2649_v52 }
 0x83f   : > { %3606 = vmatmul.mubr.f32.gmra.mxu1 %v2452_v1  ;;  %3616 = vmatprep.subr.mxu0 %v2648_v60 }
 0x840   : > { %3617 = vmatpush3.msra.mxu0 %v2648_v60 }
 0x841   : > { %3618 = vmatprep.subr.mxu0 %v2647_v36 }
 0x842   : > { %3619 = vmatpush3.msra.mxu0 %v2647_v36 }
 0x843   : > { %3620 = vmatprep.subr.mxu0 %v2646_v50 }
 0x844   : > { %3621 = vmatpush3.msra.mxu0 %v2646_v50 }
 0x845   : > { %3622 = vmatprep.subr.mxu0 %v2645_v18 }
 0x846   : > { %3623 = vmatpush3.msra.mxu0 %v2645_v18 }
 0x847   : > { %3624 = vmatprep.subr.mxu0 %v2644_v45 }
 0x848   : > { %3625 = vmatpush3.msra.mxu0 %v2644_v45 }
 0x849   : > { %3626 = vmatprep.subr.mxu0 %v2643_v28 }
 0x84a   : > { %3627 = vmatpush3.msra.mxu0 %v2643_v28 }
 0x84b   : > { %3628 = vmatprep.subr.mxu0 %v2642_v17 }
 0x84c   : > { %3629 = vmatpush3.msra.mxu0 %v2642_v17 }
 0x84d   : > { %3630 = vmatprep.subr.mxu0 %v2641_v59 }
 0x84e   : > { %3631 = vmatpush3.msra.mxu0 %v2641_v59 }
 0x84f   : > { %3632 = vmatprep.subr.mxu0 %v2640_v26 }
 0x850   : > { %3633 = vmatpush3.msra.mxu0 %v2640_v26 }
 0x851   : > { %3634 = vmatprep.subr.mxu0 %v2639_v57 }
 0x852   : > { %3635 = vmatpush3.msra.mxu0 %v2639_v57 }
 0x853   : > { %3636 = vmatprep.subr.mxu0 %v2638_v9 }
 0x854   : > { %3637 = vmatpush3.msra.mxu0 %v2638_v9 }
 0x855   : > { %3638 = vmatprep.subr.mxu0 %v2637_v41 }
 0x856   : > { %3639 = vmatpush3.msra.mxu0 %v2637_v41 }
 0x8e7   : > { %v3598_v48 = vpop.f32.mrf.mxu1 }
 0x8e8   : > { %v2548_v51 = vadd.f32 %v3598_v48, %v2878_v13  ;;  %v2887_v48 = vld [vmem:[%s5205_s5 + $0x8] ss:$0 sm:$0xff] }
 0x8e9   : > { %v2542_v61 = vpop.f32.mrf.mxu1 }
 0x8ea   : > { %v2880_v29 = vmul.f32 -1.442695, %v2548_v51  ;;  %v2543_v44 = vadd.f32 %v2878_v13, %v2542_v61 }
 0x8ec   : > { %3821 = vpow2.f32 %v2880_v29  ;;  %v2879_v20 = vmul.f32 -1.442695, %v2543_v44 }
 0x8ee   : > { %3823 = vpow2.f32 %v2879_v20 }
 0x8ef   : > { %v3601_v62 = vpop.f32.mrf.mxu1 }
 0x8f0   : > { %v2558_v35 = vadd.f32 %v3601_v62, %v2878_v13 }
 0x8f1   : > { %v2552_v25 = vpop.f32.mrf.mxu1 }
 0x8f2   : > { %v2882_v5 = vmul.f32 -1.442695, %v2558_v35  ;;  %v2553_v11 = vadd.f32 %v2878_v13, %v2552_v25 }
 0x8f4   : > { %3825 = vpow2.f32 %v2882_v5  ;;  %v2881_v43 = vmul.f32 -1.442695, %v2553_v11 }
 0x8f6   : > { %3827 = vpow2.f32 %v2881_v43 }
 0x8f7   : > { %v3604_v63 = vpop.f32.mrf.mxu1 }
 0x8f8   : > { %v2568_v54 = vadd.f32 %v3604_v63, %v2878_v13 }
 0x8f9   : > { %v2562_v31 = vpop.f32.mrf.mxu1  ;;  %v3822_v2 = vpop.eup %3821 }
 0x8fa   : > { %v2884_v56 = vmul.f32 -1.442695, %v2568_v54  ;;  %v2563_v46 = vadd.f32 %v2878_v13, %v2562_v31  ;;  %v2606_v22 = vadd.f32 1.0, %v3822_v2 }
 0x8fb   : > { %v3824_v37 = vpop.eup %3823 }
 0x8fc   : > { %3829 = vpow2.f32 %v2884_v56  ;;  %v2883_v3 = vmul.f32 -1.442695, %v2563_v46  ;;  %v2605_v23 = vadd.f32 1.0, %v3824_v37 }
 0x8fd   : > { %3831 = vrcp.f32 %v2606_v22 }
 0x8fe   : > { %3833 = vpow2.f32 %v2883_v3 }
 0x8ff   : > { %3835 = vrcp.f32 %v2605_v23  ;;  %v3607_v27 = vpop.f32.mrf.mxu1 }
 0x900   : > { %v2578_v4 = vadd.f32 %v3607_v27, %v2878_v13 }
 0x901   : > { %v3826_v33 = vpop.eup %3825  ;;  %v2572_v7 = vpop.f32.mrf.mxu1 }
 0x902   : > { %v2608_v12 = vadd.f32 1.0, %v3826_v33  ;;  %v2886_v53 = vmul.f32 -1.442695, %v2578_v4  ;;  %v2573_v38 = vadd.f32 %v2878_v13, %v2572_v7 }
 0x903   : > { %v3828_v24 = vpop.eup %3827 }
 0x904   : > { %3837 = vrcp.f32 %v2608_v12  ;;  %v2607_v55 = vadd.f32 1.0, %v3828_v24  ;;  %v2885_v47 = vmul.f32 -1.442695, %v2573_v38 }
 0x905   : > { %3839 = vpow2.f32 %v2886_v53 }
 0x906   : > { %3841 = vrcp.f32 %v2607_v55 }
 0x907   : > { %3843 = vpow2.f32 %v2885_v47 }
 0x909   : > { %v3830_v34 = vpop.eup %3829 }
 0x90a   : > { %v3832_v49 = vpop.eup %3831  ;;  %v2610_v58 = vadd.f32 1.0, %v3830_v34 }
 0x90b   : > { %v3834_v10 = vpop.eup %3833  ;;  %v2630_v39 = vmul.f32 %v3832_v49, %v2548_v51 }
 0x90c   : > { %v3836_v16 = vpop.eup %3835  ;;  %v2609_v21 = vadd.f32 1.0, %v3834_v10  ;;  %3845 = vrcp.f32 %v2610_v58 }
 0x90d   : > { %v2629_v1 = vmul.f32 %v3836_v16, %v2543_v44 }
 0x90e   : > { %3847 = vrcp.f32 %v2609_v21 }
 0x90f   : > { %3640 = vmatprep.mubr.f32.mxu0 %v2629_v1 }
 0x910   : > { %3641 = vmatmul.mubr.f32.vlgmr.msra.gmra.mxu0 %v2630_v39 }
 0x911   : > { %v3838_v32 = vpop.eup %3837 }
 0x912   : > { %v3840_v30 = vpop.eup %3839  ;;  %v2632_v18 = vmul.f32 %v3838_v32, %v2558_v35 }
 0x913   : > { %v3842_v52 = vpop.eup %3841  ;;  %v2612_v60 = vadd.f32 1.0, %v3840_v30 }
 0x914   : > { %v3844_v36 = vpop.eup %3843  ;;  %v2631_v50 = vmul.f32 %v3842_v52, %v2553_v11 }
 0x915   : > { %v2611_v45 = vadd.f32 1.0, %v3844_v36  ;;  %3849 = vrcp.f32 %v2612_v60 }
 0x916   : > { %3643 = vmatprep.mubr.f32.mxu0 %v2631_v50 }
 0x917   : > { %3851 = vrcp.f32 %v2611_v45  ;;  %3644 = vmatmul.mubr.f32.gmra.mxu0 %v2632_v18 }
 0x919   : > { %v3846_v28 = vpop.eup %3845 }
 0x91a   : > { %v2634_v26 = vmul.f32 %v3846_v28, %v2568_v54 }
 0x91b   : > { %v3848_v17 = vpop.eup %3847 }
 0x91c   : > { %v2633_v59 = vmul.f32 %v3848_v17, %v2563_v46 }
 0x91e   : > { %3646 = vmatprep.mubr.f32.mxu0 %v2633_v59 }
 0x91f   : > { %3647 = vmatmul.mubr.f32.gmra.mxu0 %v2634_v26 }
 0x922   : > { %v3850_v57 = vpop.eup %3849 }
 0x923   : > { %v2636_v13 = vmul.f32 %v3850_v57, %v2578_v4 }
 0x924   : > { %v3852_v9 = vpop.eup %3851 }
 0x925   : > { %v2635_v41 = vmul.f32 %v3852_v9, %v2573_v38 }
 0x927   : > { %3649 = vmatprep.mubr.f32.mxu0 %v2635_v41 }
 0x928   : > { %3650 = vmatmul.mubr.f32.gmra.mxu0 %v2636_v13 }
 0x9d0   : > { %v3642_v51 = vpop.f32.mrf.mxu0 }
 0x9d1   : > { %v2729_v61 = vadd.f32 %v3642_v51, %v2887_v48 }
 0x9d2   : > { %v2723_v29 = vpop.f32.mrf.mxu0 }
 0x9d3   : > { %v2763_v44 = vadd.f32 %v2729_v61, %v4993_v19  ;;  %v2724_v20 = vadd.f32 %v2887_v48, %v2723_v29 }
 0x9d5   : > { %2771 = vst [vmem:[%s278_s16 + $0x8] sm:$0xff] %v2763_v44  ;;  %v2762_v62 = vadd.f32 %v2724_v20, %v4996_v8 }
 0x9d7   : > { %2770 = vst [vmem:[%s278_s16] sm:$0xff] %v2762_v62  ;;  %v3645_v35 = vpop.f32.mrf.mxu0 }
 0x9d8   : > { %v2739_v25 = vadd.f32 %v3645_v35, %v2887_v48 }
 0x9d9   : > { %v2733_v5 = vpop.f32.mrf.mxu0 }
 0x9da   : > { %v2765_v11 = vadd.f32 %v2739_v25, %v5005_v42  ;;  %v2734_v43 = vadd.f32 %v2887_v48, %v2733_v5 }
 0x9dc   : > { %2773 = vst [vmem:[%s278_s16 + $0x18] sm:$0xff] %v2765_v11  ;;  %v2764_v63 = vadd.f32 %v2734_v43, %v5008_v14 }
 0x9de   : > { %2772 = vst [vmem:[%s278_s16 + $0x10] sm:$0xff] %v2764_v63 }
 0x9df   : > { %v3648_v54 = vpop.f32.mrf.mxu0 }
 0x9e0   : > { %v2749_v31 = vadd.f32 %v3648_v54, %v2887_v48 }
 0x9e1   : > { %v2743_v2 = vpop.f32.mrf.mxu0 }
 0x9e2   : > { %v2767_v19 = vadd.f32 %v2749_v31, %v5023_v40  ;;  %v2744_v56 = vadd.f32 %v2887_v48, %v2743_v2 }
 0x9e4   : > { %2775 = vst [vmem:[%s278_s16 + $0x28] sm:$0xff] %v2767_v19  ;;  %v2766_v8 = vadd.f32 %v2744_v56, %v5029_v15 }
 0x9e6   : > { %2774 = vst [vmem:[%s278_s16 + $0x20] sm:$0xff] %v2766_v8 }
 0x9e8   : > { %v3651_v46 = vpop.f32.mrf.mxu0 }
 0x9e9   : > { %v2759_v22 = vadd.f32 %v3651_v46, %v2887_v48 }
 0x9ea   : > { %v2753_v37 = vpop.f32.mrf.mxu0 }
 0x9eb   : > { %v2769_v42 = vadd.f32 %v2759_v22, %v5047_v0  ;;  %v2754_v3 = vadd.f32 %v2887_v48, %v2753_v37 }
 0x9ed   : > { %2777 = vst [vmem:[%s278_s16 + $0x38] sm:$0xff] %v2769_v42  ;;  %v2768_v14 = vadd.f32 %v2754_v3, %v5053_v6 }
 0x9ef   : > { %2776 = vst [vmem:[%s278_s16 + $0x30] sm:$0xff] %v2768_v14 }
 0x9f0 PF: > { %s17_s24 = sadd.s32 1, %s3868_s24  }
 0x9f1   : > { %p14_p4 = scmp.ge.s32.totalorder %s17_s24, 10  }
 0x9f3   :  { %16 = sbr.rel (!%p14_p4) target bundleno = 1 (0x1), region = 78 }

</bundles_post_ra>
